<compile_context>
chip_gen: v5e
topology: v5e:2x2
jax: 0.10.0
libtpu: 0.0.40
codegen_flags: <defaults>
</compile_context>

<pallas_src>
import math
import functools

import jax
import jax.numpy as jnp
from jax.experimental import pallas as pl
from jax.experimental.pallas import tpu as pltpu


_NEG_INF = -1e30                      # finite "minus infinity" (avoids inf-inf NaNs)
_VMEM_LIMIT = 48 * 1024 * 1024        # headroom below v7x's 64 MiB; raise on v5e/v6e


def _layer_norm(h, g, b, eps=1e-5):
    # biased variance + eps inside rsqrt, matching nn.LayerNorm defaults
    mu = jnp.mean(h, axis=-1, keepdims=True)
    var = jnp.mean((h - mu) ** 2, axis=-1, keepdims=True)
    return (h - mu) * jax.lax.rsqrt(var + eps) * g + b


def _matmul_nt(w, h):
    """(O, I) x (T, I) -> (O, T): contraction on both minor dims (MXU-native)."""
    return jax.lax.dot_general(w, h, (((1,), (1,)), ((), ())),
                               preferred_element_type=jnp.float32)


# --------------------------------------------------------------------------
# Kernel 1: LayerNorm1 + QKV projection, channel-major (lane-dense) outputs
# --------------------------------------------------------------------------
def ln_qkv_kernel(x_ref, ln1_g_ref, ln1_b_ref,
                  wq_ref, wk_ref, wv_ref, bq_ref, bk_ref, bv_ref,
                  qt_ref, kt_ref, vt_ref):
    x = x_ref[0].astype(jnp.float32)                       # (TQ, C)
    h = _layer_norm(x, ln1_g_ref[0], ln1_b_ref[0])         # (TQ, C) f32
    hb = h.astype(wq_ref.dtype)                            # bf16 for the MXU

    # (C, TQ) tiles: single lane-dense store each (lane dim = TQ), no per-head
    # slicing / narrow masked stores.  1/sqrt(D) is already folded into wq/bq.
    qt_ref[0] = (_matmul_nt(wq_ref[...], hb) + bq_ref[...]).astype(qt_ref.dtype)
    kt_ref[0] = (_matmul_nt(wk_ref[...], hb) + bk_ref[...]).astype(kt_ref.dtype)
    vt_ref[0] = (_matmul_nt(wv_ref[...], hb) + bv_ref[...]).astype(vt_ref.dtype)


# --------------------------------------------------------------------------
# Kernel 2: causal flash attention + output proj + residual + LN2 + MLP
# --------------------------------------------------------------------------
def attn_mlp_kernel(qi_of_ref, ki_of_ref,                  # scalar-prefetch tables
                    x_ref, q_ref, k_ref, v_ref,
                    ln2_g_ref, ln2_b_ref,
                    w_aproj_ref, b_aproj_ref,
                    w_fc_ref, b_fc_ref,
                    w_mproj_ref, b_mproj_ref,
                    o_ref,
                    q_sc, m_sc, l_sc, acc_sc,
                    *, n_head):
    t = pl.program_id(1)
    qi = qi_of_ref[t]                  # query-tile index of this triangular step
    ki = ki_of_ref[t]                  # kv-tile index   (ki <= qi by construction)

    @pl.when(ki == 0)
    def _():
        m_sc[...] = jnp.full_like(m_sc, _NEG_INF)
        l_sc[...] = jnp.zeros_like(l_sc)
        acc_sc[...] = jnp.zeros_like(acc_sc)
        # Re-lay Q head-major (TQ, D) once per query row tile; K/V stay D-major
        # so the attention matmuls below need no per-step transposes.
        for hi in range(n_head):
            q_sc[hi] = q_ref[0, hi].astype(jnp.float32).T.astype(q_sc.dtype)

    k = k_ref[0]                       # (H, D, TK) bf16
    v = v_ref[0]                       # (H, D, TK) bf16

    # (H, TQ, D) x (H, D, TK) -> (H, TQ, TK): MXU-native NN batched matmul.
    s = jnp.einsum('hqd,hdk->hqk', q_sc[...], k,
                   preferred_element_type=jnp.float32)

    def accumulate(s_val):
        m_prev = m_sc[...]
        m_new = jnp.maximum(m_prev, jnp.max(s_val, axis=-1, keepdims=True))
        alpha = jnp.exp(m_prev - m_new)
        p = jnp.exp(s_val - m_new)
        l_sc[...] = alpha * l_sc[...] + jnp.sum(p, axis=-1, keepdims=True)
        # (H, TQ, TK) x (H, D, TK) -> (H, TQ, D): NT batched matmul (flash pattern).
        acc_sc[...] = alpha * acc_sc[...] + jnp.einsum(
            'hqk,hdk->hqd', p.astype(v.dtype), v,
            preferred_element_type=jnp.float32)
        m_sc[...] = m_new

    # Strictly-below-diagonal tiles: fully visible, no mask work at all.
    @pl.when(ki < qi)
    def _():
        accumulate(s)

    # Diagonal tile: causal mask + epilogue (this is the last step of the row).
    @pl.when(ki == qi)
    def _():
        tq, tk = s.shape[1], s.shape[2]
        rows = jax.lax.broadcasted_iota(jnp.int32, (1, tq, tk), 1)
        cols = jax.lax.broadcasted_iota(jnp.int32, (1, tq, tk), 2)
        accumulate(jnp.where(rows >= cols, s, _NEG_INF))

        # ----- attention output projection + residual 1 + LN2 + MLP -----
        x = x_ref[0].astype(jnp.float32)                              # (TQ, C)
        out_h = acc_sc[...] * pl.reciprocal(l_sc[...], approx=True)   # (H, TQ, D)
        d = out_h.shape[-1]
        c_out = w_aproj_ref.shape[1]

        # Head combine folded into the output projection: per-head MXU matmuls
        # accumulated in f32 -- no lane-level concatenate.
        attn = jnp.zeros((tq, c_out), jnp.float32)
        for hi in range(n_head):
            attn = attn + jnp.dot(out_h[hi].astype(w_aproj_ref.dtype),
                                  w_aproj_ref[hi * d:(hi + 1) * d, :],
                                  preferred_element_type=jnp.float32)
        attn = attn + b_aproj_ref[0]
        x1 = x + attn                                                 # residual 1

        h2 = _layer_norm(x1, ln2_g_ref[0], ln2_b_ref[0])
        ff = jnp.dot(h2.astype(w_fc_ref.dtype), w_fc_ref[...],
                     preferred_element_type=jnp.float32) + b_fc_ref[0]      # (TQ, 4C)
        # exact (erf-based) GELU, matching torch.nn.GELU() default
        ff = 0.5 * ff * (1.0 + jax.lax.erf(ff * (1.0 / math.sqrt(2.0))))
        ff = jnp.dot(ff.astype(w_mproj_ref.dtype), w_mproj_ref[...],
                     preferred_element_type=jnp.float32) + b_mproj_ref[0]   # (TQ, C)
        o_ref[0] = (x1 + ff).astype(o_ref.dtype)                      # residual 2


# --------------------------------------------------------------------------
# Wrapper
# --------------------------------------------------------------------------
def _pick_q_tile(T):
    # Lane dim of the channel-major q/k/v tiles is TQ -> keep it a multiple of
    # 128 (or the full sequence).  256 is a good default on v7x (64 MiB VMEM);
    # 512 pays off on v5e/v6e's 128 MiB by halving K/V HBM re-reads.
    for cand in (256, 128):
        if T % cand == 0:
            return cand
    return T


def _const_spec(shape, single_buffer):
    """BlockSpec for a constant-index (weight/bias) operand."""
    index_map = lambda *_: (0,) * len(shape)
    if single_buffer:
        # Fetched exactly once -> single-buffering halves resident weight VMEM.
        return pl.BlockSpec(shape, index_map, pipeline_mode=pl.Buffered(1))
    return pl.BlockSpec(shape, index_map)


def _block_forward(x, params, n_head, q_tile, single_buffer_weights):
    B, T, C = x.shape
    H = n_head
    assert C % H == 0
    D = C // H
    if q_tile is None:
        q_tile = _pick_q_tile(T)
    TQ = q_tile
    assert T % TQ == 0, "sequence length must be divisible by the query tile"
    nq = T // TQ

    f32, bf16 = jnp.float32, jnp.bfloat16
    scale = 1.0 / math.sqrt(D)

    # --- host-side parameter prep (params are PyTorch (out, in) orientation) ---
    w_attn = params["w_attn"]                      # (3C, C)
    b_attn = params["b_attn"]                      # (3C,)
    wq = (w_attn[:C] * scale).astype(bf16)         # 1/sqrt(D) folded into Q proj
    wk = w_attn[C:2 * C].astype(bf16)
    wv = w_attn[2 * C:].astype(bf16)
    bq = (b_attn[:C] * scale).astype(f32).reshape(C, 1)
    bk = b_attn[C:2 * C].astype(f32).reshape(C, 1)
    bv = b_attn[2 * C:].astype(f32).reshape(C, 1)
    ln1_g = params["ln1_g"].astype(f32).reshape(1, C)
    ln1_b = params["ln1_b"].astype(f32).reshape(1, C)
    ln2_g = params["ln2_g"].astype(f32).reshape(1, C)
    ln2_b = params["ln2_b"].astype(f32).reshape(1, C)
    w_aproj = params["w_aproj"].T.astype(bf16)     # (C, C)  (in, out)
    b_aproj = params["b_aproj"].astype(f32).reshape(1, C)
    w_fc = params["w_fc"].T.astype(bf16)           # (C, 4C)
    b_fc = params["b_fc"].astype(f32).reshape(1, 4 * C)
    w_mproj = params["w_mproj"].T.astype(bf16)     # (4C, C)
    b_mproj = params["b_mproj"].astype(f32).reshape(1, C)

    cspec = functools.partial(_const_spec, single_buffer=single_buffer_weights)

    # ---------------- kernel 1: LN1 + QKV (channel-major) ----------------
    ce_qkv = pl.CostEstimate(
        flops=2 * B * T * C * 3 * C,
        transcendentals=0,
        bytes_accessed=B * T * C * 4 + 3 * C * C * 2 + 3 * B * T * C * 2)

    q_t, k_t, v_t = pl.pallas_call(
        ln_qkv_kernel,
        out_shape=(jax.ShapeDtypeStruct((B, C, T), bf16),) * 3,
        grid_spec=pltpu.PrefetchScalarGridSpec(
            num_scalar_prefetch=0,
            grid=(B, nq),
            in_specs=[
                pl.BlockSpec((1, TQ, C), lambda b, i: (b, i, 0)),   # x row tile
                cspec((1, C)), cspec((1, C)),                       # ln1 gamma/beta
                cspec((C, C)), cspec((C, C)), cspec((C, C)),        # Wq, Wk, Wv
                cspec((C, 1)), cspec((C, 1)), cspec((C, 1)),        # bq, bk, bv
            ],
            out_specs=(pl.BlockSpec((1, C, TQ), lambda b, i: (b, 0, i)),) * 3),
        compiler_params=pltpu.CompilerParams(
            dimension_semantics=("parallel", "parallel"),
            vmem_limit_bytes=_VMEM_LIMIT),
        cost_estimate=ce_qkv,
    )(x, ln1_g, ln1_b, wq, wk, wv, bq, bk, bv)

    # Free (bit-preserving) reshapes: (B, C, T) -> head-major D-first (B, H, D, T)
    q_h = q_t.reshape(B, H, D, T)
    k_h = k_t.reshape(B, H, D, T)
    v_h = v_t.reshape(B, H, D, T)

    # Lower-triangular (causal) step enumeration: only visible (qi, ki) tiles.
    tri = [(qi, ki) for qi in range(nq) for ki in range(qi + 1)]
    qi_of = jnp.asarray([p[0] for p in tri], jnp.int32)
    ki_of = jnp.asarray([p[1] for p in tri], jnp.int32)
    n_tri = len(tri)

    # -------- kernel 2: causal attention + proj + residual + MLP --------
    ce_blk = pl.CostEstimate(
        flops=2 * B * T * T * C            # causal q@k^T + p@v (~half of dense)
              + 2 * B * T * C * C          # attention output projection
              + 16 * B * T * C * C,        # MLP (C -> 4C -> C)
        transcendentals=B * H * T * T // 2 + B * T * 4 * C,
        bytes_accessed=(2 * B * T * C * 4
                        + 3 * B * T * C * 2 * (nq + 1) // 2   # K/V re-reads
                        + 10 * C * C * 2))

    x_map = lambda b, t, qi, ki: (b, qi[t], 0)
    q_map = lambda b, t, qi, ki: (b, 0, 0, qi[t])
    kv_map = lambda b, t, qi, ki: (b, 0, 0, ki[t])

    out = pl.pallas_call(
        functools.partial(attn_mlp_kernel, n_head=H),
        out_shape=jax.ShapeDtypeStruct((B, T, C), x.dtype),
        grid_spec=pltpu.PrefetchScalarGridSpec(
            num_scalar_prefetch=2,
            grid=(B, n_tri),
            in_specs=[
                pl.BlockSpec((1, TQ, C), x_map),                 # residual input
                pl.BlockSpec((1, H, D, TQ), q_map),              # Q  (D-major)
                pl.BlockSpec((1, H, D, TQ), kv_map),             # K  (D-major)
                pl.BlockSpec((1, H, D, TQ), kv_map),             # V  (D-major)
                cspec((1, C)), cspec((1, C)),                    # ln2
                cspec((C, C)), cspec((1, C)),                    # attn out proj
                cspec((C, 4 * C)), cspec((1, 4 * C)),            # mlp fc
                cspec((4 * C, C)), cspec((1, C)),                # mlp proj
            ],
            out_specs=pl.BlockSpec((1, TQ, C), x_map),
            scratch_shapes=[
                pltpu.VMEM((H, TQ, D), bf16),          # Q, head-major (per row tile)
                pltpu.VMEM((H, TQ, 1), jnp.float32),   # running max
                pltpu.VMEM((H, TQ, 1), jnp.float32),   # running denominator
                pltpu.VMEM((H, TQ, D), jnp.float32),   # running numerator
            ]),
        compiler_params=pltpu.CompilerParams(
            dimension_semantics=("parallel", "arbitrary"),
            vmem_limit_bytes=_VMEM_LIMIT),
        cost_estimate=ce_blk,
    )(qi_of, ki_of, x, q_h, k_h, v_h, ln2_g, ln2_b,
      w_aproj, b_aproj, w_fc, b_fc, w_mproj, b_mproj)
    return out


def block_forward(x, params, n_head, q_tile=None):
    """x: (B, T, C) float32.  params: PyTorch-orientation weights (see make_params)."""
    try:
        # Preferred path: constant-index weights single-buffered (pl.Buffered(1)).
        return jax.block_until_ready(
            _block_forward(x, params, n_head, q_tile, single_buffer_weights=True))
    except Exception:
        # pl.Buffered(1) not supported by this jax version -> default buffering.
        return _block_forward(x, params, n_head, q_tile, single_buffer_weights=False)


# --------------------------------------------------------------------------
# Parameters + pure-JAX reference
# --------------------------------------------------------------------------
def make_params(key, n_embd):
    """Deterministic synthetic parameters in PyTorch nn.Linear (out, in) layout."""
    C = n_embd
    ks = jax.random.split(key, 12)
    std = 0.02
    n = lambda k, shape: std * jax.random.normal(k, shape, jnp.float32)
    return {
        "ln1_g": 1.0 + 0.1 * jax.random.normal(ks[0], (C,), jnp.float32),
        "ln1_b": 0.1 * jax.random.normal(ks[1], (C,), jnp.float32),
        "w_attn": n(ks[2], (3 * C, C)),
        "b_attn": n(ks[3], (3 * C,)),
        "w_aproj": n(ks[4], (C, C)),
        "b_aproj": n(ks[5], (C,)),
        "ln2_g": 1.0 + 0.1 * jax.random.normal(ks[6], (C,), jnp.float32),
        "ln2_b": 0.1 * jax.random.normal(ks[7], (C,), jnp.float32),
        "w_fc": n(ks[8], (4 * C, C)),
        "b_fc": n(ks[9], (4 * C,)),
        "w_mproj": n(ks[10], (C, 4 * C)),
        "b_mproj": n(ks[11], (C,)),
    }


def block_reference(x, params, n_head):
    """Plain-JAX (f32) reference mirroring the PyTorch forward exactly."""
    B, T, C = x.shape
    D = C // n_head
    eps = 1e-5

    def ln(h, g, b):
        mu = jnp.mean(h, axis=-1, keepdims=True)
        var = jnp.mean((h - mu) ** 2, axis=-1, keepdims=True)
        return (h - mu) / jnp.sqrt(var + eps) * g + b

    h1 = ln(x, params["ln1_g"], params["ln1_b"])
    qkv = h1 @ params["w_attn"].T + params["b_attn"]
    q, k, v = jnp.split(qkv, 3, axis=-1)
    q = q.reshape(B, T, n_head, D).transpose(0, 2, 1, 3)
    k = k.reshape(B, T, n_head, D).transpose(0, 2, 1, 3)
    v = v.reshape(B, T, n_head, D).transpose(0, 2, 1, 3)
    att = jnp.einsum("bhtd,bhsd->bhts", q, k) / math.sqrt(D)
    mask = jnp.tril(jnp.ones((T, T), bool))
    att = jnp.where(mask[None, None], att, -jnp.inf)
    att = jax.nn.softmax(att, axis=-1)
    out = jnp.einsum("bhts,bhsd->bhtd", att, v)
    out = out.transpose(0, 2, 1, 3).reshape(B, T, C)
    x = x + out @ params["w_aproj"].T + params["b_aproj"]

    h2 = ln(x, params["ln2_g"], params["ln2_b"])
    ff = h2 @ params["w_fc"].T + params["b_fc"]
    ff = 0.5 * ff * (1.0 + jax.lax.erf(ff / math.sqrt(2.0)))
    x = x + ff @ params["w_mproj"].T + params["b_mproj"]
    return x


if __name__ == "__main__":
    key = jax.random.PRNGKey(0)
    k_x, k_p = jax.random.split(key)

    # Small, tile-friendly config: D = C // n_head = 128 keeps every lane dim
    # full-width on the hardware (8, 128) tiles.
    B, T, C, n_head = 2, 256, 256, 2
    x = jax.random.normal(k_x, (B, T, C), jnp.float32)
    params = make_params(k_p, C)

    # q_tile=128 -> nq=2 query tiles, 3 lower-triangular KV steps per batch
    # element: exercises the unmasked below-diagonal path, the masked diagonal
    # path and multi-step online-softmax accumulation.
    out = block_forward(x, params, n_head, q_tile=128)
    out = jax.block_until_ready(out)

    ref = block_reference(x, params, n_head)
    assert out.shape == (B, T, C)
    err = float(jnp.max(jnp.abs(out - ref)))
    # bf16 matmuls vs f32 reference -> loosened tolerance (f32 LN/softmax kept)
    assert jnp.allclose(out, ref, rtol=2e-2, atol=2e-2), f"max abs err {err}"

    print("KERNEL_OK")
</pallas_src>

<mosaic_0001>
module attributes {stable_mosaic.version = 11 : i64} {
  func.func @ln_qkv_kernel(%arg0: i32, %arg1: i32, %arg2: memref<1x128x256xf32, #tpu.memory_space<vmem>>, %arg3: memref<1x256xf32, #tpu.memory_space<vmem>>, %arg4: memref<1x256xf32, #tpu.memory_space<vmem>>, %arg5: memref<256x256xbf16, #tpu.memory_space<vmem>>, %arg6: memref<256x256xbf16, #tpu.memory_space<vmem>>, %arg7: memref<256x256xbf16, #tpu.memory_space<vmem>>, %arg8: memref<256x1xf32, #tpu.memory_space<vmem>>, %arg9: memref<256x1xf32, #tpu.memory_space<vmem>>, %arg10: memref<256x1xf32, #tpu.memory_space<vmem>>, %arg11: memref<1x256x128xbf16, #tpu.memory_space<vmem>>, %arg12: memref<1x256x128xbf16, #tpu.memory_space<vmem>>, %arg13: memref<1x256x128xbf16, #tpu.memory_space<vmem>>) attributes {dimension_semantics = [#tpu.dimension_semantics<parallel>, #tpu.dimension_semantics<parallel>], iteration_bounds = array<i64: 2, 2>, scalar_prefetch = 0 : i64, scratch_operands = 0 : i64, tpu.core_type = #tpu.core_type<tc>, window_params = [{transform_indices = @transform_0, window_bounds = array<i64: 1, 128, 256>}, {pipeline_mode = #tpu.pipeline_mode<synchronous>, transform_indices = @transform_1, window_bounds = array<i64: 1, 256>}, {pipeline_mode = #tpu.pipeline_mode<synchronous>, transform_indices = @transform_2, window_bounds = array<i64: 1, 256>}, {pipeline_mode = #tpu.pipeline_mode<synchronous>, transform_indices = @transform_3, window_bounds = array<i64: 256, 256>}, {pipeline_mode = #tpu.pipeline_mode<synchronous>, transform_indices = @transform_4, window_bounds = array<i64: 256, 256>}, {pipeline_mode = #tpu.pipeline_mode<synchronous>, transform_indices = @transform_5, window_bounds = array<i64: 256, 256>}, {pipeline_mode = #tpu.pipeline_mode<synchronous>, transform_indices = @transform_6, window_bounds = array<i64: 256, 1>}, {pipeline_mode = #tpu.pipeline_mode<synchronous>, transform_indices = @transform_7, window_bounds = array<i64: 256, 1>}, {pipeline_mode = #tpu.pipeline_mode<synchronous>, transform_indices = @transform_8, window_bounds = array<i64: 256, 1>}, {transform_indices = @transform_9, window_bounds = array<i64: 1, 256, 128>}, {transform_indices = @transform_10, window_bounds = array<i64: 1, 256, 128>}, {transform_indices = @transform_11, window_bounds = array<i64: 1, 256, 128>}]} {
    %c0 = arith.constant 0 : index
    %c0_0 = arith.constant 0 : index
    %c0_1 = arith.constant 0 : index
    %0 = vector.load %arg2[%c0, %c0_0, %c0_1] : memref<1x128x256xf32, #tpu.memory_space<vmem>>, vector<1x128x256xf32>
    %1 = vector.shape_cast %0 : vector<1x128x256xf32> to vector<128x256xf32>
    %c0_2 = arith.constant 0 : index
    %c0_3 = arith.constant 0 : index
    %2 = vector.load %arg3[%c0_2, %c0_3] : memref<1x256xf32, #tpu.memory_space<vmem>>, vector<1x256xf32>
    %3 = vector.shape_cast %2 : vector<1x256xf32> to vector<256xf32>
    %c0_4 = arith.constant 0 : index
    %c0_5 = arith.constant 0 : index
    %4 = vector.load %arg4[%c0_4, %c0_5] : memref<1x256xf32, #tpu.memory_space<vmem>>, vector<1x256xf32>
    %5 = vector.shape_cast %4 : vector<1x256xf32> to vector<256xf32>
    %cst = arith.constant dense<0.000000e+00> : vector<128xf32>
    %6 = vector.multi_reduction <add>, %1, %cst [1] : vector<128x256xf32> to vector<128xf32>
    %7 = vector.shape_cast %6 : vector<128xf32> to vector<128x1xf32>
    %cst_6 = arith.constant 2.560000e+02 : f32
    %8 = vector.broadcast %cst_6 : f32 to vector<128x1xf32>
    %9 = arith.divf %7, %8 : vector<128x1xf32>
    %10 = vector.broadcast %9 : vector<128x1xf32> to vector<128x256xf32>
    %11 = arith.subf %1, %10 : vector<128x256xf32>
    %12 = arith.mulf %11, %11 : vector<128x256xf32>
    %cst_7 = arith.constant dense<0.000000e+00> : vector<128xf32>
    %13 = vector.multi_reduction <add>, %12, %cst_7 [1] : vector<128x256xf32> to vector<128xf32>
    %14 = vector.shape_cast %13 : vector<128xf32> to vector<128x1xf32>
    %cst_8 = arith.constant 2.560000e+02 : f32
    %15 = vector.broadcast %cst_8 : f32 to vector<128x1xf32>
    %16 = arith.divf %14, %15 : vector<128x1xf32>
    %17 = vector.broadcast %9 : vector<128x1xf32> to vector<128x256xf32>
    %18 = arith.subf %1, %17 : vector<128x256xf32>
    %cst_9 = arith.constant 9.99999974E-6 : f32
    %19 = vector.broadcast %cst_9 : f32 to vector<128x1xf32>
    %20 = arith.addf %16, %19 : vector<128x1xf32>
    %21 = math.rsqrt %20 : vector<128x1xf32>
    %22 = vector.broadcast %21 : vector<128x1xf32> to vector<128x256xf32>
    %23 = arith.mulf %18, %22 : vector<128x256xf32>
    %24 = vector.shape_cast %3 : vector<256xf32> to vector<1x256xf32>
    %25 = vector.broadcast %24 : vector<1x256xf32> to vector<128x256xf32>
    %26 = arith.mulf %23, %25 : vector<128x256xf32>
    %27 = vector.shape_cast %5 : vector<256xf32> to vector<1x256xf32>
    %28 = vector.broadcast %27 : vector<1x256xf32> to vector<128x256xf32>
    %29 = arith.addf %26, %28 : vector<128x256xf32>
    %30 = arith.truncf %29 : vector<128x256xf32> to vector<128x256xbf16>
    %c0_10 = arith.constant 0 : index
    %c0_11 = arith.constant 0 : index
    %31 = vector.load %arg5[%c0_10, %c0_11] : memref<256x256xbf16, #tpu.memory_space<vmem>>, vector<256x256xbf16>
    %cst_12 = arith.constant dense<0.000000e+00> : vector<256x128xf32>
    %32 = tpu.matmul %31, %30, %cst_12 {dimension_numbers = #tpu.dot_dimension_numbers<[1], [1], [0], [0], [0, 0, 1, 0], [], []>} : vector<256x256xbf16>, vector<128x256xbf16>, vector<256x128xf32> -> vector<256x128xf32>
    %c0_13 = arith.constant 0 : index
    %c0_14 = arith.constant 0 : index
    %33 = vector.load %arg8[%c0_13, %c0_14] : memref<256x1xf32, #tpu.memory_space<vmem>>, vector<256x1xf32>
    %34 = vector.broadcast %33 : vector<256x1xf32> to vector<256x128xf32>
    %35 = arith.addf %32, %34 : vector<256x128xf32>
    %36 = arith.truncf %35 : vector<256x128xf32> to vector<256x128xbf16>
    %c0_15 = arith.constant 0 : index
    %c0_16 = arith.constant 0 : index
    %c0_17 = arith.constant 0 : index
    %37 = vector.load %arg11[%c0_15, %c0_16, %c0_17] : memref<1x256x128xbf16, #tpu.memory_space<vmem>>, vector<1x256x128xbf16>
    %38 = vector.shape_cast %37 : vector<1x256x128xbf16> to vector<256x128xbf16>
    %39 = vector.shape_cast %36 : vector<256x128xbf16> to vector<1x256x128xbf16>
    tpu.vector_store %arg11[%c0_15, %c0_16, %c0_17], %39 {strides = array<i32>} : memref<1x256x128xbf16, #tpu.memory_space<vmem>>, vector<1x256x128xbf16>,
    %c0_18 = arith.constant 0 : index
    %c0_19 = arith.constant 0 : index
    %40 = vector.load %arg6[%c0_18, %c0_19] : memref<256x256xbf16, #tpu.memory_space<vmem>>, vector<256x256xbf16>
    %cst_20 = arith.constant dense<0.000000e+00> : vector<256x128xf32>
    %41 = tpu.matmul %40, %30, %cst_20 {dimension_numbers = #tpu.dot_dimension_numbers<[1], [1], [0], [0], [0, 0, 1, 0], [], []>} : vector<256x256xbf16>, vector<128x256xbf16>, vector<256x128xf32> -> vector<256x128xf32>
    %c0_21 = arith.constant 0 : index
    %c0_22 = arith.constant 0 : index
    %42 = vector.load %arg9[%c0_21, %c0_22] : memref<256x1xf32, #tpu.memory_space<vmem>>, vector<256x1xf32>
    %43 = vector.broadcast %42 : vector<256x1xf32> to vector<256x128xf32>
    %44 = arith.addf %41, %43 : vector<256x128xf32>
    %45 = arith.truncf %44 : vector<256x128xf32> to vector<256x128xbf16>
    %c0_23 = arith.constant 0 : index
    %c0_24 = arith.constant 0 : index
    %c0_25 = arith.constant 0 : index
    %46 = vector.load %arg12[%c0_23, %c0_24, %c0_25] : memref<1x256x128xbf16, #tpu.memory_space<vmem>>, vector<1x256x128xbf16>
    %47 = vector.shape_cast %46 : vector<1x256x128xbf16> to vector<256x128xbf16>
    %48 = vector.shape_cast %45 : vector<256x128xbf16> to vector<1x256x128xbf16>
    tpu.vector_store %arg12[%c0_23, %c0_24, %c0_25], %48 {strides = array<i32>} : memref<1x256x128xbf16, #tpu.memory_space<vmem>>, vector<1x256x128xbf16>,
    %c0_26 = arith.constant 0 : index
    %c0_27 = arith.constant 0 : index
    %49 = vector.load %arg7[%c0_26, %c0_27] : memref<256x256xbf16, #tpu.memory_space<vmem>>, vector<256x256xbf16>
    %cst_28 = arith.constant dense<0.000000e+00> : vector<256x128xf32>
    %50 = tpu.matmul %49, %30, %cst_28 {dimension_numbers = #tpu.dot_dimension_numbers<[1], [1], [0], [0], [0, 0, 1, 0], [], []>} : vector<256x256xbf16>, vector<128x256xbf16>, vector<256x128xf32> -> vector<256x128xf32>
    %c0_29 = arith.constant 0 : index
    %c0_30 = arith.constant 0 : index
    %51 = vector.load %arg10[%c0_29, %c0_30] : memref<256x1xf32, #tpu.memory_space<vmem>>, vector<256x1xf32>
    %52 = vector.broadcast %51 : vector<256x1xf32> to vector<256x128xf32>
    %53 = arith.addf %50, %52 : vector<256x128xf32>
    %54 = arith.truncf %53 : vector<256x128xf32> to vector<256x128xbf16>
    %c0_31 = arith.constant 0 : index
    %c0_32 = arith.constant 0 : index
    %c0_33 = arith.constant 0 : index
    %55 = vector.load %arg13[%c0_31, %c0_32, %c0_33] : memref<1x256x128xbf16, #tpu.memory_space<vmem>>, vector<1x256x128xbf16>
    %56 = vector.shape_cast %55 : vector<1x256x128xbf16> to vector<256x128xbf16>
    %57 = vector.shape_cast %54 : vector<256x128xbf16> to vector<1x256x128xbf16>
    tpu.vector_store %arg13[%c0_31, %c0_32, %c0_33], %57 {strides = array<i32>} : memref<1x256x128xbf16, #tpu.memory_space<vmem>>, vector<1x256x128xbf16>,
    return
  }
  func.func @transform_0(%arg0: i32, %arg1: i32) -> (i32, i32, i32) {
    %c0_i32 = arith.constant 0 : i32
    %c0_i32_0 = arith.constant 0 : i32
    return %arg0, %arg1, %c0_i32 : i32, i32, i32
  }
  func.func @transform_1(%arg0: i32, %arg1: i32) -> (i32, i32) {
    %c0_i32 = arith.constant 0 : i32
    %c0_i32_0 = arith.constant 0 : i32
    %c0_i32_1 = arith.constant 0 : i32
    return %c0_i32, %c0_i32_0 : i32, i32
  }
  func.func @transform_2(%arg0: i32, %arg1: i32) -> (i32, i32) {
    %c0_i32 = arith.constant 0 : i32
    %c0_i32_0 = arith.constant 0 : i32
    %c0_i32_1 = arith.constant 0 : i32
    return %c0_i32, %c0_i32_0 : i32, i32
  }
  func.func @transform_3(%arg0: i32, %arg1: i32) -> (i32, i32) {
    %c0_i32 = arith.constant 0 : i32
    %c0_i32_0 = arith.constant 0 : i32
    %c0_i32_1 = arith.constant 0 : i32
    return %c0_i32, %c0_i32_0 : i32, i32
  }
  func.func @transform_4(%arg0: i32, %arg1: i32) -> (i32, i32) {
    %c0_i32 = arith.constant 0 : i32
    %c0_i32_0 = arith.constant 0 : i32
    %c0_i32_1 = arith.constant 0 : i32
    return %c0_i32, %c0_i32_0 : i32, i32
  }
  func.func @transform_5(%arg0: i32, %arg1: i32) -> (i32, i32) {
    %c0_i32 = arith.constant 0 : i32
    %c0_i32_0 = arith.constant 0 : i32
    %c0_i32_1 = arith.constant 0 : i32
    return %c0_i32, %c0_i32_0 : i32, i32
  }
  func.func @transform_6(%arg0: i32, %arg1: i32) -> (i32, i32) {
    %c0_i32 = arith.constant 0 : i32
    %c0_i32_0 = arith.constant 0 : i32
    %c0_i32_1 = arith.constant 0 : i32
    return %c0_i32, %c0_i32_0 : i32, i32
  }
  func.func @transform_7(%arg0: i32, %arg1: i32) -> (i32, i32) {
    %c0_i32 = arith.constant 0 : i32
    %c0_i32_0 = arith.constant 0 : i32
    %c0_i32_1 = arith.constant 0 : i32
    return %c0_i32, %c0_i32_0 : i32, i32
  }
  func.func @transform_8(%arg0: i32, %arg1: i32) -> (i32, i32) {
    %c0_i32 = arith.constant 0 : i32
    %c0_i32_0 = arith.constant 0 : i32
    %c0_i32_1 = arith.constant 0 : i32
    return %c0_i32, %c0_i32_0 : i32, i32
  }
  func.func @transform_9(%arg0: i32, %arg1: i32) -> (i32, i32, i32) {
    %c0_i32 = arith.constant 0 : i32
    %c0_i32_0 = arith.constant 0 : i32
    return %arg0, %c0_i32, %arg1 : i32, i32, i32
  }
  func.func @transform_10(%arg0: i32, %arg1: i32) -> (i32, i32, i32) {
    %c0_i32 = arith.constant 0 : i32
    %c0_i32_0 = arith.constant 0 : i32
    return %arg0, %c0_i32, %arg1 : i32, i32, i32
  }
  func.func @transform_11(%arg0: i32, %arg1: i32) -> (i32, i32, i32) {
    %c0_i32 = arith.constant 0 : i32
    %c0_i32_0 = arith.constant 0 : i32
    return %arg0, %c0_i32, %arg1 : i32, i32, i32
  }
}

module attributes {stable_mosaic.version = 11 : i64} {
  func.func @ln_qkv_kernel(%arg0: i32, %arg1: i32, %arg2: memref<1x128x256xf32, #tpu.memory_space<vmem>>, %arg3: memref<1x256xf32, #tpu.memory_space<vmem>>, %arg4: memref<1x256xf32, #tpu.memory_space<vmem>>, %arg5: memref<256x256xbf16, #tpu.memory_space<vmem>>, %arg6: memref<256x256xbf16, #tpu.memory_space<vmem>>, %arg7: memref<256x256xbf16, #tpu.memory_space<vmem>>, %arg8: memref<256x1xf32, #tpu.memory_space<vmem>>, %arg9: memref<256x1xf32, #tpu.memory_space<vmem>>, %arg10: memref<256x1xf32, #tpu.memory_space<vmem>>, %arg11: memref<1x256x128xbf16, #tpu.memory_space<vmem>>, %arg12: memref<1x256x128xbf16, #tpu.memory_space<vmem>>, %arg13: memref<1x256x128xbf16, #tpu.memory_space<vmem>>) attributes {dimension_semantics = [#tpu.dimension_semantics<parallel>, #tpu.dimension_semantics<parallel>], iteration_bounds = array<i64: 2, 2>, scalar_prefetch = 0 : i64, scratch_operands = 0 : i64, tpu.core_type = #tpu.core_type<tc>, window_params = [{transform_indices = @transform_0, window_bounds = array<i64: 1, 128, 256>}, {pipeline_mode = #tpu.pipeline_mode<synchronous>, transform_indices = @transform_1, window_bounds = array<i64: 1, 256>}, {pipeline_mode = #tpu.pipeline_mode<synchronous>, transform_indices = @transform_2, window_bounds = array<i64: 1, 256>}, {pipeline_mode = #tpu.pipeline_mode<synchronous>, transform_indices = @transform_3, window_bounds = array<i64: 256, 256>}, {pipeline_mode = #tpu.pipeline_mode<synchronous>, transform_indices = @transform_4, window_bounds = array<i64: 256, 256>}, {pipeline_mode = #tpu.pipeline_mode<synchronous>, transform_indices = @transform_5, window_bounds = array<i64: 256, 256>}, {pipeline_mode = #tpu.pipeline_mode<synchronous>, transform_indices = @transform_6, window_bounds = array<i64: 256, 1>}, {pipeline_mode = #tpu.pipeline_mode<synchronous>, transform_indices = @transform_7, window_bounds = array<i64: 256, 1>}, {pipeline_mode = #tpu.pipeline_mode<synchronous>, transform_indices = @transform_8, window_bounds = array<i64: 256, 1>}, {transform_indices = @transform_9, window_bounds = array<i64: 1, 256, 128>}, {transform_indices = @transform_10, window_bounds = array<i64: 1, 256, 128>}, {transform_indices = @transform_11, window_bounds = array<i64: 1, 256, 128>}]} {
    %c0 = arith.constant 0 : index
    %c0_0 = arith.constant 0 : index
    %c0_1 = arith.constant 0 : index
    %0 = vector.load %arg2[%c0, %c0_0, %c0_1] : memref<1x128x256xf32, #tpu.memory_space<vmem>>, vector<1x128x256xf32>
    %1 = vector.shape_cast %0 : vector<1x128x256xf32> to vector<128x256xf32>
    %c0_2 = arith.constant 0 : index
    %c0_3 = arith.constant 0 : index
    %2 = vector.load %arg3[%c0_2, %c0_3] : memref<1x256xf32, #tpu.memory_space<vmem>>, vector<1x256xf32>
    %3 = vector.shape_cast %2 : vector<1x256xf32> to vector<256xf32>
    %c0_4 = arith.constant 0 : index
    %c0_5 = arith.constant 0 : index
    %4 = vector.load %arg4[%c0_4, %c0_5] : memref<1x256xf32, #tpu.memory_space<vmem>>, vector<1x256xf32>
    %5 = vector.shape_cast %4 : vector<1x256xf32> to vector<256xf32>
    %cst = arith.constant dense<0.000000e+00> : vector<128xf32>
    %6 = vector.multi_reduction <add>, %1, %cst [1] : vector<128x256xf32> to vector<128xf32>
    %7 = vector.shape_cast %6 : vector<128xf32> to vector<128x1xf32>
    %cst_6 = arith.constant 2.560000e+02 : f32
    %8 = vector.broadcast %cst_6 : f32 to vector<128x1xf32>
    %9 = arith.divf %7, %8 : vector<128x1xf32>
    %10 = vector.broadcast %9 : vector<128x1xf32> to vector<128x256xf32>
    %11 = arith.subf %1, %10 : vector<128x256xf32>
    %12 = arith.mulf %11, %11 : vector<128x256xf32>
    %cst_7 = arith.constant dense<0.000000e+00> : vector<128xf32>
    %13 = vector.multi_reduction <add>, %12, %cst_7 [1] : vector<128x256xf32> to vector<128xf32>
    %14 = vector.shape_cast %13 : vector<128xf32> to vector<128x1xf32>
    %cst_8 = arith.constant 2.560000e+02 : f32
    %15 = vector.broadcast %cst_8 : f32 to vector<128x1xf32>
    %16 = arith.divf %14, %15 : vector<128x1xf32>
    %17 = vector.broadcast %9 : vector<128x1xf32> to vector<128x256xf32>
    %18 = arith.subf %1, %17 : vector<128x256xf32>
    %cst_9 = arith.constant 9.99999974E-6 : f32
    %19 = vector.broadcast %cst_9 : f32 to vector<128x1xf32>
    %20 = arith.addf %16, %19 : vector<128x1xf32>
    %21 = math.rsqrt %20 : vector<128x1xf32>
    %22 = vector.broadcast %21 : vector<128x1xf32> to vector<128x256xf32>
    %23 = arith.mulf %18, %22 : vector<128x256xf32>
    %24 = vector.shape_cast %3 : vector<256xf32> to vector<1x256xf32>
    %25 = vector.broadcast %24 : vector<1x256xf32> to vector<128x256xf32>
    %26 = arith.mulf %23, %25 : vector<128x256xf32>
    %27 = vector.shape_cast %5 : vector<256xf32> to vector<1x256xf32>
    %28 = vector.broadcast %27 : vector<1x256xf32> to vector<128x256xf32>
    %29 = arith.addf %26, %28 : vector<128x256xf32>
    %30 = arith.truncf %29 : vector<128x256xf32> to vector<128x256xbf16>
    %c0_10 = arith.constant 0 : index
    %c0_11 = arith.constant 0 : index
    %31 = vector.load %arg5[%c0_10, %c0_11] : memref<256x256xbf16, #tpu.memory_space<vmem>>, vector<256x256xbf16>
    %cst_12 = arith.constant dense<0.000000e+00> : vector<256x128xf32>
    %32 = tpu.matmul %31, %30, %cst_12 {dimension_numbers = #tpu.dot_dimension_numbers<[1], [1], [0], [0], [0, 0, 1, 0], [], []>} : vector<256x256xbf16>, vector<128x256xbf16>, vector<256x128xf32> -> vector<256x128xf32>
    %c0_13 = arith.constant 0 : index
    %c0_14 = arith.constant 0 : index
    %33 = vector.load %arg8[%c0_13, %c0_14] : memref<256x1xf32, #tpu.memory_space<vmem>>, vector<256x1xf32>
    %34 = vector.broadcast %33 : vector<256x1xf32> to vector<256x128xf32>
    %35 = arith.addf %32, %34 : vector<256x128xf32>
    %36 = arith.truncf %35 : vector<256x128xf32> to vector<256x128xbf16>
    %c0_15 = arith.constant 0 : index
    %c0_16 = arith.constant 0 : index
    %c0_17 = arith.constant 0 : index
    %37 = vector.load %arg11[%c0_15, %c0_16, %c0_17] : memref<1x256x128xbf16, #tpu.memory_space<vmem>>, vector<1x256x128xbf16>
    %38 = vector.shape_cast %37 : vector<1x256x128xbf16> to vector<256x128xbf16>
    %39 = vector.shape_cast %36 : vector<256x128xbf16> to vector<1x256x128xbf16>
    tpu.vector_store %arg11[%c0_15, %c0_16, %c0_17], %39 {strides = array<i32>} : memref<1x256x128xbf16, #tpu.memory_space<vmem>>, vector<1x256x128xbf16>,
    %c0_18 = arith.constant 0 : index
    %c0_19 = arith.constant 0 : index
    %40 = vector.load %arg6[%c0_18, %c0_19] : memref<256x256xbf16, #tpu.memory_space<vmem>>, vector<256x256xbf16>
    %cst_20 = arith.constant dense<0.000000e+00> : vector<256x128xf32>
    %41 = tpu.matmul %40, %30, %cst_20 {dimension_numbers = #tpu.dot_dimension_numbers<[1], [1], [0], [0], [0, 0, 1, 0], [], []>} : vector<256x256xbf16>, vector<128x256xbf16>, vector<256x128xf32> -> vector<256x128xf32>
    %c0_21 = arith.constant 0 : index
    %c0_22 = arith.constant 0 : index
    %42 = vector.load %arg9[%c0_21, %c0_22] : memref<256x1xf32, #tpu.memory_space<vmem>>, vector<256x1xf32>
    %43 = vector.broadcast %42 : vector<256x1xf32> to vector<256x128xf32>
    %44 = arith.addf %41, %43 : vector<256x128xf32>
    %45 = arith.truncf %44 : vector<256x128xf32> to vector<256x128xbf16>
    %c0_23 = arith.constant 0 : index
    %c0_24 = arith.constant 0 : index
    %c0_25 = arith.constant 0 : index
    %46 = vector.load %arg12[%c0_23, %c0_24, %c0_25] : memref<1x256x128xbf16, #tpu.memory_space<vmem>>, vector<1x256x128xbf16>
    %47 = vector.shape_cast %46 : vector<1x256x128xbf16> to vector<256x128xbf16>
    %48 = vector.shape_cast %45 : vector<256x128xbf16> to vector<1x256x128xbf16>
    tpu.vector_store %arg12[%c0_23, %c0_24, %c0_25], %48 {strides = array<i32>} : memref<1x256x128xbf16, #tpu.memory_space<vmem>>, vector<1x256x128xbf16>,
    %c0_26 = arith.constant 0 : index
    %c0_27 = arith.constant 0 : index
    %49 = vector.load %arg7[%c0_26, %c0_27] : memref<256x256xbf16, #tpu.memory_space<vmem>>, vector<256x256xbf16>
    %cst_28 = arith.constant dense<0.000000e+00> : vector<256x128xf32>
    %50 = tpu.matmul %49, %30, %cst_28 {dimension_numbers = #tpu.dot_dimension_numbers<[1], [1], [0], [0], [0, 0, 1, 0], [], []>} : vector<256x256xbf16>, vector<128x256xbf16>, vector<256x128xf32> -> vector<256x128xf32>
    %c0_29 = arith.constant 0 : index
    %c0_30 = arith.constant 0 : index
    %51 = vector.load %arg10[%c0_29, %c0_30] : memref<256x1xf32, #tpu.memory_space<vmem>>, vector<256x1xf32>
    %52 = vector.broadcast %51 : vector<256x1xf32> to vector<256x128xf32>
    %53 = arith.addf %50, %52 : vector<256x128xf32>
    %54 = arith.truncf %53 : vector<256x128xf32> to vector<256x128xbf16>
    %c0_31 = arith.constant 0 : index
    %c0_32 = arith.constant 0 : index
    %c0_33 = arith.constant 0 : index
    %55 = vector.load %arg13[%c0_31, %c0_32, %c0_33] : memref<1x256x128xbf16, #tpu.memory_space<vmem>>, vector<1x256x128xbf16>
    %56 = vector.shape_cast %55 : vector<1x256x128xbf16> to vector<256x128xbf16>
    %57 = vector.shape_cast %54 : vector<256x128xbf16> to vector<1x256x128xbf16>
    tpu.vector_store %arg13[%c0_31, %c0_32, %c0_33], %57 {strides = array<i32>} : memref<1x256x128xbf16, #tpu.memory_space<vmem>>, vector<1x256x128xbf16>,
    return
  }
  func.func @transform_0(%arg0: i32, %arg1: i32) -> (i32, i32, i32) {
    %c0_i32 = arith.constant 0 : i32
    %c0_i32_0 = arith.constant 0 : i32
    return %arg0, %arg1, %c0_i32 : i32, i32, i32
  }
  func.func @transform_1(%arg0: i32, %arg1: i32) -> (i32, i32) {
    %c0_i32 = arith.constant 0 : i32
    %c0_i32_0 = arith.constant 0 : i32
    %c0_i32_1 = arith.constant 0 : i32
    return %c0_i32, %c0_i32_0 : i32, i32
  }
  func.func @transform_2(%arg0: i32, %arg1: i32) -> (i32, i32) {
    %c0_i32 = arith.constant 0 : i32
    %c0_i32_0 = arith.constant 0 : i32
    %c0_i32_1 = arith.constant 0 : i32
    return %c0_i32, %c0_i32_0 : i32, i32
  }
  func.func @transform_3(%arg0: i32, %arg1: i32) -> (i32, i32) {
    %c0_i32 = arith.constant 0 : i32
    %c0_i32_0 = arith.constant 0 : i32
    %c0_i32_1 = arith.constant 0 : i32
    return %c0_i32, %c0_i32_0 : i32, i32
  }
  func.func @transform_4(%arg0: i32, %arg1: i32) -> (i32, i32) {
    %c0_i32 = arith.constant 0 : i32
    %c0_i32_0 = arith.constant 0 : i32
    %c0_i32_1 = arith.constant 0 : i32
    return %c0_i32, %c0_i32_0 : i32, i32
  }
  func.func @transform_5(%arg0: i32, %arg1: i32) -> (i32, i32) {
    %c0_i32 = arith.constant 0 : i32
    %c0_i32_0 = arith.constant 0 : i32
    %c0_i32_1 = arith.constant 0 : i32
    return %c0_i32, %c0_i32_0 : i32, i32
  }
  func.func @transform_6(%arg0: i32, %arg1: i32) -> (i32, i32) {
    %c0_i32 = arith.constant 0 : i32
    %c0_i32_0 = arith.constant 0 : i32
    %c0_i32_1 = arith.constant 0 : i32
    return %c0_i32, %c0_i32_0 : i32, i32
  }
  func.func @transform_7(%arg0: i32, %arg1: i32) -> (i32, i32) {
    %c0_i32 = arith.constant 0 : i32
    %c0_i32_0 = arith.constant 0 : i32
    %c0_i32_1 = arith.constant 0 : i32
    return %c0_i32, %c0_i32_0 : i32, i32
  }
  func.func @transform_8(%arg0: i32, %arg1: i32) -> (i32, i32) {
    %c0_i32 = arith.constant 0 : i32
    %c0_i32_0 = arith.constant 0 : i32
    %c0_i32_1 = arith.constant 0 : i32
    return %c0_i32, %c0_i32_0 : i32, i32
  }
  func.func @transform_9(%arg0: i32, %arg1: i32) -> (i32, i32, i32) {
    %c0_i32 = arith.constant 0 : i32
    %c0_i32_0 = arith.constant 0 : i32
    return %arg0, %c0_i32, %arg1 : i32, i32, i32
  }
  func.func @transform_10(%arg0: i32, %arg1: i32) -> (i32, i32, i32) {
    %c0_i32 = arith.constant 0 : i32
    %c0_i32_0 = arith.constant 0 : i32
    return %arg0, %c0_i32, %arg1 : i32, i32, i32
  }
  func.func @transform_11(%arg0: i32, %arg1: i32) -> (i32, i32, i32) {
    %c0_i32 = arith.constant 0 : i32
    %c0_i32_0 = arith.constant 0 : i32
    return %arg0, %c0_i32, %arg1 : i32, i32, i32
  }
}

</mosaic_0001>

<bundles_post_ra>
// kernel: tpu_custom_call.1
= control target key start
LH: loop header
LB: loop body
LE: loop exit
PB: predicated region body
PF: predicated region fallthrough
CT: control target
= control target key end

     0   :  { %s6314_s0 = inlined_call_operand.hbm [shape: f32[2,256,256], index: 0, kind: input, shape index: {}]   ;;  %s6315_s1 = inlined_call_operand.vmem [shape: f32[1,256], index: 1, kind: input, shape index: {}]   ;;  %s6316_s2 = inlined_call_operand.vmem [shape: f32[1,256], index: 2, kind: input, shape index: {}]   ;;  %s6317_s3 = inlined_call_operand.vmem [shape: bf16[256,256], index: 3, kind: input, shape index: {}]   ;;  %s6318_s4 = inlined_call_operand.vmem [shape: bf16[256,256], index: 4, kind: input, shape index: {}]   ;;  %s6319_s5 = inlined_call_operand.vmem [shape: bf16[256,256], index: 5, kind: input, shape index: {}]   ;;  %s6320_s6 = inlined_call_operand.vmem [shape: f32[256,1], index: 6, kind: input, shape index: {}]   ;;  %s6321_s7 = inlined_call_operand.vmem [shape: f32[256,1], index: 7, kind: input, shape index: {}]   ;;  %s6322_s8 = inlined_call_operand.vmem [shape: f32[256,1], index: 8, kind: input, shape index: {}]   ;;  %s6323_s9 = inlined_call_operand.hbm [shape: bf16[2,256,256], index: 9, kind: output, shape index: {0}]   ;;  %s6324_s10 = inlined_call_operand.hbm [shape: bf16[2,256,256], index: 10, kind: output, shape index: {1}]   ;;  %s6325_s11 = inlined_call_operand.hbm [shape: bf16[2,256,256], index: 11, kind: output, shape index: {2}]  }
   0x1   :  { %6351 = sst [smem:[#allocation27_spill]] %s6314_s0 }
   0x2   :  { %6352 = sst [smem:[#allocation28_spill]] %s6315_s1 }
   0x3   :  { %6353 = sst [smem:[#allocation29_spill]] %s6323_s9 }
   0x4   :  { %6354 = sst [smem:[#allocation30_spill]] %s6324_s10 }
   0x5   :  { %6355 = sst [smem:[#allocation31_spill]] %s6325_s11 }
   0x6   :  { %17 = vsyncpa [#allocation3], 0 }
   0x7   :  { %19 = vsyncpa [#allocation3 + $0x1], 0 }
   0x8   :  { %20 = vsyncpa [#allocation4], 0 }
   0x9   :  { %22 = vsyncpa [#allocation4 + $0x1], 0 }
   0xa   :  { %23 = vsyncpa [#allocation7], 0 }
   0xb   :  { %25 = vsyncpa [#allocation7 + $0x1], 0  ;;  %s4273_s17 = smov 0   ;;  %s4275_s18 = smov 0  }
   0xc   :  { %s4277_s19 = smov 0   ;;  %s4279_s20 = smov 0  }
   0xd   :  { %s4281_s21 = smov 0   ;;  %s4283_s22 = smov 0  }
   0xe   :  { %s4285_s23 = smov 0   ;;  %s4287_s24 = smov 0  }
   0xf LB: > { %6356 = sst [smem:[#allocation12_spill]] %s4176_s17  ;;  %s4314_s25 = sadd.s32 4294967295, %s4204_s24   ;;  %s4204_s24 = sphi %s4287_s24, %s31_s24   ;;  %s4200_s23 = sphi %s4285_s23, %s6408_s23   ;;  %s4196_s22 = sphi %s4283_s22, %s6407_s22   ;;  %s4192_s21 = sphi %s4281_s21, %s6406_s21   ;;  %s4188_s20 = sphi %s4279_s20, %s6405_s20   ;;  %s4184_s19 = sphi %s4277_s19, %s6400_s19   ;;  %s4180_s18 = sphi %s4275_s18, %s6404_s18   ;;  %s4176_s17 = sphi %s4273_s17, %s6403_s17  }
  0x10   : > { %6357 = sst [smem:[#allocation13_spill]] %s4184_s19  ;;  %s6335_s26 = sadd.s32 4294967294, %s4204_s24  }
  0x11   : > { %6358 = sst [smem:[#allocation14_spill]] %s4188_s20  ;;  %s40_s27 = sadd.s32 1, %s4196_s22 }
  0x12   : > { %6359 = sst [smem:[#allocation15_spill]] %s4314_s25  ;;  %s43_s28 = sadd.s32 1, %s4200_s23 }
  0x13   : > { %p41_p0 = scmp.ge.s32.totalorder %s40_s27, 2  ;;  %s52_s29 = sadd.s32 1, %s4184_s19 }
  0x14   : > { %p59_p1 = scmp.ne.s32.totalorder %s4184_s19, %s4180_s18  ;;  %p60_p2 = scmp.eq.s32.totalorder %s4204_s24, 0 }
  0x15   : > { %s6410_s27 = smov (%p41_p0, %s40_s27), 0  ;;  %s6412_s28 = smov (!%p41_p0, %s43_s28), %s4200_s23 }
  0x16   : > { %6360 = sst [smem:[#allocation16_spill]] %s6410_s27  ;;  %s48_s30 = ssub.s32 %s4196_s22, %s6410_s27 }
  0x17   : > { %p4328_p3 = por %p60_p2, %p59_p1  ;;  %p45_p4 = scmp.ge.s32.totalorder %s6412_s28, 2 }
  0x18   : > { %p65_p5 = scmp.ne.s32.totalorder %s4180_s18, %s4176_s17  ;;  %p66_p6 = scmp.eq.s32.totalorder %s4314_s25, 0 }
  0x19   : > { %p259_p7 = scmp.eq.s32.totalorder %s4314_s25, 3  ;;  %s6414_s28 = smov (%p45_p4, %s6412_s28), 0 }
  0x1a   : > { %6362 = sst [smem:[#allocation17_spill]] %s6414_s28  ;;  %p4338_p8 = por %p66_p6, %p65_p5 }
  0x1b   : > { %p4342_p9 = por %p259_p7, %p59_p1  ;;  %s47_s15 = ssub.s32 %s4200_s23, %s6414_s28 }
  0x1c   : > { %p265_p10 = scmp.eq.s32.totalorder %s6335_s26, 3  ;;  %s49_s16 = sor.u32 %s48_s30, %s47_s15 }
  0x1d   : > { %s6364_s14 = scalar_select %p4342_p9, 1, 0 }
  0x1e   : > { %p50_p11 = scmp.eq.s32.totalorder %s49_s16, 0  ;;  %p4350_p12 = por %p265_p10, %p65_p5 }
  0x1f   : > { %6365 = sst [smem:[#allocation18_spill]] %s6364_s14  ;;  %p3906_p13 = scmp.lt.s32.totalorder %s4204_s24, 4 }
  0x20   : > { %s6366_s27 = scalar_select %p4350_p12, 1, 0 }
  0x21   : > { %s365_s17 = sand.u32 1, %s4184_s19   ;;  %s3486_s25 = sshll.u32 %s4196_s22, 5 }
  0x22   : > { %6367 = sst [smem:[#allocation19_spill]] %s6366_s27  ;;  %s3081_s10 = sshll.u32 %s365_s17, 8 }
  0x23   : > { %s4357_s11 = scalar_select %p50_p11, %s4184_s19, %s52_s29  }
  0x24   : > { %s3084_s9 = sshll.u32 %s4200_s23, 6  ;;  %s369_s14 = scalar_lea.vmem [#allocation2], %s3081_s10 }
  0x25   : > { %6368 = sst [smem:[#allocation20_spill]] %s4357_s11  ;;  %s380_s28 = sshll.u32 %s369_s14, 4  ;;  %s381_s28 = int_to_ptr.vmem [resolvable:$true] %s380_s28 }
  0x26   : > { %s375_s20 = sadd.s32 %s3486_s25, %s3084_s9  ;;  %p3893_p0 = pnand %p3906_p13, %p4328_p3 }
  0x27   : > { %s3085_s26 = sshll.u32 %s375_s20, 3  ;;  %s6369_s0 = sld [smem:[#allocation27_spill]] }
  0x28   : > { %s366_s29 = scalar_lea.sflag [#allocation3], %s365_s17  ;;  %s4206_s11 = smov 256  }
  0x29   : > { %s4207_s19 = smov 16   ;;  %p3086_p1 = scmp.ge.s32.totalorder %s4204_s24, 1 }
  0x2a   : > { %p388_p2 = scmp.lt.s32.totalorder %s4204_s24, 5 }
  0x2c   : > { %p389_p4 = pnand %p3086_p1, %p388_p2 }
  0x2d   : > { %s377_s16 = scalar_lea.hbm %s6369_s0, %s3085_s26 }
  0x2e   : > { %s378_s27 = sshll.u32 %s377_s16, 4  ;;  %392 = sbr.rel (%p389_p4) target bundleno = 1004 (0x3ec), region = 56  ;;  %s379_s27 = int_to_ptr.hbm [resolvable:$true] %s378_s27 }
  0x2f   : > { %3895 = dma.hbm_to_vmem [thread:$0]  (!%p3893_p0), %s379_s27, 4096, %s381_s28, %s366_s29, %s4206_s11, %s4206_s11, %s4207_s19  }
  0x33   : > { %s4369_s9 = sand.u32 1, %s4180_s18  }
  0x34   : > { %s3087_s10 = sshll.u32 %s4369_s9, 8  ;;  %s395_s20 = scalar_lea.sflag [#allocation3], %s4369_s9 }
  0x35   : > { %s4373_s25 = scalar_lea.vmem [#allocation2], %s3087_s10 }
  0x36   : > { %4163 = dma.done.wait (%p4338_p8), %s395_s20, 4096  }
  0x37   : > { %4165 = vsyncadd (%p4338_p8), %s395_s20, 4294963200  ;;  %v4380_v0 = vld [vmem:[%s4373_s25 + $0xe0] sm:$0xff]  ;;  %v4383_v1 = vld [vmem:[%s4373_s25 + $0xe8] sm:$0xff]  ;;  %v4208_v45 = vmov 256.0   ;;  %s6375_s1 = sld [smem:[#allocation28_spill]]  ;;  %s5628_s12 = sshll.u32 %s4369_s9, 7 }
  0x38   : > { %v4386_v2 = vld [vmem:[%s4373_s25 + $0xc0] sm:$0xff]  ;;  %v525_v3 = vadd.f32 %v4383_v1, %v4380_v0  ;;  %v4391_v4 = vld [vmem:[%s4373_s25 + $0xc8] sm:$0xff]  ;;  %v4402_v8 = vld [vmem:[%s4373_s25 + $0xf0] sm:$0xff]  ;;  %3982 = vrcp.f32 %v4208_v45  ;;  %s5670_s20 = scalar_lea.vmem [#allocation5], %s5628_s12  ;;  %s5995_s15 = scalar_lea.vmem [#allocation8], %s5628_s12 }
  0x39   : > { %v519_v5 = vadd.f32 %v4391_v4, %v4386_v2  ;;  %v4396_v6 = vld [vmem:[%s4373_s25 + $0xa0] sm:$0xff]  ;;  %v4399_v7 = vld [vmem:[%s4373_s25 + $0xa8] sm:$0xff]  ;;  %v4405_v9 = vld [vmem:[%s4373_s25 + $0xf8] sm:$0xff]  ;;  %s6000_s16 = scalar_lea.vmem [#allocation6], %s5628_s12  ;;  %s6383_s17 = sld [smem:[#allocation14_spill]] }
  0x3a   : > { %526 = vadd.xlane.f32.xlu0 %v525_v3  ;;  %v513_v10 = vadd.f32 %v4399_v7, %v4396_v6  ;;  %v4410_v11 = vld [vmem:[%s4373_s25 + $0xd0] sm:$0xff]  ;;  %v4413_v12 = vld [vmem:[%s4373_s25 + $0xd8] sm:$0xff]  ;;  %v528_v13 = vadd.f32 %v4405_v9, %v4402_v8  ;;  %v4428_v18 = vld [vmem:[%s4373_s25 + $0x80] sm:$0xff]  ;;  %s3478_s19 = sshll.u32 %s4192_s21, 6  ;;  %s6384_s13 = sld [smem:[#allocation29_spill]] }
  0x3b   : > { %520 = vadd.xlane.f32.xlu1 %v519_v5  ;;  %v4418_v14 = vld [vmem:[%s4373_s25 + $0xb0] sm:$0xff]  ;;  %v4421_v15 = vld [vmem:[%s4373_s25 + $0xb8] sm:$0xff]  ;;  %v522_v16 = vadd.f32 %v4413_v12, %v4410_v11  ;;  %v4431_v19 = vld [vmem:[%s4373_s25 + $0x88] sm:$0xff]  ;;  %s2882_s29 = sshll.u32 %s5670_s20, 4  ;;  %s2883_s29 = int_to_ptr.vmem [resolvable:$true] %s2882_s29 }
  0x3c   : > { %514 = vadd.xlane.f32.xlu2 %v513_v10  ;;  %v516_v17 = vadd.f32 %v4421_v15, %v4418_v14  ;;  %v4434_v20 = vld [vmem:[%s4373_s25 + $0x90] sm:$0xff]  ;;  %v4437_v21 = vld [vmem:[%s4373_s25 + $0x98] sm:$0xff]  ;;  %v507_v22 = vadd.f32 %v4431_v19, %v4428_v18  ;;  %v4442_v23 = vld [vmem:[%s4373_s25 + $0x60] sm:$0xff] }
  0x3d   : > { %v4445_v24 = vld [vmem:[%s4373_s25 + $0x68] sm:$0xff]  ;;  %v510_v25 = vadd.f32 %v4437_v21, %v4434_v20  ;;  %v4452_v27 = vld [vmem:[%s4373_s25 + $0x70] sm:$0xff]  ;;  %v4455_v28 = vld [vmem:[%s4373_s25 + $0x78] sm:$0xff] }
  0x3e   : > { %v501_v26 = vadd.f32 %v4445_v24, %v4442_v23  ;;  %v4458_v29 = vld [vmem:[%s4373_s25 + $0x40] sm:$0xff]  ;;  %v4461_v30 = vld [vmem:[%s4373_s25 + $0x48] sm:$0xff]  ;;  %v504_v31 = vadd.f32 %v4455_v28, %v4452_v27  ;;  %v4466_v32 = vld [vmem:[%s4373_s25 + $0x50] sm:$0xff]  ;;  %v3983_v46 = vpop.eup %3982 }
  0x3f   : > { %v4469_v33 = vld [vmem:[%s4373_s25 + $0x58] sm:$0xff]  ;;  %v495_v34 = vadd.f32 %v4461_v30, %v4458_v29  ;;  %v4476_v36 = vld [vmem:[%s4373_s25 + $0x20] sm:$0xff]  ;;  %v4479_v37 = vld [vmem:[%s4373_s25 + $0x28] sm:$0xff]  ;;  %v532_v47 = vmul.f32 256.0, %v3983_v46  ;;  %vm536_vm0 = vweird.f32 %v3983_v46  ;;  %s2879_s26 = sadd.s32 %s6383_s17, %s3478_s19 }
  0x40   : > { %v498_v35 = vadd.f32 %v4469_v33, %v4466_v32  ;;  %v4482_v38 = vld [vmem:[%s4373_s25 + $0x30] sm:$0xff]  ;;  %v4485_v39 = vld [vmem:[%s4373_s25 + $0x38] sm:$0xff]  ;;  %v489_v40 = vadd.f32 %v4479_v37, %v4476_v36  ;;  %v4492_v42 = vld [vmem:[%s4373_s25] sm:$0xff]  ;;  %s6177_s27 = sshll.u32 %s2879_s26, 2 }
  0x41   : > { %v492_v41 = vadd.f32 %v4485_v39, %v4482_v38  ;;  %v4495_v43 = vld [vmem:[%s4373_s25 + $0x8] sm:$0xff]  ;;  %v533_v48 = vsub.f32 1.0, %v532_v47  ;;  %v4517_v5 = vld [vmem:[%s4373_s25 + $0x10] sm:$0xff]  ;;  %v4520_v10 = vld [vmem:[%s4373_s25 + $0x18] sm:$0xff]  ;;  %s2881_s30 = scalar_lea.hbm %s6384_s13, %s6177_s27  ;;  %s2859_s25 = scalar_lea.sflag [#allocation4], %s4369_s9 }
  0x42   : > { %529 = vadd.xlane.f32.xlu0 %v528_v13  ;;  %v483_v44 = vadd.f32 %v4495_v43, %v4492_v42  ;;  %s2884_s10 = sshll.u32 %s2881_s30, 4  ;;  %s2885_s10 = int_to_ptr.hbm [resolvable:$true] %s2884_s10 }
  0x43   : > { %523 = vadd.xlane.f32.xlu1 %v522_v16  ;;  %v534_v49 = vmul.f32 %v3983_v46, %v533_v48  ;;  %s4060_s12 = sshra.s32 %s2885_s10, 4  ;;  %s4061_s12 = int_to_ptr.hbm [resolvable:$true] %s4060_s12 }
  0x44   : > { %517 = vadd.xlane.f32.xlu2 %v516_v17  ;;  %s4062_s11 = scalar_lea.hbm %s4061_s12, 128  ;;  %p4067_p7 = scmp.lt.s32.totalorder %s4061_s12, %s6384_s13 }
  0x45   : > { %v535_v50 = vadd.f32 %v3983_v46, %v534_v49  ;;  %p4063_p3 = scmp.ne.s32.totalorder %s4061_s12, %s4062_s11 }
  0x47   : > { %v4499_v51 = vsel %vm536_vm0, %v3983_v46, %v535_v50  ;;  %p4064_p5 = pnand %p4063_p3, %p4342_p9 }
  0x49   : > { %p4065_p6 = pneg %p4064_p5 }
  0x4a   : > { %508 = vadd.xlane.f32.xlu0 %v507_v22 }
  0x4b   : > { %511 = vadd.xlane.f32.xlu1 %v510_v25 }
  0x4c   : > { %502 = vadd.xlane.f32.xlu2 %v501_v26 }
  0x52   : > { %505 = vadd.xlane.f32.xlu0 %v504_v31 }
  0x53   : > { %496 = vadd.xlane.f32.xlu1 %v495_v34 }
  0x54   : > { %499 = vadd.xlane.f32.xlu2 %v498_v35 }
  0x5a   : > { %490 = vadd.xlane.f32.xlu0 %v489_v40 }
  0x5b   : > { %493 = vadd.xlane.f32.xlu1 %v492_v41 }
  0x63   : > { %484 = vadd.xlane.f32.xlu1 %v483_v44 }
  0xad   : > { %v527_v52 = vpop.xlane.xlu0 %526 }
  0xae   : > { %v552_v53 = vmul.f32 %v4499_v51, %v527_v52  ;;  %v521_v54 = vpop.xlane.xlu1 %520 }
  0xaf   : > { %v515_v57 = vpop.xlane.xlu2 %514  ;;  %v550_v60 = vmul.f32 %v4499_v51, %v521_v54 }
  0xb0   : > { %v4503_v55 = vsub.f32 %v4380_v0, %v552_v53  ;;  %v4506_v56 = vsub.f32 %v4383_v1, %v552_v53  ;;  %v548_v63 = vmul.f32 %v4499_v51, %v515_v57 }
  0xb1   : > { %v4523_v13 = vsub.f32 %v4386_v2, %v550_v60  ;;  %v4526_v16 = vsub.f32 %v4391_v4, %v550_v60 }
  0xb2   : > { %v614_v58 = vmul.f32 %v4503_v55, %v4503_v55  ;;  %v615_v59 = vmul.f32 %v4506_v56, %v4506_v56  ;;  %v4541_v34 = vsub.f32 %v4396_v6, %v548_v63  ;;  %v4544_v2 = vsub.f32 %v4399_v7, %v548_v63 }
  0xb3   : > { %v610_v7 = vmul.f32 %v4523_v13, %v4523_v13  ;;  %v611_v35 = vmul.f32 %v4526_v16, %v4526_v16 }
  0xb4   : > { %v660_v61 = vadd.f32 %v615_v59, %v614_v58  ;;  %v606_v45 = vmul.f32 %v4541_v34, %v4541_v34  ;;  %v607_v46 = vmul.f32 %v4544_v2, %v4544_v2 }
  0xb5   : > { %v530_v62 = vpop.xlane.xlu0 %529  ;;  %v654_v58 = vadd.f32 %v611_v35, %v610_v7 }
  0xb6   : > { %v553_v3 = vmul.f32 %v4499_v51, %v530_v62  ;;  %v524_v0 = vpop.xlane.xlu1 %523  ;;  %661 = vadd.xlane.f32.xlu2 %v660_v61  ;;  %v648_v59 = vadd.f32 %v607_v46, %v606_v45 }
  0xb7   : > { %v551_v1 = vmul.f32 %v4499_v51, %v524_v0  ;;  %v518_v25 = vpop.xlane.xlu2 %517 }
  0xb8   : > { %v4529_v17 = vsub.f32 %v4402_v8, %v553_v3  ;;  %v4532_v22 = vsub.f32 %v4405_v9, %v553_v3  ;;  %v486_v9 = vadd.f32 %v4520_v10, %v4517_v5  ;;  %v549_v44 = vmul.f32 %v4499_v51, %v518_v25 }
  0xb9   : > { %v4535_v26 = vsub.f32 %v4410_v11, %v551_v1  ;;  %v4538_v31 = vsub.f32 %v4413_v12, %v551_v1 }
  0xba   : > { %v616_v4 = vmul.f32 %v4529_v17, %v4529_v17  ;;  %v617_v8 = vmul.f32 %v4532_v22, %v4532_v22  ;;  %v4574_v54 = vsub.f32 %v4418_v14, %v549_v44  ;;  %v4577_v57 = vsub.f32 %v4421_v15, %v549_v44 }
  0xbb   : > { %v612_v11 = vmul.f32 %v4535_v26, %v4535_v26  ;;  %v613_v12 = vmul.f32 %v4538_v31, %v4538_v31 }
  0xbc   : > { %v663_v6 = vadd.f32 %v617_v8, %v616_v4  ;;  %v608_v15 = vmul.f32 %v4574_v54, %v4574_v54 }
  0xbd   : > { %v509_v40 = vpop.xlane.xlu0 %508  ;;  %v657_v41 = vadd.f32 %v613_v12, %v612_v11 }
  0xbe   : > { %v546_v47 = vmul.f32 %v4499_v51, %v509_v40  ;;  %664 = vadd.xlane.f32.xlu0 %v663_v6  ;;  %487 = vadd.xlane.f32.xlu2 %v486_v9  ;;  %v512_v48 = vpop.xlane.xlu1 %511 }
  0xbf   : > { %658 = vadd.xlane.f32.xlu1 %v657_v41  ;;  %v547_v49 = vmul.f32 %v4499_v51, %v512_v48  ;;  %v503_v53 = vpop.xlane.xlu2 %502 }
  0xc0   : > { %v4568_v50 = vsub.f32 %v4428_v18, %v546_v47  ;;  %v4571_v52 = vsub.f32 %v4431_v19, %v546_v47  ;;  %v544_v14 = vmul.f32 %v4499_v51, %v503_v53 }
  0xc1   : > { %v4580_v60 = vsub.f32 %v4434_v20, %v547_v49  ;;  %v4583_v61 = vsub.f32 %v4437_v21, %v547_v49  ;;  %v609_v20 = vmul.f32 %v4577_v57, %v4577_v57 }
  0xc2   : > { %v602_v18 = vmul.f32 %v4568_v50, %v4568_v50  ;;  %v603_v19 = vmul.f32 %v4571_v52, %v4571_v52  ;;  %v4607_v9 = vsub.f32 %v4442_v23, %v544_v14  ;;  %v4610_v11 = vsub.f32 %v4445_v24, %v544_v14 }
  0xc3   : > { %v604_v0 = vmul.f32 %v4580_v60, %v4580_v60  ;;  %v605_v1 = vmul.f32 %v4583_v61, %v4583_v61  ;;  %v651_v7 = vadd.f32 %v609_v20, %v608_v15 }
  0xc4   : > { %v642_v62 = vadd.f32 %v603_v19, %v602_v18  ;;  %v598_v24 = vmul.f32 %v4607_v9, %v4607_v9 }
  0xc5   : > { %v506_v63 = vpop.xlane.xlu0 %505  ;;  %v645_v35 = vadd.f32 %v605_v1, %v604_v0 }
  0xc6   : > { %v545_v3 = vmul.f32 %v4499_v51, %v506_v63  ;;  %655 = vadd.xlane.f32.xlu0 %v654_v58  ;;  %649 = vadd.xlane.f32.xlu2 %v648_v59  ;;  %v497_v21 = vpop.xlane.xlu1 %496 }
  0xc7   : > { %643 = vadd.xlane.f32.xlu1 %v642_v62  ;;  %v542_v25 = vmul.f32 %v4499_v51, %v497_v21  ;;  %v500_v40 = vpop.xlane.xlu2 %499 }
  0xc8   : > { %v4601_v4 = vsub.f32 %v4452_v27, %v545_v3  ;;  %v4604_v8 = vsub.f32 %v4455_v28, %v545_v3 }
  0xc9   : > { %v4613_v12 = vsub.f32 %v4458_v29, %v542_v25  ;;  %v4616_v6 = vsub.f32 %v4461_v30, %v542_v25  ;;  %v543_v29 = vmul.f32 %v4499_v51, %v500_v40  ;;  %v599_v30 = vmul.f32 %v4610_v11, %v4610_v11 }
  0xca   : > { %v600_v27 = vmul.f32 %v4601_v4, %v4601_v4  ;;  %v601_v28 = vmul.f32 %v4604_v8, %v4604_v8 }
  0xcb   : > { %v594_v44 = vmul.f32 %v4613_v12, %v4613_v12  ;;  %v595_v45 = vmul.f32 %v4616_v6, %v4616_v6  ;;  %v4640_v58 = vsub.f32 %v4466_v32, %v543_v29  ;;  %v4643_v59 = vsub.f32 %v4469_v33, %v543_v29 }
  0xcc   : > { %v639_v23 = vadd.f32 %v601_v28, %v600_v27  ;;  %v636_v18 = vadd.f32 %v599_v30, %v598_v24 }
  0xcd   : > { %v491_v41 = vpop.xlane.xlu0 %490  ;;  %v630_v19 = vadd.f32 %v595_v45, %v594_v44  ;;  %v596_v32 = vmul.f32 %v4640_v58, %v4640_v58 }
  0xce   : > { %v540_v46 = vmul.f32 %v4499_v51, %v491_v41  ;;  %652 = vadd.xlane.f32.xlu0 %v651_v7  ;;  %646 = vadd.xlane.f32.xlu2 %v645_v35  ;;  %v494_v47 = vpop.xlane.xlu1 %493 }
  0xcf   : > { %640 = vadd.xlane.f32.xlu1 %v639_v23  ;;  %v541_v48 = vmul.f32 %v4499_v51, %v494_v47 }
  0xd0   : > { %v4634_v49 = vsub.f32 %v4476_v36, %v540_v46  ;;  %v4637_v53 = vsub.f32 %v4479_v37, %v540_v46 }
  0xd1   : > { %v4646_v62 = vsub.f32 %v4482_v38, %v541_v48  ;;  %v4649_v14 = vsub.f32 %v4485_v39, %v541_v48  ;;  %v597_v38 = vmul.f32 %v4643_v59, %v4643_v59 }
  0xd2   : > { %6370 = vst [vmem:[#allocation21_spill] sm:$0xff] %v4637_v53  ;;  %v590_v36 = vmul.f32 %v4634_v49, %v4634_v49  ;;  %v591_v37 = vmul.f32 %v4637_v53, %v4637_v53 }
  0xd3   : > { %v592_v39 = vmul.f32 %v4646_v62, %v4646_v62  ;;  %v593_v15 = vmul.f32 %v4649_v14, %v4649_v14  ;;  %v633_v0 = vadd.f32 %v597_v38, %v596_v32 }
  0xd4   : > { %v624_v63 = vadd.f32 %v591_v37, %v590_v36 }
  0xd5   : > { %v627_v1 = vadd.f32 %v593_v15, %v592_v39 }
  0xd6   : > { %637 = vadd.xlane.f32.xlu0 %v636_v18  ;;  %631 = vadd.xlane.f32.xlu2 %v630_v19  ;;  %v485_v33 = vpop.xlane.xlu1 %484 }
  0xd7   : > { %625 = vadd.xlane.f32.xlu1 %v624_v63  ;;  %v538_v20 = vmul.f32 %v4499_v51, %v485_v33 }
  0xd9   : > { %v4665_v3 = vsub.f32 %v4492_v42, %v538_v20  ;;  %v4668_v21 = vsub.f32 %v4495_v43, %v538_v20 }
  0xdb   : > { %6371 = vst [vmem:[#allocation22_spill] sm:$0xff] %v4665_v3  ;;  %v586_v25 = vmul.f32 %v4665_v3, %v4665_v3  ;;  %v587_v7 = vmul.f32 %v4668_v21, %v4668_v21 }
  0xdc   : > { %6372 = vst [vmem:[#allocation23_spill] sm:$0xff] %v4668_v21 }
  0xdd   : > { %v618_v35 = vadd.f32 %v587_v7, %v586_v25 }
  0xde   : > { %634 = vadd.xlane.f32.xlu0 %v633_v0  ;;  %628 = vadd.xlane.f32.xlu2 %v627_v1 }
  0xe6   : > { %619 = vadd.xlane.f32.xlu0 %v618_v35 }
 0x129   : > { %v662_v27 = vpop.xlane.xlu2 %661 }
 0x12a   : > { %v680_v28 = vmul.f32 %v662_v27, %v4499_v51 }
 0x12c   : > { %v696_v42 = vadd.f32 1e-05, %v680_v28 }
 0x12e   : > { %3984 = vrsqrt.f32 %v696_v42  ;;  %vm844_vm4 = vweird.f32 %v696_v42 }
 0x131   : > { %v665_v40 = vpop.xlane.xlu0 %664  ;;  %v488_v43 = vpop.xlane.xlu2 %487 }
 0x132   : > { %v681_v23 = vmul.f32 %v665_v40, %v4499_v51  ;;  %v539_v24 = vmul.f32 %v4499_v51, %v488_v43  ;;  %v659_v41 = vpop.xlane.xlu1 %658 }
 0x133   : > { %v679_v29 = vmul.f32 %v659_v41, %v4499_v51 }
 0x134   : > { %v3985_v30 = vpop.eup %3984  ;;  %v697_v44 = vadd.f32 1e-05, %v681_v23  ;;  %v4679_v45 = vsub.f32 %v4517_v5, %v539_v24  ;;  %v4682_v46 = vsub.f32 %v4520_v10, %v539_v24 }
 0x135   : > { %v839_v47 = vmul.f32 %v3985_v30, %v696_v42  ;;  %v4684_v48 = vadd.f32 1e-05, %v679_v29  ;;  %vm845_vm3 = vweird.f32 %v3985_v30  ;;  %v482_v42 = vld [vmem:[%s6316_s2] sm:$0x3] }
 0x136   : > { %6373 = vst [vmem:[#allocation24_spill] sm:$0xff] %v4679_v45  ;;  %3986 = vrsqrt.f32 %v697_v44  ;;  %v588_v18 = vmul.f32 %v4679_v45, %v4679_v45  ;;  %v589_v19 = vmul.f32 %v4682_v46, %v4682_v46  ;;  %vm854_vm1 = vweird.f32 %v697_v44  ;;  %vm846_vm6 = vmor %vm844_vm4, %vm845_vm3 }
 0x137   : > { %6374 = vst [vmem:[#allocation25_spill] sm:$0xff] %v4682_v46  ;;  %v840_v37 = vmul.f32 %v3985_v30, %v839_v47  ;;  %3988 = vrsqrt.f32 %v4684_v48  ;;  %vm834_vm7 = vweird.f32 %v4684_v48 }
 0x138   : > { %v621_v36 = vadd.f32 %v589_v19, %v588_v18 }
 0x139   : > { %v656_v63 = vpop.xlane.xlu0 %655  ;;  %v650_v32 = vpop.xlane.xlu2 %649  ;;  %v841_v20 = vmul.f32 0.5, %v840_v37 }
 0x13a   : > { %v678_v5 = vmul.f32 %v656_v63, %v4499_v51  ;;  %v676_v10 = vmul.f32 %v650_v32, %v4499_v51  ;;  %622 = vadd.xlane.f32.xlu1 %v621_v36  ;;  %v644_v15 = vpop.xlane.xlu1 %643 }
 0x13b   : > { %v674_v25 = vmul.f32 %v644_v15, %v4499_v51  ;;  %v842_v35 = vsub.f32 1.5, %v841_v20 }
 0x13c   : > { %v3987_v33 = vpop.eup %3986  ;;  %v4693_v38 = vadd.f32 1e-05, %v678_v5  ;;  %v4695_v39 = vadd.f32 1e-05, %v676_v10 }
 0x13d   : > { %v849_v0 = vmul.f32 %v3987_v33, %v697_v44  ;;  %v4699_v7 = vpop.eup %3988  ;;  %v4706_v29 = vadd.f32 1e-05, %v674_v25  ;;  %vm855_vm2 = vweird.f32 %v3987_v33  ;;  %v843_v19 = vmul.f32 %v3985_v30, %v842_v35 }
 0x13e   : > { %3990 = vrsqrt.f32 %v4693_v38  ;;  %v829_v41 = vmul.f32 %v4699_v7, %v4684_v48  ;;  %vm856_vm5 = vmor %vm854_vm1, %vm855_vm2  ;;  %vm835_vm8 = vweird.f32 %v4699_v7  ;;  %vm824_vm9 = vweird.f32 %v4693_v38 }
 0x13f   : > { %v850_v1 = vmul.f32 %v3987_v33, %v849_v0  ;;  %3992 = vrsqrt.f32 %v4695_v39  ;;  %v847_v15 = vsel %vm846_vm6, %v3985_v30, %v843_v19  ;;  %vm836_vm12 = vmor %vm834_vm7, %vm835_vm8  ;;  %vm804_vm13 = vweird.f32 %v4695_v39 }
 0x140   : > { %v830_v5 = vmul.f32 %v4699_v7, %v829_v41  ;;  %vm784_vm3 = vweird.f32 %v4706_v29 }
 0x141   : > { %v851_v27 = vmul.f32 0.5, %v850_v1  ;;  %v653_v28 = vpop.xlane.xlu0 %652  ;;  %v647_v40 = vpop.xlane.xlu2 %646  ;;  %v481_v1 = vld [vmem:[%s6375_s1] sm:$0x3] }
 0x142   : > { %v677_v43 = vmul.f32 %v653_v28, %v4499_v51  ;;  %v675_v23 = vmul.f32 %v647_v40, %v4499_v51  ;;  %v641_v10 = vpop.xlane.xlu1 %640  ;;  %v831_v28 = vmul.f32 0.5, %v830_v5  ;;  %v886_v40 = vmul.f32 %v847_v15, %v4503_v55 }
 0x143   : > { %v852_v24 = vsub.f32 1.5, %v851_v27  ;;  %v673_v27 = vmul.f32 %v641_v10, %v4499_v51 }
 0x144   : > { %v4708_v47 = vpop.eup %3990  ;;  %v4710_v18 = vadd.f32 1e-05, %v677_v43  ;;  %v4717_v32 = vadd.f32 1e-05, %v675_v23  ;;  %v4736_v23 = vperm.slane %v481_v1, 0 }
 0x145   : > { %v819_v36 = vmul.f32 %v4708_v47, %v4693_v38  ;;  %v4714_v37 = vpop.eup %3992  ;;  %v853_v63 = vmul.f32 %v3987_v33, %v852_v24  ;;  %v4738_v24 = vperm.slane %v482_v42, 0  ;;  %v4749_v5 = vadd.f32 1e-05, %v673_v27 }
 0x146   : > { %3994 = vrsqrt.f32 %v4710_v18  ;;  %v799_v20 = vmul.f32 %v4714_v37, %v4695_v39  ;;  %vm825_vm10 = vweird.f32 %v4708_v47  ;;  %v923_v27 = vmul.f32 %v4736_v23, %v886_v40 }
 0x147   : > { %v820_v44 = vmul.f32 %v4708_v47, %v819_v36  ;;  %3996 = vrsqrt.f32 %v4706_v29  ;;  %v857_v25 = vsel %vm856_vm5, %v3987_v33, %v853_v63  ;;  %v4746_v63 = vperm.slane %v481_v1, 1  ;;  %vm826_vm11 = vmor %vm824_vm9, %vm825_vm10 }
 0x148   : > { %3998 = vrsqrt.f32 %v4717_v32  ;;  %v888_v33 = vmul.f32 %v857_v25, %v4529_v17  ;;  %v800_v19 = vmul.f32 %v4714_v37, %v799_v20  ;;  %v887_v1 = vmul.f32 %v847_v15, %v4506_v56 }
 0x149   : > { %v638_v0 = vpop.xlane.xlu0 %637  ;;  %v821_v35 = vmul.f32 0.5, %v820_v44  ;;  %v632_v10 = vpop.xlane.xlu2 %631  ;;  %v4780_v40 = vperm.slane %v482_v42, 1  ;;  %vm805_vm14 = vweird.f32 %v4714_v37  ;;  %vm814_vm15 = vweird.f32 %v4710_v18 }
 0x14a   : > { %v672_v43 = vmul.f32 %v638_v0, %v4499_v51  ;;  %v832_v0 = vsub.f32 1.5, %v831_v28  ;;  %v801_v28 = vmul.f32 0.5, %v800_v19  ;;  %v925_v46 = vmul.f32 %v4736_v23, %v888_v33  ;;  %v626_v21 = vpop.xlane.xlu1 %625  ;;  %vm4807_vm1 = vmor %vm804_vm13, %vm805_vm14 }
 0x14b   : > { %v822_v55 = vsub.f32 1.5, %v821_v35  ;;  %vm794_vm5 = vweird.f32 %v4717_v32  ;;  %vm774_vm9 = vweird.f32 %v4749_v5 }
 0x14c   : > { %v4732_v30 = vpop.eup %3994  ;;  %v4751_v44 = vadd.f32 1e-05, %v672_v43  ;;  %v889_v43 = vmul.f32 %v857_v25, %v4532_v22  ;;  %v833_v15 = vmul.f32 %v4699_v7, %v832_v0  ;;  %v670_v22 = vmul.f32 %v632_v10, %v4499_v51 }
 0x14d   : > { %v4740_v41 = vpop.eup %3996  ;;  %v809_v36 = vmul.f32 %v4732_v30, %v4710_v18  ;;  %v802_v19 = vsub.f32 1.5, %v801_v28  ;;  %v962_v38 = vadd.f32 %v4738_v24, %v925_v46  ;;  %v924_v0 = vmul.f32 %v4746_v63, %v887_v1 }
 0x14e   : > { %v4756_v20 = vpop.eup %3998  ;;  %v779_v35 = vmul.f32 %v4740_v41, %v4706_v29  ;;  %4000 = vrsqrt.f32 %v4751_v44  ;;  %v926_v3 = vmul.f32 %v4746_v63, %v889_v43  ;;  %v837_v42 = vsel %vm836_vm12, %v4699_v7, %v833_v15 }
 0x14f   : > { %v810_v17 = vmul.f32 %v4732_v30, %v809_v36  ;;  %v823_v36 = vmul.f32 %v4708_v47, %v822_v55  ;;  %v789_v56 = vmul.f32 %v4756_v20, %v4717_v32  ;;  %4002 = vrsqrt.f32 %v4749_v5 }
 0x150   : > { %v780_v25 = vmul.f32 %v4740_v41, %v779_v35  ;;  %v960_v55 = vadd.f32 %v4738_v24, %v923_v27  ;;  %v4792_v35 = vadd.f32 1e-05, %v670_v22  ;;  %vm815_vm0 = vweird.f32 %v4732_v30 }
 0x151   : > { %v811_v45 = vmul.f32 0.5, %v810_v17  ;;  %v635_v33 = vpop.xlane.xlu0 %634  ;;  %v827_v10 = vsel %vm826_vm11, %v4708_v47, %v823_v36  ;;  %v790_v48 = vmul.f32 %v4756_v20, %v789_v56  ;;  %v629_v47 = vpop.xlane.xlu2 %628  ;;  %v803_v7 = vmul.f32 %v4714_v37, %v802_v19  ;;  %vm816_vm2 = vmor %vm814_vm15, %vm815_vm0 }
 0x152   : > { %v671_v46 = vmul.f32 %v635_v33, %v4499_v51  ;;  %v781_v1 = vmul.f32 0.5, %v780_v25  ;;  %v882_v43 = vmul.f32 %v827_v10, %v4523_v13  ;;  %v668_v28 = vmul.f32 %v626_v21, %v4499_v51 }
 0x153   : > { %v812_v17 = vsub.f32 1.5, %v811_v45  ;;  %v4799_v45 = vpack.c.bf16 %v962_v38, %v960_v55  ;;  %v963_v36 = vadd.f32 %v4780_v40, %v926_v3  ;;  %v791_v22 = vmul.f32 0.5, %v790_v48 }
 0x154   : > { %v4788_v53 = vpop.eup %4000  ;;  %v961_v13 = vadd.f32 %v4780_v40, %v924_v0  ;;  %4004 = vrsqrt.f32 %v4792_v35  ;;  %v4822_v21 = vadd.f32 1e-05, %v671_v46  ;;  %v669_v39 = vmul.f32 %v629_v47, %v4499_v51 }
 0x155   : > { %v4795_v27 = vpop.eup %4002  ;;  %v813_v15 = vmul.f32 %v4732_v30, %v812_v17  ;;  %v759_v25 = vmul.f32 %v4788_v53, %v4751_v44  ;;  %1364 = vmatpush.bf16.xpose.msra.mxu0 %v4799_v45  ;;  %3868 = vmatpush.bf16.xpose.msra.mxu2 %v4799_v45  ;;  %v884_v33 = vmul.f32 %v837_v42, %v4535_v26  ;;  %vm785_vm4 = vweird.f32 %v4740_v41 }
 0x156   : > { %v769_v3 = vmul.f32 %v4795_v27, %v4749_v5  ;;  %v4828_v19 = vpack.c.bf16 %v963_v36, %v961_v13  ;;  %v885_v18 = vmul.f32 %v837_v42, %v4538_v31  ;;  %v883_v55 = vmul.f32 %v827_v10, %v4526_v16  ;;  %vm786_vm8 = vmor %vm784_vm3, %vm785_vm4 }
 0x157   : > { %v807_v38 = vsel %vm4807_vm1, %v4714_v37, %v803_v7  ;;  %v919_v0 = vmul.f32 %v4736_v23, %v882_v43  ;;  %v817_v17 = vsel %vm816_vm2, %v4732_v30, %v813_v15  ;;  %v792_v48 = vsub.f32 1.5, %v791_v22 }
 0x158   : > { %v760_v26 = vmul.f32 %v4788_v53, %v759_v25  ;;  %v4838_v46 = vadd.f32 1e-05, %v668_v28  ;;  %1453 = vmatpush.bf16.xpose.msra.mxu1 %v4828_v19  ;;  %v782_v47 = vsub.f32 1.5, %v781_v1  ;;  %v770_v31 = vmul.f32 %v4795_v27, %v769_v3  ;;  %3876 = vmatpush.bf16.xpose.msra.mxu3 %v4828_v19 }
 0x159   : > { %4006 = vrsqrt.f32 %v4822_v21  ;;  %v4844_v16 = vadd.f32 1e-05, %v669_v39  ;;  %v878_v37 = vmul.f32 %v807_v38, %v4541_v34  ;;  %vm795_vm6 = vweird.f32 %v4756_v20 }
 0x15a   : > { %v921_v30 = vmul.f32 %v4736_v23, %v884_v33  ;;  %v4850_v10 = vpop.eup %4004  ;;  %v880_v42 = vmul.f32 %v817_v17, %v4574_v54  ;;  %v956_v1 = vadd.f32 %v4738_v24, %v919_v0  ;;  %v920_v43 = vmul.f32 %v4746_v63, %v883_v55  ;;  %vm796_vm7 = vmor %vm794_vm5, %vm795_vm6 }
 0x15b   : > { %4008 = vrsqrt.f32 %v4844_v16  ;;  %v793_v7 = vmul.f32 %v4756_v20, %v792_v48  ;;  %v761_v28 = vmul.f32 0.5, %v760_v26  ;;  %v783_v34 = vmul.f32 %v4740_v41, %v782_v47 }
 0x15c   : > { %4010 = vrsqrt.f32 %v4838_v46  ;;  %v771_v32 = vmul.f32 0.5, %v770_v31  ;;  %v958_v36 = vadd.f32 %v4738_v24, %v921_v30  ;;  %v922_v56 = vmul.f32 %v4746_v63, %v885_v18 }
 0x15d   : > { %v879_v54 = vmul.f32 %v807_v38, %v4544_v2  ;;  %v739_v15 = vmul.f32 %v4850_v10, %v4792_v35  ;;  %v957_v22 = vadd.f32 %v4780_v40, %v920_v43  ;;  %v881_v13 = vmul.f32 %v817_v17, %v4577_v57 }
 0x15e   : > { %v4873_v3 = vpack.c.bf16 %v958_v36, %v956_v1  ;;  %v915_v2 = vmul.f32 %v4736_v23, %v878_v37  ;;  %v917_v39 = vmul.f32 %v4736_v23, %v880_v42  ;;  %v797_v29 = vsel %vm796_vm7, %v4756_v20, %v793_v7 }
 0x15f   : > { %v4870_v25 = vpop.eup %4006  ;;  %v762_v33 = vsub.f32 1.5, %v761_v28  ;;  %v959_v55 = vadd.f32 %v4780_v40, %v922_v56  ;;  %v787_v0 = vsel %vm786_vm8, %v4740_v41, %v783_v34  ;;  %v772_v48 = vsub.f32 1.5, %v771_v32 }
 0x160   : > { %v749_v18 = vmul.f32 %v4870_v25, %v4822_v21  ;;  %vm764_vm10 = vweird.f32 %v4751_v44  ;;  %vm765_vm11 = vweird.f32 %v4788_v53  ;;  %1365 = vmatpush.bf16.xpose.msra.mxu0 %v4873_v3  ;;  %v740_v20 = vmul.f32 %v4850_v10, %v739_v15  ;;  %3869 = vmatpush.bf16.xpose.msra.mxu2 %v4873_v3  ;;  %v1014_v44 = vld [vmem:[%s6320_s6 + $0x10] sm:$0xff] }
 0x161   : > { %v4881_v38 = vpop.eup %4008  ;;  %v4892_v26 = vpack.c.bf16 %v959_v55, %v957_v22  ;;  %v916_v47 = vmul.f32 %v4746_v63, %v879_v54  ;;  %v876_v41 = vmul.f32 %v797_v29, %v4580_v60  ;;  %vm775_vm12 = vweird.f32 %v4795_v27  ;;  %vm766_vm13 = vmor %vm764_vm10, %vm765_vm11 }
 0x162   : > { %v4887_v57 = vpop.eup %4010  ;;  %v750_v17 = vmul.f32 %v4870_v25, %v749_v18  ;;  %v952_v31 = vadd.f32 %v4738_v24, %v915_v2  ;;  %v954_v37 = vadd.f32 %v4738_v24, %v917_v39  ;;  %v763_v30 = vmul.f32 %v4788_v53, %v762_v33  ;;  %vm776_vm14 = vmor %vm774_vm9, %vm775_vm12 }
 0x163   : > { %v729_v1 = vmul.f32 %v4881_v38, %v4844_v16  ;;  %1454 = vmatpush.bf16.xpose.msra.mxu1 %v4892_v26  ;;  %3877 = vmatpush.bf16.xpose.msra.mxu3 %v4892_v26  ;;  %v918_v43 = vmul.f32 %v4746_v63, %v881_v13  ;;  %v874_v60 = vmul.f32 %v787_v0, %v4568_v50  ;;  %v741_v50 = vmul.f32 0.5, %v740_v20 }
 0x164   : > { %v751_v42 = vmul.f32 0.5, %v750_v17  ;;  %v773_v7 = vmul.f32 %v4795_v27, %v772_v48  ;;  %v719_v28 = vmul.f32 %v4887_v57, %v4838_v46  ;;  %v4913_v34 = vpack.c.bf16 %v954_v37, %v952_v31 }
 0x165   : > { %v877_v32 = vmul.f32 %v797_v29, %v4583_v61  ;;  %v953_v36 = vadd.f32 %v4780_v40, %v916_v47  ;;  %v955_v56 = vadd.f32 %v4780_v40, %v918_v43  ;;  %v875_v54 = vmul.f32 %v787_v0, %v4571_v52  ;;  %v1012_v61 = vld [vmem:[%s6320_s6] sm:$0xff] }
 0x166   : > { %v913_v15 = vmul.f32 %v4736_v23, %v876_v41  ;;  %v767_v5 = vsel %vm766_vm13, %v4788_v53, %v763_v30  ;;  %v752_v22 = vsub.f32 1.5, %v751_v42  ;;  %v730_v13 = vmul.f32 %v4881_v38, %v729_v1  ;;  %v1017_v42 = vld [vmem:[%s6320_s6 + $0x28] sm:$0xff] }
 0x167   : > { %v4932_v2 = vpack.c.bf16 %v955_v56, %v953_v36  ;;  %v4209_v39 = vmov 0   ;;  %v777_v29 = vsel %vm776_vm14, %v4795_v27, %v773_v7  ;;  %v720_v52 = vmul.f32 %v4887_v57, %v719_v28  ;;  %v1013_v27 = vld [vmem:[%s6320_s6 + $0x8] sm:$0xff] }
 0x168   : > { %3981 = vset.pattern.permute.xlu1 %v4209_v39  ;;  %3979 = vset.pattern.permute.xlu2 %v4209_v39  ;;  %v911_v33 = vmul.f32 %v4736_v23, %v874_v60  ;;  %v742_v18 = vsub.f32 1.5, %v741_v50  ;;  %vm754_vm15 = vweird.f32 %v4822_v21  ;;  %vm755_vm0 = vweird.f32 %v4870_v25  ;;  %v1020_v50 = vld [vmem:[%s6320_s6 + $0x40] sm:$0xff] }
 0x169   : > { %1366 = vmatpush.bf16.xpose.msra.mxu0 %v4913_v34  ;;  %1056 = vperm.xlu1 %3981, %v1014_v44   ;;  %v914_v53 = vmul.f32 %v4746_v63, %v877_v32  ;;  %v870_v55 = vmul.f32 %v767_v5, %v4607_v9  ;;  %vm744_vm1 = vweird.f32 %v4792_v35  ;;  %v950_v0 = vadd.f32 %v4738_v24, %v913_v15  ;;  %vm756_vm3 = vmor %vm754_vm15, %vm755_vm0 }
 0x16a   : > { %3870 = vmatpush.bf16.xpose.msra.mxu2 %v4913_v34  ;;  %1046 = vperm.xlu2 %3979, %v1012_v61   ;;  %vm745_vm2 = vweird.f32 %v4850_v10  ;;  %v753_v48 = vmul.f32 %v4870_v25, %v752_v22  ;;  %v731_v20 = vmul.f32 0.5, %v730_v13  ;;  %v912_v17 = vmul.f32 %v4746_v63, %v875_v54 }
 0x16b   : > { %3980 = vset.pattern.permute.xlu0 %v4209_v39  ;;  %1455 = vmatpush.bf16.xpose.msra.mxu1 %v4932_v2  ;;  %v872_v47 = vmul.f32 %v777_v29, %v4601_v4  ;;  %v721_v41 = vmul.f32 0.5, %v720_v52  ;;  %v948_v9 = vadd.f32 %v4738_v24, %v911_v33  ;;  %v871_v31 = vmul.f32 %v767_v5, %v4610_v11  ;;  %vm746_vm4 = vmor %vm744_vm1, %vm745_vm2  ;;  %v1015_v11 = vld [vmem:[%s6320_s6 + $0x18] sm:$0xff] }
 0x16c   : > { %3878 = vmatpush.bf16.xpose.msra.mxu3 %v4932_v2  ;;  %1051 = vperm.xlu0 %3980, %v1013_v27   ;;  %v743_v37 = vmul.f32 %v4850_v10, %v742_v18  ;;  %v951_v30 = vadd.f32 %v4780_v40, %v914_v53  ;;  %v907_v21 = vmul.f32 %v4736_v23, %v870_v55  ;;  %v732_v60 = vsub.f32 1.5, %v731_v20  ;;  %v1019_v5 = vld [vmem:[%s6320_s6 + $0x38] sm:$0xff] }
 0x16d   : > { %v4969_v4 = vpack.c.bf16 %v950_v0, %v948_v9  ;;  %v873_v1 = vmul.f32 %v777_v29, %v4604_v8  ;;  %v757_v43 = vsel %vm756_vm3, %v4870_v25, %v753_v48  ;;  %v949_v7 = vadd.f32 %v4780_v40, %v912_v17 }
 0x16e   : > { %v722_v28 = vsub.f32 1.5, %v721_v41  ;;  %vm734_vm5 = vweird.f32 %v4844_v16  ;;  %v909_v35 = vmul.f32 %v4736_v23, %v872_v47  ;;  %v747_v32 = vsel %vm746_vm4, %v4850_v10, %v743_v37  ;;  %v1016_v16 = vld [vmem:[%s6320_s6 + $0x20] sm:$0xff]  ;;  %v1018_v47 = vld [vmem:[%s6320_s6 + $0x30] sm:$0xff] }
 0x16f   : > { %vm735_vm6 = vweird.f32 %v4881_v38  ;;  %v4984_v8 = vpack.c.bf16 %v951_v30, %v949_v7  ;;  %v908_v25 = vmul.f32 %v4746_v63, %v871_v31  ;;  %v868_v36 = vmul.f32 %v757_v43, %v4640_v58  ;;  %v1026_v30 = vld [vmem:[%s6320_s6 + $0x70] sm:$0xff]  ;;  %v1021_v7 = vld [vmem:[%s6320_s6 + $0x48] sm:$0xff] }
 0x170   : > { %v944_v56 = vadd.f32 %v4738_v24, %v907_v21  ;;  %vm724_vm7 = vweird.f32 %v4838_v46  ;;  %vm725_vm8 = vweird.f32 %v4887_v57  ;;  %v733_v10 = vmul.f32 %v4881_v38, %v732_v60  ;;  %vm736_vm9 = vmor %vm734_vm5, %vm735_vm6 }
 0x171   : > { %1367 = vmatpush.bf16.xpose.msra.mxu0 %v4969_v4  ;;  %1071 = vperm.xlu1 %3981, %v1017_v42   ;;  %v910_v44 = vmul.f32 %v4746_v63, %v873_v1  ;;  %v866_v54 = vmul.f32 %v747_v32, %v4613_v12  ;;  %v946_v58 = vadd.f32 %v4738_v24, %v909_v35  ;;  %vm726_vm10 = vmor %vm724_vm7, %vm725_vm8 }
 0x172   : > { %3871 = vmatpush.bf16.xpose.msra.mxu2 %v4969_v4  ;;  %1061 = vperm.xlu2 %3979, %v1015_v11   ;;  %v723_v46 = vmul.f32 %v4887_v57, %v722_v28  ;;  %v869_v15 = vmul.f32 %v757_v43, %v4643_v59  ;;  %v945_v61 = vadd.f32 %v4780_v40, %v908_v25  ;;  %v1025_v43 = vld [vmem:[%s6320_s6 + $0x68] sm:$0xff]  ;;  %v1028_v25 = vld [vmem:[%s6320_s6 + $0x80] sm:$0xff] }
 0x173   : > { %1456 = vmatpush.bf16.xpose.msra.mxu1 %v4984_v8  ;;  %v5010_v12 = vpack.c.bf16 %v946_v58, %v944_v56  ;;  %v905_v22 = vmul.f32 %v4736_v23, %v868_v36  ;;  %v867_v13 = vmul.f32 %v747_v32, %v4616_v6  ;;  %v737_v39 = vsel %vm736_vm9, %v4881_v38, %v733_v10  ;;  %v1023_v6 = vld [vmem:[%s6320_s6 + $0x58] sm:$0xff]  ;;  %v1029_v32 = vld [vmem:[%s6320_s6 + $0x88] sm:$0xff]  ;;  %v1024_v36 = vld [vmem:[%s6320_s6 + $0x60] sm:$0xff] }
 0x174   : > { %3879 = vmatpush.bf16.xpose.msra.mxu3 %v4984_v8  ;;  %1086 = vperm.xlu0 %3980, %v1020_v50   ;;  %v947_v59 = vadd.f32 %v4780_v40, %v910_v44  ;;  %v903_v29 = vmul.f32 %v4736_v23, %v866_v54  ;;  %v727_v52 = vsel %vm726_vm10, %v4887_v57, %v723_v46  ;;  %v620_v50 = vpop.xlane.xlu0 %619  ;;  %v1032_v10 = vld [vmem:[%s6320_s6 + $0xa0] sm:$0xff]  ;;  %v1031_v54 = vld [vmem:[%s6320_s6 + $0x98] sm:$0xff] }
 0x175   : > { %v906_v18 = vmul.f32 %v4746_v63, %v869_v15  ;;  %v864_v38 = vmul.f32 %v737_v39, %v4646_v62  ;;  %v942_v53 = vadd.f32 %v4738_v24, %v905_v22  ;;  %v904_v57 = vmul.f32 %v4746_v63, %v867_v13  ;;  %v1022_v62 = vld [vmem:[%s6320_s6 + $0x50] sm:$0xff]  ;;  %v1027_v58 = vld [vmem:[%s6320_s6 + $0x78] sm:$0xff]  ;;  %v1037_v13 = vld [vmem:[%s6320_s6 + $0xc8] sm:$0xff] }
 0x176   : > { %v5023_v33 = vpack.c.bf16 %v947_v59, %v945_v61  ;;  %v862_v27 = vmul.f32 %v727_v52, %v4634_v49  ;;  %v940_v55 = vadd.f32 %v4738_v24, %v903_v29  ;;  %v865_v0 = vmul.f32 %v737_v39, %v4649_v14  ;;  %v6378_v49 = vld [vmem:[#allocation21_spill] sm:$0xff]  ;;  %v1035_v46 = vld [vmem:[%s6320_s6 + $0xb8] sm:$0xff]  ;;  %v1034_v15 = vld [vmem:[%s6320_s6 + $0xb0] sm:$0xff] }
 0x177   : > { %v943_v48 = vadd.f32 %v4780_v40, %v906_v18  ;;  %v901_v17 = vmul.f32 %v4736_v23, %v864_v38  ;;  %v863_v41 = vmul.f32 %v727_v52, %v6378_v49  ;;  %v941_v9 = vadd.f32 %v4780_v40, %v904_v57  ;;  %v1030_v61 = vld [vmem:[%s6320_s6 + $0x90] sm:$0xff]  ;;  %v1033_v29 = vld [vmem:[%s6320_s6 + $0xa8] sm:$0xff] }
 0x178   : > { %v5041_v20 = vpack.c.bf16 %v942_v53, %v940_v55  ;;  %v899_v14 = vmul.f32 %v4736_v23, %v862_v27  ;;  %v902_v37 = vmul.f32 %v4746_v63, %v865_v0  ;;  %v666_v56 = vmul.f32 %v620_v50, %v4499_v51  ;;  %v1038_v22 = vld [vmem:[%s6320_s6 + $0xd0] sm:$0xff]  ;;  %v1040_v53 = vld [vmem:[%s6320_s6 + $0xe0] sm:$0xff] }
 0x179   : > { %1368 = vmatpush.bf16.xpose.msra.mxu0 %v5010_v12  ;;  %1081 = vperm.xlu1 %3981, %v1019_v5   ;;  %v5052_v31 = vpack.c.bf16 %v943_v48, %v941_v9  ;;  %v938_v42 = vadd.f32 %v4738_v24, %v901_v17  ;;  %v900_v21 = vmul.f32 %v4746_v63, %v863_v41  ;;  %v1036_v27 = vld [vmem:[%s6320_s6 + $0xc0] sm:$0xff]  ;;  %v1043_v17 = vld [vmem:[%s6320_s6 + $0xf8] sm:$0xff] }
 0x17a   : > { %3872 = vmatpush.bf16.xpose.msra.mxu2 %v5010_v12  ;;  %1066 = vperm.xlu2 %3979, %v1016_v16   ;;  %v936_v11 = vadd.f32 %v4738_v24, %v899_v14  ;;  %v939_v1 = vadd.f32 %v4780_v40, %v902_v37  ;;  %v682_v44 = vadd.f32 1e-05, %v666_v56  ;;  %v1638_v55 = vld [vmem:[%s6321_s7] sm:$0xff]  ;;  %v1039_v41 = vld [vmem:[%s6320_s6 + $0xd8] sm:$0xff]  ;;  %v6379_v14 = vld [vmem:[#allocation22_spill] sm:$0xff] }
 0x17b   : > { %1457 = vmatpush.bf16.xpose.msra.mxu1 %v5023_v33  ;;  %v937_v28 = vadd.f32 %v4780_v40, %v900_v21  ;;  %v1641_v21 = vld [vmem:[%s6321_s7 + $0x18] sm:$0xff]  ;;  %v1042_v56 = vld [vmem:[%s6320_s6 + $0xf0] sm:$0xff] }
 0x17c   : > { %3880 = vmatpush.bf16.xpose.msra.mxu3 %v5023_v33  ;;  %1101 = vperm.xlu0 %3980, %v1023_v6   ;;  %v5067_v60 = vpack.c.bf16 %v938_v42, %v936_v11  ;;  %4012 = vrsqrt.f32 %v682_v44  ;;  %v1041_v6 = vld [vmem:[%s6320_s6 + $0xe8] sm:$0xff]  ;;  %vm704_vm11 = vweird.f32 %v682_v44 }
 0x17d   : > { %v5075_v35 = vpack.c.bf16 %v939_v1, %v937_v28  ;;  %v6382_v28 = vld [vmem:[#allocation25_spill] sm:$0xff] }
 0x181   : > { %1369 = vmatpush.bf16.xpose.msra.mxu0 %v5041_v20  ;;  %1096 = vperm.xlu1 %3981, %v1022_v62  }
 0x182   : > { %3873 = vmatpush.bf16.xpose.msra.mxu2 %v5041_v20  ;;  %1076 = vperm.xlu2 %3979, %v1018_v47   ;;  %v4013_v5 = vpop.eup %4012 }
 0x183   : > { %1458 = vmatpush.bf16.xpose.msra.mxu1 %v5052_v31  ;;  %v699_v16 = vmul.f32 %v4013_v5, %v682_v44  ;;  %vm705_vm12 = vweird.f32 %v4013_v5 }
 0x184   : > { %3881 = vmatpush.bf16.xpose.msra.mxu3 %v5052_v31  ;;  %1116 = vperm.xlu0 %3980, %v1026_v30   ;;  %vm706_vm13 = vmor %vm704_vm11, %vm705_vm12  ;;  %v6380_v30 = vld [vmem:[#allocation23_spill] sm:$0xff] }
 0x185   : > { %v700_v39 = vmul.f32 %v4013_v5, %v699_v16  ;;  %v3504_v16 = vld [vmem:[%s6317_s3 + $0x84] sm:$0xf0] }
 0x187   : > { %v701_v38 = vmul.f32 0.5, %v700_v39  ;;  %v3159_v39 = vld [vmem:[%s6317_s3 + $0x88] sm:$0xf0] }
 0x189   : > { %1370 = vmatpush.bf16.xpose.msra.mxu0 %v5067_v60  ;;  %1111 = vperm.xlu1 %3981, %v1025_v43   ;;  %v702_v57 = vsub.f32 1.5, %v701_v38  ;;  %v6381_v43 = vld [vmem:[#allocation24_spill] sm:$0xff] }
 0x18a   : > { %3874 = vmatpush.bf16.xpose.msra.mxu2 %v5067_v60  ;;  %1091 = vperm.xlu2 %3979, %v1021_v7  }
 0x18b   : > { %1459 = vmatpush.bf16.xpose.msra.mxu1 %v5075_v35  ;;  %v703_v0 = vmul.f32 %v4013_v5, %v702_v57  ;;  %v1647_v57 = vld [vmem:[%s6321_s7 + $0x48] sm:$0xff] }
 0x18c   : > { %3882 = vmatpush.bf16.xpose.msra.mxu3 %v5075_v35  ;;  %1131 = vperm.xlu0 %3980, %v1029_v32  }
 0x18d   : > { %v707_v47 = vsel %vm706_vm13, %v4013_v5, %v703_v0  ;;  %v3490_v0 = vld [vmem:[%s6317_s3 + $0x14] sm:$0xf0] }
 0x18e   : > { %v858_v37 = vmul.f32 %v707_v47, %v6379_v14  ;;  %v859_v42 = vmul.f32 %v707_v47, %v6380_v30  ;;  %v3103_v47 = vld [vmem:[%s6317_s3 + $0x18] sm:$0xf0] }
 0x18f   : > { %v1653_v30 = vld [vmem:[%s6321_s7 + $0x78] sm:$0xff] }
 0x190   : > { %v895_v50 = vmul.f32 %v4736_v23, %v858_v37 }
 0x191   : > { %1126 = vperm.xlu1 %3981, %v1028_v25   ;;  %v1640_v25 = vld [vmem:[%s6321_s7 + $0x10] sm:$0xff] }
 0x192   : > { %1106 = vperm.xlu2 %3979, %v1024_v36   ;;  %v896_v36 = vmul.f32 %v4746_v63, %v859_v42  ;;  %v1652_v42 = vld [vmem:[%s6321_s7 + $0x70] sm:$0xff] }
 0x194   : > { %1146 = vperm.xlu0 %3980, %v1032_v10  }
 0x199   : > { %1141 = vperm.xlu1 %3981, %v1031_v54   ;;  %v932_v54 = vadd.f32 %v4738_v24, %v895_v50 }
 0x19a   : > { %1121 = vperm.xlu2 %3979, %v1027_v58  }
 0x19c   : > { %1161 = vperm.xlu0 %3980, %v1035_v46   ;;  %v933_v46 = vadd.f32 %v4780_v40, %v896_v36 }
 0x1a1   : > { %1156 = vperm.xlu1 %3981, %v1034_v15  }
 0x1a2   : > { %1136 = vperm.xlu2 %3979, %v1030_v61   ;;  %v1644_v61 = vld [vmem:[%s6321_s7 + $0x30] sm:$0xff] }
 0x1a4   : > { %1176 = vperm.xlu0 %3980, %v1038_v22  }
 0x1a9   : > { %1171 = vperm.xlu1 %3981, %v1037_v13   ;;  %v3503_v13 = vld [vmem:[%s6317_s3 + $0x84] sm:$0xf] }
 0x1aa   : > { %1151 = vperm.xlu2 %3979, %v1033_v29   ;;  %v3095_v29 = vld [vmem:[%s6317_s3 + $0x8] sm:$0xf0]  ;;  %v3162_v38 = vor.u32 %v3503_v13, %v3159_v39 }
 0x1ac   : > { %1191 = vperm.xlu0 %3980, %v1041_v6  }
 0x1ad   : > { %v623_v59 = vpop.xlane.xlu1 %622 }
 0x1ae   : > { %v667_v52 = vmul.f32 %v623_v59, %v4499_v51  ;;  %v3487_v59 = vld [vmem:[%s6317_s3 + $0x4] sm:$0xf] }
 0x1b0   : > { %v683_v18 = vadd.f32 1e-05, %v667_v52  ;;  %v1639_v52 = vld [vmem:[%s6321_s7 + $0x8] sm:$0xff] }
 0x1b1   : > { %1186 = vperm.xlu1 %3981, %v1040_v53   ;;  %v3098_v53 = vor.u32 %v3487_v59, %v3095_v29 }
 0x1b2   : > { %4014 = vrsqrt.f32 %v683_v18  ;;  %1166 = vperm.xlu2 %3979, %v1036_v27   ;;  %vm714_vm15 = vweird.f32 %v683_v18  ;;  %v1646_v27 = vld [vmem:[%s6321_s7 + $0x40] sm:$0xff] }
 0x1b4   : > { %1672 = vperm.xlu0 %3980, %v1638_v55   ;;  %v3101_v55 = vld [vmem:[%s6317_s3 + $0x10] sm:$0xf] }
 0x1b8   : > { %v4015_v51 = vpop.eup %4014 }
 0x1b9   : > { %v709_v48 = vmul.f32 %v4015_v51, %v683_v18  ;;  %vm715_vm14 = vweird.f32 %v4015_v51  ;;  %1201 = vperm.xlu1 %3981, %v1043_v17   ;;  %v3489_v17 = vld [vmem:[%s6317_s3 + $0x14] sm:$0xf] }
 0x1ba   : > { %1181 = vperm.xlu2 %3979, %v1039_v41   ;;  %vm716_vm0 = vmor %vm714_vm15, %vm715_vm14  ;;  %v3102_v41 = vor.u32 %v3490_v0, %v3101_v55  ;;  %v3106_v37 = vor.u32 %v3489_v17, %v3103_v47  ;;  %v3495_v55 = vld [vmem:[%s6317_s3 + $0x44] sm:$0xf]  ;;  %v3127_v0 = vld [vmem:[%s6317_s3 + $0x48] sm:$0xf0] }
 0x1bb   : > { %v710_v62 = vmul.f32 %v4015_v51, %v709_v48  ;;  %v3505_v48 = vld [vmem:[%s6317_s3 + $0x94] sm:$0xf]  ;;  %v3130_v47 = vor.u32 %v3495_v55, %v3127_v0  ;;  %v2280_v55 = vld [vmem:[%s6322_s8 + $0x80] sm:$0xff]  ;;  %v3149_v0 = vld [vmem:[%s6317_s3 + $0x70] sm:$0xf] }
 0x1bc   : > { %1687 = vperm.xlu0 %3980, %v1641_v21   ;;  %v1656_v21 = vld [vmem:[%s6321_s7 + $0x90] sm:$0xff] }
 0x1bd   : > { %v711_v49 = vmul.f32 0.5, %v710_v62  ;;  %v3167_v62 = vld [vmem:[%s6317_s3 + $0x98] sm:$0xf0] }
 0x1be   : > { %v3170_v14 = vor.u32 %v3505_v48, %v3167_v62 }
 0x1bf   : > { %v712_v9 = vsub.f32 1.5, %v711_v49  ;;  %v1645_v49 = vld [vmem:[%s6321_s7 + $0x38] sm:$0xff] }
 0x1c1   : > { %v713_v11 = vmul.f32 %v4015_v51, %v712_v9  ;;  %1682 = vperm.xlu1 %3981, %v1640_v25   ;;  %v1651_v25 = vld [vmem:[%s6321_s7 + $0x68] sm:$0xff] }
 0x1c2   : > { %1196 = vperm.xlu2 %3979, %v1042_v56  }
 0x1c3   : > { %v717_v1 = vsel %vm716_vm0, %v4015_v51, %v713_v11  ;;  %v1650_v51 = vld [vmem:[%s6321_s7 + $0x60] sm:$0xff] }
 0x1c4   : > { %v860_v7 = vmul.f32 %v717_v1, %v6381_v43  ;;  %v861_v32 = vmul.f32 %v717_v1, %v6382_v28  ;;  %1702 = vperm.xlu0 %3980, %v1644_v61   ;;  %v3109_v11 = vld [vmem:[%s6317_s3 + $0x20] sm:$0xf]  ;;  %v3492_v1 = vld [vmem:[%s6317_s3 + $0x24] sm:$0xf0]  ;;  %v3507_v43 = vld [vmem:[%s6317_s3 + $0xa4] sm:$0xf]  ;;  %v5350_v39 = vpop.permute.xlu2 %1046 }
 0x1c5   : > { %v3491_v28 = vld [vmem:[%s6317_s3 + $0x24] sm:$0xf]  ;;  %v3110_v50 = vor.u32 %v3492_v1, %v3109_v11  ;;  %v3509_v61 = vld [vmem:[%s6317_s3 + $0xb4] sm:$0xf]  ;;  %v3197_v11 = vld [vmem:[%s6317_s3 + $0xd0] sm:$0xf] }
 0x1c6   : > { %v897_v10 = vmul.f32 %v4736_v23, %v860_v7  ;;  %v898_v44 = vmul.f32 %v4746_v63, %v861_v32  ;;  %v1643_v23 = vld [vmem:[%s6321_s7 + $0x28] sm:$0xff]  ;;  %v3514_v1 = vld [vmem:[%s6317_s3 + $0xd4] sm:$0xf0] }
 0x1c7   : > { %v3488_v63 = vld [vmem:[%s6317_s3 + $0x4] sm:$0xf0]  ;;  %v3175_v7 = vld [vmem:[%s6317_s3 + $0xa8] sm:$0xf0] }
 0x1c8   : > { %v934_v58 = vadd.f32 %v4738_v24, %v897_v10  ;;  %v935_v15 = vadd.f32 %v4780_v40, %v898_v44  ;;  %v3093_v24 = vld [vmem:[%s6317_s3] sm:$0xf]  ;;  %v3111_v32 = vld [vmem:[%s6317_s3 + $0x28] sm:$0xf0]  ;;  %v3178_v56 = vor.u32 %v3507_v43, %v3175_v7  ;;  %v3497_v43 = vld [vmem:[%s6317_s3 + $0x54] sm:$0xf] }
 0x1c9   : > { %v3157_v40 = vld [vmem:[%s6317_s3 + $0x80] sm:$0xf]  ;;  %1697 = vperm.xlu1 %3981, %v1643_v23   ;;  %v3094_v18 = vor.u32 %v3488_v63, %v3093_v24  ;;  %v3114_v10 = vor.u32 %v3491_v28, %v3111_v32  ;;  %v1659_v44 = vld [vmem:[%s6321_s7 + $0xa8] sm:$0xff]  ;;  %v3183_v23 = vld [vmem:[%s6317_s3 + $0xb8] sm:$0xf0] }
 0x1ca   : > { %v5159_v5 = vpack.c.bf16 %v934_v58, %v932_v54  ;;  %v5161_v22 = vpack.c.bf16 %v935_v15, %v933_v46  ;;  %v3158_v6 = vor.u32 %v3504_v16, %v3157_v40  ;;  %1677 = vperm.xlu2 %3979, %v1639_v52   ;;  %v1658_v54 = vld [vmem:[%s6321_s7 + $0xa0] sm:$0xff]  ;;  %v3117_v46 = vld [vmem:[%s6317_s3 + $0x30] sm:$0xf]  ;;  %v3494_v15 = vld [vmem:[%s6317_s3 + $0x34] sm:$0xf0]  ;;  %v3186_v59 = vor.u32 %v3509_v61, %v3183_v23 }
 0x1cb   : > { %v1662_v58 = vld [vmem:[%s6321_s7 + $0xc0] sm:$0xff]  ;;  %v3493_v24 = vld [vmem:[%s6317_s3 + $0x34] sm:$0xf]  ;;  %v3119_v63 = vld [vmem:[%s6317_s3 + $0x38] sm:$0xf0]  ;;  %v3118_v16 = vor.u32 %v3494_v15, %v3117_v46 }
 0x1cc   : > { %1371 = vmatpush.bf16.xpose.msra.mxu0 %v5159_v5  ;;  %3875 = vmatpush.bf16.xpose.msra.mxu2 %v5159_v5  ;;  %v1657_v40 = vld [vmem:[%s6321_s7 + $0x98] sm:$0xff]  ;;  %v3122_v29 = vor.u32 %v3493_v24, %v3119_v63  ;;  %v2273_v15 = vld [vmem:[%s6322_s8 + $0x48] sm:$0xff]  ;;  %v3205_v23 = vld [vmem:[%s6317_s3 + $0xe0] sm:$0xf] }
 0x1cd   : > { %1460 = vmatpush.bf16.xpose.msra.mxu1 %v5161_v22  ;;  %3883 = vmatpush.bf16.xpose.msra.mxu3 %v5161_v22  ;;  %v3135_v7 = vld [vmem:[%s6317_s3 + $0x58] sm:$0xf0]  ;;  %v3500_v61 = vld [vmem:[%s6317_s3 + $0x64] sm:$0xf0]  ;;  %v3515_v63 = vld [vmem:[%s6317_s3 + $0xe4] sm:$0xf] }
 0x1ce   : > { %1717 = vperm.xlu0 %3980, %v1647_v57   ;;  %v3125_v57 = vld [vmem:[%s6317_s3 + $0x40] sm:$0xf]  ;;  %v1669_v28 = vld [vmem:[%s6321_s7 + $0xf8] sm:$0xff]  ;;  %v3516_v24 = vld [vmem:[%s6317_s3 + $0xe4] sm:$0xf0] }
 0x1d1   : > { %1712 = vperm.xlu1 %3981, %v1646_v27  }
 0x1d3   : > { %1372 = vmatmul.bf16.vlgmr.msra.gmra.mxu0 %v3094_v18  ;;  %1412 = vmatmul.bf16.vlgmr.msra.gmra.mxu2 %v3158_v6  ;;  %v1665_v18 = vld [vmem:[%s6321_s7 + $0xd8] sm:$0xff]  ;;  %v5368_v6 = vpop.permute.xlu2 %1061 }
 0x1d4   : > { %1990 = vmatpush.bf16.xpose.msrb.mxu2 %v4799_v45  ;;  %2616 = vmatpush.bf16.xpose.msrb.mxu0 %v4799_v45  ;;  %v1642_v45 = vld [vmem:[%s6321_s7 + $0x20] sm:$0xff] }
 0x1d5   : > { %2079 = vmatpush.bf16.xpose.msrb.mxu3 %v4828_v19  ;;  %2705 = vmatpush.bf16.xpose.msrb.mxu1 %v4828_v19  ;;  %v1649_v19 = vld [vmem:[%s6321_s7 + $0x58] sm:$0xff] }
 0x1d6   : > { %1501 = vmatmul.bf16.vlgmr.msra.gmra.mxu3 %v3162_v38  ;;  %1461 = vmatmul.bf16.vlgmr.msra.gmra.mxu1 %v3098_v53  ;;  %v1667_v38 = vld [vmem:[%s6321_s7 + $0xe8] sm:$0xff]  ;;  %v1668_v53 = vld [vmem:[%s6321_s7 + $0xf0] sm:$0xff] }
 0x1d7   : > { %1692 = vperm.xlu2 %3979, %v1642_v45   ;;  %1732 = vperm.xlu0 %3980, %v1650_v51   ;;  %v3512_v45 = vld [vmem:[%s6317_s3 + $0xc4] sm:$0xf0]  ;;  %v3191_v51 = vld [vmem:[%s6317_s3 + $0xc8] sm:$0xf0] }
 0x1d9   : > { %1727 = vperm.xlu1 %3981, %v1649_v19   ;;  %v3511_v19 = vld [vmem:[%s6317_s3 + $0xc4] sm:$0xf] }
 0x1da   : > { %v3194_v17 = vor.u32 %v3511_v19, %v3191_v51  ;;  %v2279_v51 = vld [vmem:[%s6322_s8 + $0x78] sm:$0xff] }
 0x1db   : > { %v5353_v52 = vpop.permute.xlu1 %1056 }
 0x1dc   : > { %1991 = vmatpush.bf16.xpose.msrb.mxu2 %v4873_v3  ;;  %2617 = vmatpush.bf16.xpose.msrb.mxu0 %v4873_v3  ;;  %v3165_v3 = vld [vmem:[%s6317_s3 + $0x90] sm:$0xf] }
 0x1dd   : > { %2080 = vmatpush.bf16.xpose.msrb.mxu3 %v4892_v26  ;;  %2706 = vmatpush.bf16.xpose.msrb.mxu1 %v4892_v26  ;;  %v3506_v26 = vld [vmem:[%s6317_s3 + $0x94] sm:$0xf0] }
 0x1de   : > { %v3166_v9 = vor.u32 %v3506_v26, %v3165_v3  ;;  %v1663_v3 = vld [vmem:[%s6321_s7 + $0xc8] sm:$0xff]  ;;  %v5405_v62 = vpop.permute.xlu0 %1051 }
 0x1df   : > { %1707 = vperm.xlu2 %3979, %v1645_v49   ;;  %1747 = vperm.xlu0 %3980, %v1653_v30   ;;  %v2265_v49 = vld [vmem:[%s6322_s8 + $0x8] sm:$0xff] }
 0x1e1   : > { %1742 = vperm.xlu1 %3981, %v1652_v42   ;;  %v2267_v42 = vld [vmem:[%s6322_s8 + $0x18] sm:$0xff] }
 0x1e3   : > { %1377 = vmatmul.bf16.gmra.mxu0 %v3102_v41  ;;  %1417 = vmatmul.bf16.gmra.mxu2 %v3166_v9  ;;  %v5385_v27 = vpop.permute.xlu1 %1071  ;;  %v5410_v41 = vpop.permute.xlu2 %1066  ;;  %v2264_v9 = vld [vmem:[%s6322_s8] sm:$0xff] }
 0x1e4   : > { %1992 = vmatpush.bf16.xpose.msrb.mxu2 %v4913_v34  ;;  %2618 = vmatpush.bf16.xpose.msrb.mxu0 %v4913_v34  ;;  %v1648_v34 = vld [vmem:[%s6321_s7 + $0x50] sm:$0xff] }
 0x1e5   : > { %2081 = vmatpush.bf16.xpose.msrb.mxu3 %v4932_v2  ;;  %2707 = vmatpush.bf16.xpose.msrb.mxu1 %v4932_v2  ;;  %v1655_v2 = vld [vmem:[%s6321_s7 + $0x88] sm:$0xff] }
 0x1e6   : > { %1506 = vmatmul.bf16.gmra.mxu3 %v3170_v14  ;;  %1466 = vmatmul.bf16.gmra.mxu1 %v3106_v37  ;;  %v1666_v14 = vld [vmem:[%s6321_s7 + $0xe0] sm:$0xff]  ;;  %v5420_v30 = vpop.permute.xlu0 %1086 }
 0x1e7   : > { %1722 = vperm.xlu2 %3979, %v1648_v34   ;;  %1762 = vperm.xlu0 %3980, %v1656_v21   ;;  %v2268_v34 = vld [vmem:[%s6322_s8 + $0x20] sm:$0xff]  ;;  %v3498_v21 = vld [vmem:[%s6317_s3 + $0x54] sm:$0xf0] }
 0x1e9   : > { %1757 = vperm.xlu1 %3981, %v1655_v2   ;;  %v3133_v2 = vld [vmem:[%s6317_s3 + $0x50] sm:$0xf] }
 0x1eb   : > { %v5418_v37 = vpop.permute.xlu1 %1081  ;;  %v5455_v32 = vpop.permute.xlu2 %1076 }
 0x1ec   : > { %1993 = vmatpush.bf16.xpose.msrb.mxu2 %v4969_v4  ;;  %2619 = vmatpush.bf16.xpose.msrb.mxu0 %v4969_v4  ;;  %v3173_v4 = vld [vmem:[%s6317_s3 + $0xa0] sm:$0xf] }
 0x1ed   : > { %2082 = vmatpush.bf16.xpose.msrb.mxu3 %v4984_v8  ;;  %2708 = vmatpush.bf16.xpose.msrb.mxu1 %v4984_v8  ;;  %v3508_v8 = vld [vmem:[%s6317_s3 + $0xa4] sm:$0xf0] }
 0x1ee   : > { %v3174_v36 = vor.u32 %v3508_v8, %v3173_v4  ;;  %v3513_v4 = vld [vmem:[%s6317_s3 + $0xd4] sm:$0xf]  ;;  %v3199_v8 = vld [vmem:[%s6317_s3 + $0xd8] sm:$0xf0] }
 0x1ef   : > { %1737 = vperm.xlu2 %3979, %v1651_v25   ;;  %1777 = vperm.xlu0 %3980, %v1659_v44   ;;  %v3134_v25 = vor.u32 %v3498_v21, %v3133_v2  ;;  %v2271_v44 = vld [vmem:[%s6322_s8 + $0x38] sm:$0xff] }
 0x1f1   : > { %1772 = vperm.xlu1 %3981, %v1658_v54   ;;  %v5462_v54 = vpop.permute.xlu0 %1101 }
 0x1f3   : > { %1382 = vmatmul.bf16.gmra.mxu0 %v3110_v50  ;;  %1422 = vmatmul.bf16.gmra.mxu2 %v3174_v36  ;;  %v3198_v50 = vor.u32 %v3514_v1, %v3197_v11  ;;  %v5457_v36 = vpop.permute.xlu1 %1096 }
 0x1f4   : > { %1994 = vmatpush.bf16.xpose.msrb.mxu2 %v5010_v12  ;;  %2620 = vmatpush.bf16.xpose.msrb.mxu0 %v5010_v12  ;;  %v1654_v12 = vld [vmem:[%s6321_s7 + $0x80] sm:$0xff] }
 0x1f5   : > { %2083 = vmatpush.bf16.xpose.msrb.mxu3 %v5023_v33  ;;  %2709 = vmatpush.bf16.xpose.msrb.mxu1 %v5023_v33  ;;  %v1661_v33 = vld [vmem:[%s6321_s7 + $0xb8] sm:$0xff] }
 0x1f6   : > { %1511 = vmatmul.bf16.gmra.mxu3 %v3178_v56  ;;  %1471 = vmatmul.bf16.gmra.mxu1 %v3114_v10  ;;  %v3202_v56 = vor.u32 %v3513_v4, %v3199_v8  ;;  %v3138_v10 = vor.u32 %v3497_v43, %v3135_v7  ;;  %v2283_v8 = vld [vmem:[%s6322_s8 + $0x98] sm:$0xff]  ;;  %v2282_v43 = vld [vmem:[%s6322_s8 + $0x90] sm:$0xff] }
 0x1f7   : > { %1752 = vperm.xlu2 %3979, %v1654_v12   ;;  %1792 = vperm.xlu0 %3980, %v1662_v58   ;;  %v2270_v12 = vld [vmem:[%s6322_s8 + $0x30] sm:$0xff]  ;;  %v5470_v58 = vpop.permute.xlu2 %1091 }
 0x1f8   : > { %v2278_v7 = vld [vmem:[%s6322_s8 + $0x70] sm:$0xff] }
 0x1f9   : > { %1787 = vperm.xlu1 %3981, %v1661_v33   ;;  %v2266_v33 = vld [vmem:[%s6322_s8 + $0x10] sm:$0xff] }
 0x1fb   : > { %v5472_v46 = vpop.permute.xlu1 %1111 }
 0x1fc   : > { %1995 = vmatpush.bf16.xpose.msrb.mxu2 %v5041_v20  ;;  %2621 = vmatpush.bf16.xpose.msrb.mxu0 %v5041_v20  ;;  %v3181_v20 = vld [vmem:[%s6317_s3 + $0xb0] sm:$0xf] }
 0x1fd   : > { %2084 = vmatpush.bf16.xpose.msrb.mxu3 %v5052_v31  ;;  %2710 = vmatpush.bf16.xpose.msrb.mxu1 %v5052_v31  ;;  %v3510_v31 = vld [vmem:[%s6317_s3 + $0xb4] sm:$0xf0] }
 0x1fe   : > { %v3182_v13 = vor.u32 %v3510_v31, %v3181_v20  ;;  %v2274_v20 = vld [vmem:[%s6322_s8 + $0x50] sm:$0xff]  ;;  %v3141_v31 = vld [vmem:[%s6317_s3 + $0x60] sm:$0xf] }
 0x1ff   : > { %1767 = vperm.xlu2 %3979, %v1657_v40   ;;  %1807 = vperm.xlu0 %3980, %v1665_v18   ;;  %v3207_v40 = vld [vmem:[%s6317_s3 + $0xe8] sm:$0xf0]  ;;  %v3142_v18 = vor.u32 %v3500_v61, %v3141_v31  ;;  %v3552_v31 = vld [vmem:[%s6319_s5 + $0x4] sm:$0xf0]  ;;  %v3551_v61 = vld [vmem:[%s6319_s5 + $0x4] sm:$0xf] }
 0x203   : > { %1387 = vmatmul.bf16.gmra.mxu0 %v3118_v16  ;;  %1427 = vmatmul.bf16.gmra.mxu2 %v3182_v13  ;;  %v3499_v16 = vld [vmem:[%s6317_s3 + $0x64] sm:$0xf]  ;;  %v3143_v13 = vld [vmem:[%s6317_s3 + $0x68] sm:$0xf0] }
 0x204   : > { %1996 = vmatpush.bf16.xpose.msrb.mxu2 %v5067_v60  ;;  %2622 = vmatpush.bf16.xpose.msrb.mxu0 %v5067_v60  ;;  %v1664_v60 = vld [vmem:[%s6321_s7 + $0xd0] sm:$0xff] }
 0x205   : > { %2085 = vmatpush.bf16.xpose.msrb.mxu3 %v5075_v35  ;;  %2711 = vmatpush.bf16.xpose.msrb.mxu1 %v5075_v35  ;;  %v1660_v35 = vld [vmem:[%s6321_s7 + $0xb0] sm:$0xff] }
 0x206   : > { %1516 = vmatmul.bf16.gmra.mxu3 %v3186_v59  ;;  %1476 = vmatmul.bf16.gmra.mxu1 %v3122_v29  ;;  %v2269_v59 = vld [vmem:[%s6322_s8 + $0x28] sm:$0xff]  ;;  %v5507_v29 = vpop.permute.xlu0 %1116 }
 0x207   : > { %1802 = vperm.xlu1 %3981, %v1664_v60   ;;  %1782 = vperm.xlu2 %3979, %v1660_v35   ;;  %v3206_v60 = vor.u32 %v3516_v24, %v3205_v23  ;;  %v3210_v35 = vor.u32 %v3515_v63, %v3207_v40  ;;  %v3351_v23 = vld [vmem:[%s6319_s5 + $0x8] sm:$0xf0] }
 0x208   : > { %1822 = vperm.xlu0 %3980, %v1668_v53   ;;  %v5509_v53 = vpop.permute.xlu2 %1106  ;;  %v2281_v24 = vld [vmem:[%s6322_s8 + $0x88] sm:$0xff] }
 0x20c   : > { %1997 = vmatpush.bf16.xpose.msrb.mxu2 %v5159_v5  ;;  %2623 = vmatpush.bf16.xpose.msrb.mxu0 %v5159_v5  ;;  %v3496_v5 = vld [vmem:[%s6317_s3 + $0x44] sm:$0xf0] }
 0x20d   : > { %2086 = vmatpush.bf16.xpose.msrb.mxu3 %v5161_v22  ;;  %2712 = vmatpush.bf16.xpose.msrb.mxu1 %v5161_v22  ;;  %v3189_v22 = vld [vmem:[%s6317_s3 + $0xc0] sm:$0xf]  ;;  %v3126_v26 = vor.u32 %v3496_v5, %v3125_v57  ;;  %v2277_v57 = vld [vmem:[%s6322_s8 + $0x68] sm:$0xff]  ;;  %v5514_v5 = vpop.permute.xlu1 %1126 }
 0x20e   : > { %v3190_v48 = vor.u32 %v3512_v45, %v3189_v22  ;;  %v2276_v22 = vld [vmem:[%s6322_s8 + $0x60] sm:$0xff]  ;;  %v5522_v19 = vpop.permute.xlu0 %1131 }
 0x20f   : > { %1817 = vperm.xlu1 %3981, %v1667_v38   ;;  %1797 = vperm.xlu2 %3979, %v1663_v3   ;;  %v3146_v38 = vor.u32 %v3499_v16, %v3143_v13  ;;  %v2272_v45 = vld [vmem:[%s6322_s8 + $0x40] sm:$0xff]  ;;  %v3502_v3 = vld [vmem:[%s6317_s3 + $0x74] sm:$0xf0] }
 0x210   : > { %2303 = vperm.xlu0 %3980, %v2265_v49   ;;  %v3215_v49 = vld [vmem:[%s6317_s3 + $0xf8] sm:$0xf0]  ;;  %v3150_v2 = vor.u32 %v3502_v3, %v3149_v0 }
 0x213   : > { %1392 = vmatmul.bf16.gmra.mxu0 %v3126_v26  ;;  %1432 = vmatmul.bf16.gmra.mxu2 %v3190_v48  ;;  %v3213_v26 = vld [vmem:[%s6317_s3 + $0xf0] sm:$0xf]  ;;  %v5539_v48 = vpop.permute.xlu2 %1121 }
 0x216   : > { %1521 = vmatmul.bf16.gmra.mxu3 %v3194_v17  ;;  %1481 = vmatmul.bf16.gmra.mxu1 %v3130_v47  ;;  %v3518_v17 = vld [vmem:[%s6317_s3 + $0xf4] sm:$0xf0]  ;;  %v3517_v47 = vld [vmem:[%s6317_s3 + $0xf4] sm:$0xf]  ;;  %v5561_v4 = vpop.permute.xlu0 %1146 }
 0x217   : > { %2298 = vperm.xlu1 %3981, %v2264_v9   ;;  %1812 = vperm.xlu2 %3979, %v1666_v14   ;;  %v3501_v9 = vld [vmem:[%s6317_s3 + $0x74] sm:$0xf]  ;;  %v3151_v14 = vld [vmem:[%s6317_s3 + $0x78] sm:$0xf0]  ;;  %v3214_v21 = vor.u32 %v3518_v17, %v3213_v26  ;;  %v3218_v11 = vor.u32 %v3517_v47, %v3215_v49 }
 0x218   : > { %2318 = vperm.xlu0 %3980, %v2268_v34   ;;  %v5559_v34 = vpop.permute.xlu1 %1141  ;;  %v3154_v1 = vor.u32 %v3501_v9, %v3151_v14  ;;  %v2292_v9 = vld [vmem:[%s6322_s8 + $0xe0] sm:$0xff] }
 0x21f   : > { %2313 = vperm.xlu1 %3981, %v2267_v42   ;;  %1827 = vperm.xlu2 %3979, %v1669_v28   ;;  %v2275_v42 = vld [vmem:[%s6322_s8 + $0x58] sm:$0xff]  ;;  %v5572_v28 = vpop.permute.xlu2 %1136 }
 0x220   : > { %2333 = vperm.xlu0 %3980, %v2271_v44   ;;  %v3520_v44 = vld [vmem:[%s6318_s4 + $0x4] sm:$0xf0] }
 0x223   : > { %1397 = vmatmul.bf16.gmra.mxu0 %v3134_v25  ;;  %1437 = vmatmul.bf16.gmra.mxu2 %v3198_v50  ;;  %v5574_v25 = vpop.permute.xlu1 %1156  ;;  %v2285_v50 = vld [vmem:[%s6322_s8 + $0xa8] sm:$0xff] }
 0x226   : > { %1526 = vmatmul.bf16.gmra.mxu3 %v3202_v56  ;;  %1486 = vmatmul.bf16.gmra.mxu1 %v3138_v10  ;;  %v2286_v56 = vld [vmem:[%s6322_s8 + $0xb0] sm:$0xff]  ;;  %v3221_v10 = vld [vmem:[%s6318_s4] sm:$0xf] }
 0x227   : > { %2328 = vperm.xlu1 %3981, %v2270_v12   ;;  %2308 = vperm.xlu2 %3979, %v2266_v33   ;;  %v3519_v12 = vld [vmem:[%s6318_s4 + $0x4] sm:$0xf]  ;;  %v5591_v33 = vpop.permute.xlu0 %1161  ;;  %v3222_v63 = vor.u32 %v3520_v44, %v3221_v10  ;;  %v5611_v16 = vpop.permute.xlu2 %1151  ;;  %v2287_v10 = vld [vmem:[%s6322_s8 + $0xb8] sm:$0xff] }
 0x228   : > { %2348 = vperm.xlu0 %3980, %v2274_v20   ;;  %v3349_v20 = vld [vmem:[%s6319_s5] sm:$0xf] }
 0x229   : > { %v3350_v40 = vor.u32 %v3552_v31, %v3349_v20 }
 0x22f   : > { %2343 = vperm.xlu1 %3981, %v2273_v15   ;;  %2323 = vperm.xlu2 %3979, %v2269_v59   ;;  %v3223_v15 = vld [vmem:[%s6318_s4 + $0x8] sm:$0xf0]  ;;  %v5631_v49 = vpop.permute.xlu2 %1166 }
 0x230   : > { %2363 = vperm.xlu0 %3980, %v2277_v57   ;;  %v3226_v59 = vor.u32 %v3519_v12, %v3223_v15  ;;  %v2288_v57 = vld [vmem:[%s6322_s8 + $0xc0] sm:$0xff] }
 0x233   : > { %1402 = vmatmul.bf16.gmra.mxu0 %v3142_v18  ;;  %1442 = vmatmul.bf16.gmra.mxu2 %v3206_v60  ;;  %v3354_v18 = vor.u32 %v3551_v61, %v3351_v23 }
 0x236   : > { %1531 = vmatmul.bf16.gmra.mxu3 %v3210_v35  ;;  %1491 = vmatmul.bf16.gmra.mxu1 %v3146_v38  ;;  %v5613_v35 = vpop.permute.xlu1 %1171  ;;  %v2289_v38 = vld [vmem:[%s6322_s8 + $0xc8] sm:$0xff] }
 0x237   : > { %2358 = vperm.xlu1 %3981, %v2276_v22   ;;  %2338 = vperm.xlu2 %3979, %v2272_v45   ;;  %v2284_v45 = vld [vmem:[%s6322_s8 + $0xa0] sm:$0xff] }
 0x238   : > { %2378 = vperm.xlu0 %3980, %v2280_v55  }
 0x23f   : > { %2373 = vperm.xlu1 %3981, %v2279_v51   ;;  %2353 = vperm.xlu2 %3979, %v2275_v42   ;;  %v5625_v51 = vpop.permute.xlu0 %1176  ;;  %v3229_v42 = vld [vmem:[%s6318_s4 + $0x10] sm:$0xf] }
 0x240   : > { %2393 = vperm.xlu0 %3980, %v2283_v8   ;;  %v3554_v8 = vld [vmem:[%s6319_s5 + $0x14] sm:$0xf0] }
 0x243   : > { %1407 = vmatmul.bf16.gmra.mxu0 %v3150_v2  ;;  %1447 = vmatmul.bf16.gmra.mxu2 %v3214_v21  ;;  %v3521_v2 = vld [vmem:[%s6318_s4 + $0x14] sm:$0xf]  ;;  %v5648_v21 = vpop.permute.xlu1 %1186 }
 0x246   : > { %1536 = vmatmul.bf16.gmra.mxu3 %v3218_v11  ;;  %1496 = vmatmul.bf16.gmra.mxu1 %v3154_v1  ;;  %v3231_v11 = vld [vmem:[%s6318_s4 + $0x18] sm:$0xf0]  ;;  %v3357_v1 = vld [vmem:[%s6319_s5 + $0x10] sm:$0xf] }
 0x247   : > { %2388 = vperm.xlu1 %3981, %v2282_v43   ;;  %2368 = vperm.xlu2 %3979, %v2278_v7   ;;  %v3358_v20 = vor.u32 %v3554_v8, %v3357_v1  ;;  %v5674_v31 = vpop.permute.xlu0 %1191  ;;  %v3234_v23 = vor.u32 %v3521_v2, %v3231_v11  ;;  %v3555_v1 = vld [vmem:[%s6319_s5 + $0x24] sm:$0xf]  ;;  %v3367_v8 = vld [vmem:[%s6319_s5 + $0x28] sm:$0xf0] }
 0x248   : > { %2408 = vperm.xlu0 %3980, %v2286_v56   ;;  %v3359_v56 = vld [vmem:[%s6319_s5 + $0x18] sm:$0xf0] }
 0x24f   : > { %2403 = vperm.xlu1 %3981, %v2285_v50   ;;  %2383 = vperm.xlu2 %3979, %v2281_v24   ;;  %v3553_v50 = vld [vmem:[%s6319_s5 + $0x14] sm:$0xf] }
 0x250   : > { %v1373_v13 = vpop.f32.mrf.mxu0  ;;  %2423 = vperm.xlu0 %3980, %v2289_v38   ;;  %v3362_v24 = vor.u32 %v3553_v50, %v3359_v56 }
 0x251   : > { %v1374_v22 = vadd.f32 %v1373_v13, %v5350_v39  ;;  %v2291_v39 = vld [vmem:[%s6322_s8 + $0xd8] sm:$0xff] }
 0x253   : > { %v1462_v60 = vpop.f32.mrf.mxu1  ;;  %1998 = vmatmul.bf16.vlgmr.msrb.gmra.mxu2 %v3222_v63  ;;  %2624 = vmatmul.bf16.vlgmr.msrb.gmra.mxu0 %v3350_v40 }
 0x254   : > { %v1463_v26 = vadd.f32 %v1462_v60, %v1374_v22  ;;  %v2294_v60 = vld [vmem:[%s6322_s8 + $0xf0] sm:$0xff]  ;;  %v5689_v22 = vpop.permute.xlu1 %1201 }
 0x256   : > { %2087 = vmatmul.bf16.vlgmr.msrb.gmra.mxu3 %v3226_v59  ;;  %2713 = vmatmul.bf16.vlgmr.msrb.gmra.mxu1 %v3354_v18  ;;  %v1413_v55 = vpop.f32.mrf.mxu2  ;;  %v2295_v59 = vld [vmem:[%s6322_s8 + $0xf8] sm:$0xff] }
 0x257   : > { %2418 = vperm.xlu1 %3981, %v2288_v57   ;;  %2398 = vperm.xlu2 %3979, %v2284_v45   ;;  %v1414_v43 = vadd.f32 %v1413_v55, %v5514_v5  ;;  %v2290_v57 = vld [vmem:[%s6322_s8 + $0xd0] sm:$0xff] }
 0x258   : > { %v1375_v3 = vpop.f32.mrf.mxu0  ;;  %2438 = vperm.xlu0 %3980, %v2292_v9   ;;  %v3524_v9 = vld [vmem:[%s6318_s4 + $0x24] sm:$0xf0] }
 0x259   : > { %v1502_v0 = vpop.f32.mrf.mxu3  ;;  %v1376_v17 = vadd.f32 %v1375_v3, %v5405_v62  ;;  %v3522_v62 = vld [vmem:[%s6318_s4 + $0x14] sm:$0xf0] }
 0x25a   : > { %v3230_v15 = vor.u32 %v3522_v62, %v3229_v42  ;;  %v1503_v63 = vadd.f32 %v1502_v0, %v1414_v43  ;;  %v3365_v42 = vld [vmem:[%s6319_s5 + $0x20] sm:$0xf]  ;;  %v3556_v62 = vld [vmem:[%s6319_s5 + $0x24] sm:$0xf0] }
 0x25b   : > { %v1464_v47 = vpop.f32.mrf.mxu1  ;;  %v2293_v43 = vld [vmem:[%s6322_s8 + $0xe8] sm:$0xff] }
 0x25c   : > { %v1465_v14 = vadd.f32 %v1464_v47, %v1376_v17  ;;  %v5692_v47 = vpop.permute.xlu0 %1672 }
 0x25e   : > { %v3586_v7 = vpack.c.bf16 %v1465_v14, %v1463_v26  ;;  %v1415_v44 = vpop.f32.mrf.mxu2  ;;  %v3523_v14 = vld [vmem:[%s6318_s4 + $0x24] sm:$0xf] }
 0x25f   : > { %2433 = vperm.xlu1 %3981, %v2291_v39   ;;  %v1416_v5 = vadd.f32 %v1415_v44, %v5522_v19  ;;  %2413 = vperm.xlu2 %3979, %v2287_v10   ;;  %v5679_v19 = vpop.permute.xlu2 %1181  ;;  %v3237_v39 = vld [vmem:[%s6318_s4 + $0x20] sm:$0xf]  ;;  %v3366_v44 = vor.u32 %v3556_v62, %v3365_v42 }
 0x260   : > { %3587 = vst [vmem:[%s5670_s20] sm:$0xff] %v3586_v7   ;;  %v1378_v61 = vpop.f32.mrf.mxu0  ;;  %2453 = vperm.xlu0 %3980, %v2295_v59   ;;  %v3238_v10 = vor.u32 %v3524_v9, %v3237_v39  ;;  %v3247_v9 = vld [vmem:[%s6318_s4 + $0x38] sm:$0xf0] }
 0x261   : > { %v1504_v12 = vpop.f32.mrf.mxu3  ;;  %v1379_v38 = vadd.f32 %v1378_v61, %v5353_v52 }
 0x262   : > { %v1505_v40 = vadd.f32 %v1504_v12, %v1416_v5  ;;  %v5726_v5 = vpop.permute.xlu1 %1682 }
 0x263   : > { %v1467_v13 = vpop.f32.mrf.mxu1  ;;  %2003 = vmatmul.bf16.gmra.mxu2 %v3230_v15  ;;  %2629 = vmatmul.bf16.gmra.mxu0 %v3358_v20  ;;  %v3370_v20 = vor.u32 %v3555_v1, %v3367_v8 }
 0x264   : > { %v3626_v18 = vpack.c.bf16 %v1505_v40, %v1503_v63  ;;  %v1468_v3 = vadd.f32 %v1467_v13, %v1379_v38  ;;  %v5728_v40 = vpop.permute.xlu0 %1687 }
 0x266   : > { %2092 = vmatmul.bf16.gmra.mxu3 %v3234_v23  ;;  %2718 = vmatmul.bf16.gmra.mxu1 %v3362_v24  ;;  %3830 = vst [vmem:[%s5670_s20 + $0x40] sm:$0xff] %v3626_v18   ;;  %v1418_v45 = vpop.f32.mrf.mxu2 }
 0x267   : > { %2448 = vperm.xlu1 %3981, %v2294_v60   ;;  %2428 = vperm.xlu2 %3979, %v2290_v57   ;;  %v1419_v2 = vadd.f32 %v1418_v45, %v5572_v28  ;;  %v5722_v7 = vpop.permute.xlu2 %1196 }
 0x268   : > { %v1380_v0 = vpop.f32.mrf.mxu0 }
 0x269   : > { %v1507_v55 = vpop.f32.mrf.mxu3  ;;  %v1381_v26 = vadd.f32 %v1380_v0, %v5368_v6  ;;  %v3239_v6 = vld [vmem:[%s6318_s4 + $0x28] sm:$0xf0] }
 0x26a   : > { %v3242_v15 = vor.u32 %v3523_v14, %v3239_v6  ;;  %v1508_v61 = vadd.f32 %v1507_v55, %v1419_v2  ;;  %v5735_v55 = vpop.permute.xlu1 %1697  ;;  %v3557_v14 = vld [vmem:[%s6319_s5 + $0x34] sm:$0xf]  ;;  %v3375_v6 = vld [vmem:[%s6319_s5 + $0x38] sm:$0xf0] }
 0x26b   : > { %v1469_v17 = vpop.f32.mrf.mxu1 }
 0x26c   : > { %v1470_v52 = vadd.f32 %v1469_v17, %v1381_v26  ;;  %v3525_v26 = vld [vmem:[%s6318_s4 + $0x34] sm:$0xf]  ;;  %v3558_v17 = vld [vmem:[%s6319_s5 + $0x34] sm:$0xf0]  ;;  %v5762_v42 = vpop.permute.xlu0 %1702 }
 0x26e   : > { %v3591_v11 = vpack.c.bf16 %v1470_v52, %v1468_v3  ;;  %v1420_v50 = vpop.f32.mrf.mxu2  ;;  %v3245_v3 = vld [vmem:[%s6318_s4 + $0x30] sm:$0xf] }
 0x26f   : > { %v1421_v56 = vadd.f32 %v1420_v50, %v5559_v34  ;;  %2443 = vperm.xlu2 %3979, %v2293_v43   ;;  %v5732_v18 = vpop.permute.xlu2 %1677  ;;  %v3250_v43 = vor.u32 %v3525_v26, %v3247_v9  ;;  %v3378_v50 = vor.u32 %v3557_v14, %v3375_v6  ;;  %v3559_v26 = vld [vmem:[%s6319_s5 + $0x44] sm:$0xf] }
 0x270   : > { %3823 = vst [vmem:[%s5670_s20 + $0x8] sm:$0xff] %v3591_v11   ;;  %v1383_v12 = vpop.f32.mrf.mxu0 }
 0x271   : > { %v1509_v28 = vpop.f32.mrf.mxu3  ;;  %v1384_v34 = vadd.f32 %v1383_v12, %v5410_v41  ;;  %v3526_v41 = vld [vmem:[%s6318_s4 + $0x34] sm:$0xf0] }
 0x272   : > { %v1510_v23 = vadd.f32 %v1509_v28, %v1421_v56  ;;  %v3246_v11 = vor.u32 %v3526_v41, %v3245_v3  ;;  %v3255_v41 = vld [vmem:[%s6318_s4 + $0x48] sm:$0xf0] }
 0x273   : > { %v1472_v24 = vpop.f32.mrf.mxu1  ;;  %2008 = vmatmul.bf16.gmra.mxu2 %v3238_v10  ;;  %2634 = vmatmul.bf16.gmra.mxu0 %v3366_v44 }
 0x274   : > { %v3631_v63 = vpack.c.bf16 %v1510_v23, %v1508_v61  ;;  %v1473_v38 = vadd.f32 %v1472_v24, %v1384_v34  ;;  %v5772_v23 = vpop.permute.xlu0 %1717 }
 0x276   : > { %2097 = vmatmul.bf16.gmra.mxu3 %v3242_v15  ;;  %2723 = vmatmul.bf16.gmra.mxu1 %v3370_v20  ;;  %3831 = vst [vmem:[%s5670_s20 + $0x48] sm:$0xff] %v3631_v63   ;;  %v1423_v13 = vpop.f32.mrf.mxu2  ;;  %v5768_v15 = vpop.permute.xlu1 %1712 }
 0x277   : > { %v1424_v52 = vadd.f32 %v1423_v13, %v5561_v4  ;;  %v5766_v44 = vpop.permute.xlu2 %1692 }
 0x278   : > { %v1385_v60 = vpop.f32.mrf.mxu0 }
 0x279   : > { %v1512_v59 = vpop.f32.mrf.mxu3  ;;  %v1386_v57 = vadd.f32 %v1385_v60, %v5385_v27  ;;  %v3373_v27 = vld [vmem:[%s6319_s5 + $0x30] sm:$0xf]  ;;  %v3253_v60 = vld [vmem:[%s6318_s4 + $0x40] sm:$0xf] }
 0x27a   : > { %v3374_v1 = vor.u32 %v3558_v17, %v3373_v27  ;;  %v1513_v56 = vadd.f32 %v1512_v59, %v1424_v52  ;;  %v3383_v27 = vld [vmem:[%s6319_s5 + $0x48] sm:$0xf0] }
 0x27b   : > { %v1474_v45 = vpop.f32.mrf.mxu1 }
 0x27c   : > { %v1475_v0 = vadd.f32 %v1474_v45, %v1386_v57  ;;  %v3527_v57 = vld [vmem:[%s6318_s4 + $0x44] sm:$0xf]  ;;  %v3560_v45 = vld [vmem:[%s6319_s5 + $0x44] sm:$0xf0] }
 0x27e   : > { %v3596_v39 = vpack.c.bf16 %v1475_v0, %v1473_v38  ;;  %v1425_v62 = vpop.f32.mrf.mxu2  ;;  %v3528_v38 = vld [vmem:[%s6318_s4 + $0x44] sm:$0xf0]  ;;  %v5802_v17 = vpop.permute.xlu1 %1727 }
 0x27f   : > { %v1426_v2 = vadd.f32 %v1425_v62, %v5611_v16  ;;  %v3254_v9 = vor.u32 %v3528_v38, %v3253_v60  ;;  %v3258_v62 = vor.u32 %v3527_v57, %v3255_v41  ;;  %v3263_v57 = vld [vmem:[%s6318_s4 + $0x58] sm:$0xf0] }
 0x280   : > { %3824 = vst [vmem:[%s5670_s20 + $0x10] sm:$0xff] %v3596_v39   ;;  %v1388_v8 = vpop.f32.mrf.mxu0 }
 0x281   : > { %v1514_v4 = vpop.f32.mrf.mxu3  ;;  %v1389_v16 = vadd.f32 %v1388_v8, %v5455_v32  ;;  %v5781_v32 = vpop.permute.xlu2 %1707 }
 0x282   : > { %v1515_v28 = vadd.f32 %v1514_v4, %v1426_v2  ;;  %v3386_v2 = vor.u32 %v3559_v26, %v3383_v27  ;;  %v5806_v8 = vpop.permute.xlu0 %1732 }
 0x283   : > { %v1477_v10 = vpop.f32.mrf.mxu1  ;;  %2013 = vmatmul.bf16.gmra.mxu2 %v3246_v11  ;;  %2639 = vmatmul.bf16.gmra.mxu0 %v3374_v1 }
 0x284   : > { %v3636_v12 = vpack.c.bf16 %v1515_v28, %v1513_v56  ;;  %v1478_v63 = vadd.f32 %v1477_v10, %v1389_v16 }
 0x286   : > { %2102 = vmatmul.bf16.gmra.mxu3 %v3250_v43  ;;  %2728 = vmatmul.bf16.gmra.mxu1 %v3378_v50  ;;  %3832 = vst [vmem:[%s5670_s20 + $0x50] sm:$0xff] %v3636_v12   ;;  %v1428_v20 = vpop.f32.mrf.mxu2  ;;  %v5812_v10 = vpop.permute.xlu1 %1742 }
 0x287   : > { %v1429_v0 = vadd.f32 %v1428_v20, %v5574_v25 }
 0x288   : > { %v1390_v24 = vpop.f32.mrf.mxu0 }
 0x289   : > { %v1517_v61 = vpop.f32.mrf.mxu3  ;;  %v1391_v34 = vadd.f32 %v1390_v24, %v5418_v37  ;;  %v3381_v37 = vld [vmem:[%s6319_s5 + $0x40] sm:$0xf]  ;;  %v5810_v50 = vpop.permute.xlu2 %1722 }
 0x28a   : > { %v3382_v14 = vor.u32 %v3560_v45, %v3381_v37  ;;  %v1518_v4 = vadd.f32 %v1517_v61, %v1429_v0  ;;  %v3561_v37 = vld [vmem:[%s6319_s5 + $0x54] sm:$0xf]  ;;  %v3391_v45 = vld [vmem:[%s6319_s5 + $0x58] sm:$0xf0] }
 0x28b   : > { %v1479_v13 = vpop.f32.mrf.mxu1 }
 0x28c   : > { %v1480_v59 = vadd.f32 %v1479_v13, %v1391_v34  ;;  %v5821_v34 = vpop.permute.xlu0 %1747  ;;  %v3529_v13 = vld [vmem:[%s6318_s4 + $0x54] sm:$0xf] }
 0x28e   : > { %v3601_v3 = vpack.c.bf16 %v1480_v59, %v1478_v63  ;;  %v1430_v52 = vpop.f32.mrf.mxu2  ;;  %v3261_v63 = vld [vmem:[%s6318_s4 + $0x50] sm:$0xf]  ;;  %v3562_v59 = vld [vmem:[%s6319_s5 + $0x54] sm:$0xf0] }
 0x28f   : > { %v1431_v39 = vadd.f32 %v1430_v52, %v5591_v33 }
 0x290   : > { %3825 = vst [vmem:[%s5670_s20 + $0x18] sm:$0xff] %v3601_v3   ;;  %v1393_v6 = vpop.f32.mrf.mxu0 }
 0x291   : > { %v1519_v25 = vpop.f32.mrf.mxu3  ;;  %v1394_v33 = vadd.f32 %v1393_v6, %v5420_v30  ;;  %v3530_v30 = vld [vmem:[%s6318_s4 + $0x54] sm:$0xf0]  ;;  %v5844_v27 = vpop.permute.xlu2 %1737 }
 0x292   : > { %v1520_v11 = vadd.f32 %v1519_v25, %v1431_v39  ;;  %v3266_v39 = vor.u32 %v3529_v13, %v3263_v57  ;;  %v3394_v25 = vor.u32 %v3561_v37, %v3391_v45 }
 0x293   : > { %v1482_v1 = vpop.f32.mrf.mxu1  ;;  %2018 = vmatmul.bf16.gmra.mxu2 %v3254_v9  ;;  %2644 = vmatmul.bf16.gmra.mxu0 %v3382_v14 }
 0x294   : > { %v3641_v43 = vpack.c.bf16 %v1520_v11, %v1518_v4  ;;  %v1483_v16 = vadd.f32 %v1482_v1, %v1394_v33  ;;  %v5850_v4 = vpop.permute.xlu0 %1762 }
 0x296   : > { %2107 = vmatmul.bf16.gmra.mxu3 %v3258_v62  ;;  %2733 = vmatmul.bf16.gmra.mxu1 %v3386_v2  ;;  %3833 = vst [vmem:[%s5670_s20 + $0x58] sm:$0xff] %v3641_v43   ;;  %v1433_v56 = vpop.f32.mrf.mxu2  ;;  %v5846_v62 = vpop.permute.xlu1 %1757 }
 0x297   : > { %v1434_v60 = vadd.f32 %v1433_v56, %v5631_v49  ;;  %v3262_v49 = vor.u32 %v3530_v30, %v3261_v63  ;;  %v3564_v63 = vld [vmem:[%s6319_s5 + $0x64] sm:$0xf0] }
 0x298   : > { %v1395_v12 = vpop.f32.mrf.mxu0 }
 0x299   : > { %v1522_v28 = vpop.f32.mrf.mxu3  ;;  %v1396_v20 = vadd.f32 %v1395_v12, %v5470_v58  ;;  %v3389_v58 = vld [vmem:[%s6319_s5 + $0x50] sm:$0xf]  ;;  %v5853_v12 = vpop.permute.xlu2 %1752 }
 0x29a   : > { %v3390_v26 = vor.u32 %v3562_v59, %v3389_v58  ;;  %v1523_v9 = vadd.f32 %v1522_v28, %v1434_v60  ;;  %v3271_v58 = vld [vmem:[%s6318_s4 + $0x68] sm:$0xf0]  ;;  %v3563_v59 = vld [vmem:[%s6319_s5 + $0x64] sm:$0xf] }
 0x29b   : > { %v1484_v61 = vpop.f32.mrf.mxu1  ;;  %v3399_v60 = vld [vmem:[%s6319_s5 + $0x68] sm:$0xf0] }
 0x29c   : > { %v1485_v24 = vadd.f32 %v1484_v61, %v1396_v20  ;;  %v3269_v20 = vld [vmem:[%s6318_s4 + $0x60] sm:$0xf] }
 0x29e   : > { %v3606_v38 = vpack.c.bf16 %v1485_v24, %v1483_v16  ;;  %v1435_v0 = vpop.f32.mrf.mxu2  ;;  %v5861_v61 = vpop.permute.xlu1 %1772  ;;  %v3531_v24 = vld [vmem:[%s6318_s4 + $0x64] sm:$0xf] }
 0x29f   : > { %v1436_v3 = vadd.f32 %v1435_v0, %v5613_v35  ;;  %v5884_v0 = vpop.permute.xlu0 %1777 }
 0x2a0   : > { %3826 = vst [vmem:[%s5670_s20 + $0x20] sm:$0xff] %v3606_v38   ;;  %v1398_v52 = vpop.f32.mrf.mxu0 }
 0x2a1   : > { %v1524_v41 = vpop.f32.mrf.mxu3  ;;  %v1399_v35 = vadd.f32 %v1398_v52, %v5457_v36  ;;  %v3532_v36 = vld [vmem:[%s6318_s4 + $0x64] sm:$0xf0] }
 0x2a2   : > { %v1525_v14 = vadd.f32 %v1524_v41, %v1436_v3  ;;  %v3274_v41 = vor.u32 %v3531_v24, %v3271_v58 }
 0x2a3   : > { %v1487_v6 = vpop.f32.mrf.mxu1  ;;  %2023 = vmatmul.bf16.gmra.mxu2 %v3262_v49  ;;  %2649 = vmatmul.bf16.gmra.mxu0 %v3390_v26  ;;  %v3402_v49 = vor.u32 %v3563_v59, %v3399_v60 }
 0x2a4   : > { %v3646_v2 = vpack.c.bf16 %v1525_v14, %v1523_v9  ;;  %v1488_v33 = vadd.f32 %v1487_v6, %v1399_v35  ;;  %v5886_v9 = vpop.permute.xlu2 %1767 }
 0x2a6   : > { %2112 = vmatmul.bf16.gmra.mxu3 %v3266_v39  ;;  %2738 = vmatmul.bf16.gmra.mxu1 %v3394_v25  ;;  %3834 = vst [vmem:[%s5670_s20 + $0x60] sm:$0xff] %v3646_v2   ;;  %v1438_v11 = vpop.f32.mrf.mxu2  ;;  %v5890_v14 = vpop.permute.xlu1 %1787 }
 0x2a7   : > { %v1439_v30 = vadd.f32 %v1438_v11, %v5625_v51  ;;  %v3270_v51 = vor.u32 %v3532_v36, %v3269_v20  ;;  %v3566_v20 = vld [vmem:[%s6319_s5 + $0x74] sm:$0xf0] }
 0x2a8   : > { %v1400_v43 = vpop.f32.mrf.mxu0 }
 0x2a9   : > { %v1527_v1 = vpop.f32.mrf.mxu3  ;;  %v1401_v56 = vadd.f32 %v1400_v43, %v5462_v54  ;;  %v3397_v54 = vld [vmem:[%s6319_s5 + $0x60] sm:$0xf] }
 0x2aa   : > { %v3398_v45 = vor.u32 %v3564_v63, %v3397_v54  ;;  %v1528_v26 = vadd.f32 %v1527_v1, %v1439_v30  ;;  %v3279_v54 = vld [vmem:[%s6318_s4 + $0x78] sm:$0xf0]  ;;  %v3565_v63 = vld [vmem:[%s6319_s5 + $0x74] sm:$0xf] }
 0x2ab   : > { %v1489_v28 = vpop.f32.mrf.mxu1  ;;  %v3407_v30 = vld [vmem:[%s6319_s5 + $0x78] sm:$0xf0] }
 0x2ac   : > { %v1490_v16 = vadd.f32 %v1489_v28, %v1401_v56  ;;  %v3277_v28 = vld [vmem:[%s6318_s4 + $0x70] sm:$0xf] }
 0x2ae   : > { %v3611_v13 = vpack.c.bf16 %v1490_v16, %v1488_v33  ;;  %v1440_v38 = vpop.f32.mrf.mxu2  ;;  %v5893_v33 = vpop.permute.xlu0 %1792  ;;  %v3533_v16 = vld [vmem:[%s6318_s4 + $0x74] sm:$0xf] }
 0x2af   : > { %v1441_v57 = vadd.f32 %v1440_v38, %v5679_v19 }
 0x2b0   : > { %3827 = vst [vmem:[%s5670_s20 + $0x28] sm:$0xff] %v3611_v13   ;;  %v1403_v3 = vpop.f32.mrf.mxu0  ;;  %v5920_v13 = vpop.permute.xlu2 %1782 }
 0x2b1   : > { %v1529_v37 = vpop.f32.mrf.mxu3  ;;  %v1404_v19 = vadd.f32 %v1403_v3, %v5509_v53  ;;  %v3534_v53 = vld [vmem:[%s6318_s4 + $0x74] sm:$0xf0] }
 0x2b2   : > { %v1530_v52 = vadd.f32 %v1529_v37, %v1441_v57  ;;  %v3278_v60 = vor.u32 %v3534_v53, %v3277_v28  ;;  %v5924_v57 = vpop.permute.xlu1 %1802  ;;  %v3535_v28 = vld [vmem:[%s6318_s4 + $0x84] sm:$0xf]  ;;  %v3568_v53 = vld [vmem:[%s6319_s5 + $0x84] sm:$0xf0] }
 0x2b3   : > { %v1492_v39 = vpop.f32.mrf.mxu1  ;;  %2028 = vmatmul.bf16.gmra.mxu2 %v3270_v51  ;;  %2654 = vmatmul.bf16.gmra.mxu0 %v3398_v45  ;;  %v3282_v51 = vor.u32 %v3533_v16, %v3279_v54  ;;  %v3410_v45 = vor.u32 %v3565_v63, %v3407_v30 }
 0x2b4   : > { %v3651_v25 = vpack.c.bf16 %v1530_v52, %v1528_v26  ;;  %v1493_v11 = vadd.f32 %v1492_v39, %v1404_v19 }
 0x2b6   : > { %2117 = vmatmul.bf16.gmra.mxu3 %v3274_v41  ;;  %2743 = vmatmul.bf16.gmra.mxu1 %v3402_v49  ;;  %3835 = vst [vmem:[%s5670_s20 + $0x68] sm:$0xff] %v3651_v25   ;;  %v1443_v6 = vpop.f32.mrf.mxu2  ;;  %v5926_v52 = vpop.permute.xlu0 %1807 }
 0x2b7   : > { %v1444_v36 = vadd.f32 %v1443_v6, %v5648_v21 }
 0x2b8   : > { %v1405_v35 = vpop.f32.mrf.mxu0  ;;  %v5930_v19 = vpop.permute.xlu2 %1797 }
 0x2b9   : > { %v1532_v2 = vpop.f32.mrf.mxu3  ;;  %v1406_v1 = vadd.f32 %v1405_v35, %v5472_v46  ;;  %v3405_v46 = vld [vmem:[%s6319_s5 + $0x70] sm:$0xf] }
 0x2ba   : > { %v3406_v38 = vor.u32 %v3566_v20, %v3405_v46  ;;  %v1533_v3 = vadd.f32 %v1532_v2, %v1444_v36  ;;  %v3287_v20 = vld [vmem:[%s6318_s4 + $0x88] sm:$0xf0]  ;;  %v3567_v36 = vld [vmem:[%s6319_s5 + $0x84] sm:$0xf] }
 0x2bb   : > { %v1494_v43 = vpop.f32.mrf.mxu1 }
 0x2bc   : > { %v1495_v56 = vadd.f32 %v1494_v43, %v1406_v1  ;;  %v5933_v1 = vpop.permute.xlu1 %1817 }
 0x2be   : > { %v3616_v24 = vpack.c.bf16 %v1495_v56, %v1493_v11  ;;  %v1445_v58 = vpop.f32.mrf.mxu2  ;;  %v3285_v56 = vld [vmem:[%s6318_s4 + $0x80] sm:$0xf]  ;;  %v5960_v54 = vpop.permute.xlu0 %1822 }
 0x2bf   : > { %v1446_v59 = vadd.f32 %v1445_v58, %v5674_v31 }
 0x2c0   : > { %3828 = vst [vmem:[%s5670_s20 + $0x30] sm:$0xff] %v3616_v24   ;;  %v1408_v37 = vpop.f32.mrf.mxu0  ;;  %v3415_v24 = vld [vmem:[%s6319_s5 + $0x88] sm:$0xf0] }
 0x2c1   : > { %v1534_v21 = vpop.f32.mrf.mxu3  ;;  %v1409_v31 = vadd.f32 %v1408_v37, %v5507_v29  ;;  %v3536_v29 = vld [vmem:[%s6318_s4 + $0x84] sm:$0xf0] }
 0x2c2   : > { %v1535_v41 = vadd.f32 %v1534_v21, %v1446_v59  ;;  %v3286_v58 = vor.u32 %v3536_v29, %v3285_v56  ;;  %v3538_v56 = vld [vmem:[%s6318_s4 + $0x94] sm:$0xf0] }
 0x2c3   : > { %v1497_v49 = vpop.f32.mrf.mxu1  ;;  %2033 = vmatmul.bf16.gmra.mxu2 %v3278_v60  ;;  %2659 = vmatmul.bf16.gmra.mxu0 %v3406_v38  ;;  %v3290_v60 = vor.u32 %v3535_v28, %v3287_v20  ;;  %v3418_v38 = vor.u32 %v3567_v36, %v3415_v24  ;;  %v3537_v28 = vld [vmem:[%s6318_s4 + $0x94] sm:$0xf]  ;;  %v3295_v20 = vld [vmem:[%s6318_s4 + $0x98] sm:$0xf0] }
 0x2c4   : > { %v3656_v26 = vpack.c.bf16 %v1535_v41, %v1533_v3  ;;  %v1498_v35 = vadd.f32 %v1497_v49, %v1409_v31  ;;  %v5964_v3 = vpop.permute.xlu2 %1812  ;;  %v2299_v49 = vpop.permute.xlu1 %2298  ;;  %v3569_v36 = vld [vmem:[%s6319_s5 + $0x94] sm:$0xf]  ;;  %v3423_v24 = vld [vmem:[%s6319_s5 + $0x98] sm:$0xf0] }
 0x2c6   : > { %2122 = vmatmul.bf16.gmra.mxu3 %v3282_v51  ;;  %2748 = vmatmul.bf16.gmra.mxu1 %v3410_v45  ;;  %3836 = vst [vmem:[%s5670_s20 + $0x70] sm:$0xff] %v3656_v26   ;;  %v1448_v39 = vpop.f32.mrf.mxu2 }
 0x2c7   : > { %v1449_v16 = vadd.f32 %v1448_v39, %v5722_v7  ;;  %v2304_v39 = vpop.permute.xlu0 %2303 }
 0x2c8   : > { %v1410_v6 = vpop.f32.mrf.mxu0 }
 0x2c9   : > { %v1537_v25 = vpop.f32.mrf.mxu3  ;;  %v1411_v2 = vadd.f32 %v1410_v6, %v5539_v48  ;;  %v3413_v48 = vld [vmem:[%s6319_s5 + $0x80] sm:$0xf] }
 0x2ca   : > { %v3414_v59 = vor.u32 %v3568_v53, %v3413_v48  ;;  %v1538_v37 = vadd.f32 %v1537_v25, %v1449_v16  ;;  %v3421_v48 = vld [vmem:[%s6319_s5 + $0x90] sm:$0xf]  ;;  %v3570_v53 = vld [vmem:[%s6319_s5 + $0x94] sm:$0xf0] }
 0x2cb   : > { %v1499_v11 = vpop.f32.mrf.mxu1 }
 0x2cc   : > { %v1500_v43 = vadd.f32 %v1499_v11, %v1411_v2  ;;  %v5973_v29 = vpop.permute.xlu2 %1827 }
 0x2ce   : > { %v3621_v46 = vpack.c.bf16 %v1500_v43, %v1498_v35  ;;  %v1450_v63 = vpop.f32.mrf.mxu2  ;;  %v3293_v43 = vld [vmem:[%s6318_s4 + $0x90] sm:$0xf] }
 0x2cf   : > { %v1451_v30 = vadd.f32 %v1450_v63, %v5689_v22 }
 0x2d0   : > { %3829 = vst [vmem:[%s5670_s20 + $0x38] sm:$0xff] %v3621_v46   ;;  %v2625_v21 = vpop.f32.mrf.mxu0 }
 0x2d1   : > { %v1539_v7 = vpop.f32.mrf.mxu3  ;;  %v2626_v22 = vadd.f32 %v2625_v21, %v2299_v49  ;;  %v3298_v21 = vor.u32 %v3537_v28, %v3295_v20  ;;  %v3572_v28 = vld [vmem:[%s6319_s5 + $0xa4] sm:$0xf0]  ;;  %v3431_v20 = vld [vmem:[%s6319_s5 + $0xa8] sm:$0xf0] }
 0x2d2   : > { %v1540_v51 = vadd.f32 %v1539_v7, %v1451_v30  ;;  %v3294_v7 = vor.u32 %v3538_v56, %v3293_v43  ;;  %v3539_v43 = vld [vmem:[%s6318_s4 + $0xa4] sm:$0xf]  ;;  %v3429_v56 = vld [vmem:[%s6319_s5 + $0xa0] sm:$0xf] }
 0x2d3   : > { %v2714_v45 = vpop.f32.mrf.mxu1  ;;  %2038 = vmatmul.bf16.gmra.mxu2 %v3286_v58  ;;  %2664 = vmatmul.bf16.gmra.mxu0 %v3414_v59  ;;  %v3422_v58 = vor.u32 %v3570_v53, %v3421_v48 }
 0x2d4   : > { %v3661_v41 = vpack.c.bf16 %v1540_v51, %v1538_v37  ;;  %v2715_v35 = vadd.f32 %v2714_v45, %v2626_v22 }
 0x2d6   : > { %2127 = vmatmul.bf16.gmra.mxu3 %v3290_v60  ;;  %2753 = vmatmul.bf16.gmra.mxu1 %v3418_v38  ;;  %3837 = vst [vmem:[%s5670_s20 + $0x78] sm:$0xff] %v3661_v41   ;;  %v1999_v26 = vpop.f32.mrf.mxu2  ;;  %v3426_v60 = vor.u32 %v3569_v36, %v3423_v24  ;;  %v2309_v41 = vpop.permute.xlu2 %2308  ;;  %s4066_s20 = scalar_lea.hbm %s6384_s13, 512 }
 0x2d7   : > { %v2000_v16 = vadd.f32 %v1999_v26, %v5692_v47  ;;  %v2314_v26 = vpop.permute.xlu1 %2313  ;;  %p4068_p8 = scmp.lt.s32.totalorder %s4066_s20, %s4062_s11 }
 0x2d8   : > { %v2627_v6 = vpop.f32.mrf.mxu0 }
 0x2d9   : > { %v2088_v31 = vpop.f32.mrf.mxu3  ;;  %v2628_v2 = vadd.f32 %v2627_v6, %v2304_v39  ;;  %p4069_p10 = por %p4068_p8, %p4067_p7 }
 0x2da   : > { %v2089_v38 = vadd.f32 %v2088_v31, %v2000_v16  ;;  %v3303_v16 = vld [vmem:[%s6318_s4 + $0xa8] sm:$0xf0] }
 0x2db   : > { %v2716_v25 = vpop.f32.mrf.mxu1  ;;  %p4070_p11 = pnand %p4069_p10, %p4065_p6 }
 0x2dc   : > { %v2717_v11 = vadd.f32 %v2716_v25, %v2628_v2  ;;  %v3301_v25 = vld [vmem:[%s6318_s4 + $0xa0] sm:$0xf] }
 0x2de   : > { %v3746_v46 = vpack.c.bf16 %v2717_v11, %v2715_v35  ;;  %v2001_v63 = vpop.f32.mrf.mxu2  ;;  %v3540_v11 = vld [vmem:[%s6318_s4 + $0xa4] sm:$0xf0] }
 0x2df   : > { %v2002_v47 = vadd.f32 %v2001_v63, %v5732_v18 }
 0x2e0   : > { %3747 = vst [vmem:[%s5995_s15] sm:$0xff] %v3746_v46   ;;  %v2630_v59 = vpop.f32.mrf.mxu0  ;;  %v3571_v46 = vld [vmem:[%s6319_s5 + $0xa4] sm:$0xf] }
 0x2e1   : > { %v2090_v30 = vpop.f32.mrf.mxu3  ;;  %v2631_v49 = vadd.f32 %v2630_v59, %v2309_v41 }
 0x2e2   : > { %v2091_v37 = vadd.f32 %v2090_v30, %v2002_v47  ;;  %v3430_v47 = vor.u32 %v3572_v28, %v3429_v56  ;;  %v3311_v56 = vld [vmem:[%s6318_s4 + $0xb8] sm:$0xf0]  ;;  %v3573_v28 = vld [vmem:[%s6319_s5 + $0xb4] sm:$0xf] }
 0x2e3   : > { %v2719_v51 = vpop.f32.mrf.mxu1  ;;  %2043 = vmatmul.bf16.gmra.mxu2 %v3294_v7  ;;  %2669 = vmatmul.bf16.gmra.mxu0 %v3422_v58  ;;  %v3306_v7 = vor.u32 %v3539_v43, %v3303_v16  ;;  %v3434_v58 = vor.u32 %v3571_v46, %v3431_v20 }
 0x2e4   : > { %v3666_v45 = vpack.c.bf16 %v2091_v37, %v2089_v38  ;;  %v2720_v35 = vadd.f32 %v2719_v51, %v2631_v49  ;;  %v2319_v37 = vpop.permute.xlu0 %2318 }
 0x2e6   : > { %2132 = vmatmul.bf16.gmra.mxu3 %v3298_v21  ;;  %2758 = vmatmul.bf16.gmra.mxu1 %v3426_v60  ;;  %3667 = vst [vmem:[%s6000_s16] sm:$0xff] %v3666_v45   ;;  %v2004_v18 = vpop.f32.mrf.mxu2 }
 0x2e7   : > { %v2005_v48 = vadd.f32 %v2004_v18, %v5726_v5  ;;  %v3302_v5 = vor.u32 %v3540_v11, %v3301_v25  ;;  %v3574_v25 = vld [vmem:[%s6319_s5 + $0xb4] sm:$0xf0] }
 0x2e8   : > { %v2632_v39 = vpop.f32.mrf.mxu0 }
 0x2e9   : > { %v2093_v22 = vpop.f32.mrf.mxu3  ;;  %v2633_v6 = vadd.f32 %v2632_v39, %v2314_v26 }
 0x2ea   : > { %v2094_v59 = vadd.f32 %v2093_v22, %v2005_v48  ;;  %v3309_v22 = vld [vmem:[%s6318_s4 + $0xb0] sm:$0xf]  ;;  %v3439_v48 = vld [vmem:[%s6319_s5 + $0xb8] sm:$0xf0] }
 0x2eb   : > { %v2721_v31 = vpop.f32.mrf.mxu1 }
 0x2ec   : > { %v2722_v2 = vadd.f32 %v2721_v31, %v2633_v6  ;;  %v3542_v31 = vld [vmem:[%s6318_s4 + $0xb4] sm:$0xf0] }
 0x2ee   : > { %v3751_v53 = vpack.c.bf16 %v2722_v2, %v2720_v35  ;;  %v2006_v36 = vpop.f32.mrf.mxu2  ;;  %v3541_v35 = vld [vmem:[%s6318_s4 + $0xb4] sm:$0xf]  ;;  %v3437_v2 = vld [vmem:[%s6319_s5 + $0xb0] sm:$0xf] }
 0x2ef   : > { %v2007_v24 = vadd.f32 %v2006_v36, %v5728_v40  ;;  %v2324_v40 = vpop.permute.xlu2 %2323  ;;  %v3438_v20 = vor.u32 %v3574_v25, %v3437_v2  ;;  %v3447_v2 = vld [vmem:[%s6319_s5 + $0xc8] sm:$0xf0] }
 0x2f0   : > { %3853 = vst [vmem:[%s5995_s15 + $0x8] sm:$0xff] %v3751_v53   ;;  %v2635_v30 = vpop.f32.mrf.mxu0 }
 0x2f1   : > { %v2095_v63 = vpop.f32.mrf.mxu3  ;;  %v2636_v45 = vadd.f32 %v2635_v30, %v2319_v37 }
 0x2f2   : > { %v2096_v21 = vadd.f32 %v2095_v63, %v2007_v24  ;;  %v3314_v24 = vor.u32 %v3541_v35, %v3311_v56  ;;  %v3442_v63 = vor.u32 %v3573_v28, %v3439_v48  ;;  %v3575_v35 = vld [vmem:[%s6319_s5 + $0xc4] sm:$0xf] }
 0x2f3   : > { %v2724_v60 = vpop.f32.mrf.mxu1  ;;  %2048 = vmatmul.bf16.gmra.mxu2 %v3302_v5  ;;  %2674 = vmatmul.bf16.gmra.mxu0 %v3430_v47 }
 0x2f4   : > { %v3671_v38 = vpack.c.bf16 %v2096_v21, %v2094_v59  ;;  %v2725_v39 = vadd.f32 %v2724_v60, %v2636_v45 }
 0x2f6   : > { %2137 = vmatmul.bf16.gmra.mxu3 %v3306_v7  ;;  %2763 = vmatmul.bf16.gmra.mxu1 %v3434_v58  ;;  %3838 = vst [vmem:[%s6000_s16 + $0x8] sm:$0xff] %v3671_v38   ;;  %v2009_v51 = vpop.f32.mrf.mxu2  ;;  %v2329_v58 = vpop.permute.xlu1 %2328 }
 0x2f7   : > { %v2010_v11 = vadd.f32 %v2009_v51, %v5766_v44  ;;  %v3310_v44 = vor.u32 %v3542_v31, %v3309_v22  ;;  %v3319_v31 = vld [vmem:[%s6318_s4 + $0xc8] sm:$0xf0] }
 0x2f8   : > { %v2637_v18 = vpop.f32.mrf.mxu0 }
 0x2f9   : > { %v2098_v41 = vpop.f32.mrf.mxu3  ;;  %v2638_v49 = vadd.f32 %v2637_v18, %v2324_v40  ;;  %v3544_v18 = vld [vmem:[%s6318_s4 + $0xc4] sm:$0xf0] }
 0x2fa   : > { %v2099_v5 = vadd.f32 %v2098_v41, %v2010_v11  ;;  %v3317_v41 = vld [vmem:[%s6318_s4 + $0xc0] sm:$0xf] }
 0x2fb   : > { %v2726_v26 = vpop.f32.mrf.mxu1 }
 0x2fc   : > { %v2727_v6 = vadd.f32 %v2726_v26, %v2638_v49  ;;  %v3543_v49 = vld [vmem:[%s6318_s4 + $0xc4] sm:$0xf]  ;;  %v3445_v26 = vld [vmem:[%s6319_s5 + $0xc0] sm:$0xf] }
 0x2fd   : > { %v3322_v48 = vor.u32 %v3543_v49, %v3319_v31 }
 0x2fe   : > { %v3756_v43 = vpack.c.bf16 %v2727_v6, %v2725_v39  ;;  %v2011_v53 = vpop.f32.mrf.mxu2  ;;  %v3576_v39 = vld [vmem:[%s6319_s5 + $0xc4] sm:$0xf0] }
 0x2ff   : > { %v2012_v16 = vadd.f32 %v2011_v53, %v5735_v55  ;;  %v2334_v55 = vpop.permute.xlu0 %2333  ;;  %v3446_v56 = vor.u32 %v3576_v39, %v3445_v26  ;;  %v3450_v53 = vor.u32 %v3575_v35, %v3447_v2 }
 0x300   : > { %3854 = vst [vmem:[%s5995_s15 + $0x10] sm:$0xff] %v3756_v43   ;;  %v2640_v36 = vpop.f32.mrf.mxu0 }
 0x301   : > { %v2100_v46 = vpop.f32.mrf.mxu3  ;;  %v2641_v21 = vadd.f32 %v2640_v36, %v2329_v58  ;;  %v2339_v36 = vpop.permute.xlu2 %2338 }
 0x302   : > { %v2101_v47 = vadd.f32 %v2100_v46, %v2012_v16 }
 0x303   : > { %v2729_v30 = vpop.f32.mrf.mxu1  ;;  %2053 = vmatmul.bf16.gmra.mxu2 %v3310_v44  ;;  %2679 = vmatmul.bf16.gmra.mxu0 %v3438_v20 }
 0x304   : > { %v3676_v7 = vpack.c.bf16 %v2101_v47, %v2099_v5  ;;  %v2730_v45 = vadd.f32 %v2729_v30, %v2641_v21  ;;  %v3325_v21 = vld [vmem:[%s6318_s4 + $0xd0] sm:$0xf] }
 0x306   : > { %2142 = vmatmul.bf16.gmra.mxu3 %v3314_v24  ;;  %2768 = vmatmul.bf16.gmra.mxu1 %v3442_v63  ;;  %3839 = vst [vmem:[%s6000_s16 + $0x10] sm:$0xff] %v3676_v7   ;;  %v2014_v59 = vpop.f32.mrf.mxu2 }
 0x307   : > { %v2015_v6 = vadd.f32 %v2014_v59, %v5762_v42  ;;  %v3318_v42 = vor.u32 %v3544_v18, %v3317_v41  ;;  %v3577_v41 = vld [vmem:[%s6319_s5 + $0xd4] sm:$0xf]  ;;  %v3455_v18 = vld [vmem:[%s6319_s5 + $0xd8] sm:$0xf0] }
 0x308   : > { %v2642_v38 = vpop.f32.mrf.mxu0  ;;  %v3458_v35 = vor.u32 %v3577_v41, %v3455_v18 }
 0x309   : > { %v2103_v60 = vpop.f32.mrf.mxu3  ;;  %v2643_v37 = vadd.f32 %v2642_v38, %v2334_v55  ;;  %v3545_v55 = vld [vmem:[%s6318_s4 + $0xd4] sm:$0xf]  ;;  %v3453_v38 = vld [vmem:[%s6319_s5 + $0xd0] sm:$0xf] }
 0x30a   : > { %v2104_v16 = vadd.f32 %v2103_v60, %v2015_v6  ;;  %v3546_v60 = vld [vmem:[%s6318_s4 + $0xd4] sm:$0xf0] }
 0x30b   : > { %v2731_v51 = vpop.f32.mrf.mxu1 }
 0x30c   : > { %v2732_v40 = vadd.f32 %v2731_v51, %v2643_v37  ;;  %v3578_v37 = vld [vmem:[%s6319_s5 + $0xd4] sm:$0xf0] }
 0x30d   : > { %v3454_v6 = vor.u32 %v3578_v37, %v3453_v38 }
 0x30e   : > { %v3761_v22 = vpack.c.bf16 %v2732_v40, %v2730_v45  ;;  %v2016_v25 = vpop.f32.mrf.mxu2  ;;  %v3327_v40 = vld [vmem:[%s6318_s4 + $0xd8] sm:$0xf0] }
 0x30f   : > { %v2017_v11 = vadd.f32 %v2016_v25, %v5781_v32  ;;  %v2344_v32 = vpop.permute.xlu1 %2343  ;;  %v3330_v31 = vor.u32 %v3545_v55, %v3327_v40 }
 0x310   : > { %3855 = vst [vmem:[%s5995_s15 + $0x18] sm:$0xff] %v3761_v22   ;;  %v2645_v28 = vpop.f32.mrf.mxu0 }
 0x311   : > { %v2105_v43 = vpop.f32.mrf.mxu3  ;;  %v2646_v63 = vadd.f32 %v2645_v28, %v2339_v36  ;;  %v3333_v36 = vld [vmem:[%s6318_s4 + $0xe0] sm:$0xf] }
 0x312   : > { %v2106_v46 = vadd.f32 %v2105_v43, %v2017_v11 }
 0x313   : > { %v2734_v44 = vpop.f32.mrf.mxu1  ;;  %2058 = vmatmul.bf16.gmra.mxu2 %v3318_v42  ;;  %2684 = vmatmul.bf16.gmra.mxu0 %v3446_v56  ;;  %v2349_v42 = vpop.permute.xlu0 %2348 }
 0x314   : > { %v3681_v20 = vpack.c.bf16 %v2106_v46, %v2104_v16  ;;  %v2735_v58 = vadd.f32 %v2734_v44, %v2646_v63  ;;  %v3547_v63 = vld [vmem:[%s6318_s4 + $0xe4] sm:$0xf] }
 0x316   : > { %2147 = vmatmul.bf16.gmra.mxu3 %v3322_v48  ;;  %2773 = vmatmul.bf16.gmra.mxu1 %v3450_v53  ;;  %3840 = vst [vmem:[%s6000_s16 + $0x18] sm:$0xff] %v3681_v20   ;;  %v2019_v24 = vpop.f32.mrf.mxu2 }
 0x317   : > { %v2020_v51 = vadd.f32 %v2019_v24, %v5768_v15  ;;  %v3326_v15 = vor.u32 %v3546_v60, %v3325_v21  ;;  %v3548_v24 = vld [vmem:[%s6318_s4 + $0xe4] sm:$0xf0] }
 0x318   : > { %v2647_v47 = vpop.f32.mrf.mxu0 }
 0x319   : > { %v2108_v5 = vpop.f32.mrf.mxu3  ;;  %v2648_v30 = vadd.f32 %v2647_v47, %v2344_v32  ;;  %v3580_v32 = vld [vmem:[%s6319_s5 + $0xe4] sm:$0xf0] }
 0x31a   : > { %v2109_v2 = vadd.f32 %v2108_v5, %v2020_v51  ;;  %v3461_v5 = vld [vmem:[%s6319_s5 + $0xe0] sm:$0xf] }
 0x31b   : > { %v2736_v7 = vpop.f32.mrf.mxu1  ;;  %v3462_v38 = vor.u32 %v3580_v32, %v3461_v5 }
 0x31c   : > { %v2737_v59 = vadd.f32 %v2736_v7, %v2648_v30  ;;  %v3335_v7 = vld [vmem:[%s6318_s4 + $0xe8] sm:$0xf0] }
 0x31d   : > { %v3338_v51 = vor.u32 %v3547_v63, %v3335_v7 }
 0x31e   : > { %v3766_v45 = vpack.c.bf16 %v2737_v59, %v2735_v58  ;;  %v2021_v49 = vpop.f32.mrf.mxu2  ;;  %v3579_v58 = vld [vmem:[%s6319_s5 + $0xe4] sm:$0xf]  ;;  %v3463_v59 = vld [vmem:[%s6319_s5 + $0xe8] sm:$0xf0] }
 0x31f   : > { %v2022_v26 = vadd.f32 %v2021_v49, %v5772_v23  ;;  %v2354_v23 = vpop.permute.xlu2 %2353 }
 0x320   : > { %3856 = vst [vmem:[%s5995_s15 + $0x20] sm:$0xff] %v3766_v45   ;;  %v2650_v22 = vpop.f32.mrf.mxu0  ;;  %v3466_v45 = vor.u32 %v3579_v58, %v3463_v59 }
 0x321   : > { %v2110_v39 = vpop.f32.mrf.mxu3  ;;  %v2651_v28 = vadd.f32 %v2650_v22, %v2349_v42  ;;  %v3549_v42 = vld [vmem:[%s6318_s4 + $0xf4] sm:$0xf] }
 0x322   : > { %v2111_v25 = vadd.f32 %v2110_v39, %v2022_v26  ;;  %v2359_v26 = vpop.permute.xlu1 %2358 }
 0x323   : > { %v2739_v11 = vpop.f32.mrf.mxu1  ;;  %2063 = vmatmul.bf16.gmra.mxu2 %v3326_v15  ;;  %2689 = vmatmul.bf16.gmra.mxu0 %v3454_v6 }
 0x324   : > { %v3686_v43 = vpack.c.bf16 %v2111_v25, %v2109_v2  ;;  %v2740_v44 = vadd.f32 %v2739_v11, %v2651_v28  ;;  %v3341_v11 = vld [vmem:[%s6318_s4 + $0xf0] sm:$0xf]  ;;  %v3582_v28 = vld [vmem:[%s6319_s5 + $0xf4] sm:$0xf0] }
 0x326   : > { %2152 = vmatmul.bf16.gmra.mxu3 %v3330_v31  ;;  %2778 = vmatmul.bf16.gmra.mxu1 %v3458_v35  ;;  %3841 = vst [vmem:[%s6000_s16 + $0x20] sm:$0xff] %v3686_v43   ;;  %v2024_v56 = vpop.f32.mrf.mxu2  ;;  %v3550_v43 = vld [vmem:[%s6318_s4 + $0xf4] sm:$0xf0] }
 0x327   : > { %v2025_v47 = vadd.f32 %v2024_v56, %v5810_v50  ;;  %v3334_v50 = vor.u32 %v3548_v24, %v3333_v36  ;;  %v3469_v56 = vld [vmem:[%s6319_s5 + $0xf0] sm:$0xf]  ;;  %v2369_v59 = vpop.permute.xlu2 %2368 }
 0x328   : > { %v2652_v53 = vpop.f32.mrf.mxu0  ;;  %v3470_v24 = vor.u32 %v3582_v28, %v3469_v56 }
 0x329   : > { %v2113_v48 = vpop.f32.mrf.mxu3  ;;  %v2653_v16 = vadd.f32 %v2652_v53, %v2354_v23  ;;  %v3343_v53 = vld [vmem:[%s6318_s4 + $0xf8] sm:$0xf0] }
 0x32a   : > { %v2114_v40 = vadd.f32 %v2113_v48, %v2025_v47  ;;  %v3346_v5 = vor.u32 %v3549_v42, %v3343_v53 }
 0x32b   : > { %v2741_v46 = vpop.f32.mrf.mxu1 }
 0x32c   : > { %v2742_v20 = vadd.f32 %v2741_v46, %v2653_v16  ;;  %v3581_v16 = vld [vmem:[%s6319_s5 + $0xf4] sm:$0xf]  ;;  %v3471_v46 = vld [vmem:[%s6319_s5 + $0xf8] sm:$0xf0] }
 0x32d   : > { %v3474_v32 = vor.u32 %v3581_v16, %v3471_v46 }
 0x32e   : > { %v3771_v30 = vpack.c.bf16 %v2742_v20, %v2740_v44  ;;  %v2026_v21 = vpop.f32.mrf.mxu2 }
 0x32f   : > { %v2027_v60 = vadd.f32 %v2026_v21, %v5802_v17  ;;  %v2364_v17 = vpop.permute.xlu0 %2363 }
 0x330   : > { %3857 = vst [vmem:[%s5995_s15 + $0x28] sm:$0xff] %v3771_v30   ;;  %v2655_v37 = vpop.f32.mrf.mxu0 }
 0x331   : > { %v2115_v55 = vpop.f32.mrf.mxu3  ;;  %v2656_v15 = vadd.f32 %v2655_v37, %v2359_v26 }
 0x332   : > { %v2116_v41 = vadd.f32 %v2115_v55, %v2027_v60  ;;  %v2374_v55 = vpop.permute.xlu1 %2373 }
 0x333   : > { %v2744_v18 = vpop.f32.mrf.mxu1  ;;  %2068 = vmatmul.bf16.gmra.mxu2 %v3334_v50  ;;  %2694 = vmatmul.bf16.gmra.mxu0 %v3462_v38 }
 0x334   : > { %v3691_v49 = vpack.c.bf16 %v2116_v41, %v2114_v40  ;;  %v2745_v2 = vadd.f32 %v2744_v18, %v2656_v15 }
 0x336   : > { %2157 = vmatmul.bf16.gmra.mxu3 %v3338_v51  ;;  %2783 = vmatmul.bf16.gmra.mxu1 %v3466_v45  ;;  %3842 = vst [vmem:[%s6000_s16 + $0x28] sm:$0xff] %v3691_v49   ;;  %v2029_v39 = vpop.f32.mrf.mxu2 }
 0x337   : > { %v2030_v48 = vadd.f32 %v2029_v39, %v5806_v8  ;;  %v3342_v8 = vor.u32 %v3550_v43, %v3341_v11 }
 0x338   : > { %v2657_v22 = vpop.f32.mrf.mxu0 }
 0x339   : > { %v2118_v6 = vpop.f32.mrf.mxu3  ;;  %v2658_v31 = vadd.f32 %v2657_v22, %v2364_v17 }
 0x33a   : > { %v2119_v47 = vadd.f32 %v2118_v6, %v2030_v48 }
 0x33b   : > { %v2746_v35 = vpop.f32.mrf.mxu1 }
 0x33c   : > { %v2747_v25 = vadd.f32 %v2746_v35, %v2658_v31  ;;  %v2379_v31 = vpop.permute.xlu0 %2378 }
 0x33e   : > { %v3776_v23 = vpack.c.bf16 %v2747_v25, %v2745_v2  ;;  %v2031_v44 = vpop.f32.mrf.mxu2  ;;  %v2384_v25 = vpop.permute.xlu2 %2383 }
 0x33f   : > { %v2032_v20 = vadd.f32 %v2031_v44, %v5844_v27 }
 0x340   : > { %3858 = vst [vmem:[%s5995_s15 + $0x30] sm:$0xff] %v3776_v23   ;;  %v2660_v63 = vpop.f32.mrf.mxu0 }
 0x341   : > { %v2120_v36 = vpop.f32.mrf.mxu3  ;;  %v2661_v60 = vadd.f32 %v2660_v63, %v2369_v59 }
 0x342   : > { %v2121_v30 = vadd.f32 %v2120_v36, %v2032_v20 }
 0x343   : > { %v2749_v7 = vpop.f32.mrf.mxu1  ;;  %2073 = vmatmul.bf16.gmra.mxu2 %v3342_v8  ;;  %2699 = vmatmul.bf16.gmra.mxu0 %v3470_v24 }
 0x344   : > { %v3696_v58 = vpack.c.bf16 %v2121_v30, %v2119_v47  ;;  %v2750_v51 = vadd.f32 %v2749_v7, %v2661_v60 }
 0x346   : > { %2162 = vmatmul.bf16.gmra.mxu3 %v3346_v5  ;;  %2788 = vmatmul.bf16.gmra.mxu1 %v3474_v32  ;;  %3843 = vst [vmem:[%s6000_s16 + $0x30] sm:$0xff] %v3696_v58   ;;  %v2034_v21 = vpop.f32.mrf.mxu2 }
 0x347   : > { %v2035_v40 = vadd.f32 %v2034_v21, %v5812_v10 }
 0x348   : > { %v2662_v50 = vpop.f32.mrf.mxu0 }
 0x349   : > { %v2123_v27 = vpop.f32.mrf.mxu3  ;;  %v2663_v38 = vadd.f32 %v2662_v50, %v2374_v55 }
 0x34a   : > { %v2124_v15 = vadd.f32 %v2123_v27, %v2035_v40 }
 0x34b   : > { %v2751_v37 = vpop.f32.mrf.mxu1 }
 0x34c   : > { %v2752_v45 = vadd.f32 %v2751_v37, %v2663_v38 }
 0x34e   : > { %v3781_v41 = vpack.c.bf16 %v2752_v45, %v2750_v51  ;;  %v2036_v18 = vpop.f32.mrf.mxu2 }
 0x34f   : > { %v2037_v49 = vadd.f32 %v2036_v18, %v5821_v34 }
 0x350   : > { %3859 = vst [vmem:[%s5995_s15 + $0x38] sm:$0xff] %v3781_v41   ;;  %v2665_v39 = vpop.f32.mrf.mxu0 }
 0x351   : > { %v2125_v26 = vpop.f32.mrf.mxu3  ;;  %v2666_v2 = vadd.f32 %v2665_v39, %v2379_v31 }
 0x352   : > { %v2126_v6 = vadd.f32 %v2125_v26, %v2037_v49 }
 0x353   : > { %v2754_v17 = vpop.f32.mrf.mxu1 }
 0x354   : > { %v3701_v22 = vpack.c.bf16 %v2126_v6, %v2124_v15  ;;  %v2755_v34 = vadd.f32 %v2754_v17, %v2666_v2 }
 0x356   : > { %3844 = vst [vmem:[%s6000_s16 + $0x38] sm:$0xff] %v3701_v22   ;;  %v2039_v35 = vpop.f32.mrf.mxu2 }
 0x357   : > { %v2040_v28 = vadd.f32 %v2039_v35, %v5853_v12 }
 0x358   : > { %v2667_v11 = vpop.f32.mrf.mxu0 }
 0x359   : > { %v2128_v10 = vpop.f32.mrf.mxu3  ;;  %v2668_v43 = vadd.f32 %v2667_v11, %v2384_v25 }
 0x35b   : > { %v2756_v42 = vpop.f32.mrf.mxu1 }
 0x35c   : > { %v2757_v56 = vadd.f32 %v2756_v42, %v2668_v43 }
 0x35e   : > { %v3786_v48 = vpack.c.bf16 %v2757_v56, %v2755_v34  ;;  %v2041_v23 = vpop.f32.mrf.mxu2 }
 0x35f   : > { %v2042_v53 = vadd.f32 %v2041_v23, %v5846_v62 }
 0x360   : > { %3860 = vst [vmem:[%s5995_s15 + $0x40] sm:$0xff] %v3786_v48   ;;  %v2670_v46 = vpop.f32.mrf.mxu0 }
 0x361   : > { %v2130_v16 = vpop.f32.mrf.mxu3 }
 0x362   : > { %4073 = shalt.err (!%p4070_p11)
}
 0x363   : > { %s6343_s9 = smov 64   ;;  %s6345_s28 = smov 128   ;;  %v2129_v62 = vadd.f32 %v2128_v10, %v2040_v28  ;;  %v2131_v12 = vadd.f32 %v2130_v16, %v2042_v53  ;;  %v2759_v44 = vpop.f32.mrf.mxu1  ;;  %v2389_v36 = vpop.permute.xlu1 %2388 }
 0x364   : > { %s6347_s30 = smov 4   ;;  %v2671_v24 = vadd.f32 %v2670_v46, %v2389_v36  ;;  %v2394_v5 = vpop.permute.xlu0 %2393  ;;  %v2399_v40 = vpop.permute.xlu2 %2398  ;;  %s6387_s12 = sld [smem:[#allocation30_spill]] }
 0x365   : > { %3886 = dma.vmem_to_hbm [thread:$0]  (%p4342_p9), %s2883_s29, 2048, %s2885_s10, %s2859_s25, %s6343_s9, %s6345_s28, %s6347_s30   ;;  %v3706_v20 = vpack.c.bf16 %v2131_v12, %v2129_v62 }
 0x366   : > { %v2044_v8 = vpop.f32.mrf.mxu2  ;;  %v2760_v7 = vadd.f32 %v2759_v44, %v2671_v24  ;;  %s6386_s29 = sld [smem:[#allocation15_spill]]  ;;  %s2900_s28 = sshll.u32 %s6000_s16, 4  ;;  %s2901_s28 = int_to_ptr.vmem [resolvable:$true] %s2900_s28 }
 0x367   : > { %3845 = vst [vmem:[%s6000_s16 + $0x40] sm:$0xff] %v3706_v20   ;;  %v2045_v59 = vadd.f32 %v2044_v8, %v5850_v4  ;;  %s6388_s20 = sld [smem:[#allocation31_spill]]  ;;  %s2918_s25 = sshll.u32 %s5995_s15, 4  ;;  %s6246_s25 = int_to_ptr.vmem [resolvable:$true] %s2918_s25 }
 0x368   : > { %v2672_v32 = vpop.f32.mrf.mxu0 }
 0x369   : > { %v2133_v63 = vpop.f32.mrf.mxu3  ;;  %v2673_v47 = vadd.f32 %v2672_v32, %v2394_v5 }
 0x36a   : > { %v2134_v38 = vadd.f32 %v2133_v63, %v2045_v59  ;;  %s2899_s11 = scalar_lea.hbm %s6387_s12, %s6177_s27 }
 0x36b   : > { %v2761_v30 = vpop.f32.mrf.mxu1  ;;  %v2404_v26 = vpop.permute.xlu1 %2403  ;;  %s6239_s30 = sshll.u32 %s2899_s11, 4  ;;  %s2903_s30 = int_to_ptr.hbm [resolvable:$true] %s6239_s30 }
 0x36c   : > { %v2762_v58 = vadd.f32 %v2761_v30, %v2673_v47  ;;  %v2409_v34 = vpop.permute.xlu0 %2408  ;;  %v2414_v23 = vpop.permute.xlu2 %2413  ;;  %s2863_s9 = sand.u32 1, %s6386_s29   ;;  %s4088_s29 = sshra.s32 %s2903_s30, 4  ;;  %s4089_s29 = int_to_ptr.hbm [resolvable:$true] %s4088_s29 }
 0x36d   : > { %s6389_s26 = smov %s6388_s20  ;;  %s2917_s21 = scalar_lea.hbm %s6388_s20, %s6177_s27 }
 0x36e   : > { %v3791_v21 = vpack.c.bf16 %v2762_v58, %v2760_v7  ;;  %v2046_v60 = vpop.f32.mrf.mxu2  ;;  %s6241_s10 = sshll.u32 %s2917_s21, 4  ;;  %s6249_s27 = scalar_lea.sflag [#allocation7], %s2863_s9 }
 0x36f   : > { %v2047_v27 = vadd.f32 %v2046_v60, %v5886_v9  ;;  %6390 = sst [smem:[#allocation26_spill]] %s6241_s10  ;;  %s4090_s11 = scalar_lea.hbm %s4089_s29, 128 }
 0x370   : > { %3861 = vst [vmem:[%s5995_s15 + $0x48] sm:$0xff] %v3791_v21   ;;  %v2675_v50 = vpop.f32.mrf.mxu0  ;;  %p4091_p13 = scmp.ne.s32.totalorder %s4089_s29, %s4090_s11  ;;  %p4095_p2 = scmp.lt.s32.totalorder %s4089_s29, %s6387_s12 }
 0x371   : > { %v2135_v55 = vpop.f32.mrf.mxu3  ;;  %v2676_v18 = vadd.f32 %v2675_v50, %v2399_v40 }
 0x372   : > { %v2136_v37 = vadd.f32 %v2135_v55, %v2047_v27  ;;  %p4092_p0 = pnand %p4091_p13, %p4342_p9 }
 0x373   : > { %v2764_v51 = vpop.f32.mrf.mxu1  ;;  %v2419_v47 = vpop.permute.xlu1 %2418 }
 0x374   : > { %v3711_v45 = vpack.c.bf16 %v2136_v37, %v2134_v38  ;;  %v2765_v6 = vadd.f32 %v2764_v51, %v2676_v18  ;;  %v2424_v59 = vpop.permute.xlu0 %2423  ;;  %p4093_p1 = pneg %p4092_p0 }
 0x376   : > { %3846 = vst [vmem:[%s6000_s16 + $0x48] sm:$0xff] %v3711_v45   ;;  %v2049_v41 = vpop.f32.mrf.mxu2 }
 0x377   : > { %v2050_v9 = vadd.f32 %v2049_v41, %v5861_v61 }
 0x378   : > { %v2677_v39 = vpop.f32.mrf.mxu0 }
 0x379   : > { %v2138_v49 = vpop.f32.mrf.mxu3  ;;  %v2678_v4 = vadd.f32 %v2677_v39, %v2404_v26  ;;  %v2429_v26 = vpop.permute.xlu2 %2428 }
 0x37a   : > { %v2139_v25 = vadd.f32 %v2138_v49, %v2050_v9 }
 0x37b   : > { %v2766_v15 = vpop.f32.mrf.mxu1 }
 0x37c   : > { %v2767_v17 = vadd.f32 %v2766_v15, %v2678_v4 }
 0x37e   : > { %v3796_v22 = vpack.c.bf16 %v2767_v17, %v2765_v6  ;;  %v2051_v31 = vpop.f32.mrf.mxu2  ;;  %v2434_v6 = vpop.permute.xlu1 %2433 }
 0x37f   : > { %v2052_v35 = vadd.f32 %v2051_v31, %v5884_v0 }
 0x380   : > { %3862 = vst [vmem:[%s5995_s15 + $0x50] sm:$0xff] %v3796_v22   ;;  %v2680_v10 = vpop.f32.mrf.mxu0 }
 0x381   : > { %v2140_v2 = vpop.f32.mrf.mxu3  ;;  %v2681_v28 = vadd.f32 %v2680_v10, %v2409_v34 }
 0x382   : > { %v2141_v11 = vadd.f32 %v2140_v2, %v2052_v35 }
 0x383   : > { %v2769_v43 = vpop.f32.mrf.mxu1 }
 0x384   : > { %v3716_v42 = vpack.c.bf16 %v2141_v11, %v2139_v25  ;;  %v2770_v46 = vadd.f32 %v2769_v43, %v2681_v28  ;;  %v2439_v28 = vpop.permute.xlu0 %2438 }
 0x386   : > { %3847 = vst [vmem:[%s6000_s16 + $0x50] sm:$0xff] %v3716_v42   ;;  %v2054_v56 = vpop.f32.mrf.mxu2 }
 0x387   : > { %v2055_v0 = vadd.f32 %v2054_v56, %v5920_v13 }
 0x388   : > { %v2682_v53 = vpop.f32.mrf.mxu0 }
 0x389   : > { %v2143_v48 = vpop.f32.mrf.mxu3  ;;  %v2683_v61 = vadd.f32 %v2682_v53, %v2414_v23 }
 0x38a   : > { %v2144_v24 = vadd.f32 %v2143_v48, %v2055_v0 }
 0x38b   : > { %v2771_v16 = vpop.f32.mrf.mxu1 }
 0x38c   : > { %v2772_v62 = vadd.f32 %v2771_v16, %v2683_v61  ;;  %v2444_v61 = vpop.permute.xlu2 %2443 }
 0x38e   : > { %v3801_v12 = vpack.c.bf16 %v2772_v62, %v2770_v46  ;;  %v2056_v44 = vpop.f32.mrf.mxu2 }
 0x38f   : > { %v2057_v20 = vadd.f32 %v2056_v44, %v5890_v14 }
 0x390   : > { %3863 = vst [vmem:[%s5995_s15 + $0x58] sm:$0xff] %v3801_v12   ;;  %v2685_v8 = vpop.f32.mrf.mxu0 }
 0x391   : > { %v2145_v36 = vpop.f32.mrf.mxu3  ;;  %v2686_v7 = vadd.f32 %v2685_v8, %v2419_v47  ;;  %v2449_v47 = vpop.permute.xlu1 %2448 }
 0x392   : > { %v2146_v63 = vadd.f32 %v2145_v36, %v2057_v20 }
 0x393   : > { %v2774_v5 = vpop.f32.mrf.mxu1 }
 0x394   : > { %v3721_v32 = vpack.c.bf16 %v2146_v63, %v2144_v24  ;;  %v2775_v27 = vadd.f32 %v2774_v5, %v2686_v7 }
 0x396   : > { %3848 = vst [vmem:[%s6000_s16 + $0x58] sm:$0xff] %v3721_v32   ;;  %v2059_v30 = vpop.f32.mrf.mxu2 }
 0x397   : > { %v2060_v14 = vadd.f32 %v2059_v30, %v5893_v33 }
 0x398   : > { %v2687_v21 = vpop.f32.mrf.mxu0 }
 0x399   : > { %v2148_v58 = vpop.f32.mrf.mxu3  ;;  %v2688_v13 = vadd.f32 %v2687_v21, %v2424_v59 }
 0x39a   : > { %v2149_v40 = vadd.f32 %v2148_v58, %v2060_v14  ;;  %v2454_v58 = vpop.permute.xlu0 %2453 }
 0x39b   : > { %v2776_v60 = vpop.f32.mrf.mxu1 }
 0x39c   : > { %v2777_v55 = vadd.f32 %v2776_v60, %v2688_v13 }
 0x39e   : > { %v3806_v50 = vpack.c.bf16 %v2777_v55, %v2775_v27  ;;  %v2061_v38 = vpop.f32.mrf.mxu2 }
 0x39f   : > { %v2062_v37 = vadd.f32 %v2061_v38, %v5930_v19 }
 0x3a0   : > { %3864 = vst [vmem:[%s5995_s15 + $0x60] sm:$0xff] %v3806_v50   ;;  %v2690_v45 = vpop.f32.mrf.mxu0 }
 0x3a1   : > { %v2150_v51 = vpop.f32.mrf.mxu3  ;;  %v2691_v4 = vadd.f32 %v2690_v45, %v2429_v26 }
 0x3a2   : > { %v2151_v41 = vadd.f32 %v2150_v51, %v2062_v37 }
 0x3a3   : > { %v2779_v18 = vpop.f32.mrf.mxu1 }
 0x3a4   : > { %v3726_v49 = vpack.c.bf16 %v2151_v41, %v2149_v40  ;;  %v2780_v22 = vadd.f32 %v2779_v18, %v2691_v4 }
 0x3a6   : > { %3849 = vst [vmem:[%s6000_s16 + $0x60] sm:$0xff] %v3726_v49   ;;  %v2064_v39 = vpop.f32.mrf.mxu2 }
 0x3a7   : > { %v2065_v19 = vadd.f32 %v2064_v39, %v5924_v57 }
 0x3a8   : > { %v2692_v17 = vpop.f32.mrf.mxu0 }
 0x3a9   : > { %v2153_v15 = vpop.f32.mrf.mxu3  ;;  %v2693_v33 = vadd.f32 %v2692_v17, %v2434_v6 }
 0x3aa   : > { %v2154_v43 = vadd.f32 %v2153_v15, %v2065_v19 }
 0x3ab   : > { %v2781_v9 = vpop.f32.mrf.mxu1 }
 0x3ac   : > { %v2782_v31 = vadd.f32 %v2781_v9, %v2693_v33 }
 0x3ae   : > { %v3811_v35 = vpack.c.bf16 %v2782_v31, %v2780_v22  ;;  %v2066_v2 = vpop.f32.mrf.mxu2 }
 0x3af   : > { %v2067_v10 = vadd.f32 %v2066_v2, %v5926_v52 }
 0x3b0   : > { %3865 = vst [vmem:[%s5995_s15 + $0x68] sm:$0xff] %v3811_v35   ;;  %v2695_v11 = vpop.f32.mrf.mxu0 }
 0x3b1   : > { %v2155_v25 = vpop.f32.mrf.mxu3  ;;  %v2696_v23 = vadd.f32 %v2695_v11, %v2439_v28 }
 0x3b2   : > { %v2156_v42 = vadd.f32 %v2155_v25, %v2067_v10 }
 0x3b3   : > { %v2784_v34 = vpop.f32.mrf.mxu1 }
 0x3b4   : > { %v3731_v56 = vpack.c.bf16 %v2156_v42, %v2154_v43  ;;  %v2785_v62 = vadd.f32 %v2784_v34, %v2696_v23 }
 0x3b6   : > { %3850 = vst [vmem:[%s6000_s16 + $0x68] sm:$0xff] %v3731_v56   ;;  %v2069_v48 = vpop.f32.mrf.mxu2 }
 0x3b7   : > { %v2070_v52 = vadd.f32 %v2069_v48, %v5964_v3 }
 0x3b8   : > { %v2697_v16 = vpop.f32.mrf.mxu0 }
 0x3b9   : > { %v2158_v53 = vpop.f32.mrf.mxu3  ;;  %v2698_v57 = vadd.f32 %v2697_v16, %v2444_v61 }
 0x3ba   : > { %v2159_v24 = vadd.f32 %v2158_v53, %v2070_v52 }
 0x3bb   : > { %v2786_v46 = vpop.f32.mrf.mxu1 }
 0x3bc   : > { %v2787_v0 = vadd.f32 %v2786_v46, %v2698_v57 }
 0x3be   : > { %v3816_v12 = vpack.c.bf16 %v2787_v0, %v2785_v62  ;;  %v2071_v44 = vpop.f32.mrf.mxu2 }
 0x3bf   : > { %v2072_v20 = vadd.f32 %v2071_v44, %v5933_v1 }
 0x3c0   : > { %3866 = vst [vmem:[%s5995_s15 + $0x70] sm:$0xff] %v3816_v12   ;;  %v2700_v8 = vpop.f32.mrf.mxu0 }
 0x3c1   : > { %v2160_v36 = vpop.f32.mrf.mxu3  ;;  %v2701_v7 = vadd.f32 %v2700_v8, %v2449_v47 }
 0x3c2   : > { %v2161_v63 = vadd.f32 %v2160_v36, %v2072_v20 }
 0x3c3   : > { %v2789_v5 = vpop.f32.mrf.mxu1 }
 0x3c4   : > { %v3736_v32 = vpack.c.bf16 %v2161_v63, %v2159_v24  ;;  %v2790_v13 = vadd.f32 %v2789_v5, %v2701_v7 }
 0x3c6   : > { %3851 = vst [vmem:[%s6000_s16 + $0x70] sm:$0xff] %v3736_v32   ;;  %v2074_v30 = vpop.f32.mrf.mxu2 }
 0x3c7   : > { %v2075_v27 = vadd.f32 %v2074_v30, %v5960_v54 }
 0x3c8   : > { %v2702_v59 = vpop.f32.mrf.mxu0 }
 0x3c9   : > { %v2163_v3 = vpop.f32.mrf.mxu3  ;;  %v2703_v21 = vadd.f32 %v2702_v59, %v2454_v58 }
 0x3ca   : > { %v2164_v54 = vadd.f32 %v2163_v3, %v2075_v27 }
 0x3cb   : > { %v2791_v1 = vpop.f32.mrf.mxu1 }
 0x3cc   : > { %v2792_v60 = vadd.f32 %v2791_v1, %v2703_v21 }
 0x3ce   : > { %v3821_v55 = vpack.c.bf16 %v2792_v60, %v2790_v13  ;;  %v2076_v14 = vpop.f32.mrf.mxu2 }
 0x3cf   : > { %v2077_v50 = vadd.f32 %v2076_v14, %v5973_v29 }
 0x3d0   : > { %3867 = vst [vmem:[%s5995_s15 + $0x78] sm:$0xff] %v3821_v55   ;;  %s4094_s15 = scalar_lea.hbm %s6387_s12, 512 }
 0x3d1   : > { %v2165_v38 = vpop.f32.mrf.mxu3  ;;  %p4096_p4 = scmp.lt.s32.totalorder %s4094_s15, %s4090_s11 }
 0x3d2   : > { %v2166_v37 = vadd.f32 %v2165_v38, %v2077_v50 }
 0x3d3   : > { %p4097_p3 = por %p4096_p4, %p4095_p2 }
 0x3d4   : > { %v3741_v51 = vpack.c.bf16 %v2166_v37, %v2164_v54 }
 0x3d5   : > { %p4098_p5 = pnand %p4097_p3, %p4093_p1 }
 0x3d6   : > { %3852 = vst [vmem:[%s6000_s16 + $0x78] sm:$0xff] %v3741_v51  }
 0x3d7   : > { %4101 = shalt.err (!%p4098_p5)
}
 0x3d8   : > { %s6391_s16 = smov 4   ;;  %s6392_s9 = smov 128  }
 0x3d9   : > { %s6393_s10 = smov 64   ;;  %s6394_s0 = sld [smem:[#allocation26_spill]] }
 0x3da   : > { %3887 = dma.vmem_to_hbm [thread:$0]  (%p4342_p9), %s2901_s28, 2048, %s2903_s30, %s6249_s27, %s6393_s10, %s6392_s9, %s6391_s16  }
 0x3db   : > { %s4122_s15 = scalar_lea.hbm %s6389_s26, 512 }
 0x3df   : > { %s6395_s1 = int_to_ptr.hbm [resolvable:$true] %s6394_s0 }
 0x3e0   : > { %s4116_s17 = sshra.s32 %s6395_s1, 4  ;;  %s4117_s17 = int_to_ptr.hbm [resolvable:$true] %s4116_s17 }
 0x3e1   : > { %s4118_s19 = scalar_lea.hbm %s4117_s17, 128  ;;  %p4123_p10 = scmp.lt.s32.totalorder %s4117_s17, %s6389_s26 }
 0x3e2   : > { %p4119_p6 = scmp.ne.s32.totalorder %s4117_s17, %s4118_s19  ;;  %p4124_p11 = scmp.lt.s32.totalorder %s4122_s15, %s4118_s19 }
 0x3e4   : > { %p4120_p7 = pnand %p4119_p6, %p4342_p9  ;;  %p4125_p13 = por %p4124_p11, %p4123_p10 }
 0x3e6   : > { %p4121_p8 = pneg %p4120_p7 }
 0x3e8   : > { %p4126_p0 = pnand %p4125_p13, %p4121_p8 }
 0x3ea   : > { %4129 = shalt.err (!%p4126_p0)
}
 0x3eb   : > { %3888 = dma.vmem_to_hbm [thread:$0]  (%p4342_p9), %s6246_s25, 2048, %s6395_s1, %s6249_s27, %s6393_s10, %s6392_s9, %s6391_s16  }
 0x3ec PF: > { %s6396_s28 = sld [smem:[#allocation12_spill]]  ;;  %p3907_p1 = scmp.ge.s32.totalorder %s4204_s24, 2 }
 0x3ee   : > { %p3897_p2 = pnand %p3907_p1, %p4350_p12 }
 0x3f0   : > { %p3898_p4 = pneg %p3897_p2 }
 0x3f2   : > { %s2935_s17 = sand.u32 1, %s6396_s28  }
 0x3f3   : > { %s2936_s19 = scalar_lea.sflag [#allocation4], %s2935_s17 }
 0x3f4   : > { %4167 = dma.done.wait (%p3898_p4), %s2936_s19, 2048  }
 0x3f5   : > { %4169 = vsyncadd (%p3898_p4), %s2936_s19, 4294965248  ;;  %s6398_s14 = sadd.s32 4294967294, %s4204_s24  }
 0x3f6   : > { %s2945_s29 = sand.u32 1, %s6398_s14  }
 0x3f7   : > { %s2946_s11 = scalar_lea.sflag [#allocation7], %s2945_s29 }
 0x3f8   : > { %4171 = dma.done.wait (%p3898_p4), %s2946_s11, 4096  }
 0x3f9   : > { %4173 = vsyncadd (%p3898_p4), %s2946_s11, 4294963200  ;;  %s31_s24 = sadd.s32 1, %s4204_s24   ;;  %s6399_s0 = sld [smem:[#allocation13_spill]] }
 0x3fa   : > { %p28_p9 = scmp.ge.s32.totalorder %s31_s24, 6   ;;  %s6400_s19 = sld [smem:[#allocation20_spill]] }
 0x3fb   : > { %s6401_s10 = sld [smem:[#allocation16_spill]]  ;;  %s6403_s17 = smov %s4180_s18 }
 0x3fc   : > { %s6402_s25 = sld [smem:[#allocation17_spill]]  ;;  %s6405_s20 = smov %s4196_s22 }
 0x3fd   : > { %s6406_s21 = smov %s4200_s23 }
 0x3fe   :  { %30 = sbr.rel (!%p28_p9) target bundleno = 15 (0xf), region = 133 }
 0x3ff   : > { %s6404_s18 = smov %s6399_s0 }
 0x401   : > { %s6407_s22 = smov %s6401_s10 }
 0x402   : > { %s6408_s23 = smov %s6402_s25 }
 0x403   :  { %2962 = vsyncpa [#allocation3], 1 }
 0x404   :  { %2964 = vsyncpa [#allocation3 + $0x1], 1 }
 0x405   :  { %2965 = vsyncpa [#allocation4], 1 }
 0x406   :  { %2967 = vsyncpa [#allocation4 + $0x1], 1 }
 0x407   :  { %2968 = vsyncpa [#allocation7], 1 }
 0x408   :  { %2970 = vsyncpa [#allocation7 + $0x1], 1 }

// kernel: tpu_custom_call.1
= control target key start
LH: loop header
LB: loop body
LE: loop exit
PB: predicated region body
PF: predicated region fallthrough
CT: control target
= control target key end

     0   :  { %s6314_s0 = inlined_call_operand.hbm [shape: f32[2,256,256], index: 0, kind: input, shape index: {}]   ;;  %s6315_s1 = inlined_call_operand.vmem [shape: f32[1,256], index: 1, kind: input, shape index: {}]   ;;  %s6316_s2 = inlined_call_operand.vmem [shape: f32[1,256], index: 2, kind: input, shape index: {}]   ;;  %s6317_s3 = inlined_call_operand.vmem [shape: bf16[256,256], index: 3, kind: input, shape index: {}]   ;;  %s6318_s4 = inlined_call_operand.vmem [shape: bf16[256,256], index: 4, kind: input, shape index: {}]   ;;  %s6319_s5 = inlined_call_operand.vmem [shape: bf16[256,256], index: 5, kind: input, shape index: {}]   ;;  %s6320_s6 = inlined_call_operand.vmem [shape: f32[256,1], index: 6, kind: input, shape index: {}]   ;;  %s6321_s7 = inlined_call_operand.vmem [shape: f32[256,1], index: 7, kind: input, shape index: {}]   ;;  %s6322_s8 = inlined_call_operand.vmem [shape: f32[256,1], index: 8, kind: input, shape index: {}]   ;;  %s6323_s9 = inlined_call_operand.hbm [shape: bf16[2,256,256], index: 9, kind: output, shape index: {0}]   ;;  %s6324_s10 = inlined_call_operand.hbm [shape: bf16[2,256,256], index: 10, kind: output, shape index: {1}]   ;;  %s6325_s11 = inlined_call_operand.hbm [shape: bf16[2,256,256], index: 11, kind: output, shape index: {2}]  }
   0x1   :  { %6351 = sst [smem:[#allocation27_spill]] %s6314_s0 }
   0x2   :  { %6352 = sst [smem:[#allocation28_spill]] %s6315_s1 }
   0x3   :  { %6353 = sst [smem:[#allocation29_spill]] %s6323_s9 }
   0x4   :  { %6354 = sst [smem:[#allocation30_spill]] %s6324_s10 }
   0x5   :  { %6355 = sst [smem:[#allocation31_spill]] %s6325_s11 }
   0x6   :  { %17 = vsyncpa [#allocation3], 0 }
   0x7   :  { %19 = vsyncpa [#allocation3 + $0x1], 0 }
   0x8   :  { %20 = vsyncpa [#allocation4], 0 }
   0x9   :  { %22 = vsyncpa [#allocation4 + $0x1], 0 }
   0xa   :  { %23 = vsyncpa [#allocation7], 0 }
   0xb   :  { %25 = vsyncpa [#allocation7 + $0x1], 0  ;;  %s4273_s17 = smov 0   ;;  %s4275_s18 = smov 0  }
   0xc   :  { %s4277_s19 = smov 0   ;;  %s4279_s20 = smov 0  }
   0xd   :  { %s4281_s21 = smov 0   ;;  %s4283_s22 = smov 0  }
   0xe   :  { %s4285_s23 = smov 0   ;;  %s4287_s24 = smov 0  }
   0xf LB: > { %6356 = sst [smem:[#allocation12_spill]] %s4176_s17  ;;  %s4314_s25 = sadd.s32 4294967295, %s4204_s24   ;;  %s4204_s24 = sphi %s4287_s24, %s31_s24   ;;  %s4200_s23 = sphi %s4285_s23, %s6408_s23   ;;  %s4196_s22 = sphi %s4283_s22, %s6407_s22   ;;  %s4192_s21 = sphi %s4281_s21, %s6406_s21   ;;  %s4188_s20 = sphi %s4279_s20, %s6405_s20   ;;  %s4184_s19 = sphi %s4277_s19, %s6400_s19   ;;  %s4180_s18 = sphi %s4275_s18, %s6404_s18   ;;  %s4176_s17 = sphi %s4273_s17, %s6403_s17  }
  0x10   : > { %6357 = sst [smem:[#allocation13_spill]] %s4184_s19  ;;  %s6335_s26 = sadd.s32 4294967294, %s4204_s24  }
  0x11   : > { %6358 = sst [smem:[#allocation14_spill]] %s4188_s20  ;;  %s40_s27 = sadd.s32 1, %s4196_s22 }
  0x12   : > { %6359 = sst [smem:[#allocation15_spill]] %s4314_s25  ;;  %s43_s28 = sadd.s32 1, %s4200_s23 }
  0x13   : > { %p41_p0 = scmp.ge.s32.totalorder %s40_s27, 2  ;;  %s52_s29 = sadd.s32 1, %s4184_s19 }
  0x14   : > { %p59_p1 = scmp.ne.s32.totalorder %s4184_s19, %s4180_s18  ;;  %p60_p2 = scmp.eq.s32.totalorder %s4204_s24, 0 }
  0x15   : > { %s6410_s27 = smov (%p41_p0, %s40_s27), 0  ;;  %s6412_s28 = smov (!%p41_p0, %s43_s28), %s4200_s23 }
  0x16   : > { %6360 = sst [smem:[#allocation16_spill]] %s6410_s27  ;;  %s48_s30 = ssub.s32 %s4196_s22, %s6410_s27 }
  0x17   : > { %p4328_p3 = por %p60_p2, %p59_p1  ;;  %p45_p4 = scmp.ge.s32.totalorder %s6412_s28, 2 }
  0x18   : > { %p65_p5 = scmp.ne.s32.totalorder %s4180_s18, %s4176_s17  ;;  %p66_p6 = scmp.eq.s32.totalorder %s4314_s25, 0 }
  0x19   : > { %p259_p7 = scmp.eq.s32.totalorder %s4314_s25, 3  ;;  %s6414_s28 = smov (%p45_p4, %s6412_s28), 0 }
  0x1a   : > { %6362 = sst [smem:[#allocation17_spill]] %s6414_s28  ;;  %p4338_p8 = por %p66_p6, %p65_p5 }
  0x1b   : > { %p4342_p9 = por %p259_p7, %p59_p1  ;;  %s47_s15 = ssub.s32 %s4200_s23, %s6414_s28 }
  0x1c   : > { %p265_p10 = scmp.eq.s32.totalorder %s6335_s26, 3  ;;  %s49_s16 = sor.u32 %s48_s30, %s47_s15 }
  0x1d   : > { %s6364_s14 = scalar_select %p4342_p9, 1, 0 }
  0x1e   : > { %p50_p11 = scmp.eq.s32.totalorder %s49_s16, 0  ;;  %p4350_p12 = por %p265_p10, %p65_p5 }
  0x1f   : > { %6365 = sst [smem:[#allocation18_spill]] %s6364_s14  ;;  %p3906_p13 = scmp.lt.s32.totalorder %s4204_s24, 4 }
  0x20   : > { %s6366_s27 = scalar_select %p4350_p12, 1, 0 }
  0x21   : > { %s365_s17 = sand.u32 1, %s4184_s19   ;;  %s3486_s25 = sshll.u32 %s4196_s22, 5 }
  0x22   : > { %6367 = sst [smem:[#allocation19_spill]] %s6366_s27  ;;  %s3081_s10 = sshll.u32 %s365_s17, 8 }
  0x23   : > { %s4357_s11 = scalar_select %p50_p11, %s4184_s19, %s52_s29  }
  0x24   : > { %s3084_s9 = sshll.u32 %s4200_s23, 6  ;;  %s369_s14 = scalar_lea.vmem [#allocation2], %s3081_s10 }
  0x25   : > { %6368 = sst [smem:[#allocation20_spill]] %s4357_s11  ;;  %s380_s28 = sshll.u32 %s369_s14, 4  ;;  %s381_s28 = int_to_ptr.vmem [resolvable:$true] %s380_s28 }
  0x26   : > { %s375_s20 = sadd.s32 %s3486_s25, %s3084_s9  ;;  %p3893_p0 = pnand %p3906_p13, %p4328_p3 }
  0x27   : > { %s3085_s26 = sshll.u32 %s375_s20, 3  ;;  %s6369_s0 = sld [smem:[#allocation27_spill]] }
  0x28   : > { %s366_s29 = scalar_lea.sflag [#allocation3], %s365_s17  ;;  %s4206_s11 = smov 256  }
  0x29   : > { %s4207_s19 = smov 16   ;;  %p3086_p1 = scmp.ge.s32.totalorder %s4204_s24, 1 }
  0x2a   : > { %p388_p2 = scmp.lt.s32.totalorder %s4204_s24, 5 }
  0x2c   : > { %p389_p4 = pnand %p3086_p1, %p388_p2 }
  0x2d   : > { %s377_s16 = scalar_lea.hbm %s6369_s0, %s3085_s26 }
  0x2e   : > { %s378_s27 = sshll.u32 %s377_s16, 4  ;;  %392 = sbr.rel (%p389_p4) target bundleno = 1004 (0x3ec), region = 56  ;;  %s379_s27 = int_to_ptr.hbm [resolvable:$true] %s378_s27 }
  0x2f   : > { %3895 = dma.hbm_to_vmem [thread:$0]  (!%p3893_p0), %s379_s27, 4096, %s381_s28, %s366_s29, %s4206_s11, %s4206_s11, %s4207_s19  }
  0x33   : > { %s4369_s9 = sand.u32 1, %s4180_s18  }
  0x34   : > { %s3087_s10 = sshll.u32 %s4369_s9, 8  ;;  %s395_s20 = scalar_lea.sflag [#allocation3], %s4369_s9 }
  0x35   : > { %s4373_s25 = scalar_lea.vmem [#allocation2], %s3087_s10 }
  0x36   : > { %4163 = dma.done.wait (%p4338_p8), %s395_s20, 4096  }
  0x37   : > { %4165 = vsyncadd (%p4338_p8), %s395_s20, 4294963200  ;;  %v4380_v0 = vld [vmem:[%s4373_s25 + $0xe0] sm:$0xff]  ;;  %v4383_v1 = vld [vmem:[%s4373_s25 + $0xe8] sm:$0xff]  ;;  %v4208_v45 = vmov 256.0   ;;  %s6375_s1 = sld [smem:[#allocation28_spill]]  ;;  %s5628_s12 = sshll.u32 %s4369_s9, 7 }
  0x38   : > { %v4386_v2 = vld [vmem:[%s4373_s25 + $0xc0] sm:$0xff]  ;;  %v525_v3 = vadd.f32 %v4383_v1, %v4380_v0  ;;  %v4391_v4 = vld [vmem:[%s4373_s25 + $0xc8] sm:$0xff]  ;;  %v4402_v8 = vld [vmem:[%s4373_s25 + $0xf0] sm:$0xff]  ;;  %3982 = vrcp.f32 %v4208_v45  ;;  %s5670_s20 = scalar_lea.vmem [#allocation5], %s5628_s12  ;;  %s5995_s15 = scalar_lea.vmem [#allocation8], %s5628_s12 }
  0x39   : > { %v519_v5 = vadd.f32 %v4391_v4, %v4386_v2  ;;  %v4396_v6 = vld [vmem:[%s4373_s25 + $0xa0] sm:$0xff]  ;;  %v4399_v7 = vld [vmem:[%s4373_s25 + $0xa8] sm:$0xff]  ;;  %v4405_v9 = vld [vmem:[%s4373_s25 + $0xf8] sm:$0xff]  ;;  %s6000_s16 = scalar_lea.vmem [#allocation6], %s5628_s12  ;;  %s6383_s17 = sld [smem:[#allocation14_spill]] }
  0x3a   : > { %526 = vadd.xlane.f32.xlu0 %v525_v3  ;;  %v513_v10 = vadd.f32 %v4399_v7, %v4396_v6  ;;  %v4410_v11 = vld [vmem:[%s4373_s25 + $0xd0] sm:$0xff]  ;;  %v4413_v12 = vld [vmem:[%s4373_s25 + $0xd8] sm:$0xff]  ;;  %v528_v13 = vadd.f32 %v4405_v9, %v4402_v8  ;;  %v4428_v18 = vld [vmem:[%s4373_s25 + $0x80] sm:$0xff]  ;;  %s3478_s19 = sshll.u32 %s4192_s21, 6  ;;  %s6384_s13 = sld [smem:[#allocation29_spill]] }
  0x3b   : > { %520 = vadd.xlane.f32.xlu1 %v519_v5  ;;  %v4418_v14 = vld [vmem:[%s4373_s25 + $0xb0] sm:$0xff]  ;;  %v4421_v15 = vld [vmem:[%s4373_s25 + $0xb8] sm:$0xff]  ;;  %v522_v16 = vadd.f32 %v4413_v12, %v4410_v11  ;;  %v4431_v19 = vld [vmem:[%s4373_s25 + $0x88] sm:$0xff]  ;;  %s2882_s29 = sshll.u32 %s5670_s20, 4  ;;  %s2883_s29 = int_to_ptr.vmem [resolvable:$true] %s2882_s29 }
  0x3c   : > { %514 = vadd.xlane.f32.xlu2 %v513_v10  ;;  %v516_v17 = vadd.f32 %v4421_v15, %v4418_v14  ;;  %v4434_v20 = vld [vmem:[%s4373_s25 + $0x90] sm:$0xff]  ;;  %v4437_v21 = vld [vmem:[%s4373_s25 + $0x98] sm:$0xff]  ;;  %v507_v22 = vadd.f32 %v4431_v19, %v4428_v18  ;;  %v4442_v23 = vld [vmem:[%s4373_s25 + $0x60] sm:$0xff] }
  0x3d   : > { %v4445_v24 = vld [vmem:[%s4373_s25 + $0x68] sm:$0xff]  ;;  %v510_v25 = vadd.f32 %v4437_v21, %v4434_v20  ;;  %v4452_v27 = vld [vmem:[%s4373_s25 + $0x70] sm:$0xff]  ;;  %v4455_v28 = vld [vmem:[%s4373_s25 + $0x78] sm:$0xff] }
  0x3e   : > { %v501_v26 = vadd.f32 %v4445_v24, %v4442_v23  ;;  %v4458_v29 = vld [vmem:[%s4373_s25 + $0x40] sm:$0xff]  ;;  %v4461_v30 = vld [vmem:[%s4373_s25 + $0x48] sm:$0xff]  ;;  %v504_v31 = vadd.f32 %v4455_v28, %v4452_v27  ;;  %v4466_v32 = vld [vmem:[%s4373_s25 + $0x50] sm:$0xff]  ;;  %v3983_v46 = vpop.eup %3982 }
  0x3f   : > { %v4469_v33 = vld [vmem:[%s4373_s25 + $0x58] sm:$0xff]  ;;  %v495_v34 = vadd.f32 %v4461_v30, %v4458_v29  ;;  %v4476_v36 = vld [vmem:[%s4373_s25 + $0x20] sm:$0xff]  ;;  %v4479_v37 = vld [vmem:[%s4373_s25 + $0x28] sm:$0xff]  ;;  %v532_v47 = vmul.f32 256.0, %v3983_v46  ;;  %vm536_vm0 = vweird.f32 %v3983_v46  ;;  %s2879_s26 = sadd.s32 %s6383_s17, %s3478_s19 }
  0x40   : > { %v498_v35 = vadd.f32 %v4469_v33, %v4466_v32  ;;  %v4482_v38 = vld [vmem:[%s4373_s25 + $0x30] sm:$0xff]  ;;  %v4485_v39 = vld [vmem:[%s4373_s25 + $0x38] sm:$0xff]  ;;  %v489_v40 = vadd.f32 %v4479_v37, %v4476_v36  ;;  %v4492_v42 = vld [vmem:[%s4373_s25] sm:$0xff]  ;;  %s6177_s27 = sshll.u32 %s2879_s26, 2 }
  0x41   : > { %v492_v41 = vadd.f32 %v4485_v39, %v4482_v38  ;;  %v4495_v43 = vld [vmem:[%s4373_s25 + $0x8] sm:$0xff]  ;;  %v533_v48 = vsub.f32 1.0, %v532_v47  ;;  %v4517_v5 = vld [vmem:[%s4373_s25 + $0x10] sm:$0xff]  ;;  %v4520_v10 = vld [vmem:[%s4373_s25 + $0x18] sm:$0xff]  ;;  %s2881_s30 = scalar_lea.hbm %s6384_s13, %s6177_s27  ;;  %s2859_s25 = scalar_lea.sflag [#allocation4], %s4369_s9 }
  0x42   : > { %529 = vadd.xlane.f32.xlu0 %v528_v13  ;;  %v483_v44 = vadd.f32 %v4495_v43, %v4492_v42  ;;  %s2884_s10 = sshll.u32 %s2881_s30, 4  ;;  %s2885_s10 = int_to_ptr.hbm [resolvable:$true] %s2884_s10 }
  0x43   : > { %523 = vadd.xlane.f32.xlu1 %v522_v16  ;;  %v534_v49 = vmul.f32 %v3983_v46, %v533_v48  ;;  %s4060_s12 = sshra.s32 %s2885_s10, 4  ;;  %s4061_s12 = int_to_ptr.hbm [resolvable:$true] %s4060_s12 }
  0x44   : > { %517 = vadd.xlane.f32.xlu2 %v516_v17  ;;  %s4062_s11 = scalar_lea.hbm %s4061_s12, 128  ;;  %p4067_p7 = scmp.lt.s32.totalorder %s4061_s12, %s6384_s13 }
  0x45   : > { %v535_v50 = vadd.f32 %v3983_v46, %v534_v49  ;;  %p4063_p3 = scmp.ne.s32.totalorder %s4061_s12, %s4062_s11 }
  0x47   : > { %v4499_v51 = vsel %vm536_vm0, %v3983_v46, %v535_v50  ;;  %p4064_p5 = pnand %p4063_p3, %p4342_p9 }
  0x49   : > { %p4065_p6 = pneg %p4064_p5 }
  0x4a   : > { %508 = vadd.xlane.f32.xlu0 %v507_v22 }
  0x4b   : > { %511 = vadd.xlane.f32.xlu1 %v510_v25 }
  0x4c   : > { %502 = vadd.xlane.f32.xlu2 %v501_v26 }
  0x52   : > { %505 = vadd.xlane.f32.xlu0 %v504_v31 }
  0x53   : > { %496 = vadd.xlane.f32.xlu1 %v495_v34 }
  0x54   : > { %499 = vadd.xlane.f32.xlu2 %v498_v35 }
  0x5a   : > { %490 = vadd.xlane.f32.xlu0 %v489_v40 }
  0x5b   : > { %493 = vadd.xlane.f32.xlu1 %v492_v41 }
  0x63   : > { %484 = vadd.xlane.f32.xlu1 %v483_v44 }
  0xad   : > { %v527_v52 = vpop.xlane.xlu0 %526 }
  0xae   : > { %v552_v53 = vmul.f32 %v4499_v51, %v527_v52  ;;  %v521_v54 = vpop.xlane.xlu1 %520 }
  0xaf   : > { %v515_v57 = vpop.xlane.xlu2 %514  ;;  %v550_v60 = vmul.f32 %v4499_v51, %v521_v54 }
  0xb0   : > { %v4503_v55 = vsub.f32 %v4380_v0, %v552_v53  ;;  %v4506_v56 = vsub.f32 %v4383_v1, %v552_v53  ;;  %v548_v63 = vmul.f32 %v4499_v51, %v515_v57 }
  0xb1   : > { %v4523_v13 = vsub.f32 %v4386_v2, %v550_v60  ;;  %v4526_v16 = vsub.f32 %v4391_v4, %v550_v60 }
  0xb2   : > { %v614_v58 = vmul.f32 %v4503_v55, %v4503_v55  ;;  %v615_v59 = vmul.f32 %v4506_v56, %v4506_v56  ;;  %v4541_v34 = vsub.f32 %v4396_v6, %v548_v63  ;;  %v4544_v2 = vsub.f32 %v4399_v7, %v548_v63 }
  0xb3   : > { %v610_v7 = vmul.f32 %v4523_v13, %v4523_v13  ;;  %v611_v35 = vmul.f32 %v4526_v16, %v4526_v16 }
  0xb4   : > { %v660_v61 = vadd.f32 %v615_v59, %v614_v58  ;;  %v606_v45 = vmul.f32 %v4541_v34, %v4541_v34  ;;  %v607_v46 = vmul.f32 %v4544_v2, %v4544_v2 }
  0xb5   : > { %v530_v62 = vpop.xlane.xlu0 %529  ;;  %v654_v58 = vadd.f32 %v611_v35, %v610_v7 }
  0xb6   : > { %v553_v3 = vmul.f32 %v4499_v51, %v530_v62  ;;  %v524_v0 = vpop.xlane.xlu1 %523  ;;  %661 = vadd.xlane.f32.xlu2 %v660_v61  ;;  %v648_v59 = vadd.f32 %v607_v46, %v606_v45 }
  0xb7   : > { %v551_v1 = vmul.f32 %v4499_v51, %v524_v0  ;;  %v518_v25 = vpop.xlane.xlu2 %517 }
  0xb8   : > { %v4529_v17 = vsub.f32 %v4402_v8, %v553_v3  ;;  %v4532_v22 = vsub.f32 %v4405_v9, %v553_v3  ;;  %v486_v9 = vadd.f32 %v4520_v10, %v4517_v5  ;;  %v549_v44 = vmul.f32 %v4499_v51, %v518_v25 }
  0xb9   : > { %v4535_v26 = vsub.f32 %v4410_v11, %v551_v1  ;;  %v4538_v31 = vsub.f32 %v4413_v12, %v551_v1 }
  0xba   : > { %v616_v4 = vmul.f32 %v4529_v17, %v4529_v17  ;;  %v617_v8 = vmul.f32 %v4532_v22, %v4532_v22  ;;  %v4574_v54 = vsub.f32 %v4418_v14, %v549_v44  ;;  %v4577_v57 = vsub.f32 %v4421_v15, %v549_v44 }
  0xbb   : > { %v612_v11 = vmul.f32 %v4535_v26, %v4535_v26  ;;  %v613_v12 = vmul.f32 %v4538_v31, %v4538_v31 }
  0xbc   : > { %v663_v6 = vadd.f32 %v617_v8, %v616_v4  ;;  %v608_v15 = vmul.f32 %v4574_v54, %v4574_v54 }
  0xbd   : > { %v509_v40 = vpop.xlane.xlu0 %508  ;;  %v657_v41 = vadd.f32 %v613_v12, %v612_v11 }
  0xbe   : > { %v546_v47 = vmul.f32 %v4499_v51, %v509_v40  ;;  %664 = vadd.xlane.f32.xlu0 %v663_v6  ;;  %487 = vadd.xlane.f32.xlu2 %v486_v9  ;;  %v512_v48 = vpop.xlane.xlu1 %511 }
  0xbf   : > { %658 = vadd.xlane.f32.xlu1 %v657_v41  ;;  %v547_v49 = vmul.f32 %v4499_v51, %v512_v48  ;;  %v503_v53 = vpop.xlane.xlu2 %502 }
  0xc0   : > { %v4568_v50 = vsub.f32 %v4428_v18, %v546_v47  ;;  %v4571_v52 = vsub.f32 %v4431_v19, %v546_v47  ;;  %v544_v14 = vmul.f32 %v4499_v51, %v503_v53 }
  0xc1   : > { %v4580_v60 = vsub.f32 %v4434_v20, %v547_v49  ;;  %v4583_v61 = vsub.f32 %v4437_v21, %v547_v49  ;;  %v609_v20 = vmul.f32 %v4577_v57, %v4577_v57 }
  0xc2   : > { %v602_v18 = vmul.f32 %v4568_v50, %v4568_v50  ;;  %v603_v19 = vmul.f32 %v4571_v52, %v4571_v52  ;;  %v4607_v9 = vsub.f32 %v4442_v23, %v544_v14  ;;  %v4610_v11 = vsub.f32 %v4445_v24, %v544_v14 }
  0xc3   : > { %v604_v0 = vmul.f32 %v4580_v60, %v4580_v60  ;;  %v605_v1 = vmul.f32 %v4583_v61, %v4583_v61  ;;  %v651_v7 = vadd.f32 %v609_v20, %v608_v15 }
  0xc4   : > { %v642_v62 = vadd.f32 %v603_v19, %v602_v18  ;;  %v598_v24 = vmul.f32 %v4607_v9, %v4607_v9 }
  0xc5   : > { %v506_v63 = vpop.xlane.xlu0 %505  ;;  %v645_v35 = vadd.f32 %v605_v1, %v604_v0 }
  0xc6   : > { %v545_v3 = vmul.f32 %v4499_v51, %v506_v63  ;;  %655 = vadd.xlane.f32.xlu0 %v654_v58  ;;  %649 = vadd.xlane.f32.xlu2 %v648_v59  ;;  %v497_v21 = vpop.xlane.xlu1 %496 }
  0xc7   : > { %643 = vadd.xlane.f32.xlu1 %v642_v62  ;;  %v542_v25 = vmul.f32 %v4499_v51, %v497_v21  ;;  %v500_v40 = vpop.xlane.xlu2 %499 }
  0xc8   : > { %v4601_v4 = vsub.f32 %v4452_v27, %v545_v3  ;;  %v4604_v8 = vsub.f32 %v4455_v28, %v545_v3 }
  0xc9   : > { %v4613_v12 = vsub.f32 %v4458_v29, %v542_v25  ;;  %v4616_v6 = vsub.f32 %v4461_v30, %v542_v25  ;;  %v543_v29 = vmul.f32 %v4499_v51, %v500_v40  ;;  %v599_v30 = vmul.f32 %v4610_v11, %v4610_v11 }
  0xca   : > { %v600_v27 = vmul.f32 %v4601_v4, %v4601_v4  ;;  %v601_v28 = vmul.f32 %v4604_v8, %v4604_v8 }
  0xcb   : > { %v594_v44 = vmul.f32 %v4613_v12, %v4613_v12  ;;  %v595_v45 = vmul.f32 %v4616_v6, %v4616_v6  ;;  %v4640_v58 = vsub.f32 %v4466_v32, %v543_v29  ;;  %v4643_v59 = vsub.f32 %v4469_v33, %v543_v29 }
  0xcc   : > { %v639_v23 = vadd.f32 %v601_v28, %v600_v27  ;;  %v636_v18 = vadd.f32 %v599_v30, %v598_v24 }
  0xcd   : > { %v491_v41 = vpop.xlane.xlu0 %490  ;;  %v630_v19 = vadd.f32 %v595_v45, %v594_v44  ;;  %v596_v32 = vmul.f32 %v4640_v58, %v4640_v58 }
  0xce   : > { %v540_v46 = vmul.f32 %v4499_v51, %v491_v41  ;;  %652 = vadd.xlane.f32.xlu0 %v651_v7  ;;  %646 = vadd.xlane.f32.xlu2 %v645_v35  ;;  %v494_v47 = vpop.xlane.xlu1 %493 }
  0xcf   : > { %640 = vadd.xlane.f32.xlu1 %v639_v23  ;;  %v541_v48 = vmul.f32 %v4499_v51, %v494_v47 }
  0xd0   : > { %v4634_v49 = vsub.f32 %v4476_v36, %v540_v46  ;;  %v4637_v53 = vsub.f32 %v4479_v37, %v540_v46 }
  0xd1   : > { %v4646_v62 = vsub.f32 %v4482_v38, %v541_v48  ;;  %v4649_v14 = vsub.f32 %v4485_v39, %v541_v48  ;;  %v597_v38 = vmul.f32 %v4643_v59, %v4643_v59 }
  0xd2   : > { %6370 = vst [vmem:[#allocation21_spill] sm:$0xff] %v4637_v53  ;;  %v590_v36 = vmul.f32 %v4634_v49, %v4634_v49  ;;  %v591_v37 = vmul.f32 %v4637_v53, %v4637_v53 }
  0xd3   : > { %v592_v39 = vmul.f32 %v4646_v62, %v4646_v62  ;;  %v593_v15 = vmul.f32 %v4649_v14, %v4649_v14  ;;  %v633_v0 = vadd.f32 %v597_v38, %v596_v32 }
  0xd4   : > { %v624_v63 = vadd.f32 %v591_v37, %v590_v36 }
  0xd5   : > { %v627_v1 = vadd.f32 %v593_v15, %v592_v39 }
  0xd6   : > { %637 = vadd.xlane.f32.xlu0 %v636_v18  ;;  %631 = vadd.xlane.f32.xlu2 %v630_v19  ;;  %v485_v33 = vpop.xlane.xlu1 %484 }
  0xd7   : > { %625 = vadd.xlane.f32.xlu1 %v624_v63  ;;  %v538_v20 = vmul.f32 %v4499_v51, %v485_v33 }
  0xd9   : > { %v4665_v3 = vsub.f32 %v4492_v42, %v538_v20  ;;  %v4668_v21 = vsub.f32 %v4495_v43, %v538_v20 }
  0xdb   : > { %6371 = vst [vmem:[#allocation22_spill] sm:$0xff] %v4665_v3  ;;  %v586_v25 = vmul.f32 %v4665_v3, %v4665_v3  ;;  %v587_v7 = vmul.f32 %v4668_v21, %v4668_v21 }
  0xdc   : > { %6372 = vst [vmem:[#allocation23_spill] sm:$0xff] %v4668_v21 }
  0xdd   : > { %v618_v35 = vadd.f32 %v587_v7, %v586_v25 }
  0xde   : > { %634 = vadd.xlane.f32.xlu0 %v633_v0  ;;  %628 = vadd.xlane.f32.xlu2 %v627_v1 }
  0xe6   : > { %619 = vadd.xlane.f32.xlu0 %v618_v35 }
 0x129   : > { %v662_v27 = vpop.xlane.xlu2 %661 }
 0x12a   : > { %v680_v28 = vmul.f32 %v662_v27, %v4499_v51 }
 0x12c   : > { %v696_v42 = vadd.f32 1e-05, %v680_v28 }
 0x12e   : > { %3984 = vrsqrt.f32 %v696_v42  ;;  %vm844_vm4 = vweird.f32 %v696_v42 }
 0x131   : > { %v665_v40 = vpop.xlane.xlu0 %664  ;;  %v488_v43 = vpop.xlane.xlu2 %487 }
 0x132   : > { %v681_v23 = vmul.f32 %v665_v40, %v4499_v51  ;;  %v539_v24 = vmul.f32 %v4499_v51, %v488_v43  ;;  %v659_v41 = vpop.xlane.xlu1 %658 }
 0x133   : > { %v679_v29 = vmul.f32 %v659_v41, %v4499_v51 }
 0x134   : > { %v3985_v30 = vpop.eup %3984  ;;  %v697_v44 = vadd.f32 1e-05, %v681_v23  ;;  %v4679_v45 = vsub.f32 %v4517_v5, %v539_v24  ;;  %v4682_v46 = vsub.f32 %v4520_v10, %v539_v24 }
 0x135   : > { %v839_v47 = vmul.f32 %v3985_v30, %v696_v42  ;;  %v4684_v48 = vadd.f32 1e-05, %v679_v29  ;;  %vm845_vm3 = vweird.f32 %v3985_v30  ;;  %v482_v42 = vld [vmem:[%s6316_s2] sm:$0x3] }
 0x136   : > { %6373 = vst [vmem:[#allocation24_spill] sm:$0xff] %v4679_v45  ;;  %3986 = vrsqrt.f32 %v697_v44  ;;  %v588_v18 = vmul.f32 %v4679_v45, %v4679_v45  ;;  %v589_v19 = vmul.f32 %v4682_v46, %v4682_v46  ;;  %vm854_vm1 = vweird.f32 %v697_v44  ;;  %vm846_vm6 = vmor %vm844_vm4, %vm845_vm3 }
 0x137   : > { %6374 = vst [vmem:[#allocation25_spill] sm:$0xff] %v4682_v46  ;;  %v840_v37 = vmul.f32 %v3985_v30, %v839_v47  ;;  %3988 = vrsqrt.f32 %v4684_v48  ;;  %vm834_vm7 = vweird.f32 %v4684_v48 }
 0x138   : > { %v621_v36 = vadd.f32 %v589_v19, %v588_v18 }
 0x139   : > { %v656_v63 = vpop.xlane.xlu0 %655  ;;  %v650_v32 = vpop.xlane.xlu2 %649  ;;  %v841_v20 = vmul.f32 0.5, %v840_v37 }
 0x13a   : > { %v678_v5 = vmul.f32 %v656_v63, %v4499_v51  ;;  %v676_v10 = vmul.f32 %v650_v32, %v4499_v51  ;;  %622 = vadd.xlane.f32.xlu1 %v621_v36  ;;  %v644_v15 = vpop.xlane.xlu1 %643 }
 0x13b   : > { %v674_v25 = vmul.f32 %v644_v15, %v4499_v51  ;;  %v842_v35 = vsub.f32 1.5, %v841_v20 }
 0x13c   : > { %v3987_v33 = vpop.eup %3986  ;;  %v4693_v38 = vadd.f32 1e-05, %v678_v5  ;;  %v4695_v39 = vadd.f32 1e-05, %v676_v10 }
 0x13d   : > { %v849_v0 = vmul.f32 %v3987_v33, %v697_v44  ;;  %v4699_v7 = vpop.eup %3988  ;;  %v4706_v29 = vadd.f32 1e-05, %v674_v25  ;;  %vm855_vm2 = vweird.f32 %v3987_v33  ;;  %v843_v19 = vmul.f32 %v3985_v30, %v842_v35 }
 0x13e   : > { %3990 = vrsqrt.f32 %v4693_v38  ;;  %v829_v41 = vmul.f32 %v4699_v7, %v4684_v48  ;;  %vm856_vm5 = vmor %vm854_vm1, %vm855_vm2  ;;  %vm835_vm8 = vweird.f32 %v4699_v7  ;;  %vm824_vm9 = vweird.f32 %v4693_v38 }
 0x13f   : > { %v850_v1 = vmul.f32 %v3987_v33, %v849_v0  ;;  %3992 = vrsqrt.f32 %v4695_v39  ;;  %v847_v15 = vsel %vm846_vm6, %v3985_v30, %v843_v19  ;;  %vm836_vm12 = vmor %vm834_vm7, %vm835_vm8  ;;  %vm804_vm13 = vweird.f32 %v4695_v39 }
 0x140   : > { %v830_v5 = vmul.f32 %v4699_v7, %v829_v41  ;;  %vm784_vm3 = vweird.f32 %v4706_v29 }
 0x141   : > { %v851_v27 = vmul.f32 0.5, %v850_v1  ;;  %v653_v28 = vpop.xlane.xlu0 %652  ;;  %v647_v40 = vpop.xlane.xlu2 %646  ;;  %v481_v1 = vld [vmem:[%s6375_s1] sm:$0x3] }
 0x142   : > { %v677_v43 = vmul.f32 %v653_v28, %v4499_v51  ;;  %v675_v23 = vmul.f32 %v647_v40, %v4499_v51  ;;  %v641_v10 = vpop.xlane.xlu1 %640  ;;  %v831_v28 = vmul.f32 0.5, %v830_v5  ;;  %v886_v40 = vmul.f32 %v847_v15, %v4503_v55 }
 0x143   : > { %v852_v24 = vsub.f32 1.5, %v851_v27  ;;  %v673_v27 = vmul.f32 %v641_v10, %v4499_v51 }
 0x144   : > { %v4708_v47 = vpop.eup %3990  ;;  %v4710_v18 = vadd.f32 1e-05, %v677_v43  ;;  %v4717_v32 = vadd.f32 1e-05, %v675_v23  ;;  %v4736_v23 = vperm.slane %v481_v1, 0 }
 0x145   : > { %v819_v36 = vmul.f32 %v4708_v47, %v4693_v38  ;;  %v4714_v37 = vpop.eup %3992  ;;  %v853_v63 = vmul.f32 %v3987_v33, %v852_v24  ;;  %v4738_v24 = vperm.slane %v482_v42, 0  ;;  %v4749_v5 = vadd.f32 1e-05, %v673_v27 }
 0x146   : > { %3994 = vrsqrt.f32 %v4710_v18  ;;  %v799_v20 = vmul.f32 %v4714_v37, %v4695_v39  ;;  %vm825_vm10 = vweird.f32 %v4708_v47  ;;  %v923_v27 = vmul.f32 %v4736_v23, %v886_v40 }
 0x147   : > { %v820_v44 = vmul.f32 %v4708_v47, %v819_v36  ;;  %3996 = vrsqrt.f32 %v4706_v29  ;;  %v857_v25 = vsel %vm856_vm5, %v3987_v33, %v853_v63  ;;  %v4746_v63 = vperm.slane %v481_v1, 1  ;;  %vm826_vm11 = vmor %vm824_vm9, %vm825_vm10 }
 0x148   : > { %3998 = vrsqrt.f32 %v4717_v32  ;;  %v888_v33 = vmul.f32 %v857_v25, %v4529_v17  ;;  %v800_v19 = vmul.f32 %v4714_v37, %v799_v20  ;;  %v887_v1 = vmul.f32 %v847_v15, %v4506_v56 }
 0x149   : > { %v638_v0 = vpop.xlane.xlu0 %637  ;;  %v821_v35 = vmul.f32 0.5, %v820_v44  ;;  %v632_v10 = vpop.xlane.xlu2 %631  ;;  %v4780_v40 = vperm.slane %v482_v42, 1  ;;  %vm805_vm14 = vweird.f32 %v4714_v37  ;;  %vm814_vm15 = vweird.f32 %v4710_v18 }
 0x14a   : > { %v672_v43 = vmul.f32 %v638_v0, %v4499_v51  ;;  %v832_v0 = vsub.f32 1.5, %v831_v28  ;;  %v801_v28 = vmul.f32 0.5, %v800_v19  ;;  %v925_v46 = vmul.f32 %v4736_v23, %v888_v33  ;;  %v626_v21 = vpop.xlane.xlu1 %625  ;;  %vm4807_vm1 = vmor %vm804_vm13, %vm805_vm14 }
 0x14b   : > { %v822_v55 = vsub.f32 1.5, %v821_v35  ;;  %vm794_vm5 = vweird.f32 %v4717_v32  ;;  %vm774_vm9 = vweird.f32 %v4749_v5 }
 0x14c   : > { %v4732_v30 = vpop.eup %3994  ;;  %v4751_v44 = vadd.f32 1e-05, %v672_v43  ;;  %v889_v43 = vmul.f32 %v857_v25, %v4532_v22  ;;  %v833_v15 = vmul.f32 %v4699_v7, %v832_v0  ;;  %v670_v22 = vmul.f32 %v632_v10, %v4499_v51 }
 0x14d   : > { %v4740_v41 = vpop.eup %3996  ;;  %v809_v36 = vmul.f32 %v4732_v30, %v4710_v18  ;;  %v802_v19 = vsub.f32 1.5, %v801_v28  ;;  %v962_v38 = vadd.f32 %v4738_v24, %v925_v46  ;;  %v924_v0 = vmul.f32 %v4746_v63, %v887_v1 }
 0x14e   : > { %v4756_v20 = vpop.eup %3998  ;;  %v779_v35 = vmul.f32 %v4740_v41, %v4706_v29  ;;  %4000 = vrsqrt.f32 %v4751_v44  ;;  %v926_v3 = vmul.f32 %v4746_v63, %v889_v43  ;;  %v837_v42 = vsel %vm836_vm12, %v4699_v7, %v833_v15 }
 0x14f   : > { %v810_v17 = vmul.f32 %v4732_v30, %v809_v36  ;;  %v823_v36 = vmul.f32 %v4708_v47, %v822_v55  ;;  %v789_v56 = vmul.f32 %v4756_v20, %v4717_v32  ;;  %4002 = vrsqrt.f32 %v4749_v5 }
 0x150   : > { %v780_v25 = vmul.f32 %v4740_v41, %v779_v35  ;;  %v960_v55 = vadd.f32 %v4738_v24, %v923_v27  ;;  %v4792_v35 = vadd.f32 1e-05, %v670_v22  ;;  %vm815_vm0 = vweird.f32 %v4732_v30 }
 0x151   : > { %v811_v45 = vmul.f32 0.5, %v810_v17  ;;  %v635_v33 = vpop.xlane.xlu0 %634  ;;  %v827_v10 = vsel %vm826_vm11, %v4708_v47, %v823_v36  ;;  %v790_v48 = vmul.f32 %v4756_v20, %v789_v56  ;;  %v629_v47 = vpop.xlane.xlu2 %628  ;;  %v803_v7 = vmul.f32 %v4714_v37, %v802_v19  ;;  %vm816_vm2 = vmor %vm814_vm15, %vm815_vm0 }
 0x152   : > { %v671_v46 = vmul.f32 %v635_v33, %v4499_v51  ;;  %v781_v1 = vmul.f32 0.5, %v780_v25  ;;  %v882_v43 = vmul.f32 %v827_v10, %v4523_v13  ;;  %v668_v28 = vmul.f32 %v626_v21, %v4499_v51 }
 0x153   : > { %v812_v17 = vsub.f32 1.5, %v811_v45  ;;  %v4799_v45 = vpack.c.bf16 %v962_v38, %v960_v55  ;;  %v963_v36 = vadd.f32 %v4780_v40, %v926_v3  ;;  %v791_v22 = vmul.f32 0.5, %v790_v48 }
 0x154   : > { %v4788_v53 = vpop.eup %4000  ;;  %v961_v13 = vadd.f32 %v4780_v40, %v924_v0  ;;  %4004 = vrsqrt.f32 %v4792_v35  ;;  %v4822_v21 = vadd.f32 1e-05, %v671_v46  ;;  %v669_v39 = vmul.f32 %v629_v47, %v4499_v51 }
 0x155   : > { %v4795_v27 = vpop.eup %4002  ;;  %v813_v15 = vmul.f32 %v4732_v30, %v812_v17  ;;  %v759_v25 = vmul.f32 %v4788_v53, %v4751_v44  ;;  %1364 = vmatpush.bf16.xpose.msra.mxu0 %v4799_v45  ;;  %3868 = vmatpush.bf16.xpose.msra.mxu2 %v4799_v45  ;;  %v884_v33 = vmul.f32 %v837_v42, %v4535_v26  ;;  %vm785_vm4 = vweird.f32 %v4740_v41 }
 0x156   : > { %v769_v3 = vmul.f32 %v4795_v27, %v4749_v5  ;;  %v4828_v19 = vpack.c.bf16 %v963_v36, %v961_v13  ;;  %v885_v18 = vmul.f32 %v837_v42, %v4538_v31  ;;  %v883_v55 = vmul.f32 %v827_v10, %v4526_v16  ;;  %vm786_vm8 = vmor %vm784_vm3, %vm785_vm4 }
 0x157   : > { %v807_v38 = vsel %vm4807_vm1, %v4714_v37, %v803_v7  ;;  %v919_v0 = vmul.f32 %v4736_v23, %v882_v43  ;;  %v817_v17 = vsel %vm816_vm2, %v4732_v30, %v813_v15  ;;  %v792_v48 = vsub.f32 1.5, %v791_v22 }
 0x158   : > { %v760_v26 = vmul.f32 %v4788_v53, %v759_v25  ;;  %v4838_v46 = vadd.f32 1e-05, %v668_v28  ;;  %1453 = vmatpush.bf16.xpose.msra.mxu1 %v4828_v19  ;;  %v782_v47 = vsub.f32 1.5, %v781_v1  ;;  %v770_v31 = vmul.f32 %v4795_v27, %v769_v3  ;;  %3876 = vmatpush.bf16.xpose.msra.mxu3 %v4828_v19 }
 0x159   : > { %4006 = vrsqrt.f32 %v4822_v21  ;;  %v4844_v16 = vadd.f32 1e-05, %v669_v39  ;;  %v878_v37 = vmul.f32 %v807_v38, %v4541_v34  ;;  %vm795_vm6 = vweird.f32 %v4756_v20 }
 0x15a   : > { %v921_v30 = vmul.f32 %v4736_v23, %v884_v33  ;;  %v4850_v10 = vpop.eup %4004  ;;  %v880_v42 = vmul.f32 %v817_v17, %v4574_v54  ;;  %v956_v1 = vadd.f32 %v4738_v24, %v919_v0  ;;  %v920_v43 = vmul.f32 %v4746_v63, %v883_v55  ;;  %vm796_vm7 = vmor %vm794_vm5, %vm795_vm6 }
 0x15b   : > { %4008 = vrsqrt.f32 %v4844_v16  ;;  %v793_v7 = vmul.f32 %v4756_v20, %v792_v48  ;;  %v761_v28 = vmul.f32 0.5, %v760_v26  ;;  %v783_v34 = vmul.f32 %v4740_v41, %v782_v47 }
 0x15c   : > { %4010 = vrsqrt.f32 %v4838_v46  ;;  %v771_v32 = vmul.f32 0.5, %v770_v31  ;;  %v958_v36 = vadd.f32 %v4738_v24, %v921_v30  ;;  %v922_v56 = vmul.f32 %v4746_v63, %v885_v18 }
 0x15d   : > { %v879_v54 = vmul.f32 %v807_v38, %v4544_v2  ;;  %v739_v15 = vmul.f32 %v4850_v10, %v4792_v35  ;;  %v957_v22 = vadd.f32 %v4780_v40, %v920_v43  ;;  %v881_v13 = vmul.f32 %v817_v17, %v4577_v57 }
 0x15e   : > { %v4873_v3 = vpack.c.bf16 %v958_v36, %v956_v1  ;;  %v915_v2 = vmul.f32 %v4736_v23, %v878_v37  ;;  %v917_v39 = vmul.f32 %v4736_v23, %v880_v42  ;;  %v797_v29 = vsel %vm796_vm7, %v4756_v20, %v793_v7 }
 0x15f   : > { %v4870_v25 = vpop.eup %4006  ;;  %v762_v33 = vsub.f32 1.5, %v761_v28  ;;  %v959_v55 = vadd.f32 %v4780_v40, %v922_v56  ;;  %v787_v0 = vsel %vm786_vm8, %v4740_v41, %v783_v34  ;;  %v772_v48 = vsub.f32 1.5, %v771_v32 }
 0x160   : > { %v749_v18 = vmul.f32 %v4870_v25, %v4822_v21  ;;  %vm764_vm10 = vweird.f32 %v4751_v44  ;;  %vm765_vm11 = vweird.f32 %v4788_v53  ;;  %1365 = vmatpush.bf16.xpose.msra.mxu0 %v4873_v3  ;;  %v740_v20 = vmul.f32 %v4850_v10, %v739_v15  ;;  %3869 = vmatpush.bf16.xpose.msra.mxu2 %v4873_v3  ;;  %v1014_v44 = vld [vmem:[%s6320_s6 + $0x10] sm:$0xff] }
 0x161   : > { %v4881_v38 = vpop.eup %4008  ;;  %v4892_v26 = vpack.c.bf16 %v959_v55, %v957_v22  ;;  %v916_v47 = vmul.f32 %v4746_v63, %v879_v54  ;;  %v876_v41 = vmul.f32 %v797_v29, %v4580_v60  ;;  %vm775_vm12 = vweird.f32 %v4795_v27  ;;  %vm766_vm13 = vmor %vm764_vm10, %vm765_vm11 }
 0x162   : > { %v4887_v57 = vpop.eup %4010  ;;  %v750_v17 = vmul.f32 %v4870_v25, %v749_v18  ;;  %v952_v31 = vadd.f32 %v4738_v24, %v915_v2  ;;  %v954_v37 = vadd.f32 %v4738_v24, %v917_v39  ;;  %v763_v30 = vmul.f32 %v4788_v53, %v762_v33  ;;  %vm776_vm14 = vmor %vm774_vm9, %vm775_vm12 }
 0x163   : > { %v729_v1 = vmul.f32 %v4881_v38, %v4844_v16  ;;  %1454 = vmatpush.bf16.xpose.msra.mxu1 %v4892_v26  ;;  %3877 = vmatpush.bf16.xpose.msra.mxu3 %v4892_v26  ;;  %v918_v43 = vmul.f32 %v4746_v63, %v881_v13  ;;  %v874_v60 = vmul.f32 %v787_v0, %v4568_v50  ;;  %v741_v50 = vmul.f32 0.5, %v740_v20 }
 0x164   : > { %v751_v42 = vmul.f32 0.5, %v750_v17  ;;  %v773_v7 = vmul.f32 %v4795_v27, %v772_v48  ;;  %v719_v28 = vmul.f32 %v4887_v57, %v4838_v46  ;;  %v4913_v34 = vpack.c.bf16 %v954_v37, %v952_v31 }
 0x165   : > { %v877_v32 = vmul.f32 %v797_v29, %v4583_v61  ;;  %v953_v36 = vadd.f32 %v4780_v40, %v916_v47  ;;  %v955_v56 = vadd.f32 %v4780_v40, %v918_v43  ;;  %v875_v54 = vmul.f32 %v787_v0, %v4571_v52  ;;  %v1012_v61 = vld [vmem:[%s6320_s6] sm:$0xff] }
 0x166   : > { %v913_v15 = vmul.f32 %v4736_v23, %v876_v41  ;;  %v767_v5 = vsel %vm766_vm13, %v4788_v53, %v763_v30  ;;  %v752_v22 = vsub.f32 1.5, %v751_v42  ;;  %v730_v13 = vmul.f32 %v4881_v38, %v729_v1  ;;  %v1017_v42 = vld [vmem:[%s6320_s6 + $0x28] sm:$0xff] }
 0x167   : > { %v4932_v2 = vpack.c.bf16 %v955_v56, %v953_v36  ;;  %v4209_v39 = vmov 0   ;;  %v777_v29 = vsel %vm776_vm14, %v4795_v27, %v773_v7  ;;  %v720_v52 = vmul.f32 %v4887_v57, %v719_v28  ;;  %v1013_v27 = vld [vmem:[%s6320_s6 + $0x8] sm:$0xff] }
 0x168   : > { %3981 = vset.pattern.permute.xlu1 %v4209_v39  ;;  %3979 = vset.pattern.permute.xlu2 %v4209_v39  ;;  %v911_v33 = vmul.f32 %v4736_v23, %v874_v60  ;;  %v742_v18 = vsub.f32 1.5, %v741_v50  ;;  %vm754_vm15 = vweird.f32 %v4822_v21  ;;  %vm755_vm0 = vweird.f32 %v4870_v25  ;;  %v1020_v50 = vld [vmem:[%s6320_s6 + $0x40] sm:$0xff] }
 0x169   : > { %1366 = vmatpush.bf16.xpose.msra.mxu0 %v4913_v34  ;;  %1056 = vperm.xlu1 %3981, %v1014_v44   ;;  %v914_v53 = vmul.f32 %v4746_v63, %v877_v32  ;;  %v870_v55 = vmul.f32 %v767_v5, %v4607_v9  ;;  %vm744_vm1 = vweird.f32 %v4792_v35  ;;  %v950_v0 = vadd.f32 %v4738_v24, %v913_v15  ;;  %vm756_vm3 = vmor %vm754_vm15, %vm755_vm0 }
 0x16a   : > { %3870 = vmatpush.bf16.xpose.msra.mxu2 %v4913_v34  ;;  %1046 = vperm.xlu2 %3979, %v1012_v61   ;;  %vm745_vm2 = vweird.f32 %v4850_v10  ;;  %v753_v48 = vmul.f32 %v4870_v25, %v752_v22  ;;  %v731_v20 = vmul.f32 0.5, %v730_v13  ;;  %v912_v17 = vmul.f32 %v4746_v63, %v875_v54 }
 0x16b   : > { %3980 = vset.pattern.permute.xlu0 %v4209_v39  ;;  %1455 = vmatpush.bf16.xpose.msra.mxu1 %v4932_v2  ;;  %v872_v47 = vmul.f32 %v777_v29, %v4601_v4  ;;  %v721_v41 = vmul.f32 0.5, %v720_v52  ;;  %v948_v9 = vadd.f32 %v4738_v24, %v911_v33  ;;  %v871_v31 = vmul.f32 %v767_v5, %v4610_v11  ;;  %vm746_vm4 = vmor %vm744_vm1, %vm745_vm2  ;;  %v1015_v11 = vld [vmem:[%s6320_s6 + $0x18] sm:$0xff] }
 0x16c   : > { %3878 = vmatpush.bf16.xpose.msra.mxu3 %v4932_v2  ;;  %1051 = vperm.xlu0 %3980, %v1013_v27   ;;  %v743_v37 = vmul.f32 %v4850_v10, %v742_v18  ;;  %v951_v30 = vadd.f32 %v4780_v40, %v914_v53  ;;  %v907_v21 = vmul.f32 %v4736_v23, %v870_v55  ;;  %v732_v60 = vsub.f32 1.5, %v731_v20  ;;  %v1019_v5 = vld [vmem:[%s6320_s6 + $0x38] sm:$0xff] }
 0x16d   : > { %v4969_v4 = vpack.c.bf16 %v950_v0, %v948_v9  ;;  %v873_v1 = vmul.f32 %v777_v29, %v4604_v8  ;;  %v757_v43 = vsel %vm756_vm3, %v4870_v25, %v753_v48  ;;  %v949_v7 = vadd.f32 %v4780_v40, %v912_v17 }
 0x16e   : > { %v722_v28 = vsub.f32 1.5, %v721_v41  ;;  %vm734_vm5 = vweird.f32 %v4844_v16  ;;  %v909_v35 = vmul.f32 %v4736_v23, %v872_v47  ;;  %v747_v32 = vsel %vm746_vm4, %v4850_v10, %v743_v37  ;;  %v1016_v16 = vld [vmem:[%s6320_s6 + $0x20] sm:$0xff]  ;;  %v1018_v47 = vld [vmem:[%s6320_s6 + $0x30] sm:$0xff] }
 0x16f   : > { %vm735_vm6 = vweird.f32 %v4881_v38  ;;  %v4984_v8 = vpack.c.bf16 %v951_v30, %v949_v7  ;;  %v908_v25 = vmul.f32 %v4746_v63, %v871_v31  ;;  %v868_v36 = vmul.f32 %v757_v43, %v4640_v58  ;;  %v1026_v30 = vld [vmem:[%s6320_s6 + $0x70] sm:$0xff]  ;;  %v1021_v7 = vld [vmem:[%s6320_s6 + $0x48] sm:$0xff] }
 0x170   : > { %v944_v56 = vadd.f32 %v4738_v24, %v907_v21  ;;  %vm724_vm7 = vweird.f32 %v4838_v46  ;;  %vm725_vm8 = vweird.f32 %v4887_v57  ;;  %v733_v10 = vmul.f32 %v4881_v38, %v732_v60  ;;  %vm736_vm9 = vmor %vm734_vm5, %vm735_vm6 }
 0x171   : > { %1367 = vmatpush.bf16.xpose.msra.mxu0 %v4969_v4  ;;  %1071 = vperm.xlu1 %3981, %v1017_v42   ;;  %v910_v44 = vmul.f32 %v4746_v63, %v873_v1  ;;  %v866_v54 = vmul.f32 %v747_v32, %v4613_v12  ;;  %v946_v58 = vadd.f32 %v4738_v24, %v909_v35  ;;  %vm726_vm10 = vmor %vm724_vm7, %vm725_vm8 }
 0x172   : > { %3871 = vmatpush.bf16.xpose.msra.mxu2 %v4969_v4  ;;  %1061 = vperm.xlu2 %3979, %v1015_v11   ;;  %v723_v46 = vmul.f32 %v4887_v57, %v722_v28  ;;  %v869_v15 = vmul.f32 %v757_v43, %v4643_v59  ;;  %v945_v61 = vadd.f32 %v4780_v40, %v908_v25  ;;  %v1025_v43 = vld [vmem:[%s6320_s6 + $0x68] sm:$0xff]  ;;  %v1028_v25 = vld [vmem:[%s6320_s6 + $0x80] sm:$0xff] }
 0x173   : > { %1456 = vmatpush.bf16.xpose.msra.mxu1 %v4984_v8  ;;  %v5010_v12 = vpack.c.bf16 %v946_v58, %v944_v56  ;;  %v905_v22 = vmul.f32 %v4736_v23, %v868_v36  ;;  %v867_v13 = vmul.f32 %v747_v32, %v4616_v6  ;;  %v737_v39 = vsel %vm736_vm9, %v4881_v38, %v733_v10  ;;  %v1023_v6 = vld [vmem:[%s6320_s6 + $0x58] sm:$0xff]  ;;  %v1029_v32 = vld [vmem:[%s6320_s6 + $0x88] sm:$0xff]  ;;  %v1024_v36 = vld [vmem:[%s6320_s6 + $0x60] sm:$0xff] }
 0x174   : > { %3879 = vmatpush.bf16.xpose.msra.mxu3 %v4984_v8  ;;  %1086 = vperm.xlu0 %3980, %v1020_v50   ;;  %v947_v59 = vadd.f32 %v4780_v40, %v910_v44  ;;  %v903_v29 = vmul.f32 %v4736_v23, %v866_v54  ;;  %v727_v52 = vsel %vm726_vm10, %v4887_v57, %v723_v46  ;;  %v620_v50 = vpop.xlane.xlu0 %619  ;;  %v1032_v10 = vld [vmem:[%s6320_s6 + $0xa0] sm:$0xff]  ;;  %v1031_v54 = vld [vmem:[%s6320_s6 + $0x98] sm:$0xff] }
 0x175   : > { %v906_v18 = vmul.f32 %v4746_v63, %v869_v15  ;;  %v864_v38 = vmul.f32 %v737_v39, %v4646_v62  ;;  %v942_v53 = vadd.f32 %v4738_v24, %v905_v22  ;;  %v904_v57 = vmul.f32 %v4746_v63, %v867_v13  ;;  %v1022_v62 = vld [vmem:[%s6320_s6 + $0x50] sm:$0xff]  ;;  %v1027_v58 = vld [vmem:[%s6320_s6 + $0x78] sm:$0xff]  ;;  %v1037_v13 = vld [vmem:[%s6320_s6 + $0xc8] sm:$0xff] }
 0x176   : > { %v5023_v33 = vpack.c.bf16 %v947_v59, %v945_v61  ;;  %v862_v27 = vmul.f32 %v727_v52, %v4634_v49  ;;  %v940_v55 = vadd.f32 %v4738_v24, %v903_v29  ;;  %v865_v0 = vmul.f32 %v737_v39, %v4649_v14  ;;  %v6378_v49 = vld [vmem:[#allocation21_spill] sm:$0xff]  ;;  %v1035_v46 = vld [vmem:[%s6320_s6 + $0xb8] sm:$0xff]  ;;  %v1034_v15 = vld [vmem:[%s6320_s6 + $0xb0] sm:$0xff] }
 0x177   : > { %v943_v48 = vadd.f32 %v4780_v40, %v906_v18  ;;  %v901_v17 = vmul.f32 %v4736_v23, %v864_v38  ;;  %v863_v41 = vmul.f32 %v727_v52, %v6378_v49  ;;  %v941_v9 = vadd.f32 %v4780_v40, %v904_v57  ;;  %v1030_v61 = vld [vmem:[%s6320_s6 + $0x90] sm:$0xff]  ;;  %v1033_v29 = vld [vmem:[%s6320_s6 + $0xa8] sm:$0xff] }
 0x178   : > { %v5041_v20 = vpack.c.bf16 %v942_v53, %v940_v55  ;;  %v899_v14 = vmul.f32 %v4736_v23, %v862_v27  ;;  %v902_v37 = vmul.f32 %v4746_v63, %v865_v0  ;;  %v666_v56 = vmul.f32 %v620_v50, %v4499_v51  ;;  %v1038_v22 = vld [vmem:[%s6320_s6 + $0xd0] sm:$0xff]  ;;  %v1040_v53 = vld [vmem:[%s6320_s6 + $0xe0] sm:$0xff] }
 0x179   : > { %1368 = vmatpush.bf16.xpose.msra.mxu0 %v5010_v12  ;;  %1081 = vperm.xlu1 %3981, %v1019_v5   ;;  %v5052_v31 = vpack.c.bf16 %v943_v48, %v941_v9  ;;  %v938_v42 = vadd.f32 %v4738_v24, %v901_v17  ;;  %v900_v21 = vmul.f32 %v4746_v63, %v863_v41  ;;  %v1036_v27 = vld [vmem:[%s6320_s6 + $0xc0] sm:$0xff]  ;;  %v1043_v17 = vld [vmem:[%s6320_s6 + $0xf8] sm:$0xff] }
 0x17a   : > { %3872 = vmatpush.bf16.xpose.msra.mxu2 %v5010_v12  ;;  %1066 = vperm.xlu2 %3979, %v1016_v16   ;;  %v936_v11 = vadd.f32 %v4738_v24, %v899_v14  ;;  %v939_v1 = vadd.f32 %v4780_v40, %v902_v37  ;;  %v682_v44 = vadd.f32 1e-05, %v666_v56  ;;  %v1638_v55 = vld [vmem:[%s6321_s7] sm:$0xff]  ;;  %v1039_v41 = vld [vmem:[%s6320_s6 + $0xd8] sm:$0xff]  ;;  %v6379_v14 = vld [vmem:[#allocation22_spill] sm:$0xff] }
 0x17b   : > { %1457 = vmatpush.bf16.xpose.msra.mxu1 %v5023_v33  ;;  %v937_v28 = vadd.f32 %v4780_v40, %v900_v21  ;;  %v1641_v21 = vld [vmem:[%s6321_s7 + $0x18] sm:$0xff]  ;;  %v1042_v56 = vld [vmem:[%s6320_s6 + $0xf0] sm:$0xff] }
 0x17c   : > { %3880 = vmatpush.bf16.xpose.msra.mxu3 %v5023_v33  ;;  %1101 = vperm.xlu0 %3980, %v1023_v6   ;;  %v5067_v60 = vpack.c.bf16 %v938_v42, %v936_v11  ;;  %4012 = vrsqrt.f32 %v682_v44  ;;  %v1041_v6 = vld [vmem:[%s6320_s6 + $0xe8] sm:$0xff]  ;;  %vm704_vm11 = vweird.f32 %v682_v44 }
 0x17d   : > { %v5075_v35 = vpack.c.bf16 %v939_v1, %v937_v28  ;;  %v6382_v28 = vld [vmem:[#allocation25_spill] sm:$0xff] }
 0x181   : > { %1369 = vmatpush.bf16.xpose.msra.mxu0 %v5041_v20  ;;  %1096 = vperm.xlu1 %3981, %v1022_v62  }
 0x182   : > { %3873 = vmatpush.bf16.xpose.msra.mxu2 %v5041_v20  ;;  %1076 = vperm.xlu2 %3979, %v1018_v47   ;;  %v4013_v5 = vpop.eup %4012 }
 0x183   : > { %1458 = vmatpush.bf16.xpose.msra.mxu1 %v5052_v31  ;;  %v699_v16 = vmul.f32 %v4013_v5, %v682_v44  ;;  %vm705_vm12 = vweird.f32 %v4013_v5 }
 0x184   : > { %3881 = vmatpush.bf16.xpose.msra.mxu3 %v5052_v31  ;;  %1116 = vperm.xlu0 %3980, %v1026_v30   ;;  %vm706_vm13 = vmor %vm704_vm11, %vm705_vm12  ;;  %v6380_v30 = vld [vmem:[#allocation23_spill] sm:$0xff] }
 0x185   : > { %v700_v39 = vmul.f32 %v4013_v5, %v699_v16  ;;  %v3504_v16 = vld [vmem:[%s6317_s3 + $0x84] sm:$0xf0] }
 0x187   : > { %v701_v38 = vmul.f32 0.5, %v700_v39  ;;  %v3159_v39 = vld [vmem:[%s6317_s3 + $0x88] sm:$0xf0] }
 0x189   : > { %1370 = vmatpush.bf16.xpose.msra.mxu0 %v5067_v60  ;;  %1111 = vperm.xlu1 %3981, %v1025_v43   ;;  %v702_v57 = vsub.f32 1.5, %v701_v38  ;;  %v6381_v43 = vld [vmem:[#allocation24_spill] sm:$0xff] }
 0x18a   : > { %3874 = vmatpush.bf16.xpose.msra.mxu2 %v5067_v60  ;;  %1091 = vperm.xlu2 %3979, %v1021_v7  }
 0x18b   : > { %1459 = vmatpush.bf16.xpose.msra.mxu1 %v5075_v35  ;;  %v703_v0 = vmul.f32 %v4013_v5, %v702_v57  ;;  %v1647_v57 = vld [vmem:[%s6321_s7 + $0x48] sm:$0xff] }
 0x18c   : > { %3882 = vmatpush.bf16.xpose.msra.mxu3 %v5075_v35  ;;  %1131 = vperm.xlu0 %3980, %v1029_v32  }
 0x18d   : > { %v707_v47 = vsel %vm706_vm13, %v4013_v5, %v703_v0  ;;  %v3490_v0 = vld [vmem:[%s6317_s3 + $0x14] sm:$0xf0] }
 0x18e   : > { %v858_v37 = vmul.f32 %v707_v47, %v6379_v14  ;;  %v859_v42 = vmul.f32 %v707_v47, %v6380_v30  ;;  %v3103_v47 = vld [vmem:[%s6317_s3 + $0x18] sm:$0xf0] }
 0x18f   : > { %v1653_v30 = vld [vmem:[%s6321_s7 + $0x78] sm:$0xff] }
 0x190   : > { %v895_v50 = vmul.f32 %v4736_v23, %v858_v37 }
 0x191   : > { %1126 = vperm.xlu1 %3981, %v1028_v25   ;;  %v1640_v25 = vld [vmem:[%s6321_s7 + $0x10] sm:$0xff] }
 0x192   : > { %1106 = vperm.xlu2 %3979, %v1024_v36   ;;  %v896_v36 = vmul.f32 %v4746_v63, %v859_v42  ;;  %v1652_v42 = vld [vmem:[%s6321_s7 + $0x70] sm:$0xff] }
 0x194   : > { %1146 = vperm.xlu0 %3980, %v1032_v10  }
 0x199   : > { %1141 = vperm.xlu1 %3981, %v1031_v54   ;;  %v932_v54 = vadd.f32 %v4738_v24, %v895_v50 }
 0x19a   : > { %1121 = vperm.xlu2 %3979, %v1027_v58  }
 0x19c   : > { %1161 = vperm.xlu0 %3980, %v1035_v46   ;;  %v933_v46 = vadd.f32 %v4780_v40, %v896_v36 }
 0x1a1   : > { %1156 = vperm.xlu1 %3981, %v1034_v15  }
 0x1a2   : > { %1136 = vperm.xlu2 %3979, %v1030_v61   ;;  %v1644_v61 = vld [vmem:[%s6321_s7 + $0x30] sm:$0xff] }
 0x1a4   : > { %1176 = vperm.xlu0 %3980, %v1038_v22  }
 0x1a9   : > { %1171 = vperm.xlu1 %3981, %v1037_v13   ;;  %v3503_v13 = vld [vmem:[%s6317_s3 + $0x84] sm:$0xf] }
 0x1aa   : > { %1151 = vperm.xlu2 %3979, %v1033_v29   ;;  %v3095_v29 = vld [vmem:[%s6317_s3 + $0x8] sm:$0xf0]  ;;  %v3162_v38 = vor.u32 %v3503_v13, %v3159_v39 }
 0x1ac   : > { %1191 = vperm.xlu0 %3980, %v1041_v6  }
 0x1ad   : > { %v623_v59 = vpop.xlane.xlu1 %622 }
 0x1ae   : > { %v667_v52 = vmul.f32 %v623_v59, %v4499_v51  ;;  %v3487_v59 = vld [vmem:[%s6317_s3 + $0x4] sm:$0xf] }
 0x1b0   : > { %v683_v18 = vadd.f32 1e-05, %v667_v52  ;;  %v1639_v52 = vld [vmem:[%s6321_s7 + $0x8] sm:$0xff] }
 0x1b1   : > { %1186 = vperm.xlu1 %3981, %v1040_v53   ;;  %v3098_v53 = vor.u32 %v3487_v59, %v3095_v29 }
 0x1b2   : > { %4014 = vrsqrt.f32 %v683_v18  ;;  %1166 = vperm.xlu2 %3979, %v1036_v27   ;;  %vm714_vm15 = vweird.f32 %v683_v18  ;;  %v1646_v27 = vld [vmem:[%s6321_s7 + $0x40] sm:$0xff] }
 0x1b4   : > { %1672 = vperm.xlu0 %3980, %v1638_v55   ;;  %v3101_v55 = vld [vmem:[%s6317_s3 + $0x10] sm:$0xf] }
 0x1b8   : > { %v4015_v51 = vpop.eup %4014 }
 0x1b9   : > { %v709_v48 = vmul.f32 %v4015_v51, %v683_v18  ;;  %vm715_vm14 = vweird.f32 %v4015_v51  ;;  %1201 = vperm.xlu1 %3981, %v1043_v17   ;;  %v3489_v17 = vld [vmem:[%s6317_s3 + $0x14] sm:$0xf] }
 0x1ba   : > { %1181 = vperm.xlu2 %3979, %v1039_v41   ;;  %vm716_vm0 = vmor %vm714_vm15, %vm715_vm14  ;;  %v3102_v41 = vor.u32 %v3490_v0, %v3101_v55  ;;  %v3106_v37 = vor.u32 %v3489_v17, %v3103_v47  ;;  %v3495_v55 = vld [vmem:[%s6317_s3 + $0x44] sm:$0xf]  ;;  %v3127_v0 = vld [vmem:[%s6317_s3 + $0x48] sm:$0xf0] }
 0x1bb   : > { %v710_v62 = vmul.f32 %v4015_v51, %v709_v48  ;;  %v3505_v48 = vld [vmem:[%s6317_s3 + $0x94] sm:$0xf]  ;;  %v3130_v47 = vor.u32 %v3495_v55, %v3127_v0  ;;  %v2280_v55 = vld [vmem:[%s6322_s8 + $0x80] sm:$0xff]  ;;  %v3149_v0 = vld [vmem:[%s6317_s3 + $0x70] sm:$0xf] }
 0x1bc   : > { %1687 = vperm.xlu0 %3980, %v1641_v21   ;;  %v1656_v21 = vld [vmem:[%s6321_s7 + $0x90] sm:$0xff] }
 0x1bd   : > { %v711_v49 = vmul.f32 0.5, %v710_v62  ;;  %v3167_v62 = vld [vmem:[%s6317_s3 + $0x98] sm:$0xf0] }
 0x1be   : > { %v3170_v14 = vor.u32 %v3505_v48, %v3167_v62 }
 0x1bf   : > { %v712_v9 = vsub.f32 1.5, %v711_v49  ;;  %v1645_v49 = vld [vmem:[%s6321_s7 + $0x38] sm:$0xff] }
 0x1c1   : > { %v713_v11 = vmul.f32 %v4015_v51, %v712_v9  ;;  %1682 = vperm.xlu1 %3981, %v1640_v25   ;;  %v1651_v25 = vld [vmem:[%s6321_s7 + $0x68] sm:$0xff] }
 0x1c2   : > { %1196 = vperm.xlu2 %3979, %v1042_v56  }
 0x1c3   : > { %v717_v1 = vsel %vm716_vm0, %v4015_v51, %v713_v11  ;;  %v1650_v51 = vld [vmem:[%s6321_s7 + $0x60] sm:$0xff] }
 0x1c4   : > { %v860_v7 = vmul.f32 %v717_v1, %v6381_v43  ;;  %v861_v32 = vmul.f32 %v717_v1, %v6382_v28  ;;  %1702 = vperm.xlu0 %3980, %v1644_v61   ;;  %v3109_v11 = vld [vmem:[%s6317_s3 + $0x20] sm:$0xf]  ;;  %v3492_v1 = vld [vmem:[%s6317_s3 + $0x24] sm:$0xf0]  ;;  %v3507_v43 = vld [vmem:[%s6317_s3 + $0xa4] sm:$0xf]  ;;  %v5350_v39 = vpop.permute.xlu2 %1046 }
 0x1c5   : > { %v3491_v28 = vld [vmem:[%s6317_s3 + $0x24] sm:$0xf]  ;;  %v3110_v50 = vor.u32 %v3492_v1, %v3109_v11  ;;  %v3509_v61 = vld [vmem:[%s6317_s3 + $0xb4] sm:$0xf]  ;;  %v3197_v11 = vld [vmem:[%s6317_s3 + $0xd0] sm:$0xf] }
 0x1c6   : > { %v897_v10 = vmul.f32 %v4736_v23, %v860_v7  ;;  %v898_v44 = vmul.f32 %v4746_v63, %v861_v32  ;;  %v1643_v23 = vld [vmem:[%s6321_s7 + $0x28] sm:$0xff]  ;;  %v3514_v1 = vld [vmem:[%s6317_s3 + $0xd4] sm:$0xf0] }
 0x1c7   : > { %v3488_v63 = vld [vmem:[%s6317_s3 + $0x4] sm:$0xf0]  ;;  %v3175_v7 = vld [vmem:[%s6317_s3 + $0xa8] sm:$0xf0] }
 0x1c8   : > { %v934_v58 = vadd.f32 %v4738_v24, %v897_v10  ;;  %v935_v15 = vadd.f32 %v4780_v40, %v898_v44  ;;  %v3093_v24 = vld [vmem:[%s6317_s3] sm:$0xf]  ;;  %v3111_v32 = vld [vmem:[%s6317_s3 + $0x28] sm:$0xf0]  ;;  %v3178_v56 = vor.u32 %v3507_v43, %v3175_v7  ;;  %v3497_v43 = vld [vmem:[%s6317_s3 + $0x54] sm:$0xf] }
 0x1c9   : > { %v3157_v40 = vld [vmem:[%s6317_s3 + $0x80] sm:$0xf]  ;;  %1697 = vperm.xlu1 %3981, %v1643_v23   ;;  %v3094_v18 = vor.u32 %v3488_v63, %v3093_v24  ;;  %v3114_v10 = vor.u32 %v3491_v28, %v3111_v32  ;;  %v1659_v44 = vld [vmem:[%s6321_s7 + $0xa8] sm:$0xff]  ;;  %v3183_v23 = vld [vmem:[%s6317_s3 + $0xb8] sm:$0xf0] }
 0x1ca   : > { %v5159_v5 = vpack.c.bf16 %v934_v58, %v932_v54  ;;  %v5161_v22 = vpack.c.bf16 %v935_v15, %v933_v46  ;;  %v3158_v6 = vor.u32 %v3504_v16, %v3157_v40  ;;  %1677 = vperm.xlu2 %3979, %v1639_v52   ;;  %v1658_v54 = vld [vmem:[%s6321_s7 + $0xa0] sm:$0xff]  ;;  %v3117_v46 = vld [vmem:[%s6317_s3 + $0x30] sm:$0xf]  ;;  %v3494_v15 = vld [vmem:[%s6317_s3 + $0x34] sm:$0xf0]  ;;  %v3186_v59 = vor.u32 %v3509_v61, %v3183_v23 }
 0x1cb   : > { %v1662_v58 = vld [vmem:[%s6321_s7 + $0xc0] sm:$0xff]  ;;  %v3493_v24 = vld [vmem:[%s6317_s3 + $0x34] sm:$0xf]  ;;  %v3119_v63 = vld [vmem:[%s6317_s3 + $0x38] sm:$0xf0]  ;;  %v3118_v16 = vor.u32 %v3494_v15, %v3117_v46 }
 0x1cc   : > { %1371 = vmatpush.bf16.xpose.msra.mxu0 %v5159_v5  ;;  %3875 = vmatpush.bf16.xpose.msra.mxu2 %v5159_v5  ;;  %v1657_v40 = vld [vmem:[%s6321_s7 + $0x98] sm:$0xff]  ;;  %v3122_v29 = vor.u32 %v3493_v24, %v3119_v63  ;;  %v2273_v15 = vld [vmem:[%s6322_s8 + $0x48] sm:$0xff]  ;;  %v3205_v23 = vld [vmem:[%s6317_s3 + $0xe0] sm:$0xf] }
 0x1cd   : > { %1460 = vmatpush.bf16.xpose.msra.mxu1 %v5161_v22  ;;  %3883 = vmatpush.bf16.xpose.msra.mxu3 %v5161_v22  ;;  %v3135_v7 = vld [vmem:[%s6317_s3 + $0x58] sm:$0xf0]  ;;  %v3500_v61 = vld [vmem:[%s6317_s3 + $0x64] sm:$0xf0]  ;;  %v3515_v63 = vld [vmem:[%s6317_s3 + $0xe4] sm:$0xf] }
 0x1ce   : > { %1717 = vperm.xlu0 %3980, %v1647_v57   ;;  %v3125_v57 = vld [vmem:[%s6317_s3 + $0x40] sm:$0xf]  ;;  %v1669_v28 = vld [vmem:[%s6321_s7 + $0xf8] sm:$0xff]  ;;  %v3516_v24 = vld [vmem:[%s6317_s3 + $0xe4] sm:$0xf0] }
 0x1d1   : > { %1712 = vperm.xlu1 %3981, %v1646_v27  }
 0x1d3   : > { %1372 = vmatmul.bf16.vlgmr.msra.gmra.mxu0 %v3094_v18  ;;  %1412 = vmatmul.bf16.vlgmr.msra.gmra.mxu2 %v3158_v6  ;;  %v1665_v18 = vld [vmem:[%s6321_s7 + $0xd8] sm:$0xff]  ;;  %v5368_v6 = vpop.permute.xlu2 %1061 }
 0x1d4   : > { %1990 = vmatpush.bf16.xpose.msrb.mxu2 %v4799_v45  ;;  %2616 = vmatpush.bf16.xpose.msrb.mxu0 %v4799_v45  ;;  %v1642_v45 = vld [vmem:[%s6321_s7 + $0x20] sm:$0xff] }
 0x1d5   : > { %2079 = vmatpush.bf16.xpose.msrb.mxu3 %v4828_v19  ;;  %2705 = vmatpush.bf16.xpose.msrb.mxu1 %v4828_v19  ;;  %v1649_v19 = vld [vmem:[%s6321_s7 + $0x58] sm:$0xff] }
 0x1d6   : > { %1501 = vmatmul.bf16.vlgmr.msra.gmra.mxu3 %v3162_v38  ;;  %1461 = vmatmul.bf16.vlgmr.msra.gmra.mxu1 %v3098_v53  ;;  %v1667_v38 = vld [vmem:[%s6321_s7 + $0xe8] sm:$0xff]  ;;  %v1668_v53 = vld [vmem:[%s6321_s7 + $0xf0] sm:$0xff] }
 0x1d7   : > { %1692 = vperm.xlu2 %3979, %v1642_v45   ;;  %1732 = vperm.xlu0 %3980, %v1650_v51   ;;  %v3512_v45 = vld [vmem:[%s6317_s3 + $0xc4] sm:$0xf0]  ;;  %v3191_v51 = vld [vmem:[%s6317_s3 + $0xc8] sm:$0xf0] }
 0x1d9   : > { %1727 = vperm.xlu1 %3981, %v1649_v19   ;;  %v3511_v19 = vld [vmem:[%s6317_s3 + $0xc4] sm:$0xf] }
 0x1da   : > { %v3194_v17 = vor.u32 %v3511_v19, %v3191_v51  ;;  %v2279_v51 = vld [vmem:[%s6322_s8 + $0x78] sm:$0xff] }
 0x1db   : > { %v5353_v52 = vpop.permute.xlu1 %1056 }
 0x1dc   : > { %1991 = vmatpush.bf16.xpose.msrb.mxu2 %v4873_v3  ;;  %2617 = vmatpush.bf16.xpose.msrb.mxu0 %v4873_v3  ;;  %v3165_v3 = vld [vmem:[%s6317_s3 + $0x90] sm:$0xf] }
 0x1dd   : > { %2080 = vmatpush.bf16.xpose.msrb.mxu3 %v4892_v26  ;;  %2706 = vmatpush.bf16.xpose.msrb.mxu1 %v4892_v26  ;;  %v3506_v26 = vld [vmem:[%s6317_s3 + $0x94] sm:$0xf0] }
 0x1de   : > { %v3166_v9 = vor.u32 %v3506_v26, %v3165_v3  ;;  %v1663_v3 = vld [vmem:[%s6321_s7 + $0xc8] sm:$0xff]  ;;  %v5405_v62 = vpop.permute.xlu0 %1051 }
 0x1df   : > { %1707 = vperm.xlu2 %3979, %v1645_v49   ;;  %1747 = vperm.xlu0 %3980, %v1653_v30   ;;  %v2265_v49 = vld [vmem:[%s6322_s8 + $0x8] sm:$0xff] }
 0x1e1   : > { %1742 = vperm.xlu1 %3981, %v1652_v42   ;;  %v2267_v42 = vld [vmem:[%s6322_s8 + $0x18] sm:$0xff] }
 0x1e3   : > { %1377 = vmatmul.bf16.gmra.mxu0 %v3102_v41  ;;  %1417 = vmatmul.bf16.gmra.mxu2 %v3166_v9  ;;  %v5385_v27 = vpop.permute.xlu1 %1071  ;;  %v5410_v41 = vpop.permute.xlu2 %1066  ;;  %v2264_v9 = vld [vmem:[%s6322_s8] sm:$0xff] }
 0x1e4   : > { %1992 = vmatpush.bf16.xpose.msrb.mxu2 %v4913_v34  ;;  %2618 = vmatpush.bf16.xpose.msrb.mxu0 %v4913_v34  ;;  %v1648_v34 = vld [vmem:[%s6321_s7 + $0x50] sm:$0xff] }
 0x1e5   : > { %2081 = vmatpush.bf16.xpose.msrb.mxu3 %v4932_v2  ;;  %2707 = vmatpush.bf16.xpose.msrb.mxu1 %v4932_v2  ;;  %v1655_v2 = vld [vmem:[%s6321_s7 + $0x88] sm:$0xff] }
 0x1e6   : > { %1506 = vmatmul.bf16.gmra.mxu3 %v3170_v14  ;;  %1466 = vmatmul.bf16.gmra.mxu1 %v3106_v37  ;;  %v1666_v14 = vld [vmem:[%s6321_s7 + $0xe0] sm:$0xff]  ;;  %v5420_v30 = vpop.permute.xlu0 %1086 }
 0x1e7   : > { %1722 = vperm.xlu2 %3979, %v1648_v34   ;;  %1762 = vperm.xlu0 %3980, %v1656_v21   ;;  %v2268_v34 = vld [vmem:[%s6322_s8 + $0x20] sm:$0xff]  ;;  %v3498_v21 = vld [vmem:[%s6317_s3 + $0x54] sm:$0xf0] }
 0x1e9   : > { %1757 = vperm.xlu1 %3981, %v1655_v2   ;;  %v3133_v2 = vld [vmem:[%s6317_s3 + $0x50] sm:$0xf] }
 0x1eb   : > { %v5418_v37 = vpop.permute.xlu1 %1081  ;;  %v5455_v32 = vpop.permute.xlu2 %1076 }
 0x1ec   : > { %1993 = vmatpush.bf16.xpose.msrb.mxu2 %v4969_v4  ;;  %2619 = vmatpush.bf16.xpose.msrb.mxu0 %v4969_v4  ;;  %v3173_v4 = vld [vmem:[%s6317_s3 + $0xa0] sm:$0xf] }
 0x1ed   : > { %2082 = vmatpush.bf16.xpose.msrb.mxu3 %v4984_v8  ;;  %2708 = vmatpush.bf16.xpose.msrb.mxu1 %v4984_v8  ;;  %v3508_v8 = vld [vmem:[%s6317_s3 + $0xa4] sm:$0xf0] }
 0x1ee   : > { %v3174_v36 = vor.u32 %v3508_v8, %v3173_v4  ;;  %v3513_v4 = vld [vmem:[%s6317_s3 + $0xd4] sm:$0xf]  ;;  %v3199_v8 = vld [vmem:[%s6317_s3 + $0xd8] sm:$0xf0] }
 0x1ef   : > { %1737 = vperm.xlu2 %3979, %v1651_v25   ;;  %1777 = vperm.xlu0 %3980, %v1659_v44   ;;  %v3134_v25 = vor.u32 %v3498_v21, %v3133_v2  ;;  %v2271_v44 = vld [vmem:[%s6322_s8 + $0x38] sm:$0xff] }
 0x1f1   : > { %1772 = vperm.xlu1 %3981, %v1658_v54   ;;  %v5462_v54 = vpop.permute.xlu0 %1101 }
 0x1f3   : > { %1382 = vmatmul.bf16.gmra.mxu0 %v3110_v50  ;;  %1422 = vmatmul.bf16.gmra.mxu2 %v3174_v36  ;;  %v3198_v50 = vor.u32 %v3514_v1, %v3197_v11  ;;  %v5457_v36 = vpop.permute.xlu1 %1096 }
 0x1f4   : > { %1994 = vmatpush.bf16.xpose.msrb.mxu2 %v5010_v12  ;;  %2620 = vmatpush.bf16.xpose.msrb.mxu0 %v5010_v12  ;;  %v1654_v12 = vld [vmem:[%s6321_s7 + $0x80] sm:$0xff] }
 0x1f5   : > { %2083 = vmatpush.bf16.xpose.msrb.mxu3 %v5023_v33  ;;  %2709 = vmatpush.bf16.xpose.msrb.mxu1 %v5023_v33  ;;  %v1661_v33 = vld [vmem:[%s6321_s7 + $0xb8] sm:$0xff] }
 0x1f6   : > { %1511 = vmatmul.bf16.gmra.mxu3 %v3178_v56  ;;  %1471 = vmatmul.bf16.gmra.mxu1 %v3114_v10  ;;  %v3202_v56 = vor.u32 %v3513_v4, %v3199_v8  ;;  %v3138_v10 = vor.u32 %v3497_v43, %v3135_v7  ;;  %v2283_v8 = vld [vmem:[%s6322_s8 + $0x98] sm:$0xff]  ;;  %v2282_v43 = vld [vmem:[%s6322_s8 + $0x90] sm:$0xff] }
 0x1f7   : > { %1752 = vperm.xlu2 %3979, %v1654_v12   ;;  %1792 = vperm.xlu0 %3980, %v1662_v58   ;;  %v2270_v12 = vld [vmem:[%s6322_s8 + $0x30] sm:$0xff]  ;;  %v5470_v58 = vpop.permute.xlu2 %1091 }
 0x1f8   : > { %v2278_v7 = vld [vmem:[%s6322_s8 + $0x70] sm:$0xff] }
 0x1f9   : > { %1787 = vperm.xlu1 %3981, %v1661_v33   ;;  %v2266_v33 = vld [vmem:[%s6322_s8 + $0x10] sm:$0xff] }
 0x1fb   : > { %v5472_v46 = vpop.permute.xlu1 %1111 }
 0x1fc   : > { %1995 = vmatpush.bf16.xpose.msrb.mxu2 %v5041_v20  ;;  %2621 = vmatpush.bf16.xpose.msrb.mxu0 %v5041_v20  ;;  %v3181_v20 = vld [vmem:[%s6317_s3 + $0xb0] sm:$0xf] }
 0x1fd   : > { %2084 = vmatpush.bf16.xpose.msrb.mxu3 %v5052_v31  ;;  %2710 = vmatpush.bf16.xpose.msrb.mxu1 %v5052_v31  ;;  %v3510_v31 = vld [vmem:[%s6317_s3 + $0xb4] sm:$0xf0] }
 0x1fe   : > { %v3182_v13 = vor.u32 %v3510_v31, %v3181_v20  ;;  %v2274_v20 = vld [vmem:[%s6322_s8 + $0x50] sm:$0xff]  ;;  %v3141_v31 = vld [vmem:[%s6317_s3 + $0x60] sm:$0xf] }
 0x1ff   : > { %1767 = vperm.xlu2 %3979, %v1657_v40   ;;  %1807 = vperm.xlu0 %3980, %v1665_v18   ;;  %v3207_v40 = vld [vmem:[%s6317_s3 + $0xe8] sm:$0xf0]  ;;  %v3142_v18 = vor.u32 %v3500_v61, %v3141_v31  ;;  %v3552_v31 = vld [vmem:[%s6319_s5 + $0x4] sm:$0xf0]  ;;  %v3551_v61 = vld [vmem:[%s6319_s5 + $0x4] sm:$0xf] }
 0x203   : > { %1387 = vmatmul.bf16.gmra.mxu0 %v3118_v16  ;;  %1427 = vmatmul.bf16.gmra.mxu2 %v3182_v13  ;;  %v3499_v16 = vld [vmem:[%s6317_s3 + $0x64] sm:$0xf]  ;;  %v3143_v13 = vld [vmem:[%s6317_s3 + $0x68] sm:$0xf0] }
 0x204   : > { %1996 = vmatpush.bf16.xpose.msrb.mxu2 %v5067_v60  ;;  %2622 = vmatpush.bf16.xpose.msrb.mxu0 %v5067_v60  ;;  %v1664_v60 = vld [vmem:[%s6321_s7 + $0xd0] sm:$0xff] }
 0x205   : > { %2085 = vmatpush.bf16.xpose.msrb.mxu3 %v5075_v35  ;;  %2711 = vmatpush.bf16.xpose.msrb.mxu1 %v5075_v35  ;;  %v1660_v35 = vld [vmem:[%s6321_s7 + $0xb0] sm:$0xff] }
 0x206   : > { %1516 = vmatmul.bf16.gmra.mxu3 %v3186_v59  ;;  %1476 = vmatmul.bf16.gmra.mxu1 %v3122_v29  ;;  %v2269_v59 = vld [vmem:[%s6322_s8 + $0x28] sm:$0xff]  ;;  %v5507_v29 = vpop.permute.xlu0 %1116 }
 0x207   : > { %1802 = vperm.xlu1 %3981, %v1664_v60   ;;  %1782 = vperm.xlu2 %3979, %v1660_v35   ;;  %v3206_v60 = vor.u32 %v3516_v24, %v3205_v23  ;;  %v3210_v35 = vor.u32 %v3515_v63, %v3207_v40  ;;  %v3351_v23 = vld [vmem:[%s6319_s5 + $0x8] sm:$0xf0] }
 0x208   : > { %1822 = vperm.xlu0 %3980, %v1668_v53   ;;  %v5509_v53 = vpop.permute.xlu2 %1106  ;;  %v2281_v24 = vld [vmem:[%s6322_s8 + $0x88] sm:$0xff] }
 0x20c   : > { %1997 = vmatpush.bf16.xpose.msrb.mxu2 %v5159_v5  ;;  %2623 = vmatpush.bf16.xpose.msrb.mxu0 %v5159_v5  ;;  %v3496_v5 = vld [vmem:[%s6317_s3 + $0x44] sm:$0xf0] }
 0x20d   : > { %2086 = vmatpush.bf16.xpose.msrb.mxu3 %v5161_v22  ;;  %2712 = vmatpush.bf16.xpose.msrb.mxu1 %v5161_v22  ;;  %v3189_v22 = vld [vmem:[%s6317_s3 + $0xc0] sm:$0xf]  ;;  %v3126_v26 = vor.u32 %v3496_v5, %v3125_v57  ;;  %v2277_v57 = vld [vmem:[%s6322_s8 + $0x68] sm:$0xff]  ;;  %v5514_v5 = vpop.permute.xlu1 %1126 }
 0x20e   : > { %v3190_v48 = vor.u32 %v3512_v45, %v3189_v22  ;;  %v2276_v22 = vld [vmem:[%s6322_s8 + $0x60] sm:$0xff]  ;;  %v5522_v19 = vpop.permute.xlu0 %1131 }
 0x20f   : > { %1817 = vperm.xlu1 %3981, %v1667_v38   ;;  %1797 = vperm.xlu2 %3979, %v1663_v3   ;;  %v3146_v38 = vor.u32 %v3499_v16, %v3143_v13  ;;  %v2272_v45 = vld [vmem:[%s6322_s8 + $0x40] sm:$0xff]  ;;  %v3502_v3 = vld [vmem:[%s6317_s3 + $0x74] sm:$0xf0] }
 0x210   : > { %2303 = vperm.xlu0 %3980, %v2265_v49   ;;  %v3215_v49 = vld [vmem:[%s6317_s3 + $0xf8] sm:$0xf0]  ;;  %v3150_v2 = vor.u32 %v3502_v3, %v3149_v0 }
 0x213   : > { %1392 = vmatmul.bf16.gmra.mxu0 %v3126_v26  ;;  %1432 = vmatmul.bf16.gmra.mxu2 %v3190_v48  ;;  %v3213_v26 = vld [vmem:[%s6317_s3 + $0xf0] sm:$0xf]  ;;  %v5539_v48 = vpop.permute.xlu2 %1121 }
 0x216   : > { %1521 = vmatmul.bf16.gmra.mxu3 %v3194_v17  ;;  %1481 = vmatmul.bf16.gmra.mxu1 %v3130_v47  ;;  %v3518_v17 = vld [vmem:[%s6317_s3 + $0xf4] sm:$0xf0]  ;;  %v3517_v47 = vld [vmem:[%s6317_s3 + $0xf4] sm:$0xf]  ;;  %v5561_v4 = vpop.permute.xlu0 %1146 }
 0x217   : > { %2298 = vperm.xlu1 %3981, %v2264_v9   ;;  %1812 = vperm.xlu2 %3979, %v1666_v14   ;;  %v3501_v9 = vld [vmem:[%s6317_s3 + $0x74] sm:$0xf]  ;;  %v3151_v14 = vld [vmem:[%s6317_s3 + $0x78] sm:$0xf0]  ;;  %v3214_v21 = vor.u32 %v3518_v17, %v3213_v26  ;;  %v3218_v11 = vor.u32 %v3517_v47, %v3215_v49 }
 0x218   : > { %2318 = vperm.xlu0 %3980, %v2268_v34   ;;  %v5559_v34 = vpop.permute.xlu1 %1141  ;;  %v3154_v1 = vor.u32 %v3501_v9, %v3151_v14  ;;  %v2292_v9 = vld [vmem:[%s6322_s8 + $0xe0] sm:$0xff] }
 0x21f   : > { %2313 = vperm.xlu1 %3981, %v2267_v42   ;;  %1827 = vperm.xlu2 %3979, %v1669_v28   ;;  %v2275_v42 = vld [vmem:[%s6322_s8 + $0x58] sm:$0xff]  ;;  %v5572_v28 = vpop.permute.xlu2 %1136 }
 0x220   : > { %2333 = vperm.xlu0 %3980, %v2271_v44   ;;  %v3520_v44 = vld [vmem:[%s6318_s4 + $0x4] sm:$0xf0] }
 0x223   : > { %1397 = vmatmul.bf16.gmra.mxu0 %v3134_v25  ;;  %1437 = vmatmul.bf16.gmra.mxu2 %v3198_v50  ;;  %v5574_v25 = vpop.permute.xlu1 %1156  ;;  %v2285_v50 = vld [vmem:[%s6322_s8 + $0xa8] sm:$0xff] }
 0x226   : > { %1526 = vmatmul.bf16.gmra.mxu3 %v3202_v56  ;;  %1486 = vmatmul.bf16.gmra.mxu1 %v3138_v10  ;;  %v2286_v56 = vld [vmem:[%s6322_s8 + $0xb0] sm:$0xff]  ;;  %v3221_v10 = vld [vmem:[%s6318_s4] sm:$0xf] }
 0x227   : > { %2328 = vperm.xlu1 %3981, %v2270_v12   ;;  %2308 = vperm.xlu2 %3979, %v2266_v33   ;;  %v3519_v12 = vld [vmem:[%s6318_s4 + $0x4] sm:$0xf]  ;;  %v5591_v33 = vpop.permute.xlu0 %1161  ;;  %v3222_v63 = vor.u32 %v3520_v44, %v3221_v10  ;;  %v5611_v16 = vpop.permute.xlu2 %1151  ;;  %v2287_v10 = vld [vmem:[%s6322_s8 + $0xb8] sm:$0xff] }
 0x228   : > { %2348 = vperm.xlu0 %3980, %v2274_v20   ;;  %v3349_v20 = vld [vmem:[%s6319_s5] sm:$0xf] }
 0x229   : > { %v3350_v40 = vor.u32 %v3552_v31, %v3349_v20 }
 0x22f   : > { %2343 = vperm.xlu1 %3981, %v2273_v15   ;;  %2323 = vperm.xlu2 %3979, %v2269_v59   ;;  %v3223_v15 = vld [vmem:[%s6318_s4 + $0x8] sm:$0xf0]  ;;  %v5631_v49 = vpop.permute.xlu2 %1166 }
 0x230   : > { %2363 = vperm.xlu0 %3980, %v2277_v57   ;;  %v3226_v59 = vor.u32 %v3519_v12, %v3223_v15  ;;  %v2288_v57 = vld [vmem:[%s6322_s8 + $0xc0] sm:$0xff] }
 0x233   : > { %1402 = vmatmul.bf16.gmra.mxu0 %v3142_v18  ;;  %1442 = vmatmul.bf16.gmra.mxu2 %v3206_v60  ;;  %v3354_v18 = vor.u32 %v3551_v61, %v3351_v23 }
 0x236   : > { %1531 = vmatmul.bf16.gmra.mxu3 %v3210_v35  ;;  %1491 = vmatmul.bf16.gmra.mxu1 %v3146_v38  ;;  %v5613_v35 = vpop.permute.xlu1 %1171  ;;  %v2289_v38 = vld [vmem:[%s6322_s8 + $0xc8] sm:$0xff] }
 0x237   : > { %2358 = vperm.xlu1 %3981, %v2276_v22   ;;  %2338 = vperm.xlu2 %3979, %v2272_v45   ;;  %v2284_v45 = vld [vmem:[%s6322_s8 + $0xa0] sm:$0xff] }
 0x238   : > { %2378 = vperm.xlu0 %3980, %v2280_v55  }
 0x23f   : > { %2373 = vperm.xlu1 %3981, %v2279_v51   ;;  %2353 = vperm.xlu2 %3979, %v2275_v42   ;;  %v5625_v51 = vpop.permute.xlu0 %1176  ;;  %v3229_v42 = vld [vmem:[%s6318_s4 + $0x10] sm:$0xf] }
 0x240   : > { %2393 = vperm.xlu0 %3980, %v2283_v8   ;;  %v3554_v8 = vld [vmem:[%s6319_s5 + $0x14] sm:$0xf0] }
 0x243   : > { %1407 = vmatmul.bf16.gmra.mxu0 %v3150_v2  ;;  %1447 = vmatmul.bf16.gmra.mxu2 %v3214_v21  ;;  %v3521_v2 = vld [vmem:[%s6318_s4 + $0x14] sm:$0xf]  ;;  %v5648_v21 = vpop.permute.xlu1 %1186 }
 0x246   : > { %1536 = vmatmul.bf16.gmra.mxu3 %v3218_v11  ;;  %1496 = vmatmul.bf16.gmra.mxu1 %v3154_v1  ;;  %v3231_v11 = vld [vmem:[%s6318_s4 + $0x18] sm:$0xf0]  ;;  %v3357_v1 = vld [vmem:[%s6319_s5 + $0x10] sm:$0xf] }
 0x247   : > { %2388 = vperm.xlu1 %3981, %v2282_v43   ;;  %2368 = vperm.xlu2 %3979, %v2278_v7   ;;  %v3358_v20 = vor.u32 %v3554_v8, %v3357_v1  ;;  %v5674_v31 = vpop.permute.xlu0 %1191  ;;  %v3234_v23 = vor.u32 %v3521_v2, %v3231_v11  ;;  %v3555_v1 = vld [vmem:[%s6319_s5 + $0x24] sm:$0xf]  ;;  %v3367_v8 = vld [vmem:[%s6319_s5 + $0x28] sm:$0xf0] }
 0x248   : > { %2408 = vperm.xlu0 %3980, %v2286_v56   ;;  %v3359_v56 = vld [vmem:[%s6319_s5 + $0x18] sm:$0xf0] }
 0x24f   : > { %2403 = vperm.xlu1 %3981, %v2285_v50   ;;  %2383 = vperm.xlu2 %3979, %v2281_v24   ;;  %v3553_v50 = vld [vmem:[%s6319_s5 + $0x14] sm:$0xf] }
 0x250   : > { %v1373_v13 = vpop.f32.mrf.mxu0  ;;  %2423 = vperm.xlu0 %3980, %v2289_v38   ;;  %v3362_v24 = vor.u32 %v3553_v50, %v3359_v56 }
 0x251   : > { %v1374_v22 = vadd.f32 %v1373_v13, %v5350_v39  ;;  %v2291_v39 = vld [vmem:[%s6322_s8 + $0xd8] sm:$0xff] }
 0x253   : > { %v1462_v60 = vpop.f32.mrf.mxu1  ;;  %1998 = vmatmul.bf16.vlgmr.msrb.gmra.mxu2 %v3222_v63  ;;  %2624 = vmatmul.bf16.vlgmr.msrb.gmra.mxu0 %v3350_v40 }
 0x254   : > { %v1463_v26 = vadd.f32 %v1462_v60, %v1374_v22  ;;  %v2294_v60 = vld [vmem:[%s6322_s8 + $0xf0] sm:$0xff]  ;;  %v5689_v22 = vpop.permute.xlu1 %1201 }
 0x256   : > { %2087 = vmatmul.bf16.vlgmr.msrb.gmra.mxu3 %v3226_v59  ;;  %2713 = vmatmul.bf16.vlgmr.msrb.gmra.mxu1 %v3354_v18  ;;  %v1413_v55 = vpop.f32.mrf.mxu2  ;;  %v2295_v59 = vld [vmem:[%s6322_s8 + $0xf8] sm:$0xff] }
 0x257   : > { %2418 = vperm.xlu1 %3981, %v2288_v57   ;;  %2398 = vperm.xlu2 %3979, %v2284_v45   ;;  %v1414_v43 = vadd.f32 %v1413_v55, %v5514_v5  ;;  %v2290_v57 = vld [vmem:[%s6322_s8 + $0xd0] sm:$0xff] }
 0x258   : > { %v1375_v3 = vpop.f32.mrf.mxu0  ;;  %2438 = vperm.xlu0 %3980, %v2292_v9   ;;  %v3524_v9 = vld [vmem:[%s6318_s4 + $0x24] sm:$0xf0] }
 0x259   : > { %v1502_v0 = vpop.f32.mrf.mxu3  ;;  %v1376_v17 = vadd.f32 %v1375_v3, %v5405_v62  ;;  %v3522_v62 = vld [vmem:[%s6318_s4 + $0x14] sm:$0xf0] }
 0x25a   : > { %v3230_v15 = vor.u32 %v3522_v62, %v3229_v42  ;;  %v1503_v63 = vadd.f32 %v1502_v0, %v1414_v43  ;;  %v3365_v42 = vld [vmem:[%s6319_s5 + $0x20] sm:$0xf]  ;;  %v3556_v62 = vld [vmem:[%s6319_s5 + $0x24] sm:$0xf0] }
 0x25b   : > { %v1464_v47 = vpop.f32.mrf.mxu1  ;;  %v2293_v43 = vld [vmem:[%s6322_s8 + $0xe8] sm:$0xff] }
 0x25c   : > { %v1465_v14 = vadd.f32 %v1464_v47, %v1376_v17  ;;  %v5692_v47 = vpop.permute.xlu0 %1672 }
 0x25e   : > { %v3586_v7 = vpack.c.bf16 %v1465_v14, %v1463_v26  ;;  %v1415_v44 = vpop.f32.mrf.mxu2  ;;  %v3523_v14 = vld [vmem:[%s6318_s4 + $0x24] sm:$0xf] }
 0x25f   : > { %2433 = vperm.xlu1 %3981, %v2291_v39   ;;  %v1416_v5 = vadd.f32 %v1415_v44, %v5522_v19  ;;  %2413 = vperm.xlu2 %3979, %v2287_v10   ;;  %v5679_v19 = vpop.permute.xlu2 %1181  ;;  %v3237_v39 = vld [vmem:[%s6318_s4 + $0x20] sm:$0xf]  ;;  %v3366_v44 = vor.u32 %v3556_v62, %v3365_v42 }
 0x260   : > { %3587 = vst [vmem:[%s5670_s20] sm:$0xff] %v3586_v7   ;;  %v1378_v61 = vpop.f32.mrf.mxu0  ;;  %2453 = vperm.xlu0 %3980, %v2295_v59   ;;  %v3238_v10 = vor.u32 %v3524_v9, %v3237_v39  ;;  %v3247_v9 = vld [vmem:[%s6318_s4 + $0x38] sm:$0xf0] }
 0x261   : > { %v1504_v12 = vpop.f32.mrf.mxu3  ;;  %v1379_v38 = vadd.f32 %v1378_v61, %v5353_v52 }
 0x262   : > { %v1505_v40 = vadd.f32 %v1504_v12, %v1416_v5  ;;  %v5726_v5 = vpop.permute.xlu1 %1682 }
 0x263   : > { %v1467_v13 = vpop.f32.mrf.mxu1  ;;  %2003 = vmatmul.bf16.gmra.mxu2 %v3230_v15  ;;  %2629 = vmatmul.bf16.gmra.mxu0 %v3358_v20  ;;  %v3370_v20 = vor.u32 %v3555_v1, %v3367_v8 }
 0x264   : > { %v3626_v18 = vpack.c.bf16 %v1505_v40, %v1503_v63  ;;  %v1468_v3 = vadd.f32 %v1467_v13, %v1379_v38  ;;  %v5728_v40 = vpop.permute.xlu0 %1687 }
 0x266   : > { %2092 = vmatmul.bf16.gmra.mxu3 %v3234_v23  ;;  %2718 = vmatmul.bf16.gmra.mxu1 %v3362_v24  ;;  %3830 = vst [vmem:[%s5670_s20 + $0x40] sm:$0xff] %v3626_v18   ;;  %v1418_v45 = vpop.f32.mrf.mxu2 }
 0x267   : > { %2448 = vperm.xlu1 %3981, %v2294_v60   ;;  %2428 = vperm.xlu2 %3979, %v2290_v57   ;;  %v1419_v2 = vadd.f32 %v1418_v45, %v5572_v28  ;;  %v5722_v7 = vpop.permute.xlu2 %1196 }
 0x268   : > { %v1380_v0 = vpop.f32.mrf.mxu0 }
 0x269   : > { %v1507_v55 = vpop.f32.mrf.mxu3  ;;  %v1381_v26 = vadd.f32 %v1380_v0, %v5368_v6  ;;  %v3239_v6 = vld [vmem:[%s6318_s4 + $0x28] sm:$0xf0] }
 0x26a   : > { %v3242_v15 = vor.u32 %v3523_v14, %v3239_v6  ;;  %v1508_v61 = vadd.f32 %v1507_v55, %v1419_v2  ;;  %v5735_v55 = vpop.permute.xlu1 %1697  ;;  %v3557_v14 = vld [vmem:[%s6319_s5 + $0x34] sm:$0xf]  ;;  %v3375_v6 = vld [vmem:[%s6319_s5 + $0x38] sm:$0xf0] }
 0x26b   : > { %v1469_v17 = vpop.f32.mrf.mxu1 }
 0x26c   : > { %v1470_v52 = vadd.f32 %v1469_v17, %v1381_v26  ;;  %v3525_v26 = vld [vmem:[%s6318_s4 + $0x34] sm:$0xf]  ;;  %v3558_v17 = vld [vmem:[%s6319_s5 + $0x34] sm:$0xf0]  ;;  %v5762_v42 = vpop.permute.xlu0 %1702 }
 0x26e   : > { %v3591_v11 = vpack.c.bf16 %v1470_v52, %v1468_v3  ;;  %v1420_v50 = vpop.f32.mrf.mxu2  ;;  %v3245_v3 = vld [vmem:[%s6318_s4 + $0x30] sm:$0xf] }
 0x26f   : > { %v1421_v56 = vadd.f32 %v1420_v50, %v5559_v34  ;;  %2443 = vperm.xlu2 %3979, %v2293_v43   ;;  %v5732_v18 = vpop.permute.xlu2 %1677  ;;  %v3250_v43 = vor.u32 %v3525_v26, %v3247_v9  ;;  %v3378_v50 = vor.u32 %v3557_v14, %v3375_v6  ;;  %v3559_v26 = vld [vmem:[%s6319_s5 + $0x44] sm:$0xf] }
 0x270   : > { %3823 = vst [vmem:[%s5670_s20 + $0x8] sm:$0xff] %v3591_v11   ;;  %v1383_v12 = vpop.f32.mrf.mxu0 }
 0x271   : > { %v1509_v28 = vpop.f32.mrf.mxu3  ;;  %v1384_v34 = vadd.f32 %v1383_v12, %v5410_v41  ;;  %v3526_v41 = vld [vmem:[%s6318_s4 + $0x34] sm:$0xf0] }
 0x272   : > { %v1510_v23 = vadd.f32 %v1509_v28, %v1421_v56  ;;  %v3246_v11 = vor.u32 %v3526_v41, %v3245_v3  ;;  %v3255_v41 = vld [vmem:[%s6318_s4 + $0x48] sm:$0xf0] }
 0x273   : > { %v1472_v24 = vpop.f32.mrf.mxu1  ;;  %2008 = vmatmul.bf16.gmra.mxu2 %v3238_v10  ;;  %2634 = vmatmul.bf16.gmra.mxu0 %v3366_v44 }
 0x274   : > { %v3631_v63 = vpack.c.bf16 %v1510_v23, %v1508_v61  ;;  %v1473_v38 = vadd.f32 %v1472_v24, %v1384_v34  ;;  %v5772_v23 = vpop.permute.xlu0 %1717 }
 0x276   : > { %2097 = vmatmul.bf16.gmra.mxu3 %v3242_v15  ;;  %2723 = vmatmul.bf16.gmra.mxu1 %v3370_v20  ;;  %3831 = vst [vmem:[%s5670_s20 + $0x48] sm:$0xff] %v3631_v63   ;;  %v1423_v13 = vpop.f32.mrf.mxu2  ;;  %v5768_v15 = vpop.permute.xlu1 %1712 }
 0x277   : > { %v1424_v52 = vadd.f32 %v1423_v13, %v5561_v4  ;;  %v5766_v44 = vpop.permute.xlu2 %1692 }
 0x278   : > { %v1385_v60 = vpop.f32.mrf.mxu0 }
 0x279   : > { %v1512_v59 = vpop.f32.mrf.mxu3  ;;  %v1386_v57 = vadd.f32 %v1385_v60, %v5385_v27  ;;  %v3373_v27 = vld [vmem:[%s6319_s5 + $0x30] sm:$0xf]  ;;  %v3253_v60 = vld [vmem:[%s6318_s4 + $0x40] sm:$0xf] }
 0x27a   : > { %v3374_v1 = vor.u32 %v3558_v17, %v3373_v27  ;;  %v1513_v56 = vadd.f32 %v1512_v59, %v1424_v52  ;;  %v3383_v27 = vld [vmem:[%s6319_s5 + $0x48] sm:$0xf0] }
 0x27b   : > { %v1474_v45 = vpop.f32.mrf.mxu1 }
 0x27c   : > { %v1475_v0 = vadd.f32 %v1474_v45, %v1386_v57  ;;  %v3527_v57 = vld [vmem:[%s6318_s4 + $0x44] sm:$0xf]  ;;  %v3560_v45 = vld [vmem:[%s6319_s5 + $0x44] sm:$0xf0] }
 0x27e   : > { %v3596_v39 = vpack.c.bf16 %v1475_v0, %v1473_v38  ;;  %v1425_v62 = vpop.f32.mrf.mxu2  ;;  %v3528_v38 = vld [vmem:[%s6318_s4 + $0x44] sm:$0xf0]  ;;  %v5802_v17 = vpop.permute.xlu1 %1727 }
 0x27f   : > { %v1426_v2 = vadd.f32 %v1425_v62, %v5611_v16  ;;  %v3254_v9 = vor.u32 %v3528_v38, %v3253_v60  ;;  %v3258_v62 = vor.u32 %v3527_v57, %v3255_v41  ;;  %v3263_v57 = vld [vmem:[%s6318_s4 + $0x58] sm:$0xf0] }
 0x280   : > { %3824 = vst [vmem:[%s5670_s20 + $0x10] sm:$0xff] %v3596_v39   ;;  %v1388_v8 = vpop.f32.mrf.mxu0 }
 0x281   : > { %v1514_v4 = vpop.f32.mrf.mxu3  ;;  %v1389_v16 = vadd.f32 %v1388_v8, %v5455_v32  ;;  %v5781_v32 = vpop.permute.xlu2 %1707 }
 0x282   : > { %v1515_v28 = vadd.f32 %v1514_v4, %v1426_v2  ;;  %v3386_v2 = vor.u32 %v3559_v26, %v3383_v27  ;;  %v5806_v8 = vpop.permute.xlu0 %1732 }
 0x283   : > { %v1477_v10 = vpop.f32.mrf.mxu1  ;;  %2013 = vmatmul.bf16.gmra.mxu2 %v3246_v11  ;;  %2639 = vmatmul.bf16.gmra.mxu0 %v3374_v1 }
 0x284   : > { %v3636_v12 = vpack.c.bf16 %v1515_v28, %v1513_v56  ;;  %v1478_v63 = vadd.f32 %v1477_v10, %v1389_v16 }
 0x286   : > { %2102 = vmatmul.bf16.gmra.mxu3 %v3250_v43  ;;  %2728 = vmatmul.bf16.gmra.mxu1 %v3378_v50  ;;  %3832 = vst [vmem:[%s5670_s20 + $0x50] sm:$0xff] %v3636_v12   ;;  %v1428_v20 = vpop.f32.mrf.mxu2  ;;  %v5812_v10 = vpop.permute.xlu1 %1742 }
 0x287   : > { %v1429_v0 = vadd.f32 %v1428_v20, %v5574_v25 }
 0x288   : > { %v1390_v24 = vpop.f32.mrf.mxu0 }
 0x289   : > { %v1517_v61 = vpop.f32.mrf.mxu3  ;;  %v1391_v34 = vadd.f32 %v1390_v24, %v5418_v37  ;;  %v3381_v37 = vld [vmem:[%s6319_s5 + $0x40] sm:$0xf]  ;;  %v5810_v50 = vpop.permute.xlu2 %1722 }
 0x28a   : > { %v3382_v14 = vor.u32 %v3560_v45, %v3381_v37  ;;  %v1518_v4 = vadd.f32 %v1517_v61, %v1429_v0  ;;  %v3561_v37 = vld [vmem:[%s6319_s5 + $0x54] sm:$0xf]  ;;  %v3391_v45 = vld [vmem:[%s6319_s5 + $0x58] sm:$0xf0] }
 0x28b   : > { %v1479_v13 = vpop.f32.mrf.mxu1 }
 0x28c   : > { %v1480_v59 = vadd.f32 %v1479_v13, %v1391_v34  ;;  %v5821_v34 = vpop.permute.xlu0 %1747  ;;  %v3529_v13 = vld [vmem:[%s6318_s4 + $0x54] sm:$0xf] }
 0x28e   : > { %v3601_v3 = vpack.c.bf16 %v1480_v59, %v1478_v63  ;;  %v1430_v52 = vpop.f32.mrf.mxu2  ;;  %v3261_v63 = vld [vmem:[%s6318_s4 + $0x50] sm:$0xf]  ;;  %v3562_v59 = vld [vmem:[%s6319_s5 + $0x54] sm:$0xf0] }
 0x28f   : > { %v1431_v39 = vadd.f32 %v1430_v52, %v5591_v33 }
 0x290   : > { %3825 = vst [vmem:[%s5670_s20 + $0x18] sm:$0xff] %v3601_v3   ;;  %v1393_v6 = vpop.f32.mrf.mxu0 }
 0x291   : > { %v1519_v25 = vpop.f32.mrf.mxu3  ;;  %v1394_v33 = vadd.f32 %v1393_v6, %v5420_v30  ;;  %v3530_v30 = vld [vmem:[%s6318_s4 + $0x54] sm:$0xf0]  ;;  %v5844_v27 = vpop.permute.xlu2 %1737 }
 0x292   : > { %v1520_v11 = vadd.f32 %v1519_v25, %v1431_v39  ;;  %v3266_v39 = vor.u32 %v3529_v13, %v3263_v57  ;;  %v3394_v25 = vor.u32 %v3561_v37, %v3391_v45 }
 0x293   : > { %v1482_v1 = vpop.f32.mrf.mxu1  ;;  %2018 = vmatmul.bf16.gmra.mxu2 %v3254_v9  ;;  %2644 = vmatmul.bf16.gmra.mxu0 %v3382_v14 }
 0x294   : > { %v3641_v43 = vpack.c.bf16 %v1520_v11, %v1518_v4  ;;  %v1483_v16 = vadd.f32 %v1482_v1, %v1394_v33  ;;  %v5850_v4 = vpop.permute.xlu0 %1762 }
 0x296   : > { %2107 = vmatmul.bf16.gmra.mxu3 %v3258_v62  ;;  %2733 = vmatmul.bf16.gmra.mxu1 %v3386_v2  ;;  %3833 = vst [vmem:[%s5670_s20 + $0x58] sm:$0xff] %v3641_v43   ;;  %v1433_v56 = vpop.f32.mrf.mxu2  ;;  %v5846_v62 = vpop.permute.xlu1 %1757 }
 0x297   : > { %v1434_v60 = vadd.f32 %v1433_v56, %v5631_v49  ;;  %v3262_v49 = vor.u32 %v3530_v30, %v3261_v63  ;;  %v3564_v63 = vld [vmem:[%s6319_s5 + $0x64] sm:$0xf0] }
 0x298   : > { %v1395_v12 = vpop.f32.mrf.mxu0 }
 0x299   : > { %v1522_v28 = vpop.f32.mrf.mxu3  ;;  %v1396_v20 = vadd.f32 %v1395_v12, %v5470_v58  ;;  %v3389_v58 = vld [vmem:[%s6319_s5 + $0x50] sm:$0xf]  ;;  %v5853_v12 = vpop.permute.xlu2 %1752 }
 0x29a   : > { %v3390_v26 = vor.u32 %v3562_v59, %v3389_v58  ;;  %v1523_v9 = vadd.f32 %v1522_v28, %v1434_v60  ;;  %v3271_v58 = vld [vmem:[%s6318_s4 + $0x68] sm:$0xf0]  ;;  %v3563_v59 = vld [vmem:[%s6319_s5 + $0x64] sm:$0xf] }
 0x29b   : > { %v1484_v61 = vpop.f32.mrf.mxu1  ;;  %v3399_v60 = vld [vmem:[%s6319_s5 + $0x68] sm:$0xf0] }
 0x29c   : > { %v1485_v24 = vadd.f32 %v1484_v61, %v1396_v20  ;;  %v3269_v20 = vld [vmem:[%s6318_s4 + $0x60] sm:$0xf] }
 0x29e   : > { %v3606_v38 = vpack.c.bf16 %v1485_v24, %v1483_v16  ;;  %v1435_v0 = vpop.f32.mrf.mxu2  ;;  %v5861_v61 = vpop.permute.xlu1 %1772  ;;  %v3531_v24 = vld [vmem:[%s6318_s4 + $0x64] sm:$0xf] }
 0x29f   : > { %v1436_v3 = vadd.f32 %v1435_v0, %v5613_v35  ;;  %v5884_v0 = vpop.permute.xlu0 %1777 }
 0x2a0   : > { %3826 = vst [vmem:[%s5670_s20 + $0x20] sm:$0xff] %v3606_v38   ;;  %v1398_v52 = vpop.f32.mrf.mxu0 }
 0x2a1   : > { %v1524_v41 = vpop.f32.mrf.mxu3  ;;  %v1399_v35 = vadd.f32 %v1398_v52, %v5457_v36  ;;  %v3532_v36 = vld [vmem:[%s6318_s4 + $0x64] sm:$0xf0] }
 0x2a2   : > { %v1525_v14 = vadd.f32 %v1524_v41, %v1436_v3  ;;  %v3274_v41 = vor.u32 %v3531_v24, %v3271_v58 }
 0x2a3   : > { %v1487_v6 = vpop.f32.mrf.mxu1  ;;  %2023 = vmatmul.bf16.gmra.mxu2 %v3262_v49  ;;  %2649 = vmatmul.bf16.gmra.mxu0 %v3390_v26  ;;  %v3402_v49 = vor.u32 %v3563_v59, %v3399_v60 }
 0x2a4   : > { %v3646_v2 = vpack.c.bf16 %v1525_v14, %v1523_v9  ;;  %v1488_v33 = vadd.f32 %v1487_v6, %v1399_v35  ;;  %v5886_v9 = vpop.permute.xlu2 %1767 }
 0x2a6   : > { %2112 = vmatmul.bf16.gmra.mxu3 %v3266_v39  ;;  %2738 = vmatmul.bf16.gmra.mxu1 %v3394_v25  ;;  %3834 = vst [vmem:[%s5670_s20 + $0x60] sm:$0xff] %v3646_v2   ;;  %v1438_v11 = vpop.f32.mrf.mxu2  ;;  %v5890_v14 = vpop.permute.xlu1 %1787 }
 0x2a7   : > { %v1439_v30 = vadd.f32 %v1438_v11, %v5625_v51  ;;  %v3270_v51 = vor.u32 %v3532_v36, %v3269_v20  ;;  %v3566_v20 = vld [vmem:[%s6319_s5 + $0x74] sm:$0xf0] }
 0x2a8   : > { %v1400_v43 = vpop.f32.mrf.mxu0 }
 0x2a9   : > { %v1527_v1 = vpop.f32.mrf.mxu3  ;;  %v1401_v56 = vadd.f32 %v1400_v43, %v5462_v54  ;;  %v3397_v54 = vld [vmem:[%s6319_s5 + $0x60] sm:$0xf] }
 0x2aa   : > { %v3398_v45 = vor.u32 %v3564_v63, %v3397_v54  ;;  %v1528_v26 = vadd.f32 %v1527_v1, %v1439_v30  ;;  %v3279_v54 = vld [vmem:[%s6318_s4 + $0x78] sm:$0xf0]  ;;  %v3565_v63 = vld [vmem:[%s6319_s5 + $0x74] sm:$0xf] }
 0x2ab   : > { %v1489_v28 = vpop.f32.mrf.mxu1  ;;  %v3407_v30 = vld [vmem:[%s6319_s5 + $0x78] sm:$0xf0] }
 0x2ac   : > { %v1490_v16 = vadd.f32 %v1489_v28, %v1401_v56  ;;  %v3277_v28 = vld [vmem:[%s6318_s4 + $0x70] sm:$0xf] }
 0x2ae   : > { %v3611_v13 = vpack.c.bf16 %v1490_v16, %v1488_v33  ;;  %v1440_v38 = vpop.f32.mrf.mxu2  ;;  %v5893_v33 = vpop.permute.xlu0 %1792  ;;  %v3533_v16 = vld [vmem:[%s6318_s4 + $0x74] sm:$0xf] }
 0x2af   : > { %v1441_v57 = vadd.f32 %v1440_v38, %v5679_v19 }
 0x2b0   : > { %3827 = vst [vmem:[%s5670_s20 + $0x28] sm:$0xff] %v3611_v13   ;;  %v1403_v3 = vpop.f32.mrf.mxu0  ;;  %v5920_v13 = vpop.permute.xlu2 %1782 }
 0x2b1   : > { %v1529_v37 = vpop.f32.mrf.mxu3  ;;  %v1404_v19 = vadd.f32 %v1403_v3, %v5509_v53  ;;  %v3534_v53 = vld [vmem:[%s6318_s4 + $0x74] sm:$0xf0] }
 0x2b2   : > { %v1530_v52 = vadd.f32 %v1529_v37, %v1441_v57  ;;  %v3278_v60 = vor.u32 %v3534_v53, %v3277_v28  ;;  %v5924_v57 = vpop.permute.xlu1 %1802  ;;  %v3535_v28 = vld [vmem:[%s6318_s4 + $0x84] sm:$0xf]  ;;  %v3568_v53 = vld [vmem:[%s6319_s5 + $0x84] sm:$0xf0] }
 0x2b3   : > { %v1492_v39 = vpop.f32.mrf.mxu1  ;;  %2028 = vmatmul.bf16.gmra.mxu2 %v3270_v51  ;;  %2654 = vmatmul.bf16.gmra.mxu0 %v3398_v45  ;;  %v3282_v51 = vor.u32 %v3533_v16, %v3279_v54  ;;  %v3410_v45 = vor.u32 %v3565_v63, %v3407_v30 }
 0x2b4   : > { %v3651_v25 = vpack.c.bf16 %v1530_v52, %v1528_v26  ;;  %v1493_v11 = vadd.f32 %v1492_v39, %v1404_v19 }
 0x2b6   : > { %2117 = vmatmul.bf16.gmra.mxu3 %v3274_v41  ;;  %2743 = vmatmul.bf16.gmra.mxu1 %v3402_v49  ;;  %3835 = vst [vmem:[%s5670_s20 + $0x68] sm:$0xff] %v3651_v25   ;;  %v1443_v6 = vpop.f32.mrf.mxu2  ;;  %v5926_v52 = vpop.permute.xlu0 %1807 }
 0x2b7   : > { %v1444_v36 = vadd.f32 %v1443_v6, %v5648_v21 }
 0x2b8   : > { %v1405_v35 = vpop.f32.mrf.mxu0  ;;  %v5930_v19 = vpop.permute.xlu2 %1797 }
 0x2b9   : > { %v1532_v2 = vpop.f32.mrf.mxu3  ;;  %v1406_v1 = vadd.f32 %v1405_v35, %v5472_v46  ;;  %v3405_v46 = vld [vmem:[%s6319_s5 + $0x70] sm:$0xf] }
 0x2ba   : > { %v3406_v38 = vor.u32 %v3566_v20, %v3405_v46  ;;  %v1533_v3 = vadd.f32 %v1532_v2, %v1444_v36  ;;  %v3287_v20 = vld [vmem:[%s6318_s4 + $0x88] sm:$0xf0]  ;;  %v3567_v36 = vld [vmem:[%s6319_s5 + $0x84] sm:$0xf] }
 0x2bb   : > { %v1494_v43 = vpop.f32.mrf.mxu1 }
 0x2bc   : > { %v1495_v56 = vadd.f32 %v1494_v43, %v1406_v1  ;;  %v5933_v1 = vpop.permute.xlu1 %1817 }
 0x2be   : > { %v3616_v24 = vpack.c.bf16 %v1495_v56, %v1493_v11  ;;  %v1445_v58 = vpop.f32.mrf.mxu2  ;;  %v3285_v56 = vld [vmem:[%s6318_s4 + $0x80] sm:$0xf]  ;;  %v5960_v54 = vpop.permute.xlu0 %1822 }
 0x2bf   : > { %v1446_v59 = vadd.f32 %v1445_v58, %v5674_v31 }
 0x2c0   : > { %3828 = vst [vmem:[%s5670_s20 + $0x30] sm:$0xff] %v3616_v24   ;;  %v1408_v37 = vpop.f32.mrf.mxu0  ;;  %v3415_v24 = vld [vmem:[%s6319_s5 + $0x88] sm:$0xf0] }
 0x2c1   : > { %v1534_v21 = vpop.f32.mrf.mxu3  ;;  %v1409_v31 = vadd.f32 %v1408_v37, %v5507_v29  ;;  %v3536_v29 = vld [vmem:[%s6318_s4 + $0x84] sm:$0xf0] }
 0x2c2   : > { %v1535_v41 = vadd.f32 %v1534_v21, %v1446_v59  ;;  %v3286_v58 = vor.u32 %v3536_v29, %v3285_v56  ;;  %v3538_v56 = vld [vmem:[%s6318_s4 + $0x94] sm:$0xf0] }
 0x2c3   : > { %v1497_v49 = vpop.f32.mrf.mxu1  ;;  %2033 = vmatmul.bf16.gmra.mxu2 %v3278_v60  ;;  %2659 = vmatmul.bf16.gmra.mxu0 %v3406_v38  ;;  %v3290_v60 = vor.u32 %v3535_v28, %v3287_v20  ;;  %v3418_v38 = vor.u32 %v3567_v36, %v3415_v24  ;;  %v3537_v28 = vld [vmem:[%s6318_s4 + $0x94] sm:$0xf]  ;;  %v3295_v20 = vld [vmem:[%s6318_s4 + $0x98] sm:$0xf0] }
 0x2c4   : > { %v3656_v26 = vpack.c.bf16 %v1535_v41, %v1533_v3  ;;  %v1498_v35 = vadd.f32 %v1497_v49, %v1409_v31  ;;  %v5964_v3 = vpop.permute.xlu2 %1812  ;;  %v2299_v49 = vpop.permute.xlu1 %2298  ;;  %v3569_v36 = vld [vmem:[%s6319_s5 + $0x94] sm:$0xf]  ;;  %v3423_v24 = vld [vmem:[%s6319_s5 + $0x98] sm:$0xf0] }
 0x2c6   : > { %2122 = vmatmul.bf16.gmra.mxu3 %v3282_v51  ;;  %2748 = vmatmul.bf16.gmra.mxu1 %v3410_v45  ;;  %3836 = vst [vmem:[%s5670_s20 + $0x70] sm:$0xff] %v3656_v26   ;;  %v1448_v39 = vpop.f32.mrf.mxu2 }
 0x2c7   : > { %v1449_v16 = vadd.f32 %v1448_v39, %v5722_v7  ;;  %v2304_v39 = vpop.permute.xlu0 %2303 }
 0x2c8   : > { %v1410_v6 = vpop.f32.mrf.mxu0 }
 0x2c9   : > { %v1537_v25 = vpop.f32.mrf.mxu3  ;;  %v1411_v2 = vadd.f32 %v1410_v6, %v5539_v48  ;;  %v3413_v48 = vld [vmem:[%s6319_s5 + $0x80] sm:$0xf] }
 0x2ca   : > { %v3414_v59 = vor.u32 %v3568_v53, %v3413_v48  ;;  %v1538_v37 = vadd.f32 %v1537_v25, %v1449_v16  ;;  %v3421_v48 = vld [vmem:[%s6319_s5 + $0x90] sm:$0xf]  ;;  %v3570_v53 = vld [vmem:[%s6319_s5 + $0x94] sm:$0xf0] }
 0x2cb   : > { %v1499_v11 = vpop.f32.mrf.mxu1 }
 0x2cc   : > { %v1500_v43 = vadd.f32 %v1499_v11, %v1411_v2  ;;  %v5973_v29 = vpop.permute.xlu2 %1827 }
 0x2ce   : > { %v3621_v46 = vpack.c.bf16 %v1500_v43, %v1498_v35  ;;  %v1450_v63 = vpop.f32.mrf.mxu2  ;;  %v3293_v43 = vld [vmem:[%s6318_s4 + $0x90] sm:$0xf] }
 0x2cf   : > { %v1451_v30 = vadd.f32 %v1450_v63, %v5689_v22 }
 0x2d0   : > { %3829 = vst [vmem:[%s5670_s20 + $0x38] sm:$0xff] %v3621_v46   ;;  %v2625_v21 = vpop.f32.mrf.mxu0 }
 0x2d1   : > { %v1539_v7 = vpop.f32.mrf.mxu3  ;;  %v2626_v22 = vadd.f32 %v2625_v21, %v2299_v49  ;;  %v3298_v21 = vor.u32 %v3537_v28, %v3295_v20  ;;  %v3572_v28 = vld [vmem:[%s6319_s5 + $0xa4] sm:$0xf0]  ;;  %v3431_v20 = vld [vmem:[%s6319_s5 + $0xa8] sm:$0xf0] }
 0x2d2   : > { %v1540_v51 = vadd.f32 %v1539_v7, %v1451_v30  ;;  %v3294_v7 = vor.u32 %v3538_v56, %v3293_v43  ;;  %v3539_v43 = vld [vmem:[%s6318_s4 + $0xa4] sm:$0xf]  ;;  %v3429_v56 = vld [vmem:[%s6319_s5 + $0xa0] sm:$0xf] }
 0x2d3   : > { %v2714_v45 = vpop.f32.mrf.mxu1  ;;  %2038 = vmatmul.bf16.gmra.mxu2 %v3286_v58  ;;  %2664 = vmatmul.bf16.gmra.mxu0 %v3414_v59  ;;  %v3422_v58 = vor.u32 %v3570_v53, %v3421_v48 }
 0x2d4   : > { %v3661_v41 = vpack.c.bf16 %v1540_v51, %v1538_v37  ;;  %v2715_v35 = vadd.f32 %v2714_v45, %v2626_v22 }
 0x2d6   : > { %2127 = vmatmul.bf16.gmra.mxu3 %v3290_v60  ;;  %2753 = vmatmul.bf16.gmra.mxu1 %v3418_v38  ;;  %3837 = vst [vmem:[%s5670_s20 + $0x78] sm:$0xff] %v3661_v41   ;;  %v1999_v26 = vpop.f32.mrf.mxu2  ;;  %v3426_v60 = vor.u32 %v3569_v36, %v3423_v24  ;;  %v2309_v41 = vpop.permute.xlu2 %2308  ;;  %s4066_s20 = scalar_lea.hbm %s6384_s13, 512 }
 0x2d7   : > { %v2000_v16 = vadd.f32 %v1999_v26, %v5692_v47  ;;  %v2314_v26 = vpop.permute.xlu1 %2313  ;;  %p4068_p8 = scmp.lt.s32.totalorder %s4066_s20, %s4062_s11 }
 0x2d8   : > { %v2627_v6 = vpop.f32.mrf.mxu0 }
 0x2d9   : > { %v2088_v31 = vpop.f32.mrf.mxu3  ;;  %v2628_v2 = vadd.f32 %v2627_v6, %v2304_v39  ;;  %p4069_p10 = por %p4068_p8, %p4067_p7 }
 0x2da   : > { %v2089_v38 = vadd.f32 %v2088_v31, %v2000_v16  ;;  %v3303_v16 = vld [vmem:[%s6318_s4 + $0xa8] sm:$0xf0] }
 0x2db   : > { %v2716_v25 = vpop.f32.mrf.mxu1  ;;  %p4070_p11 = pnand %p4069_p10, %p4065_p6 }
 0x2dc   : > { %v2717_v11 = vadd.f32 %v2716_v25, %v2628_v2  ;;  %v3301_v25 = vld [vmem:[%s6318_s4 + $0xa0] sm:$0xf] }
 0x2de   : > { %v3746_v46 = vpack.c.bf16 %v2717_v11, %v2715_v35  ;;  %v2001_v63 = vpop.f32.mrf.mxu2  ;;  %v3540_v11 = vld [vmem:[%s6318_s4 + $0xa4] sm:$0xf0] }
 0x2df   : > { %v2002_v47 = vadd.f32 %v2001_v63, %v5732_v18 }
 0x2e0   : > { %3747 = vst [vmem:[%s5995_s15] sm:$0xff] %v3746_v46   ;;  %v2630_v59 = vpop.f32.mrf.mxu0  ;;  %v3571_v46 = vld [vmem:[%s6319_s5 + $0xa4] sm:$0xf] }
 0x2e1   : > { %v2090_v30 = vpop.f32.mrf.mxu3  ;;  %v2631_v49 = vadd.f32 %v2630_v59, %v2309_v41 }
 0x2e2   : > { %v2091_v37 = vadd.f32 %v2090_v30, %v2002_v47  ;;  %v3430_v47 = vor.u32 %v3572_v28, %v3429_v56  ;;  %v3311_v56 = vld [vmem:[%s6318_s4 + $0xb8] sm:$0xf0]  ;;  %v3573_v28 = vld [vmem:[%s6319_s5 + $0xb4] sm:$0xf] }
 0x2e3   : > { %v2719_v51 = vpop.f32.mrf.mxu1  ;;  %2043 = vmatmul.bf16.gmra.mxu2 %v3294_v7  ;;  %2669 = vmatmul.bf16.gmra.mxu0 %v3422_v58  ;;  %v3306_v7 = vor.u32 %v3539_v43, %v3303_v16  ;;  %v3434_v58 = vor.u32 %v3571_v46, %v3431_v20 }
 0x2e4   : > { %v3666_v45 = vpack.c.bf16 %v2091_v37, %v2089_v38  ;;  %v2720_v35 = vadd.f32 %v2719_v51, %v2631_v49  ;;  %v2319_v37 = vpop.permute.xlu0 %2318 }
 0x2e6   : > { %2132 = vmatmul.bf16.gmra.mxu3 %v3298_v21  ;;  %2758 = vmatmul.bf16.gmra.mxu1 %v3426_v60  ;;  %3667 = vst [vmem:[%s6000_s16] sm:$0xff] %v3666_v45   ;;  %v2004_v18 = vpop.f32.mrf.mxu2 }
 0x2e7   : > { %v2005_v48 = vadd.f32 %v2004_v18, %v5726_v5  ;;  %v3302_v5 = vor.u32 %v3540_v11, %v3301_v25  ;;  %v3574_v25 = vld [vmem:[%s6319_s5 + $0xb4] sm:$0xf0] }
 0x2e8   : > { %v2632_v39 = vpop.f32.mrf.mxu0 }
 0x2e9   : > { %v2093_v22 = vpop.f32.mrf.mxu3  ;;  %v2633_v6 = vadd.f32 %v2632_v39, %v2314_v26 }
 0x2ea   : > { %v2094_v59 = vadd.f32 %v2093_v22, %v2005_v48  ;;  %v3309_v22 = vld [vmem:[%s6318_s4 + $0xb0] sm:$0xf]  ;;  %v3439_v48 = vld [vmem:[%s6319_s5 + $0xb8] sm:$0xf0] }
 0x2eb   : > { %v2721_v31 = vpop.f32.mrf.mxu1 }
 0x2ec   : > { %v2722_v2 = vadd.f32 %v2721_v31, %v2633_v6  ;;  %v3542_v31 = vld [vmem:[%s6318_s4 + $0xb4] sm:$0xf0] }
 0x2ee   : > { %v3751_v53 = vpack.c.bf16 %v2722_v2, %v2720_v35  ;;  %v2006_v36 = vpop.f32.mrf.mxu2  ;;  %v3541_v35 = vld [vmem:[%s6318_s4 + $0xb4] sm:$0xf]  ;;  %v3437_v2 = vld [vmem:[%s6319_s5 + $0xb0] sm:$0xf] }
 0x2ef   : > { %v2007_v24 = vadd.f32 %v2006_v36, %v5728_v40  ;;  %v2324_v40 = vpop.permute.xlu2 %2323  ;;  %v3438_v20 = vor.u32 %v3574_v25, %v3437_v2  ;;  %v3447_v2 = vld [vmem:[%s6319_s5 + $0xc8] sm:$0xf0] }
 0x2f0   : > { %3853 = vst [vmem:[%s5995_s15 + $0x8] sm:$0xff] %v3751_v53   ;;  %v2635_v30 = vpop.f32.mrf.mxu0 }
 0x2f1   : > { %v2095_v63 = vpop.f32.mrf.mxu3  ;;  %v2636_v45 = vadd.f32 %v2635_v30, %v2319_v37 }
 0x2f2   : > { %v2096_v21 = vadd.f32 %v2095_v63, %v2007_v24  ;;  %v3314_v24 = vor.u32 %v3541_v35, %v3311_v56  ;;  %v3442_v63 = vor.u32 %v3573_v28, %v3439_v48  ;;  %v3575_v35 = vld [vmem:[%s6319_s5 + $0xc4] sm:$0xf] }
 0x2f3   : > { %v2724_v60 = vpop.f32.mrf.mxu1  ;;  %2048 = vmatmul.bf16.gmra.mxu2 %v3302_v5  ;;  %2674 = vmatmul.bf16.gmra.mxu0 %v3430_v47 }
 0x2f4   : > { %v3671_v38 = vpack.c.bf16 %v2096_v21, %v2094_v59  ;;  %v2725_v39 = vadd.f32 %v2724_v60, %v2636_v45 }
 0x2f6   : > { %2137 = vmatmul.bf16.gmra.mxu3 %v3306_v7  ;;  %2763 = vmatmul.bf16.gmra.mxu1 %v3434_v58  ;;  %3838 = vst [vmem:[%s6000_s16 + $0x8] sm:$0xff] %v3671_v38   ;;  %v2009_v51 = vpop.f32.mrf.mxu2  ;;  %v2329_v58 = vpop.permute.xlu1 %2328 }
 0x2f7   : > { %v2010_v11 = vadd.f32 %v2009_v51, %v5766_v44  ;;  %v3310_v44 = vor.u32 %v3542_v31, %v3309_v22  ;;  %v3319_v31 = vld [vmem:[%s6318_s4 + $0xc8] sm:$0xf0] }
 0x2f8   : > { %v2637_v18 = vpop.f32.mrf.mxu0 }
 0x2f9   : > { %v2098_v41 = vpop.f32.mrf.mxu3  ;;  %v2638_v49 = vadd.f32 %v2637_v18, %v2324_v40  ;;  %v3544_v18 = vld [vmem:[%s6318_s4 + $0xc4] sm:$0xf0] }
 0x2fa   : > { %v2099_v5 = vadd.f32 %v2098_v41, %v2010_v11  ;;  %v3317_v41 = vld [vmem:[%s6318_s4 + $0xc0] sm:$0xf] }
 0x2fb   : > { %v2726_v26 = vpop.f32.mrf.mxu1 }
 0x2fc   : > { %v2727_v6 = vadd.f32 %v2726_v26, %v2638_v49  ;;  %v3543_v49 = vld [vmem:[%s6318_s4 + $0xc4] sm:$0xf]  ;;  %v3445_v26 = vld [vmem:[%s6319_s5 + $0xc0] sm:$0xf] }
 0x2fd   : > { %v3322_v48 = vor.u32 %v3543_v49, %v3319_v31 }
 0x2fe   : > { %v3756_v43 = vpack.c.bf16 %v2727_v6, %v2725_v39  ;;  %v2011_v53 = vpop.f32.mrf.mxu2  ;;  %v3576_v39 = vld [vmem:[%s6319_s5 + $0xc4] sm:$0xf0] }
 0x2ff   : > { %v2012_v16 = vadd.f32 %v2011_v53, %v5735_v55  ;;  %v2334_v55 = vpop.permute.xlu0 %2333  ;;  %v3446_v56 = vor.u32 %v3576_v39, %v3445_v26  ;;  %v3450_v53 = vor.u32 %v3575_v35, %v3447_v2 }
 0x300   : > { %3854 = vst [vmem:[%s5995_s15 + $0x10] sm:$0xff] %v3756_v43   ;;  %v2640_v36 = vpop.f32.mrf.mxu0 }
 0x301   : > { %v2100_v46 = vpop.f32.mrf.mxu3  ;;  %v2641_v21 = vadd.f32 %v2640_v36, %v2329_v58  ;;  %v2339_v36 = vpop.permute.xlu2 %2338 }
 0x302   : > { %v2101_v47 = vadd.f32 %v2100_v46, %v2012_v16 }
 0x303   : > { %v2729_v30 = vpop.f32.mrf.mxu1  ;;  %2053 = vmatmul.bf16.gmra.mxu2 %v3310_v44  ;;  %2679 = vmatmul.bf16.gmra.mxu0 %v3438_v20 }
 0x304   : > { %v3676_v7 = vpack.c.bf16 %v2101_v47, %v2099_v5  ;;  %v2730_v45 = vadd.f32 %v2729_v30, %v2641_v21  ;;  %v3325_v21 = vld [vmem:[%s6318_s4 + $0xd0] sm:$0xf] }
 0x306   : > { %2142 = vmatmul.bf16.gmra.mxu3 %v3314_v24  ;;  %2768 = vmatmul.bf16.gmra.mxu1 %v3442_v63  ;;  %3839 = vst [vmem:[%s6000_s16 + $0x10] sm:$0xff] %v3676_v7   ;;  %v2014_v59 = vpop.f32.mrf.mxu2 }
 0x307   : > { %v2015_v6 = vadd.f32 %v2014_v59, %v5762_v42  ;;  %v3318_v42 = vor.u32 %v3544_v18, %v3317_v41  ;;  %v3577_v41 = vld [vmem:[%s6319_s5 + $0xd4] sm:$0xf]  ;;  %v3455_v18 = vld [vmem:[%s6319_s5 + $0xd8] sm:$0xf0] }
 0x308   : > { %v2642_v38 = vpop.f32.mrf.mxu0  ;;  %v3458_v35 = vor.u32 %v3577_v41, %v3455_v18 }
 0x309   : > { %v2103_v60 = vpop.f32.mrf.mxu3  ;;  %v2643_v37 = vadd.f32 %v2642_v38, %v2334_v55  ;;  %v3545_v55 = vld [vmem:[%s6318_s4 + $0xd4] sm:$0xf]  ;;  %v3453_v38 = vld [vmem:[%s6319_s5 + $0xd0] sm:$0xf] }
 0x30a   : > { %v2104_v16 = vadd.f32 %v2103_v60, %v2015_v6  ;;  %v3546_v60 = vld [vmem:[%s6318_s4 + $0xd4] sm:$0xf0] }
 0x30b   : > { %v2731_v51 = vpop.f32.mrf.mxu1 }
 0x30c   : > { %v2732_v40 = vadd.f32 %v2731_v51, %v2643_v37  ;;  %v3578_v37 = vld [vmem:[%s6319_s5 + $0xd4] sm:$0xf0] }
 0x30d   : > { %v3454_v6 = vor.u32 %v3578_v37, %v3453_v38 }
 0x30e   : > { %v3761_v22 = vpack.c.bf16 %v2732_v40, %v2730_v45  ;;  %v2016_v25 = vpop.f32.mrf.mxu2  ;;  %v3327_v40 = vld [vmem:[%s6318_s4 + $0xd8] sm:$0xf0] }
 0x30f   : > { %v2017_v11 = vadd.f32 %v2016_v25, %v5781_v32  ;;  %v2344_v32 = vpop.permute.xlu1 %2343  ;;  %v3330_v31 = vor.u32 %v3545_v55, %v3327_v40 }
 0x310   : > { %3855 = vst [vmem:[%s5995_s15 + $0x18] sm:$0xff] %v3761_v22   ;;  %v2645_v28 = vpop.f32.mrf.mxu0 }
 0x311   : > { %v2105_v43 = vpop.f32.mrf.mxu3  ;;  %v2646_v63 = vadd.f32 %v2645_v28, %v2339_v36  ;;  %v3333_v36 = vld [vmem:[%s6318_s4 + $0xe0] sm:$0xf] }
 0x312   : > { %v2106_v46 = vadd.f32 %v2105_v43, %v2017_v11 }
 0x313   : > { %v2734_v44 = vpop.f32.mrf.mxu1  ;;  %2058 = vmatmul.bf16.gmra.mxu2 %v3318_v42  ;;  %2684 = vmatmul.bf16.gmra.mxu0 %v3446_v56  ;;  %v2349_v42 = vpop.permute.xlu0 %2348 }
 0x314   : > { %v3681_v20 = vpack.c.bf16 %v2106_v46, %v2104_v16  ;;  %v2735_v58 = vadd.f32 %v2734_v44, %v2646_v63  ;;  %v3547_v63 = vld [vmem:[%s6318_s4 + $0xe4] sm:$0xf] }
 0x316   : > { %2147 = vmatmul.bf16.gmra.mxu3 %v3322_v48  ;;  %2773 = vmatmul.bf16.gmra.mxu1 %v3450_v53  ;;  %3840 = vst [vmem:[%s6000_s16 + $0x18] sm:$0xff] %v3681_v20   ;;  %v2019_v24 = vpop.f32.mrf.mxu2 }
 0x317   : > { %v2020_v51 = vadd.f32 %v2019_v24, %v5768_v15  ;;  %v3326_v15 = vor.u32 %v3546_v60, %v3325_v21  ;;  %v3548_v24 = vld [vmem:[%s6318_s4 + $0xe4] sm:$0xf0] }
 0x318   : > { %v2647_v47 = vpop.f32.mrf.mxu0 }
 0x319   : > { %v2108_v5 = vpop.f32.mrf.mxu3  ;;  %v2648_v30 = vadd.f32 %v2647_v47, %v2344_v32  ;;  %v3580_v32 = vld [vmem:[%s6319_s5 + $0xe4] sm:$0xf0] }
 0x31a   : > { %v2109_v2 = vadd.f32 %v2108_v5, %v2020_v51  ;;  %v3461_v5 = vld [vmem:[%s6319_s5 + $0xe0] sm:$0xf] }
 0x31b   : > { %v2736_v7 = vpop.f32.mrf.mxu1  ;;  %v3462_v38 = vor.u32 %v3580_v32, %v3461_v5 }
 0x31c   : > { %v2737_v59 = vadd.f32 %v2736_v7, %v2648_v30  ;;  %v3335_v7 = vld [vmem:[%s6318_s4 + $0xe8] sm:$0xf0] }
 0x31d   : > { %v3338_v51 = vor.u32 %v3547_v63, %v3335_v7 }
 0x31e   : > { %v3766_v45 = vpack.c.bf16 %v2737_v59, %v2735_v58  ;;  %v2021_v49 = vpop.f32.mrf.mxu2  ;;  %v3579_v58 = vld [vmem:[%s6319_s5 + $0xe4] sm:$0xf]  ;;  %v3463_v59 = vld [vmem:[%s6319_s5 + $0xe8] sm:$0xf0] }
 0x31f   : > { %v2022_v26 = vadd.f32 %v2021_v49, %v5772_v23  ;;  %v2354_v23 = vpop.permute.xlu2 %2353 }
 0x320   : > { %3856 = vst [vmem:[%s5995_s15 + $0x20] sm:$0xff] %v3766_v45   ;;  %v2650_v22 = vpop.f32.mrf.mxu0  ;;  %v3466_v45 = vor.u32 %v3579_v58, %v3463_v59 }
 0x321   : > { %v2110_v39 = vpop.f32.mrf.mxu3  ;;  %v2651_v28 = vadd.f32 %v2650_v22, %v2349_v42  ;;  %v3549_v42 = vld [vmem:[%s6318_s4 + $0xf4] sm:$0xf] }
 0x322   : > { %v2111_v25 = vadd.f32 %v2110_v39, %v2022_v26  ;;  %v2359_v26 = vpop.permute.xlu1 %2358 }
 0x323   : > { %v2739_v11 = vpop.f32.mrf.mxu1  ;;  %2063 = vmatmul.bf16.gmra.mxu2 %v3326_v15  ;;  %2689 = vmatmul.bf16.gmra.mxu0 %v3454_v6 }
 0x324   : > { %v3686_v43 = vpack.c.bf16 %v2111_v25, %v2109_v2  ;;  %v2740_v44 = vadd.f32 %v2739_v11, %v2651_v28  ;;  %v3341_v11 = vld [vmem:[%s6318_s4 + $0xf0] sm:$0xf]  ;;  %v3582_v28 = vld [vmem:[%s6319_s5 + $0xf4] sm:$0xf0] }
 0x326   : > { %2152 = vmatmul.bf16.gmra.mxu3 %v3330_v31  ;;  %2778 = vmatmul.bf16.gmra.mxu1 %v3458_v35  ;;  %3841 = vst [vmem:[%s6000_s16 + $0x20] sm:$0xff] %v3686_v43   ;;  %v2024_v56 = vpop.f32.mrf.mxu2  ;;  %v3550_v43 = vld [vmem:[%s6318_s4 + $0xf4] sm:$0xf0] }
 0x327   : > { %v2025_v47 = vadd.f32 %v2024_v56, %v5810_v50  ;;  %v3334_v50 = vor.u32 %v3548_v24, %v3333_v36  ;;  %v3469_v56 = vld [vmem:[%s6319_s5 + $0xf0] sm:$0xf]  ;;  %v2369_v59 = vpop.permute.xlu2 %2368 }
 0x328   : > { %v2652_v53 = vpop.f32.mrf.mxu0  ;;  %v3470_v24 = vor.u32 %v3582_v28, %v3469_v56 }
 0x329   : > { %v2113_v48 = vpop.f32.mrf.mxu3  ;;  %v2653_v16 = vadd.f32 %v2652_v53, %v2354_v23  ;;  %v3343_v53 = vld [vmem:[%s6318_s4 + $0xf8] sm:$0xf0] }
 0x32a   : > { %v2114_v40 = vadd.f32 %v2113_v48, %v2025_v47  ;;  %v3346_v5 = vor.u32 %v3549_v42, %v3343_v53 }
 0x32b   : > { %v2741_v46 = vpop.f32.mrf.mxu1 }
 0x32c   : > { %v2742_v20 = vadd.f32 %v2741_v46, %v2653_v16  ;;  %v3581_v16 = vld [vmem:[%s6319_s5 + $0xf4] sm:$0xf]  ;;  %v3471_v46 = vld [vmem:[%s6319_s5 + $0xf8] sm:$0xf0] }
 0x32d   : > { %v3474_v32 = vor.u32 %v3581_v16, %v3471_v46 }
 0x32e   : > { %v3771_v30 = vpack.c.bf16 %v2742_v20, %v2740_v44  ;;  %v2026_v21 = vpop.f32.mrf.mxu2 }
 0x32f   : > { %v2027_v60 = vadd.f32 %v2026_v21, %v5802_v17  ;;  %v2364_v17 = vpop.permute.xlu0 %2363 }
 0x330   : > { %3857 = vst [vmem:[%s5995_s15 + $0x28] sm:$0xff] %v3771_v30   ;;  %v2655_v37 = vpop.f32.mrf.mxu0 }
 0x331   : > { %v2115_v55 = vpop.f32.mrf.mxu3  ;;  %v2656_v15 = vadd.f32 %v2655_v37, %v2359_v26 }
 0x332   : > { %v2116_v41 = vadd.f32 %v2115_v55, %v2027_v60  ;;  %v2374_v55 = vpop.permute.xlu1 %2373 }
 0x333   : > { %v2744_v18 = vpop.f32.mrf.mxu1  ;;  %2068 = vmatmul.bf16.gmra.mxu2 %v3334_v50  ;;  %2694 = vmatmul.bf16.gmra.mxu0 %v3462_v38 }
 0x334   : > { %v3691_v49 = vpack.c.bf16 %v2116_v41, %v2114_v40  ;;  %v2745_v2 = vadd.f32 %v2744_v18, %v2656_v15 }
 0x336   : > { %2157 = vmatmul.bf16.gmra.mxu3 %v3338_v51  ;;  %2783 = vmatmul.bf16.gmra.mxu1 %v3466_v45  ;;  %3842 = vst [vmem:[%s6000_s16 + $0x28] sm:$0xff] %v3691_v49   ;;  %v2029_v39 = vpop.f32.mrf.mxu2 }
 0x337   : > { %v2030_v48 = vadd.f32 %v2029_v39, %v5806_v8  ;;  %v3342_v8 = vor.u32 %v3550_v43, %v3341_v11 }
 0x338   : > { %v2657_v22 = vpop.f32.mrf.mxu0 }
 0x339   : > { %v2118_v6 = vpop.f32.mrf.mxu3  ;;  %v2658_v31 = vadd.f32 %v2657_v22, %v2364_v17 }
 0x33a   : > { %v2119_v47 = vadd.f32 %v2118_v6, %v2030_v48 }
 0x33b   : > { %v2746_v35 = vpop.f32.mrf.mxu1 }
 0x33c   : > { %v2747_v25 = vadd.f32 %v2746_v35, %v2658_v31  ;;  %v2379_v31 = vpop.permute.xlu0 %2378 }
 0x33e   : > { %v3776_v23 = vpack.c.bf16 %v2747_v25, %v2745_v2  ;;  %v2031_v44 = vpop.f32.mrf.mxu2  ;;  %v2384_v25 = vpop.permute.xlu2 %2383 }
 0x33f   : > { %v2032_v20 = vadd.f32 %v2031_v44, %v5844_v27 }
 0x340   : > { %3858 = vst [vmem:[%s5995_s15 + $0x30] sm:$0xff] %v3776_v23   ;;  %v2660_v63 = vpop.f32.mrf.mxu0 }
 0x341   : > { %v2120_v36 = vpop.f32.mrf.mxu3  ;;  %v2661_v60 = vadd.f32 %v2660_v63, %v2369_v59 }
 0x342   : > { %v2121_v30 = vadd.f32 %v2120_v36, %v2032_v20 }
 0x343   : > { %v2749_v7 = vpop.f32.mrf.mxu1  ;;  %2073 = vmatmul.bf16.gmra.mxu2 %v3342_v8  ;;  %2699 = vmatmul.bf16.gmra.mxu0 %v3470_v24 }
 0x344   : > { %v3696_v58 = vpack.c.bf16 %v2121_v30, %v2119_v47  ;;  %v2750_v51 = vadd.f32 %v2749_v7, %v2661_v60 }
 0x346   : > { %2162 = vmatmul.bf16.gmra.mxu3 %v3346_v5  ;;  %2788 = vmatmul.bf16.gmra.mxu1 %v3474_v32  ;;  %3843 = vst [vmem:[%s6000_s16 + $0x30] sm:$0xff] %v3696_v58   ;;  %v2034_v21 = vpop.f32.mrf.mxu2 }
 0x347   : > { %v2035_v40 = vadd.f32 %v2034_v21, %v5812_v10 }
 0x348   : > { %v2662_v50 = vpop.f32.mrf.mxu0 }
 0x349   : > { %v2123_v27 = vpop.f32.mrf.mxu3  ;;  %v2663_v38 = vadd.f32 %v2662_v50, %v2374_v55 }
 0x34a   : > { %v2124_v15 = vadd.f32 %v2123_v27, %v2035_v40 }
 0x34b   : > { %v2751_v37 = vpop.f32.mrf.mxu1 }
 0x34c   : > { %v2752_v45 = vadd.f32 %v2751_v37, %v2663_v38 }
 0x34e   : > { %v3781_v41 = vpack.c.bf16 %v2752_v45, %v2750_v51  ;;  %v2036_v18 = vpop.f32.mrf.mxu2 }
 0x34f   : > { %v2037_v49 = vadd.f32 %v2036_v18, %v5821_v34 }
 0x350   : > { %3859 = vst [vmem:[%s5995_s15 + $0x38] sm:$0xff] %v3781_v41   ;;  %v2665_v39 = vpop.f32.mrf.mxu0 }
 0x351   : > { %v2125_v26 = vpop.f32.mrf.mxu3  ;;  %v2666_v2 = vadd.f32 %v2665_v39, %v2379_v31 }
 0x352   : > { %v2126_v6 = vadd.f32 %v2125_v26, %v2037_v49 }
 0x353   : > { %v2754_v17 = vpop.f32.mrf.mxu1 }
 0x354   : > { %v3701_v22 = vpack.c.bf16 %v2126_v6, %v2124_v15  ;;  %v2755_v34 = vadd.f32 %v2754_v17, %v2666_v2 }
 0x356   : > { %3844 = vst [vmem:[%s6000_s16 + $0x38] sm:$0xff] %v3701_v22   ;;  %v2039_v35 = vpop.f32.mrf.mxu2 }
 0x357   : > { %v2040_v28 = vadd.f32 %v2039_v35, %v5853_v12 }
 0x358   : > { %v2667_v11 = vpop.f32.mrf.mxu0 }
 0x359   : > { %v2128_v10 = vpop.f32.mrf.mxu3  ;;  %v2668_v43 = vadd.f32 %v2667_v11, %v2384_v25 }
 0x35b   : > { %v2756_v42 = vpop.f32.mrf.mxu1 }
 0x35c   : > { %v2757_v56 = vadd.f32 %v2756_v42, %v2668_v43 }
 0x35e   : > { %v3786_v48 = vpack.c.bf16 %v2757_v56, %v2755_v34  ;;  %v2041_v23 = vpop.f32.mrf.mxu2 }
 0x35f   : > { %v2042_v53 = vadd.f32 %v2041_v23, %v5846_v62 }
 0x360   : > { %3860 = vst [vmem:[%s5995_s15 + $0x40] sm:$0xff] %v3786_v48   ;;  %v2670_v46 = vpop.f32.mrf.mxu0 }
 0x361   : > { %v2130_v16 = vpop.f32.mrf.mxu3 }
 0x362   : > { %4073 = shalt.err (!%p4070_p11)
}
 0x363   : > { %s6343_s9 = smov 64   ;;  %s6345_s28 = smov 128   ;;  %v2129_v62 = vadd.f32 %v2128_v10, %v2040_v28  ;;  %v2131_v12 = vadd.f32 %v2130_v16, %v2042_v53  ;;  %v2759_v44 = vpop.f32.mrf.mxu1  ;;  %v2389_v36 = vpop.permute.xlu1 %2388 }
 0x364   : > { %s6347_s30 = smov 4   ;;  %v2671_v24 = vadd.f32 %v2670_v46, %v2389_v36  ;;  %v2394_v5 = vpop.permute.xlu0 %2393  ;;  %v2399_v40 = vpop.permute.xlu2 %2398  ;;  %s6387_s12 = sld [smem:[#allocation30_spill]] }
 0x365   : > { %3886 = dma.vmem_to_hbm [thread:$0]  (%p4342_p9), %s2883_s29, 2048, %s2885_s10, %s2859_s25, %s6343_s9, %s6345_s28, %s6347_s30   ;;  %v3706_v20 = vpack.c.bf16 %v2131_v12, %v2129_v62 }
 0x366   : > { %v2044_v8 = vpop.f32.mrf.mxu2  ;;  %v2760_v7 = vadd.f32 %v2759_v44, %v2671_v24  ;;  %s6386_s29 = sld [smem:[#allocation15_spill]]  ;;  %s2900_s28 = sshll.u32 %s6000_s16, 4  ;;  %s2901_s28 = int_to_ptr.vmem [resolvable:$true] %s2900_s28 }
 0x367   : > { %3845 = vst [vmem:[%s6000_s16 + $0x40] sm:$0xff] %v3706_v20   ;;  %v2045_v59 = vadd.f32 %v2044_v8, %v5850_v4  ;;  %s6388_s20 = sld [smem:[#allocation31_spill]]  ;;  %s2918_s25 = sshll.u32 %s5995_s15, 4  ;;  %s6246_s25 = int_to_ptr.vmem [resolvable:$true] %s2918_s25 }
 0x368   : > { %v2672_v32 = vpop.f32.mrf.mxu0 }
 0x369   : > { %v2133_v63 = vpop.f32.mrf.mxu3  ;;  %v2673_v47 = vadd.f32 %v2672_v32, %v2394_v5 }
 0x36a   : > { %v2134_v38 = vadd.f32 %v2133_v63, %v2045_v59  ;;  %s2899_s11 = scalar_lea.hbm %s6387_s12, %s6177_s27 }
 0x36b   : > { %v2761_v30 = vpop.f32.mrf.mxu1  ;;  %v2404_v26 = vpop.permute.xlu1 %2403  ;;  %s6239_s30 = sshll.u32 %s2899_s11, 4  ;;  %s2903_s30 = int_to_ptr.hbm [resolvable:$true] %s6239_s30 }
 0x36c   : > { %v2762_v58 = vadd.f32 %v2761_v30, %v2673_v47  ;;  %v2409_v34 = vpop.permute.xlu0 %2408  ;;  %v2414_v23 = vpop.permute.xlu2 %2413  ;;  %s2863_s9 = sand.u32 1, %s6386_s29   ;;  %s4088_s29 = sshra.s32 %s2903_s30, 4  ;;  %s4089_s29 = int_to_ptr.hbm [resolvable:$true] %s4088_s29 }
 0x36d   : > { %s6389_s26 = smov %s6388_s20  ;;  %s2917_s21 = scalar_lea.hbm %s6388_s20, %s6177_s27 }
 0x36e   : > { %v3791_v21 = vpack.c.bf16 %v2762_v58, %v2760_v7  ;;  %v2046_v60 = vpop.f32.mrf.mxu2  ;;  %s6241_s10 = sshll.u32 %s2917_s21, 4  ;;  %s6249_s27 = scalar_lea.sflag [#allocation7], %s2863_s9 }
 0x36f   : > { %v2047_v27 = vadd.f32 %v2046_v60, %v5886_v9  ;;  %6390 = sst [smem:[#allocation26_spill]] %s6241_s10  ;;  %s4090_s11 = scalar_lea.hbm %s4089_s29, 128 }
 0x370   : > { %3861 = vst [vmem:[%s5995_s15 + $0x48] sm:$0xff] %v3791_v21   ;;  %v2675_v50 = vpop.f32.mrf.mxu0  ;;  %p4091_p13 = scmp.ne.s32.totalorder %s4089_s29, %s4090_s11  ;;  %p4095_p2 = scmp.lt.s32.totalorder %s4089_s29, %s6387_s12 }
 0x371   : > { %v2135_v55 = vpop.f32.mrf.mxu3  ;;  %v2676_v18 = vadd.f32 %v2675_v50, %v2399_v40 }
 0x372   : > { %v2136_v37 = vadd.f32 %v2135_v55, %v2047_v27  ;;  %p4092_p0 = pnand %p4091_p13, %p4342_p9 }
 0x373   : > { %v2764_v51 = vpop.f32.mrf.mxu1  ;;  %v2419_v47 = vpop.permute.xlu1 %2418 }
 0x374   : > { %v3711_v45 = vpack.c.bf16 %v2136_v37, %v2134_v38  ;;  %v2765_v6 = vadd.f32 %v2764_v51, %v2676_v18  ;;  %v2424_v59 = vpop.permute.xlu0 %2423  ;;  %p4093_p1 = pneg %p4092_p0 }
 0x376   : > { %3846 = vst [vmem:[%s6000_s16 + $0x48] sm:$0xff] %v3711_v45   ;;  %v2049_v41 = vpop.f32.mrf.mxu2 }
 0x377   : > { %v2050_v9 = vadd.f32 %v2049_v41, %v5861_v61 }
 0x378   : > { %v2677_v39 = vpop.f32.mrf.mxu0 }
 0x379   : > { %v2138_v49 = vpop.f32.mrf.mxu3  ;;  %v2678_v4 = vadd.f32 %v2677_v39, %v2404_v26  ;;  %v2429_v26 = vpop.permute.xlu2 %2428 }
 0x37a   : > { %v2139_v25 = vadd.f32 %v2138_v49, %v2050_v9 }
 0x37b   : > { %v2766_v15 = vpop.f32.mrf.mxu1 }
 0x37c   : > { %v2767_v17 = vadd.f32 %v2766_v15, %v2678_v4 }
 0x37e   : > { %v3796_v22 = vpack.c.bf16 %v2767_v17, %v2765_v6  ;;  %v2051_v31 = vpop.f32.mrf.mxu2  ;;  %v2434_v6 = vpop.permute.xlu1 %2433 }
 0x37f   : > { %v2052_v35 = vadd.f32 %v2051_v31, %v5884_v0 }
 0x380   : > { %3862 = vst [vmem:[%s5995_s15 + $0x50] sm:$0xff] %v3796_v22   ;;  %v2680_v10 = vpop.f32.mrf.mxu0 }
 0x381   : > { %v2140_v2 = vpop.f32.mrf.mxu3  ;;  %v2681_v28 = vadd.f32 %v2680_v10, %v2409_v34 }
 0x382   : > { %v2141_v11 = vadd.f32 %v2140_v2, %v2052_v35 }
 0x383   : > { %v2769_v43 = vpop.f32.mrf.mxu1 }
 0x384   : > { %v3716_v42 = vpack.c.bf16 %v2141_v11, %v2139_v25  ;;  %v2770_v46 = vadd.f32 %v2769_v43, %v2681_v28  ;;  %v2439_v28 = vpop.permute.xlu0 %2438 }
 0x386   : > { %3847 = vst [vmem:[%s6000_s16 + $0x50] sm:$0xff] %v3716_v42   ;;  %v2054_v56 = vpop.f32.mrf.mxu2 }
 0x387   : > { %v2055_v0 = vadd.f32 %v2054_v56, %v5920_v13 }
 0x388   : > { %v2682_v53 = vpop.f32.mrf.mxu0 }
 0x389   : > { %v2143_v48 = vpop.f32.mrf.mxu3  ;;  %v2683_v61 = vadd.f32 %v2682_v53, %v2414_v23 }
 0x38a   : > { %v2144_v24 = vadd.f32 %v2143_v48, %v2055_v0 }
 0x38b   : > { %v2771_v16 = vpop.f32.mrf.mxu1 }
 0x38c   : > { %v2772_v62 = vadd.f32 %v2771_v16, %v2683_v61  ;;  %v2444_v61 = vpop.permute.xlu2 %2443 }
 0x38e   : > { %v3801_v12 = vpack.c.bf16 %v2772_v62, %v2770_v46  ;;  %v2056_v44 = vpop.f32.mrf.mxu2 }
 0x38f   : > { %v2057_v20 = vadd.f32 %v2056_v44, %v5890_v14 }
 0x390   : > { %3863 = vst [vmem:[%s5995_s15 + $0x58] sm:$0xff] %v3801_v12   ;;  %v2685_v8 = vpop.f32.mrf.mxu0 }
 0x391   : > { %v2145_v36 = vpop.f32.mrf.mxu3  ;;  %v2686_v7 = vadd.f32 %v2685_v8, %v2419_v47  ;;  %v2449_v47 = vpop.permute.xlu1 %2448 }
 0x392   : > { %v2146_v63 = vadd.f32 %v2145_v36, %v2057_v20 }
 0x393   : > { %v2774_v5 = vpop.f32.mrf.mxu1 }
 0x394   : > { %v3721_v32 = vpack.c.bf16 %v2146_v63, %v2144_v24  ;;  %v2775_v27 = vadd.f32 %v2774_v5, %v2686_v7 }
 0x396   : > { %3848 = vst [vmem:[%s6000_s16 + $0x58] sm:$0xff] %v3721_v32   ;;  %v2059_v30 = vpop.f32.mrf.mxu2 }
 0x397   : > { %v2060_v14 = vadd.f32 %v2059_v30, %v5893_v33 }
 0x398   : > { %v2687_v21 = vpop.f32.mrf.mxu0 }
 0x399   : > { %v2148_v58 = vpop.f32.mrf.mxu3  ;;  %v2688_v13 = vadd.f32 %v2687_v21, %v2424_v59 }
 0x39a   : > { %v2149_v40 = vadd.f32 %v2148_v58, %v2060_v14  ;;  %v2454_v58 = vpop.permute.xlu0 %2453 }
 0x39b   : > { %v2776_v60 = vpop.f32.mrf.mxu1 }
 0x39c   : > { %v2777_v55 = vadd.f32 %v2776_v60, %v2688_v13 }
 0x39e   : > { %v3806_v50 = vpack.c.bf16 %v2777_v55, %v2775_v27  ;;  %v2061_v38 = vpop.f32.mrf.mxu2 }
 0x39f   : > { %v2062_v37 = vadd.f32 %v2061_v38, %v5930_v19 }
 0x3a0   : > { %3864 = vst [vmem:[%s5995_s15 + $0x60] sm:$0xff] %v3806_v50   ;;  %v2690_v45 = vpop.f32.mrf.mxu0 }
 0x3a1   : > { %v2150_v51 = vpop.f32.mrf.mxu3  ;;  %v2691_v4 = vadd.f32 %v2690_v45, %v2429_v26 }
 0x3a2   : > { %v2151_v41 = vadd.f32 %v2150_v51, %v2062_v37 }
 0x3a3   : > { %v2779_v18 = vpop.f32.mrf.mxu1 }
 0x3a4   : > { %v3726_v49 = vpack.c.bf16 %v2151_v41, %v2149_v40  ;;  %v2780_v22 = vadd.f32 %v2779_v18, %v2691_v4 }
 0x3a6   : > { %3849 = vst [vmem:[%s6000_s16 + $0x60] sm:$0xff] %v3726_v49   ;;  %v2064_v39 = vpop.f32.mrf.mxu2 }
 0x3a7   : > { %v2065_v19 = vadd.f32 %v2064_v39, %v5924_v57 }
 0x3a8   : > { %v2692_v17 = vpop.f32.mrf.mxu0 }
 0x3a9   : > { %v2153_v15 = vpop.f32.mrf.mxu3  ;;  %v2693_v33 = vadd.f32 %v2692_v17, %v2434_v6 }
 0x3aa   : > { %v2154_v43 = vadd.f32 %v2153_v15, %v2065_v19 }
 0x3ab   : > { %v2781_v9 = vpop.f32.mrf.mxu1 }
 0x3ac   : > { %v2782_v31 = vadd.f32 %v2781_v9, %v2693_v33 }
 0x3ae   : > { %v3811_v35 = vpack.c.bf16 %v2782_v31, %v2780_v22  ;;  %v2066_v2 = vpop.f32.mrf.mxu2 }
 0x3af   : > { %v2067_v10 = vadd.f32 %v2066_v2, %v5926_v52 }
 0x3b0   : > { %3865 = vst [vmem:[%s5995_s15 + $0x68] sm:$0xff] %v3811_v35   ;;  %v2695_v11 = vpop.f32.mrf.mxu0 }
 0x3b1   : > { %v2155_v25 = vpop.f32.mrf.mxu3  ;;  %v2696_v23 = vadd.f32 %v2695_v11, %v2439_v28 }
 0x3b2   : > { %v2156_v42 = vadd.f32 %v2155_v25, %v2067_v10 }
 0x3b3   : > { %v2784_v34 = vpop.f32.mrf.mxu1 }
 0x3b4   : > { %v3731_v56 = vpack.c.bf16 %v2156_v42, %v2154_v43  ;;  %v2785_v62 = vadd.f32 %v2784_v34, %v2696_v23 }
 0x3b6   : > { %3850 = vst [vmem:[%s6000_s16 + $0x68] sm:$0xff] %v3731_v56   ;;  %v2069_v48 = vpop.f32.mrf.mxu2 }
 0x3b7   : > { %v2070_v52 = vadd.f32 %v2069_v48, %v5964_v3 }
 0x3b8   : > { %v2697_v16 = vpop.f32.mrf.mxu0 }
 0x3b9   : > { %v2158_v53 = vpop.f32.mrf.mxu3  ;;  %v2698_v57 = vadd.f32 %v2697_v16, %v2444_v61 }
 0x3ba   : > { %v2159_v24 = vadd.f32 %v2158_v53, %v2070_v52 }
 0x3bb   : > { %v2786_v46 = vpop.f32.mrf.mxu1 }
 0x3bc   : > { %v2787_v0 = vadd.f32 %v2786_v46, %v2698_v57 }
 0x3be   : > { %v3816_v12 = vpack.c.bf16 %v2787_v0, %v2785_v62  ;;  %v2071_v44 = vpop.f32.mrf.mxu2 }
 0x3bf   : > { %v2072_v20 = vadd.f32 %v2071_v44, %v5933_v1 }
 0x3c0   : > { %3866 = vst [vmem:[%s5995_s15 + $0x70] sm:$0xff] %v3816_v12   ;;  %v2700_v8 = vpop.f32.mrf.mxu0 }
 0x3c1   : > { %v2160_v36 = vpop.f32.mrf.mxu3  ;;  %v2701_v7 = vadd.f32 %v2700_v8, %v2449_v47 }
 0x3c2   : > { %v2161_v63 = vadd.f32 %v2160_v36, %v2072_v20 }
 0x3c3   : > { %v2789_v5 = vpop.f32.mrf.mxu1 }
 0x3c4   : > { %v3736_v32 = vpack.c.bf16 %v2161_v63, %v2159_v24  ;;  %v2790_v13 = vadd.f32 %v2789_v5, %v2701_v7 }
 0x3c6   : > { %3851 = vst [vmem:[%s6000_s16 + $0x70] sm:$0xff] %v3736_v32   ;;  %v2074_v30 = vpop.f32.mrf.mxu2 }
 0x3c7   : > { %v2075_v27 = vadd.f32 %v2074_v30, %v5960_v54 }
 0x3c8   : > { %v2702_v59 = vpop.f32.mrf.mxu0 }
 0x3c9   : > { %v2163_v3 = vpop.f32.mrf.mxu3  ;;  %v2703_v21 = vadd.f32 %v2702_v59, %v2454_v58 }
 0x3ca   : > { %v2164_v54 = vadd.f32 %v2163_v3, %v2075_v27 }
 0x3cb   : > { %v2791_v1 = vpop.f32.mrf.mxu1 }
 0x3cc   : > { %v2792_v60 = vadd.f32 %v2791_v1, %v2703_v21 }
 0x3ce   : > { %v3821_v55 = vpack.c.bf16 %v2792_v60, %v2790_v13  ;;  %v2076_v14 = vpop.f32.mrf.mxu2 }
 0x3cf   : > { %v2077_v50 = vadd.f32 %v2076_v14, %v5973_v29 }
 0x3d0   : > { %3867 = vst [vmem:[%s5995_s15 + $0x78] sm:$0xff] %v3821_v55   ;;  %s4094_s15 = scalar_lea.hbm %s6387_s12, 512 }
 0x3d1   : > { %v2165_v38 = vpop.f32.mrf.mxu3  ;;  %p4096_p4 = scmp.lt.s32.totalorder %s4094_s15, %s4090_s11 }
 0x3d2   : > { %v2166_v37 = vadd.f32 %v2165_v38, %v2077_v50 }
 0x3d3   : > { %p4097_p3 = por %p4096_p4, %p4095_p2 }
 0x3d4   : > { %v3741_v51 = vpack.c.bf16 %v2166_v37, %v2164_v54 }
 0x3d5   : > { %p4098_p5 = pnand %p4097_p3, %p4093_p1 }
 0x3d6   : > { %3852 = vst [vmem:[%s6000_s16 + $0x78] sm:$0xff] %v3741_v51  }
 0x3d7   : > { %4101 = shalt.err (!%p4098_p5)
}
 0x3d8   : > { %s6391_s16 = smov 4   ;;  %s6392_s9 = smov 128  }
 0x3d9   : > { %s6393_s10 = smov 64   ;;  %s6394_s0 = sld [smem:[#allocation26_spill]] }
 0x3da   : > { %3887 = dma.vmem_to_hbm [thread:$0]  (%p4342_p9), %s2901_s28, 2048, %s2903_s30, %s6249_s27, %s6393_s10, %s6392_s9, %s6391_s16  }
 0x3db   : > { %s4122_s15 = scalar_lea.hbm %s6389_s26, 512 }
 0x3df   : > { %s6395_s1 = int_to_ptr.hbm [resolvable:$true] %s6394_s0 }
 0x3e0   : > { %s4116_s17 = sshra.s32 %s6395_s1, 4  ;;  %s4117_s17 = int_to_ptr.hbm [resolvable:$true] %s4116_s17 }
 0x3e1   : > { %s4118_s19 = scalar_lea.hbm %s4117_s17, 128  ;;  %p4123_p10 = scmp.lt.s32.totalorder %s4117_s17, %s6389_s26 }
 0x3e2   : > { %p4119_p6 = scmp.ne.s32.totalorder %s4117_s17, %s4118_s19  ;;  %p4124_p11 = scmp.lt.s32.totalorder %s4122_s15, %s4118_s19 }
 0x3e4   : > { %p4120_p7 = pnand %p4119_p6, %p4342_p9  ;;  %p4125_p13 = por %p4124_p11, %p4123_p10 }
 0x3e6   : > { %p4121_p8 = pneg %p4120_p7 }
 0x3e8   : > { %p4126_p0 = pnand %p4125_p13, %p4121_p8 }
 0x3ea   : > { %4129 = shalt.err (!%p4126_p0)
}
 0x3eb   : > { %3888 = dma.vmem_to_hbm [thread:$0]  (%p4342_p9), %s6246_s25, 2048, %s6395_s1, %s6249_s27, %s6393_s10, %s6392_s9, %s6391_s16  }
 0x3ec PF: > { %s6396_s28 = sld [smem:[#allocation12_spill]]  ;;  %p3907_p1 = scmp.ge.s32.totalorder %s4204_s24, 2 }
 0x3ee   : > { %p3897_p2 = pnand %p3907_p1, %p4350_p12 }
 0x3f0   : > { %p3898_p4 = pneg %p3897_p2 }
 0x3f2   : > { %s2935_s17 = sand.u32 1, %s6396_s28  }
 0x3f3   : > { %s2936_s19 = scalar_lea.sflag [#allocation4], %s2935_s17 }
 0x3f4   : > { %4167 = dma.done.wait (%p3898_p4), %s2936_s19, 2048  }
 0x3f5   : > { %4169 = vsyncadd (%p3898_p4), %s2936_s19, 4294965248  ;;  %s6398_s14 = sadd.s32 4294967294, %s4204_s24  }
 0x3f6   : > { %s2945_s29 = sand.u32 1, %s6398_s14  }
 0x3f7   : > { %s2946_s11 = scalar_lea.sflag [#allocation7], %s2945_s29 }
 0x3f8   : > { %4171 = dma.done.wait (%p3898_p4), %s2946_s11, 4096  }
 0x3f9   : > { %4173 = vsyncadd (%p3898_p4), %s2946_s11, 4294963200  ;;  %s31_s24 = sadd.s32 1, %s4204_s24   ;;  %s6399_s0 = sld [smem:[#allocation13_spill]] }
 0x3fa   : > { %p28_p9 = scmp.ge.s32.totalorder %s31_s24, 6   ;;  %s6400_s19 = sld [smem:[#allocation20_spill]] }
 0x3fb   : > { %s6401_s10 = sld [smem:[#allocation16_spill]]  ;;  %s6403_s17 = smov %s4180_s18 }
 0x3fc   : > { %s6402_s25 = sld [smem:[#allocation17_spill]]  ;;  %s6405_s20 = smov %s4196_s22 }
 0x3fd   : > { %s6406_s21 = smov %s4200_s23 }
 0x3fe   :  { %30 = sbr.rel (!%p28_p9) target bundleno = 15 (0xf), region = 133 }
 0x3ff   : > { %s6404_s18 = smov %s6399_s0 }
 0x401   : > { %s6407_s22 = smov %s6401_s10 }
 0x402   : > { %s6408_s23 = smov %s6402_s25 }
 0x403   :  { %2962 = vsyncpa [#allocation3], 1 }
 0x404   :  { %2964 = vsyncpa [#allocation3 + $0x1], 1 }
 0x405   :  { %2965 = vsyncpa [#allocation4], 1 }
 0x406   :  { %2967 = vsyncpa [#allocation4 + $0x1], 1 }
 0x407   :  { %2968 = vsyncpa [#allocation7], 1 }
 0x408   :  { %2970 = vsyncpa [#allocation7 + $0x1], 1 }

</bundles_post_ra>
